<compile_context>
chip_gen: v7x
topology: tpu7x:2x2x1
jax: 0.10.0
libtpu: 0.0.40
codegen_flags: <defaults>
</compile_context>

<pallas_src>
import jax
import jax.numpy as jnp
from jax.experimental import pallas as pl
from jax.experimental.pallas import tpu as pltpu


def _hard_sigmoid(x):
    # PyTorch nn.Hardsigmoid: clip(x/6 + 0.5, 0, 1)
    return jnp.clip(x / 6.0 + 0.5, 0.0, 1.0)


def sfm_kernel(x_ref, Wx_ref, Uh_ref, b_ref, Ua_ref, ba_ref, Wp_ref, bp_ref,
               re_ref, im_ref, p_ref):
    T, B, D = x_ref.shape
    H = ba_ref.shape[1]
    F = re_ref.shape[1]

    # Weights/tables loaded once, live across the whole T loop.
    Wx = Wx_ref[...]          # (D, 4H+F)   [W_i | W_ste | W_c | W_o | W_fre]
    Uh = Uh_ref[...]          # (H, 4H+F)   [U_i | U_ste | U_c | U_o | U_fre]
    b = b_ref[...]            # (1, 4H+F)
    Ua = Ua_ref[...]          # (F, H)      U_a column broadcast along H (host-side)
    ba = ba_ref[...]          # (1, H)

    def step(t, carry):
        h, S_re, S_im = carry                        # (B,H), (B,F,H), (B,F,H)
        x_t = x_ref[t]                               # (B, D)

        # ----- fused gate + frequency-gate matmuls: 2 MXU pushes per step -----
        z = (jnp.dot(x_t, Wx, preferred_element_type=jnp.float32)
             + jnp.dot(h, Uh, preferred_element_type=jnp.float32)
             + b)                                    # (B, 4H+F)
        i_g = _hard_sigmoid(z[:, 0 * H:1 * H])       # (B, H)
        ste = _hard_sigmoid(z[:, 1 * H:2 * H])       # (B, H)
        c_a = jnp.tanh(z[:, 2 * H:3 * H])            # (B, H)
        o_g = _hard_sigmoid(z[:, 3 * H:4 * H])       # (B, H)
        fre = _hard_sigmoid(z[:, 4 * H:4 * H + F])   # (B, F)

        c = i_g * c_a                                # (B, H)

        # ----- oscillatory state update in (B, F, H) layout (H on lanes) -----
        f = fre[:, :, None] * ste[:, None, :]        # (B, F, H)
        re = re_ref[t]                               # (F, H)  precomputed cos table
        im = im_ref[t]                               # (F, H)  precomputed sin table
        c_b = c[:, None, :]                          # (B, 1, H)
        S_re = f * S_re + c_b * re[None]
        S_im = f * S_im + c_b * im[None]

        # ----- amplitude -> hidden -----
        A = S_re * S_re + S_im * S_im                # (B, F, H)
        A_a = jnp.sum(A * Ua[None], axis=1)          # (B, H) : sum_f A[b,f,h]*U_a[f]
        a = jnp.tanh(A_a + ba)                       # (B, H)
        h_new = o_g * a                              # (B, H)
        return h_new, S_re, S_im

    h0 = jnp.zeros((B, H), jnp.float32)
    S0 = jnp.zeros((B, F, H), jnp.float32)
    h, _, _ = jax.lax.fori_loop(0, T, step, (h0, S0, S0), unroll=bool(T <= 16))

    # ----- projection once, on the final hidden state (only last p is returned) -----
    p_ref[...] = (jnp.dot(h, Wp_ref[...], preferred_element_type=jnp.float32)
                  + bp_ref[...])


def sfm_forward(x, P):
    B, T, D = x.shape
    H = P["U_i"].shape[0]
    F = P["W_fre"].shape[1]
    O = P["W_p"].shape[1]
    N = 4 * H + F

    # Stack the gate weights (order: i, ste, c, o, fre) so the per-step work is 2 matmuls.
    Wx = jnp.concatenate([P["W_i"], P["W_ste"], P["W_c"], P["W_o"], P["W_fre"]],
                         axis=1).astype(jnp.float32)                       # (D, 4H+F)
    Uh = jnp.concatenate([P["U_i"], P["U_ste"], P["U_c"], P["U_o"], P["U_fre"]],
                         axis=1).astype(jnp.float32)                       # (H, 4H+F)
    b = jnp.concatenate([P["b_i"], P["b_ste"], P["b_c"], P["b_o"],
                         P["b_fre"]])[None, :].astype(jnp.float32)         # (1, 4H+F)
    Ua = jnp.broadcast_to(P["U_a"].astype(jnp.float32), (F, H))            # (F, H)
    ba = P["b_a"][None, :].astype(jnp.float32)                             # (1, H)
    Wp = P["W_p"].astype(jnp.float32)                                      # (H, O)
    bp = P["b_p"][None, :].astype(jnp.float32)                             # (1, O)

    # Time-major input, fully resident in VMEM (T*B*D*4 bytes ~ KBs here).
    x_tbd = jnp.transpose(x, (1, 0, 2)).astype(jnp.float32)                # (T, B, D)

    # Precomputed oscillator tables: omega = 2*pi*(t+1)*k/F, shaped (T, F, H) so the
    # in-kernel broadcast against the (B, F, H) state is pure elementwise work.
    freq = jnp.arange(F, dtype=jnp.float32) / F                            # (F,)
    times = jnp.arange(1, T + 1, dtype=jnp.float32)                        # (T,)
    omega = (2.0 * jnp.pi) * times[:, None] * freq[None, :]                # (T, F)
    re_tbl = jnp.broadcast_to(jnp.cos(omega)[:, :, None], (T, F, H))
    im_tbl = jnp.broadcast_to(jnp.sin(omega)[:, :, None], (T, F, H))

    def full(shape):
        nd = len(shape)
        return pl.BlockSpec(shape, lambda i, _nd=nd: (0,) * _nd)

    out = pl.pallas_call(
        sfm_kernel,
        out_shape=jax.ShapeDtypeStruct((B, O), jnp.float32),
        grid=(1,),
        in_specs=[
            full((T, B, D)),
            full((D, N)), full((H, N)), full((1, N)),
            full((F, H)), full((1, H)),
            full((H, O)), full((1, O)),
            full((T, F, H)), full((T, F, H)),
        ],
        out_specs=pl.BlockSpec((B, O), lambda i: (0, 0)),
        compiler_params=pltpu.CompilerParams(
            dimension_semantics=("arbitrary",)),
    )(x_tbd, Wx, Uh, b, Ua, ba, Wp, bp, re_tbl, im_tbl)
    return out


# ---------------- pure-JAX reference (mirrors the PyTorch forward) ----------------
def sfm_reference(x, P):
    B, T, D = x.shape
    H = P["U_i"].shape[0]
    F = P["W_fre"].shape[1]
    h = jnp.zeros((B, H), jnp.float32)
    S_re = jnp.zeros((B, H, F), jnp.float32)
    S_im = jnp.zeros((B, H, F), jnp.float32)
    freq = jnp.arange(F, dtype=jnp.float32) / F
    hs = _hard_sigmoid
    p = None
    for ts in range(T):
        xt = x[:, ts, :]
        x_i = xt @ P["W_i"] + P["b_i"]
        x_ste = xt @ P["W_ste"] + P["b_ste"]
        x_fre = xt @ P["W_fre"] + P["b_fre"]
        x_c = xt @ P["W_c"] + P["b_c"]
        x_o = xt @ P["W_o"] + P["b_o"]
        i = hs(x_i + h @ P["U_i"])
        ste = hs(x_ste + h @ P["U_ste"])
        fre = hs(x_fre + h @ P["U_fre"])
        f = ste[:, :, None] * fre[:, None, :]
        c = i * jnp.tanh(x_c + h @ P["U_c"])
        omega = 2.0 * jnp.pi * (ts + 1) * freq
        re, im = jnp.cos(omega), jnp.sin(omega)
        S_re = f * S_re + c[:, :, None] * re
        S_im = f * S_im + c[:, :, None] * im
        A = S_re ** 2 + S_im ** 2
        A_a = (A.reshape(-1, F) @ P["U_a"]).reshape(B, H)
        a = jnp.tanh(A_a + P["b_a"])
        o = hs(x_o + h @ P["U_o"])
        h = o * a
        p = h @ P["W_p"] + P["b_p"]
    return p


# ---------------- deterministic parameter init (shapes from __init__) ----------------
def _xavier_uniform(key, shape):
    fan_in, fan_out = shape
    bound = (6.0 / (fan_in + fan_out)) ** 0.5
    return jax.random.uniform(key, shape, jnp.float32, -bound, bound)


def _orthogonal(key, shape):
    return jax.nn.initializers.orthogonal()(key, shape, jnp.float32)


def init_params(key, D, H, F, O):
    ks = jax.random.split(key, 16)
    return {
        "W_i":   _xavier_uniform(ks[0], (D, H)),
        "U_i":   _orthogonal(ks[1], (H, H)),
        "b_i":   jnp.zeros((H,), jnp.float32),
        "W_ste": _xavier_uniform(ks[2], (D, H)),
        "U_ste": _orthogonal(ks[3], (H, H)),
        "b_ste": jnp.ones((H,), jnp.float32),
        "W_fre": _xavier_uniform(ks[4], (D, F)),
        "U_fre": _orthogonal(ks[5], (H, F)),
        "b_fre": jnp.ones((F,), jnp.float32),
        "W_c":   _xavier_uniform(ks[6], (D, H)),
        "U_c":   _orthogonal(ks[7], (H, H)),
        "b_c":   jnp.zeros((H,), jnp.float32),
        "W_o":   _xavier_uniform(ks[8], (D, H)),
        "U_o":   _orthogonal(ks[9], (H, H)),
        "b_o":   jnp.zeros((H,), jnp.float32),
        "U_a":   _orthogonal(ks[10], (F, 1)),
        "b_a":   jnp.zeros((H,), jnp.float32),
        "W_p":   _xavier_uniform(ks[11], (H, O)),
        "b_p":   jnp.zeros((O,), jnp.float32),
        # NOTE: fc_out of the PyTorch module is never used in forward(); omitted.
    }


if __name__ == "__main__":
    B, T, D, H, F, O = 8, 8, 6, 64, 10, 1
    key = jax.random.PRNGKey(0)
    pkey, xkey = jax.random.split(key)
    params = init_params(pkey, D, H, F, O)
    x = jax.random.normal(xkey, (B, T, D), jnp.float32)

    out = sfm_forward(x, params)
    out = jax.block_until_ready(out)

    ref = sfm_reference(x, params)
    assert out.shape == (B, O), out.shape
    assert jnp.allclose(out, ref, rtol=1e-3, atol=1e-4), (out, ref)
    print("KERNEL_OK")
</pallas_src>

<mosaic_0001>
module attributes {stable_mosaic.version = 11 : i64} {
  func.func @sfm_kernel(%arg0: i32, %arg1: memref<8x8x6xf32, #tpu.memory_space<vmem>>, %arg2: memref<6x266xf32, #tpu.memory_space<vmem>>, %arg3: memref<64x266xf32, #tpu.memory_space<vmem>>, %arg4: memref<1x266xf32, #tpu.memory_space<vmem>>, %arg5: memref<10x64xf32, #tpu.memory_space<vmem>>, %arg6: memref<1x64xf32, #tpu.memory_space<vmem>>, %arg7: memref<64x1xf32, #tpu.memory_space<vmem>>, %arg8: memref<1x1xf32, #tpu.memory_space<vmem>>, %arg9: memref<8x10x64xf32, #tpu.memory_space<vmem>>, %arg10: memref<8x10x64xf32, #tpu.memory_space<vmem>>, %arg11: memref<8x1xf32, #tpu.memory_space<vmem>>) attributes {dimension_semantics = [#tpu.dimension_semantics<arbitrary>], iteration_bounds = array<i64: 1>, scalar_prefetch = 0 : i64, scratch_operands = 0 : i64, tpu.core_type = #tpu.core_type<tc>, window_params = [{pipeline_mode = #tpu.pipeline_mode<synchronous>, transform_indices = @transform_0, window_bounds = array<i64: 8, 8, 6>}, {pipeline_mode = #tpu.pipeline_mode<synchronous>, transform_indices = @transform_1, window_bounds = array<i64: 6, 266>}, {pipeline_mode = #tpu.pipeline_mode<synchronous>, transform_indices = @transform_2, window_bounds = array<i64: 64, 266>}, {pipeline_mode = #tpu.pipeline_mode<synchronous>, transform_indices = @transform_3, window_bounds = array<i64: 1, 266>}, {pipeline_mode = #tpu.pipeline_mode<synchronous>, transform_indices = @transform_4, window_bounds = array<i64: 10, 64>}, {pipeline_mode = #tpu.pipeline_mode<synchronous>, transform_indices = @transform_5, window_bounds = array<i64: 1, 64>}, {pipeline_mode = #tpu.pipeline_mode<synchronous>, transform_indices = @transform_6, window_bounds = array<i64: 64, 1>}, {pipeline_mode = #tpu.pipeline_mode<synchronous>, transform_indices = @transform_7, window_bounds = array<i64: 1, 1>}, {pipeline_mode = #tpu.pipeline_mode<synchronous>, transform_indices = @transform_8, window_bounds = array<i64: 8, 10, 64>}, {pipeline_mode = #tpu.pipeline_mode<synchronous>, transform_indices = @transform_9, window_bounds = array<i64: 8, 10, 64>}, {pipeline_mode = #tpu.pipeline_mode<synchronous>, transform_indices = @transform_10, window_bounds = array<i64: 8, 1>}]} {
    %c0 = arith.constant 0 : index
    %c0_0 = arith.constant 0 : index
    %0 = vector.load %arg2[%c0, %c0_0] : memref<6x266xf32, #tpu.memory_space<vmem>>, vector<6x266xf32>
    %c0_1 = arith.constant 0 : index
    %c0_2 = arith.constant 0 : index
    %1 = vector.load %arg3[%c0_1, %c0_2] : memref<64x266xf32, #tpu.memory_space<vmem>>, vector<64x266xf32>
    %c0_3 = arith.constant 0 : index
    %c0_4 = arith.constant 0 : index
    %2 = vector.load %arg4[%c0_3, %c0_4] : memref<1x266xf32, #tpu.memory_space<vmem>>, vector<1x266xf32>
    %c0_5 = arith.constant 0 : index
    %c0_6 = arith.constant 0 : index
    %3 = vector.load %arg5[%c0_5, %c0_6] : memref<10x64xf32, #tpu.memory_space<vmem>>, vector<10x64xf32>
    %c0_7 = arith.constant 0 : index
    %c0_8 = arith.constant 0 : index
    %4 = vector.load %arg6[%c0_7, %c0_8] : memref<1x64xf32, #tpu.memory_space<vmem>>, vector<1x64xf32>
    %cst = arith.constant 0.000000e+00 : f32
    %5 = vector.broadcast %cst : f32 to vector<8x64xf32>
    %cst_9 = arith.constant 0.000000e+00 : f32
    %6 = vector.broadcast %cst_9 : f32 to vector<8x10x64xf32>
    %c0_i32 = arith.constant 0 : i32
    %7 = arith.index_cast %c0_i32 : i32 to index
    %c0_10 = arith.constant 0 : index
    %c0_11 = arith.constant 0 : index
    %8 = vector.load %arg1[%7, %c0_10, %c0_11] : memref<8x8x6xf32, #tpu.memory_space<vmem>>, vector<1x8x6xf32>
    %9 = vector.shape_cast %8 : vector<1x8x6xf32> to vector<8x6xf32>
    %cst_12 = arith.constant dense<0.000000e+00> : vector<8x266xf32>
    %10 = tpu.matmul %9, %0, %cst_12 {dimension_numbers = #tpu.dot_dimension_numbers<[1], [0], [0], [1], [0, 0, 1, 1], [], []>} : vector<8x6xf32>, vector<6x266xf32>, vector<8x266xf32> -> vector<8x266xf32>
    %cst_13 = arith.constant dense<0.000000e+00> : vector<8x266xf32>
    %11 = tpu.matmul %5, %1, %cst_13 {dimension_numbers = #tpu.dot_dimension_numbers<[1], [0], [0], [1], [0, 0, 1, 1], [], []>} : vector<8x64xf32>, vector<64x266xf32>, vector<8x266xf32> -> vector<8x266xf32>
    %12 = arith.addf %10, %11 : vector<8x266xf32>
    %13 = vector.broadcast %2 : vector<1x266xf32> to vector<8x266xf32>
    %14 = arith.addf %12, %13 : vector<8x266xf32>
    %15 = vector.extract_strided_slice %14 {offsets = [0, 0], sizes = [8, 64], strides = [1, 1]} : vector<8x266xf32> to vector<8x64xf32>
    %cst_14 = arith.constant 6.000000e+00 : f32
    %16 = vector.broadcast %cst_14 : f32 to vector<8x64xf32>
    %17 = arith.divf %15, %16 : vector<8x64xf32>
    %cst_15 = arith.constant 5.000000e-01 : f32
    %18 = vector.broadcast %cst_15 : f32 to vector<8x64xf32>
    %19 = arith.addf %17, %18 : vector<8x64xf32>
    %cst_16 = arith.constant 0.000000e+00 : f32
    %cst_17 = arith.constant 1.000000e+00 : f32
    %20 = vector.broadcast %cst_16 : f32 to vector<8x64xf32>
    %21 = arith.maximumf %20, %19 : vector<8x64xf32>
    %22 = vector.broadcast %cst_17 : f32 to vector<8x64xf32>
    %23 = arith.minimumf %22, %21 : vector<8x64xf32>
    %24 = vector.extract_strided_slice %14 {offsets = [0, 64], sizes = [8, 64], strides = [1, 1]} : vector<8x266xf32> to vector<8x64xf32>
    %cst_18 = arith.constant 6.000000e+00 : f32
    %25 = vector.broadcast %cst_18 : f32 to vector<8x64xf32>
    %26 = arith.divf %24, %25 : vector<8x64xf32>
    %cst_19 = arith.constant 5.000000e-01 : f32
    %27 = vector.broadcast %cst_19 : f32 to vector<8x64xf32>
    %28 = arith.addf %26, %27 : vector<8x64xf32>
    %cst_20 = arith.constant 0.000000e+00 : f32
    %cst_21 = arith.constant 1.000000e+00 : f32
    %29 = vector.broadcast %cst_20 : f32 to vector<8x64xf32>
    %30 = arith.maximumf %29, %28 : vector<8x64xf32>
    %31 = vector.broadcast %cst_21 : f32 to vector<8x64xf32>
    %32 = arith.minimumf %31, %30 : vector<8x64xf32>
    %33 = vector.extract_strided_slice %14 {offsets = [0, 128], sizes = [8, 64], strides = [1, 1]} : vector<8x266xf32> to vector<8x64xf32>
    %34 = math.tanh %33 : vector<8x64xf32>
    %35 = vector.extract_strided_slice %14 {offsets = [0, 192], sizes = [8, 64], strides = [1, 1]} : vector<8x266xf32> to vector<8x64xf32>
    %cst_22 = arith.constant 6.000000e+00 : f32
    %36 = vector.broadcast %cst_22 : f32 to vector<8x64xf32>
    %37 = arith.divf %35, %36 : vector<8x64xf32>
    %cst_23 = arith.constant 5.000000e-01 : f32
    %38 = vector.broadcast %cst_23 : f32 to vector<8x64xf32>
    %39 = arith.addf %37, %38 : vector<8x64xf32>
    %cst_24 = arith.constant 0.000000e+00 : f32
    %cst_25 = arith.constant 1.000000e+00 : f32
    %40 = vector.broadcast %cst_24 : f32 to vector<8x64xf32>
    %41 = arith.maximumf %40, %39 : vector<8x64xf32>
    %42 = vector.broadcast %cst_25 : f32 to vector<8x64xf32>
    %43 = arith.minimumf %42, %41 : vector<8x64xf32>
    %44 = vector.extract_strided_slice %14 {offsets = [0, 256], sizes = [8, 10], strides = [1, 1]} : vector<8x266xf32> to vector<8x10xf32>
    %cst_26 = arith.constant 6.000000e+00 : f32
    %45 = vector.broadcast %cst_26 : f32 to vector<8x10xf32>
    %46 = arith.divf %44, %45 : vector<8x10xf32>
    %cst_27 = arith.constant 5.000000e-01 : f32
    %47 = vector.broadcast %cst_27 : f32 to vector<8x10xf32>
    %48 = arith.addf %46, %47 : vector<8x10xf32>
    %cst_28 = arith.constant 0.000000e+00 : f32
    %cst_29 = arith.constant 1.000000e+00 : f32
    %49 = vector.broadcast %cst_28 : f32 to vector<8x10xf32>
    %50 = arith.maximumf %49, %48 : vector<8x10xf32>
    %51 = vector.broadcast %cst_29 : f32 to vector<8x10xf32>
    %52 = arith.minimumf %51, %50 : vector<8x10xf32>
    %53 = arith.mulf %23, %34 : vector<8x64xf32>
    %54 = vector.shape_cast %52 : vector<8x10xf32> to vector<8x10x1xf32>
    %55 = vector.shape_cast %32 : vector<8x64xf32> to vector<8x1x64xf32>
    %56 = vector.broadcast %54 : vector<8x10x1xf32> to vector<8x10x64xf32>
    %57 = vector.broadcast %55 : vector<8x1x64xf32> to vector<8x10x64xf32>
    %58 = arith.mulf %56, %57 : vector<8x10x64xf32>
    %59 = arith.index_cast %c0_i32 : i32 to index
    %c0_30 = arith.constant 0 : index
    %c0_31 = arith.constant 0 : index
    %60 = vector.load %arg9[%59, %c0_30, %c0_31] : memref<8x10x64xf32, #tpu.memory_space<vmem>>, vector<1x10x64xf32>
    %61 = vector.shape_cast %60 : vector<1x10x64xf32> to vector<10x64xf32>
    %62 = arith.index_cast %c0_i32 : i32 to index
    %c0_32 = arith.constant 0 : index
    %c0_33 = arith.constant 0 : index
    %63 = vector.load %arg10[%62, %c0_32, %c0_33] : memref<8x10x64xf32, #tpu.memory_space<vmem>>, vector<1x10x64xf32>
    %64 = vector.shape_cast %63 : vector<1x10x64xf32> to vector<10x64xf32>
    %65 = vector.shape_cast %53 : vector<8x64xf32> to vector<8x1x64xf32>
    %66 = arith.mulf %58, %6 : vector<8x10x64xf32>
    %67 = vector.shape_cast %61 : vector<10x64xf32> to vector<1x10x64xf32>
    %68 = vector.broadcast %65 : vector<8x1x64xf32> to vector<8x10x64xf32>
    %69 = vector.broadcast %67 : vector<1x10x64xf32> to vector<8x10x64xf32>
    %70 = arith.mulf %68, %69 : vector<8x10x64xf32>
    %71 = arith.addf %66, %70 : vector<8x10x64xf32>
    %72 = arith.mulf %58, %6 : vector<8x10x64xf32>
    %73 = vector.shape_cast %64 : vector<10x64xf32> to vector<1x10x64xf32>
    %74 = vector.broadcast %65 : vector<8x1x64xf32> to vector<8x10x64xf32>
    %75 = vector.broadcast %73 : vector<1x10x64xf32> to vector<8x10x64xf32>
    %76 = arith.mulf %74, %75 : vector<8x10x64xf32>
    %77 = arith.addf %72, %76 : vector<8x10x64xf32>
    %78 = arith.mulf %71, %71 : vector<8x10x64xf32>
    %79 = arith.mulf %77, %77 : vector<8x10x64xf32>
    %80 = arith.addf %78, %79 : vector<8x10x64xf32>
    %81 = vector.shape_cast %3 : vector<10x64xf32> to vector<1x10x64xf32>
    %82 = vector.broadcast %81 : vector<1x10x64xf32> to vector<8x10x64xf32>
    %83 = arith.mulf %80, %82 : vector<8x10x64xf32>
    %cst_34 = arith.constant dense<0.000000e+00> : vector<8x64xf32>
    %84 = vector.multi_reduction <add>, %83, %cst_34 [1] : vector<8x10x64xf32> to vector<8x64xf32>
    %85 = vector.broadcast %4 : vector<1x64xf32> to vector<8x64xf32>
    %86 = arith.addf %84, %85 : vector<8x64xf32>
    %87 = math.tanh %86 : vector<8x64xf32>
    %88 = arith.mulf %43, %87 : vector<8x64xf32>
    %c1_i32 = arith.constant 1 : i32
    %89 = arith.index_cast %c1_i32 : i32 to index
    %c0_35 = arith.constant 0 : index
    %c0_36 = arith.constant 0 : index
    %90 = vector.load %arg1[%89, %c0_35, %c0_36] : memref<8x8x6xf32, #tpu.memory_space<vmem>>, vector<1x8x6xf32>
    %91 = vector.shape_cast %90 : vector<1x8x6xf32> to vector<8x6xf32>
    %cst_37 = arith.constant dense<0.000000e+00> : vector<8x266xf32>
    %92 = tpu.matmul %91, %0, %cst_37 {dimension_numbers = #tpu.dot_dimension_numbers<[1], [0], [0], [1], [0, 0, 1, 1], [], []>} : vector<8x6xf32>, vector<6x266xf32>, vector<8x266xf32> -> vector<8x266xf32>
    %cst_38 = arith.constant dense<0.000000e+00> : vector<8x266xf32>
    %93 = tpu.matmul %88, %1, %cst_38 {dimension_numbers = #tpu.dot_dimension_numbers<[1], [0], [0], [1], [0, 0, 1, 1], [], []>} : vector<8x64xf32>, vector<64x266xf32>, vector<8x266xf32> -> vector<8x266xf32>
    %94 = arith.addf %92, %93 : vector<8x266xf32>
    %95 = vector.broadcast %2 : vector<1x266xf32> to vector<8x266xf32>
    %96 = arith.addf %94, %95 : vector<8x266xf32>
    %97 = vector.extract_strided_slice %96 {offsets = [0, 0], sizes = [8, 64], strides = [1, 1]} : vector<8x266xf32> to vector<8x64xf32>
    %cst_39 = arith.constant 6.000000e+00 : f32
    %98 = vector.broadcast %cst_39 : f32 to vector<8x64xf32>
    %99 = arith.divf %97, %98 : vector<8x64xf32>
    %cst_40 = arith.constant 5.000000e-01 : f32
    %100 = vector.broadcast %cst_40 : f32 to vector<8x64xf32>
    %101 = arith.addf %99, %100 : vector<8x64xf32>
    %cst_41 = arith.constant 0.000000e+00 : f32
    %cst_42 = arith.constant 1.000000e+00 : f32
    %102 = vector.broadcast %cst_41 : f32 to vector<8x64xf32>
    %103 = arith.maximumf %102, %101 : vector<8x64xf32>
    %104 = vector.broadcast %cst_42 : f32 to vector<8x64xf32>
    %105 = arith.minimumf %104, %103 : vector<8x64xf32>
    %106 = vector.extract_strided_slice %96 {offsets = [0, 64], sizes = [8, 64], strides = [1, 1]} : vector<8x266xf32> to vector<8x64xf32>
    %cst_43 = arith.constant 6.000000e+00 : f32
    %107 = vector.broadcast %cst_43 : f32 to vector<8x64xf32>
    %108 = arith.divf %106, %107 : vector<8x64xf32>
    %cst_44 = arith.constant 5.000000e-01 : f32
    %109 = vector.broadcast %cst_44 : f32 to vector<8x64xf32>
    %110 = arith.addf %108, %109 : vector<8x64xf32>
    %cst_45 = arith.constant 0.000000e+00 : f32
    %cst_46 = arith.constant 1.000000e+00 : f32
    %111 = vector.broadcast %cst_45 : f32 to vector<8x64xf32>
    %112 = arith.maximumf %111, %110 : vector<8x64xf32>
    %113 = vector.broadcast %cst_46 : f32 to vector<8x64xf32>
    %114 = arith.minimumf %113, %112 : vector<8x64xf32>
    %115 = vector.extract_strided_slice %96 {offsets = [0, 128], sizes = [8, 64], strides = [1, 1]} : vector<8x266xf32> to vector<8x64xf32>
    %116 = math.tanh %115 : vector<8x64xf32>
    %117 = vector.extract_strided_slice %96 {offsets = [0, 192], sizes = [8, 64], strides = [1, 1]} : vector<8x266xf32> to vector<8x64xf32>
    %cst_47 = arith.constant 6.000000e+00 : f32
    %118 = vector.broadcast %cst_47 : f32 to vector<8x64xf32>
    %119 = arith.divf %117, %118 : vector<8x64xf32>
    %cst_48 = arith.constant 5.000000e-01 : f32
    %120 = vector.broadcast %cst_48 : f32 to vector<8x64xf32>
    %121 = arith.addf %119, %120 : vector<8x64xf32>
    %cst_49 = arith.constant 0.000000e+00 : f32
    %cst_50 = arith.constant 1.000000e+00 : f32
    %122 = vector.broadcast %cst_49 : f32 to vector<8x64xf32>
    %123 = arith.maximumf %122, %121 : vector<8x64xf32>
    %124 = vector.broadcast %cst_50 : f32 to vector<8x64xf32>
    %125 = arith.minimumf %124, %123 : vector<8x64xf32>
    %126 = vector.extract_strided_slice %96 {offsets = [0, 256], sizes = [8, 10], strides = [1, 1]} : vector<8x266xf32> to vector<8x10xf32>
    %cst_51 = arith.constant 6.000000e+00 : f32
    %127 = vector.broadcast %cst_51 : f32 to vector<8x10xf32>
    %128 = arith.divf %126, %127 : vector<8x10xf32>
    %cst_52 = arith.constant 5.000000e-01 : f32
    %129 = vector.broadcast %cst_52 : f32 to vector<8x10xf32>
    %130 = arith.addf %128, %129 : vector<8x10xf32>
    %cst_53 = arith.constant 0.000000e+00 : f32
    %cst_54 = arith.constant 1.000000e+00 : f32
    %131 = vector.broadcast %cst_53 : f32 to vector<8x10xf32>
    %132 = arith.maximumf %131, %130 : vector<8x10xf32>
    %133 = vector.broadcast %cst_54 : f32 to vector<8x10xf32>
    %134 = arith.minimumf %133, %132 : vector<8x10xf32>
    %135 = arith.mulf %105, %116 : vector<8x64xf32>
    %136 = vector.shape_cast %134 : vector<8x10xf32> to vector<8x10x1xf32>
    %137 = vector.shape_cast %114 : vector<8x64xf32> to vector<8x1x64xf32>
    %138 = vector.broadcast %136 : vector<8x10x1xf32> to vector<8x10x64xf32>
    %139 = vector.broadcast %137 : vector<8x1x64xf32> to vector<8x10x64xf32>
    %140 = arith.mulf %138, %139 : vector<8x10x64xf32>
    %141 = arith.index_cast %c1_i32 : i32 to index
    %c0_55 = arith.constant 0 : index
    %c0_56 = arith.constant 0 : index
    %142 = vector.load %arg9[%141, %c0_55, %c0_56] : memref<8x10x64xf32, #tpu.memory_space<vmem>>, vector<1x10x64xf32>
    %143 = vector.shape_cast %142 : vector<1x10x64xf32> to vector<10x64xf32>
    %144 = arith.index_cast %c1_i32 : i32 to index
    %c0_57 = arith.constant 0 : index
    %c0_58 = arith.constant 0 : index
    %145 = vector.load %arg10[%144, %c0_57, %c0_58] : memref<8x10x64xf32, #tpu.memory_space<vmem>>, vector<1x10x64xf32>
    %146 = vector.shape_cast %145 : vector<1x10x64xf32> to vector<10x64xf32>
    %147 = vector.shape_cast %135 : vector<8x64xf32> to vector<8x1x64xf32>
    %148 = arith.mulf %140, %71 : vector<8x10x64xf32>
    %149 = vector.shape_cast %143 : vector<10x64xf32> to vector<1x10x64xf32>
    %150 = vector.broadcast %147 : vector<8x1x64xf32> to vector<8x10x64xf32>
    %151 = vector.broadcast %149 : vector<1x10x64xf32> to vector<8x10x64xf32>
    %152 = arith.mulf %150, %151 : vector<8x10x64xf32>
    %153 = arith.addf %148, %152 : vector<8x10x64xf32>
    %154 = arith.mulf %140, %77 : vector<8x10x64xf32>
    %155 = vector.shape_cast %146 : vector<10x64xf32> to vector<1x10x64xf32>
    %156 = vector.broadcast %147 : vector<8x1x64xf32> to vector<8x10x64xf32>
    %157 = vector.broadcast %155 : vector<1x10x64xf32> to vector<8x10x64xf32>
    %158 = arith.mulf %156, %157 : vector<8x10x64xf32>
    %159 = arith.addf %154, %158 : vector<8x10x64xf32>
    %160 = arith.mulf %153, %153 : vector<8x10x64xf32>
    %161 = arith.mulf %159, %159 : vector<8x10x64xf32>
    %162 = arith.addf %160, %161 : vector<8x10x64xf32>
    %163 = vector.shape_cast %3 : vector<10x64xf32> to vector<1x10x64xf32>
    %164 = vector.broadcast %163 : vector<1x10x64xf32> to vector<8x10x64xf32>
    %165 = arith.mulf %162, %164 : vector<8x10x64xf32>
    %cst_59 = arith.constant dense<0.000000e+00> : vector<8x64xf32>
    %166 = vector.multi_reduction <add>, %165, %cst_59 [1] : vector<8x10x64xf32> to vector<8x64xf32>
    %167 = vector.broadcast %4 : vector<1x64xf32> to vector<8x64xf32>
    %168 = arith.addf %166, %167 : vector<8x64xf32>
    %169 = math.tanh %168 : vector<8x64xf32>
    %170 = arith.mulf %125, %169 : vector<8x64xf32>
    %c2_i32 = arith.constant 2 : i32
    %171 = arith.index_cast %c2_i32 : i32 to index
    %c0_60 = arith.constant 0 : index
    %c0_61 = arith.constant 0 : index
    %172 = vector.load %arg1[%171, %c0_60, %c0_61] : memref<8x8x6xf32, #tpu.memory_space<vmem>>, vector<1x8x6xf32>
    %173 = vector.shape_cast %172 : vector<1x8x6xf32> to vector<8x6xf32>
    %cst_62 = arith.constant dense<0.000000e+00> : vector<8x266xf32>
    %174 = tpu.matmul %173, %0, %cst_62 {dimension_numbers = #tpu.dot_dimension_numbers<[1], [0], [0], [1], [0, 0, 1, 1], [], []>} : vector<8x6xf32>, vector<6x266xf32>, vector<8x266xf32> -> vector<8x266xf32>
    %cst_63 = arith.constant dense<0.000000e+00> : vector<8x266xf32>
    %175 = tpu.matmul %170, %1, %cst_63 {dimension_numbers = #tpu.dot_dimension_numbers<[1], [0], [0], [1], [0, 0, 1, 1], [], []>} : vector<8x64xf32>, vector<64x266xf32>, vector<8x266xf32> -> vector<8x266xf32>
    %176 = arith.addf %174, %175 : vector<8x266xf32>
    %177 = vector.broadcast %2 : vector<1x266xf32> to vector<8x266xf32>
    %178 = arith.addf %176, %177 : vector<8x266xf32>
    %179 = vector.extract_strided_slice %178 {offsets = [0, 0], sizes = [8, 64], strides = [1, 1]} : vector<8x266xf32> to vector<8x64xf32>
    %cst_64 = arith.constant 6.000000e+00 : f32
    %180 = vector.broadcast %cst_64 : f32 to vector<8x64xf32>
    %181 = arith.divf %179, %180 : vector<8x64xf32>
    %cst_65 = arith.constant 5.000000e-01 : f32
    %182 = vector.broadcast %cst_65 : f32 to vector<8x64xf32>
    %183 = arith.addf %181, %182 : vector<8x64xf32>
    %cst_66 = arith.constant 0.000000e+00 : f32
    %cst_67 = arith.constant 1.000000e+00 : f32
    %184 = vector.broadcast %cst_66 : f32 to vector<8x64xf32>
    %185 = arith.maximumf %184, %183 : vector<8x64xf32>
    %186 = vector.broadcast %cst_67 : f32 to vector<8x64xf32>
    %187 = arith.minimumf %186, %185 : vector<8x64xf32>
    %188 = vector.extract_strided_slice %178 {offsets = [0, 64], sizes = [8, 64], strides = [1, 1]} : vector<8x266xf32> to vector<8x64xf32>
    %cst_68 = arith.constant 6.000000e+00 : f32
    %189 = vector.broadcast %cst_68 : f32 to vector<8x64xf32>
    %190 = arith.divf %188, %189 : vector<8x64xf32>
    %cst_69 = arith.constant 5.000000e-01 : f32
    %191 = vector.broadcast %cst_69 : f32 to vector<8x64xf32>
    %192 = arith.addf %190, %191 : vector<8x64xf32>
    %cst_70 = arith.constant 0.000000e+00 : f32
    %cst_71 = arith.constant 1.000000e+00 : f32
    %193 = vector.broadcast %cst_70 : f32 to vector<8x64xf32>
    %194 = arith.maximumf %193, %192 : vector<8x64xf32>
    %195 = vector.broadcast %cst_71 : f32 to vector<8x64xf32>
    %196 = arith.minimumf %195, %194 : vector<8x64xf32>
    %197 = vector.extract_strided_slice %178 {offsets = [0, 128], sizes = [8, 64], strides = [1, 1]} : vector<8x266xf32> to vector<8x64xf32>
    %198 = math.tanh %197 : vector<8x64xf32>
    %199 = vector.extract_strided_slice %178 {offsets = [0, 192], sizes = [8, 64], strides = [1, 1]} : vector<8x266xf32> to vector<8x64xf32>
    %cst_72 = arith.constant 6.000000e+00 : f32
    %200 = vector.broadcast %cst_72 : f32 to vector<8x64xf32>
    %201 = arith.divf %199, %200 : vector<8x64xf32>
    %cst_73 = arith.constant 5.000000e-01 : f32
    %202 = vector.broadcast %cst_73 : f32 to vector<8x64xf32>
    %203 = arith.addf %201, %202 : vector<8x64xf32>
    %cst_74 = arith.constant 0.000000e+00 : f32
    %cst_75 = arith.constant 1.000000e+00 : f32
    %204 = vector.broadcast %cst_74 : f32 to vector<8x64xf32>
    %205 = arith.maximumf %204, %203 : vector<8x64xf32>
    %206 = vector.broadcast %cst_75 : f32 to vector<8x64xf32>
    %207 = arith.minimumf %206, %205 : vector<8x64xf32>
    %208 = vector.extract_strided_slice %178 {offsets = [0, 256], sizes = [8, 10], strides = [1, 1]} : vector<8x266xf32> to vector<8x10xf32>
    %cst_76 = arith.constant 6.000000e+00 : f32
    %209 = vector.broadcast %cst_76 : f32 to vector<8x10xf32>
    %210 = arith.divf %208, %209 : vector<8x10xf32>
    %cst_77 = arith.constant 5.000000e-01 : f32
    %211 = vector.broadcast %cst_77 : f32 to vector<8x10xf32>
    %212 = arith.addf %210, %211 : vector<8x10xf32>
    %cst_78 = arith.constant 0.000000e+00 : f32
    %cst_79 = arith.constant 1.000000e+00 : f32
    %213 = vector.broadcast %cst_78 : f32 to vector<8x10xf32>
    %214 = arith.maximumf %213, %212 : vector<8x10xf32>
    %215 = vector.broadcast %cst_79 : f32 to vector<8x10xf32>
    %216 = arith.minimumf %215, %214 : vector<8x10xf32>
    %217 = arith.mulf %187, %198 : vector<8x64xf32>
    %218 = vector.shape_cast %216 : vector<8x10xf32> to vector<8x10x1xf32>
    %219 = vector.shape_cast %196 : vector<8x64xf32> to vector<8x1x64xf32>
    %220 = vector.broadcast %218 : vector<8x10x1xf32> to vector<8x10x64xf32>
    %221 = vector.broadcast %219 : vector<8x1x64xf32> to vector<8x10x64xf32>
    %222 = arith.mulf %220, %221 : vector<8x10x64xf32>
    %223 = arith.index_cast %c2_i32 : i32 to index
    %c0_80 = arith.constant 0 : index
    %c0_81 = arith.constant 0 : index
    %224 = vector.load %arg9[%223, %c0_80, %c0_81] : memref<8x10x64xf32, #tpu.memory_space<vmem>>, vector<1x10x64xf32>
    %225 = vector.shape_cast %224 : vector<1x10x64xf32> to vector<10x64xf32>
    %226 = arith.index_cast %c2_i32 : i32 to index
    %c0_82 = arith.constant 0 : index
    %c0_83 = arith.constant 0 : index
    %227 = vector.load %arg10[%226, %c0_82, %c0_83] : memref<8x10x64xf32, #tpu.memory_space<vmem>>, vector<1x10x64xf32>
    %228 = vector.shape_cast %227 : vector<1x10x64xf32> to vector<10x64xf32>
    %229 = vector.shape_cast %217 : vector<8x64xf32> to vector<8x1x64xf32>
    %230 = arith.mulf %222, %153 : vector<8x10x64xf32>
    %231 = vector.shape_cast %225 : vector<10x64xf32> to vector<1x10x64xf32>
    %232 = vector.broadcast %229 : vector<8x1x64xf32> to vector<8x10x64xf32>
    %233 = vector.broadcast %231 : vector<1x10x64xf32> to vector<8x10x64xf32>
    %234 = arith.mulf %232, %233 : vector<8x10x64xf32>
    %235 = arith.addf %230, %234 : vector<8x10x64xf32>
    %236 = arith.mulf %222, %159 : vector<8x10x64xf32>
    %237 = vector.shape_cast %228 : vector<10x64xf32> to vector<1x10x64xf32>
    %238 = vector.broadcast %229 : vector<8x1x64xf32> to vector<8x10x64xf32>
    %239 = vector.broadcast %237 : vector<1x10x64xf32> to vector<8x10x64xf32>
    %240 = arith.mulf %238, %239 : vector<8x10x64xf32>
    %241 = arith.addf %236, %240 : vector<8x10x64xf32>
    %242 = arith.mulf %235, %235 : vector<8x10x64xf32>
    %243 = arith.mulf %241, %241 : vector<8x10x64xf32>
    %244 = arith.addf %242, %243 : vector<8x10x64xf32>
    %245 = vector.shape_cast %3 : vector<10x64xf32> to vector<1x10x64xf32>
    %246 = vector.broadcast %245 : vector<1x10x64xf32> to vector<8x10x64xf32>
    %247 = arith.mulf %244, %246 : vector<8x10x64xf32>
    %cst_84 = arith.constant dense<0.000000e+00> : vector<8x64xf32>
    %248 = vector.multi_reduction <add>, %247, %cst_84 [1] : vector<8x10x64xf32> to vector<8x64xf32>
    %249 = vector.broadcast %4 : vector<1x64xf32> to vector<8x64xf32>
    %250 = arith.addf %248, %249 : vector<8x64xf32>
    %251 = math.tanh %250 : vector<8x64xf32>
    %252 = arith.mulf %207, %251 : vector<8x64xf32>
    %c3_i32 = arith.constant 3 : i32
    %253 = arith.index_cast %c3_i32 : i32 to index
    %c0_85 = arith.constant 0 : index
    %c0_86 = arith.constant 0 : index
    %254 = vector.load %arg1[%253, %c0_85, %c0_86] : memref<8x8x6xf32, #tpu.memory_space<vmem>>, vector<1x8x6xf32>
    %255 = vector.shape_cast %254 : vector<1x8x6xf32> to vector<8x6xf32>
    %cst_87 = arith.constant dense<0.000000e+00> : vector<8x266xf32>
    %256 = tpu.matmul %255, %0, %cst_87 {dimension_numbers = #tpu.dot_dimension_numbers<[1], [0], [0], [1], [0, 0, 1, 1], [], []>} : vector<8x6xf32>, vector<6x266xf32>, vector<8x266xf32> -> vector<8x266xf32>
    %cst_88 = arith.constant dense<0.000000e+00> : vector<8x266xf32>
    %257 = tpu.matmul %252, %1, %cst_88 {dimension_numbers = #tpu.dot_dimension_numbers<[1], [0], [0], [1], [0, 0, 1, 1], [], []>} : vector<8x64xf32>, vector<64x266xf32>, vector<8x266xf32> -> vector<8x266xf32>
    %258 = arith.addf %256, %257 : vector<8x266xf32>
    %259 = vector.broadcast %2 : vector<1x266xf32> to vector<8x266xf32>
    %260 = arith.addf %258, %259 : vector<8x266xf32>
    %261 = vector.extract_strided_slice %260 {offsets = [0, 0], sizes = [8, 64], strides = [1, 1]} : vector<8x266xf32> to vector<8x64xf32>
    %cst_89 = arith.constant 6.000000e+00 : f32
    %262 = vector.broadcast %cst_89 : f32 to vector<8x64xf32>
    %263 = arith.divf %261, %262 : vector<8x64xf32>
    %cst_90 = arith.constant 5.000000e-01 : f32
    %264 = vector.broadcast %cst_90 : f32 to vector<8x64xf32>
    %265 = arith.addf %263, %264 : vector<8x64xf32>
    %cst_91 = arith.constant 0.000000e+00 : f32
    %cst_92 = arith.constant 1.000000e+00 : f32
    %266 = vector.broadcast %cst_91 : f32 to vector<8x64xf32>
    %267 = arith.maximumf %266, %265 : vector<8x64xf32>
    %268 = vector.broadcast %cst_92 : f32 to vector<8x64xf32>
    %269 = arith.minimumf %268, %267 : vector<8x64xf32>
    %270 = vector.extract_strided_slice %260 {offsets = [0, 64], sizes = [8, 64], strides = [1, 1]} : vector<8x266xf32> to vector<8x64xf32>
    %cst_93 = arith.constant 6.000000e+00 : f32
    %271 = vector.broadcast %cst_93 : f32 to vector<8x64xf32>
    %272 = arith.divf %270, %271 : vector<8x64xf32>
    %cst_94 = arith.constant 5.000000e-01 : f32
    %273 = vector.broadcast %cst_94 : f32 to vector<8x64xf32>
    %274 = arith.addf %272, %273 : vector<8x64xf32>
    %cst_95 = arith.constant 0.000000e+00 : f32
    %cst_96 = arith.constant 1.000000e+00 : f32
    %275 = vector.broadcast %cst_95 : f32 to vector<8x64xf32>
    %276 = arith.maximumf %275, %274 : vector<8x64xf32>
    %277 = vector.broadcast %cst_96 : f32 to vector<8x64xf32>
    %278 = arith.minimumf %277, %276 : vector<8x64xf32>
    %279 = vector.extract_strided_slice %260 {offsets = [0, 128], sizes = [8, 64], strides = [1, 1]} : vector<8x266xf32> to vector<8x64xf32>
    %280 = math.tanh %279 : vector<8x64xf32>
    %281 = vector.extract_strided_slice %260 {offsets = [0, 192], sizes = [8, 64], strides = [1, 1]} : vector<8x266xf32> to vector<8x64xf32>
    %cst_97 = arith.constant 6.000000e+00 : f32
    %282 = vector.broadcast %cst_97 : f32 to vector<8x64xf32>
    %283 = arith.divf %281, %282 : vector<8x64xf32>
    %cst_98 = arith.constant 5.000000e-01 : f32
    %284 = vector.broadcast %cst_98 : f32 to vector<8x64xf32>
    %285 = arith.addf %283, %284 : vector<8x64xf32>
    %cst_99 = arith.constant 0.000000e+00 : f32
    %cst_100 = arith.constant 1.000000e+00 : f32
    %286 = vector.broadcast %cst_99 : f32 to vector<8x64xf32>
    %287 = arith.maximumf %286, %285 : vector<8x64xf32>
    %288 = vector.broadcast %cst_100 : f32 to vector<8x64xf32>
    %289 = arith.minimumf %288, %287 : vector<8x64xf32>
    %290 = vector.extract_strided_slice %260 {offsets = [0, 256], sizes = [8, 10], strides = [1, 1]} : vector<8x266xf32> to vector<8x10xf32>
    %cst_101 = arith.constant 6.000000e+00 : f32
    %291 = vector.broadcast %cst_101 : f32 to vector<8x10xf32>
    %292 = arith.divf %290, %291 : vector<8x10xf32>
    %cst_102 = arith.constant 5.000000e-01 : f32
    %293 = vector.broadcast %cst_102 : f32 to vector<8x10xf32>
    %294 = arith.addf %292, %293 : vector<8x10xf32>
    %cst_103 = arith.constant 0.000000e+00 : f32
    %cst_104 = arith.constant 1.000000e+00 : f32
    %295 = vector.broadcast %cst_103 : f32 to vector<8x10xf32>
    %296 = arith.maximumf %295, %294 : vector<8x10xf32>
    %297 = vector.broadcast %cst_104 : f32 to vector<8x10xf32>
    %298 = arith.minimumf %297, %296 : vector<8x10xf32>
    %299 = arith.mulf %269, %280 : vector<8x64xf32>
    %300 = vector.shape_cast %298 : vector<8x10xf32> to vector<8x10x1xf32>
    %301 = vector.shape_cast %278 : vector<8x64xf32> to vector<8x1x64xf32>
    %302 = vector.broadcast %300 : vector<8x10x1xf32> to vector<8x10x64xf32>
    %303 = vector.broadcast %301 : vector<8x1x64xf32> to vector<8x10x64xf32>
    %304 = arith.mulf %302, %303 : vector<8x10x64xf32>
    %305 = arith.index_cast %c3_i32 : i32 to index
    %c0_105 = arith.constant 0 : index
    %c0_106 = arith.constant 0 : index
    %306 = vector.load %arg9[%305, %c0_105, %c0_106] : memref<8x10x64xf32, #tpu.memory_space<vmem>>, vector<1x10x64xf32>
    %307 = vector.shape_cast %306 : vector<1x10x64xf32> to vector<10x64xf32>
    %308 = arith.index_cast %c3_i32 : i32 to index
    %c0_107 = arith.constant 0 : index
    %c0_108 = arith.constant 0 : index
    %309 = vector.load %arg10[%308, %c0_107, %c0_108] : memref<8x10x64xf32, #tpu.memory_space<vmem>>, vector<1x10x64xf32>
    %310 = vector.shape_cast %309 : vector<1x10x64xf32> to vector<10x64xf32>
    %311 = vector.shape_cast %299 : vector<8x64xf32> to vector<8x1x64xf32>
    %312 = arith.mulf %304, %235 : vector<8x10x64xf32>
    %313 = vector.shape_cast %307 : vector<10x64xf32> to vector<1x10x64xf32>
    %314 = vector.broadcast %311 : vector<8x1x64xf32> to vector<8x10x64xf32>
    %315 = vector.broadcast %313 : vector<1x10x64xf32> to vector<8x10x64xf32>
    %316 = arith.mulf %314, %315 : vector<8x10x64xf32>
    %317 = arith.addf %312, %316 : vector<8x10x64xf32>
    %318 = arith.mulf %304, %241 : vector<8x10x64xf32>
    %319 = vector.shape_cast %310 : vector<10x64xf32> to vector<1x10x64xf32>
    %320 = vector.broadcast %311 : vector<8x1x64xf32> to vector<8x10x64xf32>
    %321 = vector.broadcast %319 : vector<1x10x64xf32> to vector<8x10x64xf32>
    %322 = arith.mulf %320, %321 : vector<8x10x64xf32>
    %323 = arith.addf %318, %322 : vector<8x10x64xf32>
    %324 = arith.mulf %317, %317 : vector<8x10x64xf32>
    %325 = arith.mulf %323, %323 : vector<8x10x64xf32>
    %326 = arith.addf %324, %325 : vector<8x10x64xf32>
    %327 = vector.shape_cast %3 : vector<10x64xf32> to vector<1x10x64xf32>
    %328 = vector.broadcast %327 : vector<1x10x64xf32> to vector<8x10x64xf32>
    %329 = arith.mulf %326, %328 : vector<8x10x64xf32>
    %cst_109 = arith.constant dense<0.000000e+00> : vector<8x64xf32>
    %330 = vector.multi_reduction <add>, %329, %cst_109 [1] : vector<8x10x64xf32> to vector<8x64xf32>
    %331 = vector.broadcast %4 : vector<1x64xf32> to vector<8x64xf32>
    %332 = arith.addf %330, %331 : vector<8x64xf32>
    %333 = math.tanh %332 : vector<8x64xf32>
    %334 = arith.mulf %289, %333 : vector<8x64xf32>
    %c4_i32 = arith.constant 4 : i32
    %335 = arith.index_cast %c4_i32 : i32 to index
    %c0_110 = arith.constant 0 : index
    %c0_111 = arith.constant 0 : index
    %336 = vector.load %arg1[%335, %c0_110, %c0_111] : memref<8x8x6xf32, #tpu.memory_space<vmem>>, vector<1x8x6xf32>
    %337 = vector.shape_cast %336 : vector<1x8x6xf32> to vector<8x6xf32>
    %cst_112 = arith.constant dense<0.000000e+00> : vector<8x266xf32>
    %338 = tpu.matmul %337, %0, %cst_112 {dimension_numbers = #tpu.dot_dimension_numbers<[1], [0], [0], [1], [0, 0, 1, 1], [], []>} : vector<8x6xf32>, vector<6x266xf32>, vector<8x266xf32> -> vector<8x266xf32>
    %cst_113 = arith.constant dense<0.000000e+00> : vector<8x266xf32>
    %339 = tpu.matmul %334, %1, %cst_113 {dimension_numbers = #tpu.dot_dimension_numbers<[1], [0], [0], [1], [0, 0, 1, 1], [], []>} : vector<8x64xf32>, vector<64x266xf32>, vector<8x266xf32> -> vector<8x266xf32>
    %340 = arith.addf %338, %339 : vector<8x266xf32>
    %341 = vector.broadcast %2 : vector<1x266xf32> to vector<8x266xf32>
    %342 = arith.addf %340, %341 : vector<8x266xf32>
    %343 = vector.extract_strided_slice %342 {offsets = [0, 0], sizes = [8, 64], strides = [1, 1]} : vector<8x266xf32> to vector<8x64xf32>
    %cst_114 = arith.constant 6.000000e+00 : f32
    %344 = vector.broadcast %cst_114 : f32 to vector<8x64xf32>
    %345 = arith.divf %343, %344 : vector<8x64xf32>
    %cst_115 = arith.constant 5.000000e-01 : f32
    %346 = vector.broadcast %cst_115 : f32 to vector<8x64xf32>
    %347 = arith.addf %345, %346 : vector<8x64xf32>
    %cst_116 = arith.constant 0.000000e+00 : f32
    %cst_117 = arith.constant 1.000000e+00 : f32
    %348 = vector.broadcast %cst_116 : f32 to vector<8x64xf32>
    %349 = arith.maximumf %348, %347 : vector<8x64xf32>
    %350 = vector.broadcast %cst_117 : f32 to vector<8x64xf32>
    %351 = arith.minimumf %350, %349 : vector<8x64xf32>
    %352 = vector.extract_strided_slice %342 {offsets = [0, 64], sizes = [8, 64], strides = [1, 1]} : vector<8x266xf32> to vector<8x64xf32>
    %cst_118 = arith.constant 6.000000e+00 : f32
    %353 = vector.broadcast %cst_118 : f32 to vector<8x64xf32>
    %354 = arith.divf %352, %353 : vector<8x64xf32>
    %cst_119 = arith.constant 5.000000e-01 : f32
    %355 = vector.broadcast %cst_119 : f32 to vector<8x64xf32>
    %356 = arith.addf %354, %355 : vector<8x64xf32>
    %cst_120 = arith.constant 0.000000e+00 : f32
    %cst_121 = arith.constant 1.000000e+00 : f32
    %357 = vector.broadcast %cst_120 : f32 to vector<8x64xf32>
    %358 = arith.maximumf %357, %356 : vector<8x64xf32>
    %359 = vector.broadcast %cst_121 : f32 to vector<8x64xf32>
    %360 = arith.minimumf %359, %358 : vector<8x64xf32>
    %361 = vector.extract_strided_slice %342 {offsets = [0, 128], sizes = [8, 64], strides = [1, 1]} : vector<8x266xf32> to vector<8x64xf32>
    %362 = math.tanh %361 : vector<8x64xf32>
    %363 = vector.extract_strided_slice %342 {offsets = [0, 192], sizes = [8, 64], strides = [1, 1]} : vector<8x266xf32> to vector<8x64xf32>
    %cst_122 = arith.constant 6.000000e+00 : f32
    %364 = vector.broadcast %cst_122 : f32 to vector<8x64xf32>
    %365 = arith.divf %363, %364 : vector<8x64xf32>
    %cst_123 = arith.constant 5.000000e-01 : f32
    %366 = vector.broadcast %cst_123 : f32 to vector<8x64xf32>
    %367 = arith.addf %365, %366 : vector<8x64xf32>
    %cst_124 = arith.constant 0.000000e+00 : f32
    %cst_125 = arith.constant 1.000000e+00 : f32
    %368 = vector.broadcast %cst_124 : f32 to vector<8x64xf32>
    %369 = arith.maximumf %368, %367 : vector<8x64xf32>
    %370 = vector.broadcast %cst_125 : f32 to vector<8x64xf32>
    %371 = arith.minimumf %370, %369 : vector<8x64xf32>
    %372 = vector.extract_strided_slice %342 {offsets = [0, 256], sizes = [8, 10], strides = [1, 1]} : vector<8x266xf32> to vector<8x10xf32>
    %cst_126 = arith.constant 6.000000e+00 : f32
    %373 = vector.broadcast %cst_126 : f32 to vector<8x10xf32>
    %374 = arith.divf %372, %373 : vector<8x10xf32>
    %cst_127 = arith.constant 5.000000e-01 : f32
    %375 = vector.broadcast %cst_127 : f32 to vector<8x10xf32>
    %376 = arith.addf %374, %375 : vector<8x10xf32>
    %cst_128 = arith.constant 0.000000e+00 : f32
    %cst_129 = arith.constant 1.000000e+00 : f32
    %377 = vector.broadcast %cst_128 : f32 to vector<8x10xf32>
    %378 = arith.maximumf %377, %376 : vector<8x10xf32>
    %379 = vector.broadcast %cst_129 : f32 to vector<8x10xf32>
    %380 = arith.minimumf %379, %378 : vector<8x10xf32>
    %381 = arith.mulf %351, %362 : vector<8x64xf32>
    %382 = vector.shape_cast %380 : vector<8x10xf32> to vector<8x10x1xf32>
    %383 = vector.shape_cast %360 : vector<8x64xf32> to vector<8x1x64xf32>
    %384 = vector.broadcast %382 : vector<8x10x1xf32> to vector<8x10x64xf32>
    %385 = vector.broadcast %383 : vector<8x1x64xf32> to vector<8x10x64xf32>
    %386 = arith.mulf %384, %385 : vector<8x10x64xf32>
    %387 = arith.index_cast %c4_i32 : i32 to index
    %c0_130 = arith.constant 0 : index
    %c0_131 = arith.constant 0 : index
    %388 = vector.load %arg9[%387, %c0_130, %c0_131] : memref<8x10x64xf32, #tpu.memory_space<vmem>>, vector<1x10x64xf32>
    %389 = vector.shape_cast %388 : vector<1x10x64xf32> to vector<10x64xf32>
    %390 = arith.index_cast %c4_i32 : i32 to index
    %c0_132 = arith.constant 0 : index
    %c0_133 = arith.constant 0 : index
    %391 = vector.load %arg10[%390, %c0_132, %c0_133] : memref<8x10x64xf32, #tpu.memory_space<vmem>>, vector<1x10x64xf32>
    %392 = vector.shape_cast %391 : vector<1x10x64xf32> to vector<10x64xf32>
    %393 = vector.shape_cast %381 : vector<8x64xf32> to vector<8x1x64xf32>
    %394 = arith.mulf %386, %317 : vector<8x10x64xf32>
    %395 = vector.shape_cast %389 : vector<10x64xf32> to vector<1x10x64xf32>
    %396 = vector.broadcast %393 : vector<8x1x64xf32> to vector<8x10x64xf32>
    %397 = vector.broadcast %395 : vector<1x10x64xf32> to vector<8x10x64xf32>
    %398 = arith.mulf %396, %397 : vector<8x10x64xf32>
    %399 = arith.addf %394, %398 : vector<8x10x64xf32>
    %400 = arith.mulf %386, %323 : vector<8x10x64xf32>
    %401 = vector.shape_cast %392 : vector<10x64xf32> to vector<1x10x64xf32>
    %402 = vector.broadcast %393 : vector<8x1x64xf32> to vector<8x10x64xf32>
    %403 = vector.broadcast %401 : vector<1x10x64xf32> to vector<8x10x64xf32>
    %404 = arith.mulf %402, %403 : vector<8x10x64xf32>
    %405 = arith.addf %400, %404 : vector<8x10x64xf32>
    %406 = arith.mulf %399, %399 : vector<8x10x64xf32>
    %407 = arith.mulf %405, %405 : vector<8x10x64xf32>
    %408 = arith.addf %406, %407 : vector<8x10x64xf32>
    %409 = vector.shape_cast %3 : vector<10x64xf32> to vector<1x10x64xf32>
    %410 = vector.broadcast %409 : vector<1x10x64xf32> to vector<8x10x64xf32>
    %411 = arith.mulf %408, %410 : vector<8x10x64xf32>
    %cst_134 = arith.constant dense<0.000000e+00> : vector<8x64xf32>
    %412 = vector.multi_reduction <add>, %411, %cst_134 [1] : vector<8x10x64xf32> to vector<8x64xf32>
    %413 = vector.broadcast %4 : vector<1x64xf32> to vector<8x64xf32>
    %414 = arith.addf %412, %413 : vector<8x64xf32>
    %415 = math.tanh %414 : vector<8x64xf32>
    %416 = arith.mulf %371, %415 : vector<8x64xf32>
    %c5_i32 = arith.constant 5 : i32
    %417 = arith.index_cast %c5_i32 : i32 to index
    %c0_135 = arith.constant 0 : index
    %c0_136 = arith.constant 0 : index
    %418 = vector.load %arg1[%417, %c0_135, %c0_136] : memref<8x8x6xf32, #tpu.memory_space<vmem>>, vector<1x8x6xf32>
    %419 = vector.shape_cast %418 : vector<1x8x6xf32> to vector<8x6xf32>
    %cst_137 = arith.constant dense<0.000000e+00> : vector<8x266xf32>
    %420 = tpu.matmul %419, %0, %cst_137 {dimension_numbers = #tpu.dot_dimension_numbers<[1], [0], [0], [1], [0, 0, 1, 1], [], []>} : vector<8x6xf32>, vector<6x266xf32>, vector<8x266xf32> -> vector<8x266xf32>
    %cst_138 = arith.constant dense<0.000000e+00> : vector<8x266xf32>
    %421 = tpu.matmul %416, %1, %cst_138 {dimension_numbers = #tpu.dot_dimension_numbers<[1], [0], [0], [1], [0, 0, 1, 1], [], []>} : vector<8x64xf32>, vector<64x266xf32>, vector<8x266xf32> -> vector<8x266xf32>
    %422 = arith.addf %420, %421 : vector<8x266xf32>
    %423 = vector.broadcast %2 : vector<1x266xf32> to vector<8x266xf32>
    %424 = arith.addf %422, %423 : vector<8x266xf32>
    %425 = vector.extract_strided_slice %424 {offsets = [0, 0], sizes = [8, 64], strides = [1, 1]} : vector<8x266xf32> to vector<8x64xf32>
    %cst_139 = arith.constant 6.000000e+00 : f32
    %426 = vector.broadcast %cst_139 : f32 to vector<8x64xf32>
    %427 = arith.divf %425, %426 : vector<8x64xf32>
    %cst_140 = arith.constant 5.000000e-01 : f32
    %428 = vector.broadcast %cst_140 : f32 to vector<8x64xf32>
    %429 = arith.addf %427, %428 : vector<8x64xf32>
    %cst_141 = arith.constant 0.000000e+00 : f32
    %cst_142 = arith.constant 1.000000e+00 : f32
    %430 = vector.broadcast %cst_141 : f32 to vector<8x64xf32>
    %431 = arith.maximumf %430, %429 : vector<8x64xf32>
    %432 = vector.broadcast %cst_142 : f32 to vector<8x64xf32>
    %433 = arith.minimumf %432, %431 : vector<8x64xf32>
    %434 = vector.extract_strided_slice %424 {offsets = [0, 64], sizes = [8, 64], strides = [1, 1]} : vector<8x266xf32> to vector<8x64xf32>
    %cst_143 = arith.constant 6.000000e+00 : f32
    %435 = vector.broadcast %cst_143 : f32 to vector<8x64xf32>
    %436 = arith.divf %434, %435 : vector<8x64xf32>
    %cst_144 = arith.constant 5.000000e-01 : f32
    %437 = vector.broadcast %cst_144 : f32 to vector<8x64xf32>
    %438 = arith.addf %436, %437 : vector<8x64xf32>
    %cst_145 = arith.constant 0.000000e+00 : f32
    %cst_146 = arith.constant 1.000000e+00 : f32
    %439 = vector.broadcast %cst_145 : f32 to vector<8x64xf32>
    %440 = arith.maximumf %439, %438 : vector<8x64xf32>
    %441 = vector.broadcast %cst_146 : f32 to vector<8x64xf32>
    %442 = arith.minimumf %441, %440 : vector<8x64xf32>
    %443 = vector.extract_strided_slice %424 {offsets = [0, 128], sizes = [8, 64], strides = [1, 1]} : vector<8x266xf32> to vector<8x64xf32>
    %444 = math.tanh %443 : vector<8x64xf32>
    %445 = vector.extract_strided_slice %424 {offsets = [0, 192], sizes = [8, 64], strides = [1, 1]} : vector<8x266xf32> to vector<8x64xf32>
    %cst_147 = arith.constant 6.000000e+00 : f32
    %446 = vector.broadcast %cst_147 : f32 to vector<8x64xf32>
    %447 = arith.divf %445, %446 : vector<8x64xf32>
    %cst_148 = arith.constant 5.000000e-01 : f32
    %448 = vector.broadcast %cst_148 : f32 to vector<8x64xf32>
    %449 = arith.addf %447, %448 : vector<8x64xf32>
    %cst_149 = arith.constant 0.000000e+00 : f32
    %cst_150 = arith.constant 1.000000e+00 : f32
    %450 = vector.broadcast %cst_149 : f32 to vector<8x64xf32>
    %451 = arith.maximumf %450, %449 : vector<8x64xf32>
    %452 = vector.broadcast %cst_150 : f32 to vector<8x64xf32>
    %453 = arith.minimumf %452, %451 : vector<8x64xf32>
    %454 = vector.extract_strided_slice %424 {offsets = [0, 256], sizes = [8, 10], strides = [1, 1]} : vector<8x266xf32> to vector<8x10xf32>
    %cst_151 = arith.constant 6.000000e+00 : f32
    %455 = vector.broadcast %cst_151 : f32 to vector<8x10xf32>
    %456 = arith.divf %454, %455 : vector<8x10xf32>
    %cst_152 = arith.constant 5.000000e-01 : f32
    %457 = vector.broadcast %cst_152 : f32 to vector<8x10xf32>
    %458 = arith.addf %456, %457 : vector<8x10xf32>
    %cst_153 = arith.constant 0.000000e+00 : f32
    %cst_154 = arith.constant 1.000000e+00 : f32
    %459 = vector.broadcast %cst_153 : f32 to vector<8x10xf32>
    %460 = arith.maximumf %459, %458 : vector<8x10xf32>
    %461 = vector.broadcast %cst_154 : f32 to vector<8x10xf32>
    %462 = arith.minimumf %461, %460 : vector<8x10xf32>
    %463 = arith.mulf %433, %444 : vector<8x64xf32>
    %464 = vector.shape_cast %462 : vector<8x10xf32> to vector<8x10x1xf32>
    %465 = vector.shape_cast %442 : vector<8x64xf32> to vector<8x1x64xf32>
    %466 = vector.broadcast %464 : vector<8x10x1xf32> to vector<8x10x64xf32>
    %467 = vector.broadcast %465 : vector<8x1x64xf32> to vector<8x10x64xf32>
    %468 = arith.mulf %466, %467 : vector<8x10x64xf32>
    %469 = arith.index_cast %c5_i32 : i32 to index
    %c0_155 = arith.constant 0 : index
    %c0_156 = arith.constant 0 : index
    %470 = vector.load %arg9[%469, %c0_155, %c0_156] : memref<8x10x64xf32, #tpu.memory_space<vmem>>, vector<1x10x64xf32>
    %471 = vector.shape_cast %470 : vector<1x10x64xf32> to vector<10x64xf32>
    %472 = arith.index_cast %c5_i32 : i32 to index
    %c0_157 = arith.constant 0 : index
    %c0_158 = arith.constant 0 : index
    %473 = vector.load %arg10[%472, %c0_157, %c0_158] : memref<8x10x64xf32, #tpu.memory_space<vmem>>, vector<1x10x64xf32>
    %474 = vector.shape_cast %473 : vector<1x10x64xf32> to vector<10x64xf32>
    %475 = vector.shape_cast %463 : vector<8x64xf32> to vector<8x1x64xf32>
    %476 = arith.mulf %468, %399 : vector<8x10x64xf32>
    %477 = vector.shape_cast %471 : vector<10x64xf32> to vector<1x10x64xf32>
    %478 = vector.broadcast %475 : vector<8x1x64xf32> to vector<8x10x64xf32>
    %479 = vector.broadcast %477 : vector<1x10x64xf32> to vector<8x10x64xf32>
    %480 = arith.mulf %478, %479 : vector<8x10x64xf32>
    %481 = arith.addf %476, %480 : vector<8x10x64xf32>
    %482 = arith.mulf %468, %405 : vector<8x10x64xf32>
    %483 = vector.shape_cast %474 : vector<10x64xf32> to vector<1x10x64xf32>
    %484 = vector.broadcast %475 : vector<8x1x64xf32> to vector<8x10x64xf32>
    %485 = vector.broadcast %483 : vector<1x10x64xf32> to vector<8x10x64xf32>
    %486 = arith.mulf %484, %485 : vector<8x10x64xf32>
    %487 = arith.addf %482, %486 : vector<8x10x64xf32>
    %488 = arith.mulf %481, %481 : vector<8x10x64xf32>
    %489 = arith.mulf %487, %487 : vector<8x10x64xf32>
    %490 = arith.addf %488, %489 : vector<8x10x64xf32>
    %491 = vector.shape_cast %3 : vector<10x64xf32> to vector<1x10x64xf32>
    %492 = vector.broadcast %491 : vector<1x10x64xf32> to vector<8x10x64xf32>
    %493 = arith.mulf %490, %492 : vector<8x10x64xf32>
    %cst_159 = arith.constant dense<0.000000e+00> : vector<8x64xf32>
    %494 = vector.multi_reduction <add>, %493, %cst_159 [1] : vector<8x10x64xf32> to vector<8x64xf32>
    %495 = vector.broadcast %4 : vector<1x64xf32> to vector<8x64xf32>
    %496 = arith.addf %494, %495 : vector<8x64xf32>
    %497 = math.tanh %496 : vector<8x64xf32>
    %498 = arith.mulf %453, %497 : vector<8x64xf32>
    %c6_i32 = arith.constant 6 : i32
    %499 = arith.index_cast %c6_i32 : i32 to index
    %c0_160 = arith.constant 0 : index
    %c0_161 = arith.constant 0 : index
    %500 = vector.load %arg1[%499, %c0_160, %c0_161] : memref<8x8x6xf32, #tpu.memory_space<vmem>>, vector<1x8x6xf32>
    %501 = vector.shape_cast %500 : vector<1x8x6xf32> to vector<8x6xf32>
    %cst_162 = arith.constant dense<0.000000e+00> : vector<8x266xf32>
    %502 = tpu.matmul %501, %0, %cst_162 {dimension_numbers = #tpu.dot_dimension_numbers<[1], [0], [0], [1], [0, 0, 1, 1], [], []>} : vector<8x6xf32>, vector<6x266xf32>, vector<8x266xf32> -> vector<8x266xf32>
    %cst_163 = arith.constant dense<0.000000e+00> : vector<8x266xf32>
    %503 = tpu.matmul %498, %1, %cst_163 {dimension_numbers = #tpu.dot_dimension_numbers<[1], [0], [0], [1], [0, 0, 1, 1], [], []>} : vector<8x64xf32>, vector<64x266xf32>, vector<8x266xf32> -> vector<8x266xf32>
    %504 = arith.addf %502, %503 : vector<8x266xf32>
    %505 = vector.broadcast %2 : vector<1x266xf32> to vector<8x266xf32>
    %506 = arith.addf %504, %505 : vector<8x266xf32>
    %507 = vector.extract_strided_slice %506 {offsets = [0, 0], sizes = [8, 64], strides = [1, 1]} : vector<8x266xf32> to vector<8x64xf32>
    %cst_164 = arith.constant 6.000000e+00 : f32
    %508 = vector.broadcast %cst_164 : f32 to vector<8x64xf32>
    %509 = arith.divf %507, %508 : vector<8x64xf32>
    %cst_165 = arith.constant 5.000000e-01 : f32
    %510 = vector.broadcast %cst_165 : f32 to vector<8x64xf32>
    %511 = arith.addf %509, %510 : vector<8x64xf32>
    %cst_166 = arith.constant 0.000000e+00 : f32
    %cst_167 = arith.constant 1.000000e+00 : f32
    %512 = vector.broadcast %cst_166 : f32 to vector<8x64xf32>
    %513 = arith.maximumf %512, %511 : vector<8x64xf32>
    %514 = vector.broadcast %cst_167 : f32 to vector<8x64xf32>
    %515 = arith.minimumf %514, %513 : vector<8x64xf32>
    %516 = vector.extract_strided_slice %506 {offsets = [0, 64], sizes = [8, 64], strides = [1, 1]} : vector<8x266xf32> to vector<8x64xf32>
    %cst_168 = arith.constant 6.000000e+00 : f32
    %517 = vector.broadcast %cst_168 : f32 to vector<8x64xf32>
    %518 = arith.divf %516, %517 : vector<8x64xf32>
    %cst_169 = arith.constant 5.000000e-01 : f32
    %519 = vector.broadcast %cst_169 : f32 to vector<8x64xf32>
    %520 = arith.addf %518, %519 : vector<8x64xf32>
    %cst_170 = arith.constant 0.000000e+00 : f32
    %cst_171 = arith.constant 1.000000e+00 : f32
    %521 = vector.broadcast %cst_170 : f32 to vector<8x64xf32>
    %522 = arith.maximumf %521, %520 : vector<8x64xf32>
    %523 = vector.broadcast %cst_171 : f32 to vector<8x64xf32>
    %524 = arith.minimumf %523, %522 : vector<8x64xf32>
    %525 = vector.extract_strided_slice %506 {offsets = [0, 128], sizes = [8, 64], strides = [1, 1]} : vector<8x266xf32> to vector<8x64xf32>
    %526 = math.tanh %525 : vector<8x64xf32>
    %527 = vector.extract_strided_slice %506 {offsets = [0, 192], sizes = [8, 64], strides = [1, 1]} : vector<8x266xf32> to vector<8x64xf32>
    %cst_172 = arith.constant 6.000000e+00 : f32
    %528 = vector.broadcast %cst_172 : f32 to vector<8x64xf32>
    %529 = arith.divf %527, %528 : vector<8x64xf32>
    %cst_173 = arith.constant 5.000000e-01 : f32
    %530 = vector.broadcast %cst_173 : f32 to vector<8x64xf32>
    %531 = arith.addf %529, %530 : vector<8x64xf32>
    %cst_174 = arith.constant 0.000000e+00 : f32
    %cst_175 = arith.constant 1.000000e+00 : f32
    %532 = vector.broadcast %cst_174 : f32 to vector<8x64xf32>
    %533 = arith.maximumf %532, %531 : vector<8x64xf32>
    %534 = vector.broadcast %cst_175 : f32 to vector<8x64xf32>
    %535 = arith.minimumf %534, %533 : vector<8x64xf32>
    %536 = vector.extract_strided_slice %506 {offsets = [0, 256], sizes = [8, 10], strides = [1, 1]} : vector<8x266xf32> to vector<8x10xf32>
    %cst_176 = arith.constant 6.000000e+00 : f32
    %537 = vector.broadcast %cst_176 : f32 to vector<8x10xf32>
    %538 = arith.divf %536, %537 : vector<8x10xf32>
    %cst_177 = arith.constant 5.000000e-01 : f32
    %539 = vector.broadcast %cst_177 : f32 to vector<8x10xf32>
    %540 = arith.addf %538, %539 : vector<8x10xf32>
    %cst_178 = arith.constant 0.000000e+00 : f32
    %cst_179 = arith.constant 1.000000e+00 : f32
    %541 = vector.broadcast %cst_178 : f32 to vector<8x10xf32>
    %542 = arith.maximumf %541, %540 : vector<8x10xf32>
    %543 = vector.broadcast %cst_179 : f32 to vector<8x10xf32>
    %544 = arith.minimumf %543, %542 : vector<8x10xf32>
    %545 = arith.mulf %515, %526 : vector<8x64xf32>
    %546 = vector.shape_cast %544 : vector<8x10xf32> to vector<8x10x1xf32>
    %547 = vector.shape_cast %524 : vector<8x64xf32> to vector<8x1x64xf32>
    %548 = vector.broadcast %546 : vector<8x10x1xf32> to vector<8x10x64xf32>
    %549 = vector.broadcast %547 : vector<8x1x64xf32> to vector<8x10x64xf32>
    %550 = arith.mulf %548, %549 : vector<8x10x64xf32>
    %551 = arith.index_cast %c6_i32 : i32 to index
    %c0_180 = arith.constant 0 : index
    %c0_181 = arith.constant 0 : index
    %552 = vector.load %arg9[%551, %c0_180, %c0_181] : memref<8x10x64xf32, #tpu.memory_space<vmem>>, vector<1x10x64xf32>
    %553 = vector.shape_cast %552 : vector<1x10x64xf32> to vector<10x64xf32>
    %554 = arith.index_cast %c6_i32 : i32 to index
    %c0_182 = arith.constant 0 : index
    %c0_183 = arith.constant 0 : index
    %555 = vector.load %arg10[%554, %c0_182, %c0_183] : memref<8x10x64xf32, #tpu.memory_space<vmem>>, vector<1x10x64xf32>
    %556 = vector.shape_cast %555 : vector<1x10x64xf32> to vector<10x64xf32>
    %557 = vector.shape_cast %545 : vector<8x64xf32> to vector<8x1x64xf32>
    %558 = arith.mulf %550, %481 : vector<8x10x64xf32>
    %559 = vector.shape_cast %553 : vector<10x64xf32> to vector<1x10x64xf32>
    %560 = vector.broadcast %557 : vector<8x1x64xf32> to vector<8x10x64xf32>
    %561 = vector.broadcast %559 : vector<1x10x64xf32> to vector<8x10x64xf32>
    %562 = arith.mulf %560, %561 : vector<8x10x64xf32>
    %563 = arith.addf %558, %562 : vector<8x10x64xf32>
    %564 = arith.mulf %550, %487 : vector<8x10x64xf32>
    %565 = vector.shape_cast %556 : vector<10x64xf32> to vector<1x10x64xf32>
    %566 = vector.broadcast %557 : vector<8x1x64xf32> to vector<8x10x64xf32>
    %567 = vector.broadcast %565 : vector<1x10x64xf32> to vector<8x10x64xf32>
    %568 = arith.mulf %566, %567 : vector<8x10x64xf32>
    %569 = arith.addf %564, %568 : vector<8x10x64xf32>
    %570 = arith.mulf %563, %563 : vector<8x10x64xf32>
    %571 = arith.mulf %569, %569 : vector<8x10x64xf32>
    %572 = arith.addf %570, %571 : vector<8x10x64xf32>
    %573 = vector.shape_cast %3 : vector<10x64xf32> to vector<1x10x64xf32>
    %574 = vector.broadcast %573 : vector<1x10x64xf32> to vector<8x10x64xf32>
    %575 = arith.mulf %572, %574 : vector<8x10x64xf32>
    %cst_184 = arith.constant dense<0.000000e+00> : vector<8x64xf32>
    %576 = vector.multi_reduction <add>, %575, %cst_184 [1] : vector<8x10x64xf32> to vector<8x64xf32>
    %577 = vector.broadcast %4 : vector<1x64xf32> to vector<8x64xf32>
    %578 = arith.addf %576, %577 : vector<8x64xf32>
    %579 = math.tanh %578 : vector<8x64xf32>
    %580 = arith.mulf %535, %579 : vector<8x64xf32>
    %c7_i32 = arith.constant 7 : i32
    %581 = arith.index_cast %c7_i32 : i32 to index
    %c0_185 = arith.constant 0 : index
    %c0_186 = arith.constant 0 : index
    %582 = vector.load %arg1[%581, %c0_185, %c0_186] : memref<8x8x6xf32, #tpu.memory_space<vmem>>, vector<1x8x6xf32>
    %583 = vector.shape_cast %582 : vector<1x8x6xf32> to vector<8x6xf32>
    %cst_187 = arith.constant dense<0.000000e+00> : vector<8x266xf32>
    %584 = tpu.matmul %583, %0, %cst_187 {dimension_numbers = #tpu.dot_dimension_numbers<[1], [0], [0], [1], [0, 0, 1, 1], [], []>} : vector<8x6xf32>, vector<6x266xf32>, vector<8x266xf32> -> vector<8x266xf32>
    %cst_188 = arith.constant dense<0.000000e+00> : vector<8x266xf32>
    %585 = tpu.matmul %580, %1, %cst_188 {dimension_numbers = #tpu.dot_dimension_numbers<[1], [0], [0], [1], [0, 0, 1, 1], [], []>} : vector<8x64xf32>, vector<64x266xf32>, vector<8x266xf32> -> vector<8x266xf32>
    %586 = arith.addf %584, %585 : vector<8x266xf32>
    %587 = vector.broadcast %2 : vector<1x266xf32> to vector<8x266xf32>
    %588 = arith.addf %586, %587 : vector<8x266xf32>
    %589 = vector.extract_strided_slice %588 {offsets = [0, 0], sizes = [8, 64], strides = [1, 1]} : vector<8x266xf32> to vector<8x64xf32>
    %cst_189 = arith.constant 6.000000e+00 : f32
    %590 = vector.broadcast %cst_189 : f32 to vector<8x64xf32>
    %591 = arith.divf %589, %590 : vector<8x64xf32>
    %cst_190 = arith.constant 5.000000e-01 : f32
    %592 = vector.broadcast %cst_190 : f32 to vector<8x64xf32>
    %593 = arith.addf %591, %592 : vector<8x64xf32>
    %cst_191 = arith.constant 0.000000e+00 : f32
    %cst_192 = arith.constant 1.000000e+00 : f32
    %594 = vector.broadcast %cst_191 : f32 to vector<8x64xf32>
    %595 = arith.maximumf %594, %593 : vector<8x64xf32>
    %596 = vector.broadcast %cst_192 : f32 to vector<8x64xf32>
    %597 = arith.minimumf %596, %595 : vector<8x64xf32>
    %598 = vector.extract_strided_slice %588 {offsets = [0, 64], sizes = [8, 64], strides = [1, 1]} : vector<8x266xf32> to vector<8x64xf32>
    %cst_193 = arith.constant 6.000000e+00 : f32
    %599 = vector.broadcast %cst_193 : f32 to vector<8x64xf32>
    %600 = arith.divf %598, %599 : vector<8x64xf32>
    %cst_194 = arith.constant 5.000000e-01 : f32
    %601 = vector.broadcast %cst_194 : f32 to vector<8x64xf32>
    %602 = arith.addf %600, %601 : vector<8x64xf32>
    %cst_195 = arith.constant 0.000000e+00 : f32
    %cst_196 = arith.constant 1.000000e+00 : f32
    %603 = vector.broadcast %cst_195 : f32 to vector<8x64xf32>
    %604 = arith.maximumf %603, %602 : vector<8x64xf32>
    %605 = vector.broadcast %cst_196 : f32 to vector<8x64xf32>
    %606 = arith.minimumf %605, %604 : vector<8x64xf32>
    %607 = vector.extract_strided_slice %588 {offsets = [0, 128], sizes = [8, 64], strides = [1, 1]} : vector<8x266xf32> to vector<8x64xf32>
    %608 = math.tanh %607 : vector<8x64xf32>
    %609 = vector.extract_strided_slice %588 {offsets = [0, 192], sizes = [8, 64], strides = [1, 1]} : vector<8x266xf32> to vector<8x64xf32>
    %cst_197 = arith.constant 6.000000e+00 : f32
    %610 = vector.broadcast %cst_197 : f32 to vector<8x64xf32>
    %611 = arith.divf %609, %610 : vector<8x64xf32>
    %cst_198 = arith.constant 5.000000e-01 : f32
    %612 = vector.broadcast %cst_198 : f32 to vector<8x64xf32>
    %613 = arith.addf %611, %612 : vector<8x64xf32>
    %cst_199 = arith.constant 0.000000e+00 : f32
    %cst_200 = arith.constant 1.000000e+00 : f32
    %614 = vector.broadcast %cst_199 : f32 to vector<8x64xf32>
    %615 = arith.maximumf %614, %613 : vector<8x64xf32>
    %616 = vector.broadcast %cst_200 : f32 to vector<8x64xf32>
    %617 = arith.minimumf %616, %615 : vector<8x64xf32>
    %618 = vector.extract_strided_slice %588 {offsets = [0, 256], sizes = [8, 10], strides = [1, 1]} : vector<8x266xf32> to vector<8x10xf32>
    %cst_201 = arith.constant 6.000000e+00 : f32
    %619 = vector.broadcast %cst_201 : f32 to vector<8x10xf32>
    %620 = arith.divf %618, %619 : vector<8x10xf32>
    %cst_202 = arith.constant 5.000000e-01 : f32
    %621 = vector.broadcast %cst_202 : f32 to vector<8x10xf32>
    %622 = arith.addf %620, %621 : vector<8x10xf32>
    %cst_203 = arith.constant 0.000000e+00 : f32
    %cst_204 = arith.constant 1.000000e+00 : f32
    %623 = vector.broadcast %cst_203 : f32 to vector<8x10xf32>
    %624 = arith.maximumf %623, %622 : vector<8x10xf32>
    %625 = vector.broadcast %cst_204 : f32 to vector<8x10xf32>
    %626 = arith.minimumf %625, %624 : vector<8x10xf32>
    %627 = arith.mulf %597, %608 : vector<8x64xf32>
    %628 = vector.shape_cast %626 : vector<8x10xf32> to vector<8x10x1xf32>
    %629 = vector.shape_cast %606 : vector<8x64xf32> to vector<8x1x64xf32>
    %630 = vector.broadcast %628 : vector<8x10x1xf32> to vector<8x10x64xf32>
    %631 = vector.broadcast %629 : vector<8x1x64xf32> to vector<8x10x64xf32>
    %632 = arith.mulf %630, %631 : vector<8x10x64xf32>
    %633 = arith.index_cast %c7_i32 : i32 to index
    %c0_205 = arith.constant 0 : index
    %c0_206 = arith.constant 0 : index
    %634 = vector.load %arg9[%633, %c0_205, %c0_206] : memref<8x10x64xf32, #tpu.memory_space<vmem>>, vector<1x10x64xf32>
    %635 = vector.shape_cast %634 : vector<1x10x64xf32> to vector<10x64xf32>
    %636 = arith.index_cast %c7_i32 : i32 to index
    %c0_207 = arith.constant 0 : index
    %c0_208 = arith.constant 0 : index
    %637 = vector.load %arg10[%636, %c0_207, %c0_208] : memref<8x10x64xf32, #tpu.memory_space<vmem>>, vector<1x10x64xf32>
    %638 = vector.shape_cast %637 : vector<1x10x64xf32> to vector<10x64xf32>
    %639 = vector.shape_cast %627 : vector<8x64xf32> to vector<8x1x64xf32>
    %640 = arith.mulf %632, %563 : vector<8x10x64xf32>
    %641 = vector.shape_cast %635 : vector<10x64xf32> to vector<1x10x64xf32>
    %642 = vector.broadcast %639 : vector<8x1x64xf32> to vector<8x10x64xf32>
    %643 = vector.broadcast %641 : vector<1x10x64xf32> to vector<8x10x64xf32>
    %644 = arith.mulf %642, %643 : vector<8x10x64xf32>
    %645 = arith.addf %640, %644 : vector<8x10x64xf32>
    %646 = arith.mulf %632, %569 : vector<8x10x64xf32>
    %647 = vector.shape_cast %638 : vector<10x64xf32> to vector<1x10x64xf32>
    %648 = vector.broadcast %639 : vector<8x1x64xf32> to vector<8x10x64xf32>
    %649 = vector.broadcast %647 : vector<1x10x64xf32> to vector<8x10x64xf32>
    %650 = arith.mulf %648, %649 : vector<8x10x64xf32>
    %651 = arith.addf %646, %650 : vector<8x10x64xf32>
    %652 = arith.mulf %645, %645 : vector<8x10x64xf32>
    %653 = arith.mulf %651, %651 : vector<8x10x64xf32>
    %654 = arith.addf %652, %653 : vector<8x10x64xf32>
    %655 = vector.shape_cast %3 : vector<10x64xf32> to vector<1x10x64xf32>
    %656 = vector.broadcast %655 : vector<1x10x64xf32> to vector<8x10x64xf32>
    %657 = arith.mulf %654, %656 : vector<8x10x64xf32>
    %cst_209 = arith.constant dense<0.000000e+00> : vector<8x64xf32>
    %658 = vector.multi_reduction <add>, %657, %cst_209 [1] : vector<8x10x64xf32> to vector<8x64xf32>
    %659 = vector.broadcast %4 : vector<1x64xf32> to vector<8x64xf32>
    %660 = arith.addf %658, %659 : vector<8x64xf32>
    %661 = math.tanh %660 : vector<8x64xf32>
    %662 = arith.mulf %617, %661 : vector<8x64xf32>
    %c8_i32 = arith.constant 8 : i32
    %c0_210 = arith.constant 0 : index
    %c0_211 = arith.constant 0 : index
    %663 = vector.load %arg7[%c0_210, %c0_211] : memref<64x1xf32, #tpu.memory_space<vmem>>, vector<64x1xf32>
    %cst_212 = arith.constant dense<0.000000e+00> : vector<8x1xf32>
    %664 = tpu.matmul %662, %663, %cst_212 {dimension_numbers = #tpu.dot_dimension_numbers<[1], [0], [0], [1], [0, 0, 1, 1], [], []>} : vector<8x64xf32>, vector<64x1xf32>, vector<8x1xf32> -> vector<8x1xf32>
    %c0_213 = arith.constant 0 : index
    %c0_214 = arith.constant 0 : index
    %665 = vector.load %arg8[%c0_213, %c0_214] : memref<1x1xf32, #tpu.memory_space<vmem>>, vector<1x1xf32>
    %666 = vector.broadcast %665 : vector<1x1xf32> to vector<8x1xf32>
    %667 = arith.addf %664, %666 : vector<8x1xf32>
    %c0_215 = arith.constant 0 : index
    %c0_216 = arith.constant 0 : index
    %668 = vector.load %arg11[%c0_215, %c0_216] : memref<8x1xf32, #tpu.memory_space<vmem>>, vector<8x1xf32>
    tpu.vector_store %arg11[%c0_215, %c0_216], %667 {strides = array<i32>} : memref<8x1xf32, #tpu.memory_space<vmem>>, vector<8x1xf32>,
    return
  }
  func.func @transform_0(%arg0: i32) -> (i32, i32, i32) {
    %c0_i32 = arith.constant 0 : i32
    %c0_i32_0 = arith.constant 0 : i32
    %c0_i32_1 = arith.constant 0 : i32
    %c0_i32_2 = arith.constant 0 : i32
    return %c0_i32, %c0_i32_0, %c0_i32_1 : i32, i32, i32
  }
  func.func @transform_1(%arg0: i32) -> (i32, i32) {
    %c0_i32 = arith.constant 0 : i32
    %c0_i32_0 = arith.constant 0 : i32
    %c0_i32_1 = arith.constant 0 : i32
    return %c0_i32, %c0_i32_0 : i32, i32
  }
  func.func @transform_2(%arg0: i32) -> (i32, i32) {
    %c0_i32 = arith.constant 0 : i32
    %c0_i32_0 = arith.constant 0 : i32
    %c0_i32_1 = arith.constant 0 : i32
    return %c0_i32, %c0_i32_0 : i32, i32
  }
  func.func @transform_3(%arg0: i32) -> (i32, i32) {
    %c0_i32 = arith.constant 0 : i32
    %c0_i32_0 = arith.constant 0 : i32
    %c0_i32_1 = arith.constant 0 : i32
    return %c0_i32, %c0_i32_0 : i32, i32
  }
  func.func @transform_4(%arg0: i32) -> (i32, i32) {
    %c0_i32 = arith.constant 0 : i32
    %c0_i32_0 = arith.constant 0 : i32
    %c0_i32_1 = arith.constant 0 : i32
    return %c0_i32, %c0_i32_0 : i32, i32
  }
  func.func @transform_5(%arg0: i32) -> (i32, i32) {
    %c0_i32 = arith.constant 0 : i32
    %c0_i32_0 = arith.constant 0 : i32
    %c0_i32_1 = arith.constant 0 : i32
    return %c0_i32, %c0_i32_0 : i32, i32
  }
  func.func @transform_6(%arg0: i32) -> (i32, i32) {
    %c0_i32 = arith.constant 0 : i32
    %c0_i32_0 = arith.constant 0 : i32
    %c0_i32_1 = arith.constant 0 : i32
    return %c0_i32, %c0_i32_0 : i32, i32
  }
  func.func @transform_7(%arg0: i32) -> (i32, i32) {
    %c0_i32 = arith.constant 0 : i32
    %c0_i32_0 = arith.constant 0 : i32
    %c0_i32_1 = arith.constant 0 : i32
    return %c0_i32, %c0_i32_0 : i32, i32
  }
  func.func @transform_8(%arg0: i32) -> (i32, i32, i32) {
    %c0_i32 = arith.constant 0 : i32
    %c0_i32_0 = arith.constant 0 : i32
    %c0_i32_1 = arith.constant 0 : i32
    %c0_i32_2 = arith.constant 0 : i32
    return %c0_i32, %c0_i32_0, %c0_i32_1 : i32, i32, i32
  }
  func.func @transform_9(%arg0: i32) -> (i32, i32, i32) {
    %c0_i32 = arith.constant 0 : i32
    %c0_i32_0 = arith.constant 0 : i32
    %c0_i32_1 = arith.constant 0 : i32
    %c0_i32_2 = arith.constant 0 : i32
    return %c0_i32, %c0_i32_0, %c0_i32_1 : i32, i32, i32
  }
  func.func @transform_10(%arg0: i32) -> (i32, i32) {
    %c0_i32 = arith.constant 0 : i32
    %c0_i32_0 = arith.constant 0 : i32
    %c0_i32_1 = arith.constant 0 : i32
    return %c0_i32, %c0_i32_0 : i32, i32
  }
}

</mosaic_0001>

<bundles_post_ra>
// kernel: tpu_custom_call.1
= control target key start
LH: loop header
LB: loop body
LE: loop exit
PB: predicated region body
PF: predicated region fallthrough
CT: control target
= control target key end

     0   :  { %v12550_v0 = vmov 0.0|0.0   ;;  %vm9002_vm0 = vmmov 0   ;;  %v12552_v4 = vmov 0.0   ;;  %vm218_vm1 = vcmask 1045504   ;;  %s9005_s17 = smov 64   ;;  %s12539_s2 = inlined_call_operand.vmem [shape: f32[64,266], index: 2, kind: input, shape index: {}]   ;;  %s12540_s1 = inlined_call_operand.vmem [shape: f32[6,266], index: 1, kind: input, shape index: {}]   ;;  %s12541_s0 = inlined_call_operand.vmem [shape: f32[8,8,6], index: 0, kind: input, shape index: {}]   ;;  %s12542_s3 = inlined_call_operand.vmem [shape: f32[1,266], index: 3, kind: input, shape index: {}]   ;;  %s12543_s8 = inlined_call_operand.vmem [shape: f32[8,10,64], index: 8, kind: input, shape index: {}]   ;;  %s12544_s9 = inlined_call_operand.vmem [shape: f32[8,10,64], index: 9, kind: input, shape index: {}]   ;;  %s12545_s4 = inlined_call_operand.vmem [shape: f32[10,64], index: 4, kind: input, shape index: {}]   ;;  %s12546_s5 = inlined_call_operand.vmem [shape: f32[1,64], index: 5, kind: input, shape index: {}]   ;;  %s12547_s6 = inlined_call_operand.vmem [shape: f32[64,1], index: 6, kind: input, shape index: {}]   ;;  %s12548_s7 = inlined_call_operand.<no memory space> [shape: f32[1,1], index: 7, kind: input, shape index: {}]   ;;  %s12549_s10 = inlined_call_operand.vmem [shape: f32[8,1], index: 10, kind: output, shape index: {}]  }
   0x1   :  { %8605 = vmatprep.subr.bf16.mxu1 %v12550_v0  ;;  %v42_v1 = vld [vmem:[%s12539_s2 + $0x10] sm:$0xff]  ;;  %v45_v2 = vld [vmem:[%s12539_s2 + $0x28] sm:$0xff]  ;;  %8394 = vmatprep.mubr.msk.f32.mxu1 %vm9002_vm0, %v12552_v4  ;;  %v44_v6 = vld [vmem:[%s12539_s2 + $0x20] sm:$0xff]  ;;  %vm214_vm2 = vcmask 48128   ;;  %v370_v42 = vlaneseq  ;;  %vm971_vm3 = vcmask 1048064   ;;  %vm973_vm4 = vcmask 1041920  }
   0x2   :  { %v41_v3 = vld [vmem:[%s12539_s2 + $0x8] sm:$0xff]  ;;  %v9073_v5 = vpack.c.bf16 %v45_v2, %v42_v1  ;;  %v40_v7 = vld [vmem:[%s12539_s2] sm:$0xff]  ;;  %v43_v8 = vld [vmem:[%s12539_s2 + $0x18] sm:$0xff]  ;;  %137 = vmatprep.mubr.f32.mxu0 %v12552_v4  ;;  %vm1078_vm5 = vcmask 1041409   ;;  %vm1081_vm6 = vcmask 1042434   ;;  %vm1084_vm7 = vcmask 1043459  }
   0x3   :  { %v9085_v9 = vpack.c.bf16 %v44_v6, %v41_v3  ;;  %v9087_v10 = vpack.c.bf16 %v43_v8, %v40_v7  ;;  %v48_v11 = vld [vmem:[%s12539_s2 + $0x40] sm:$0xff]  ;;  %v51_v12 = vld [vmem:[%s12539_s2 + $0x58] sm:$0xff]  ;;  %v50_v15 = vld [vmem:[%s12539_s2 + $0x50] sm:$0xff]  ;;  %v371_v43 = vshrl.u32 %v370_v42, 7  ;;  %vm1087_vm8 = vcmask 1044484  }
   0x4   :  { %12713 = vst [vmem:[#allocation3_spill] sm:$0xff] %v9073_v5  ;;  %v47_v13 = vld [vmem:[%s12539_s2 + $0x38] sm:$0xff]  ;;  %8607 = vmatpush3.bf16.msra.mxu1 %v9073_v5  ;;  %v9099_v14 = vpack.c.bf16 %v51_v12, %v48_v11  ;;  %v46_v16 = vld [vmem:[%s12539_s2 + $0x30] sm:$0xff]  ;;  %v49_v17 = vld [vmem:[%s12539_s2 + $0x48] sm:$0xff]  ;;  %vm1090_vm9 = vcmask 1045509   ;;  %vm1093_vm10 = vcmask 1046534  }
   0x5   :  { %12714 = vst [vmem:[#allocation4_spill] sm:$0xff] %v9085_v9  ;;  %12715 = vst [vmem:[#allocation5_spill] sm:$0xff] %v9087_v10  ;;  %8590 = vmatprep.subr.bf16.mxu0 %v9085_v9  ;;  %8608 = vmatprep.subr.bf16.mxu1 %v12550_v0  ;;  %v9112_v18 = vpack.c.bf16 %v50_v15, %v47_v13  ;;  %v54_v19 = vld [vmem:[%s12539_s2 + $0x70] sm:$0xff]  ;;  %v57_v20 = vld [vmem:[%s12539_s2 + $0x88] sm:$0xff]  ;;  %v9124_v22 = vpack.c.bf16 %v49_v17, %v46_v16  ;;  %v9220_v44 = vsub.s32 0, %v371_v43  ;;  %vm1096_vm11 = vcmask 1047559  }
   0x6   :  { %12716 = vst [vmem:[#allocation6_spill] sm:$0xff] %v9099_v14  ;;  %v53_v21 = vld [vmem:[%s12539_s2 + $0x68] sm:$0xff]  ;;  %8592 = vmatpush1.bf16.msra.mxu0 %v9087_v10  ;;  %v56_v23 = vld [vmem:[%s12539_s2 + $0x80] sm:$0xff]  ;;  %v55_v26 = vld [vmem:[%s12539_s2 + $0x78] sm:$0xff]  ;;  %v9139_v27 = vpack.c.bf16 %v57_v20, %v54_v19  ;;  %v9225_v47 = vsub.s32 1, %v371_v43  ;;  %v9230_v52 = vsub.s32 2, %v371_v43 }
   0x7   :  { %12717 = vst [vmem:[#allocation7_spill] sm:$0xff] %v9112_v18  ;;  %12718 = vst [vmem:[#allocation8_spill] sm:$0xff] %v9124_v22  ;;  %8594 = vmatprep.subr.bf16.mxu0 %v9112_v18  ;;  %v9130_v24 = vpack.c.bf16 %v56_v23, %v53_v21  ;;  %v52_v25 = vld [vmem:[%s12539_s2 + $0x60] sm:$0xff]  ;;  %v59_v28 = vld [vmem:[%s12539_s2 + $0x98] sm:$0xff]  ;;  %v9252_v21 = vsub.s32 3, %v371_v43  ;;  %vm69_vm12 = vcmask 523264  }
   0x8   :  { %8610 = vmatpush3.bf16.msra.mxu1 %v9099_v14  ;;  %12720 = vst [vmem:[#allocation10_spill] sm:$0xff] %v9139_v27  ;;  %v62_v29 = vld [vmem:[%s12539_s2 + $0xb0] sm:$0xff]  ;;  %v60_v30 = vld [vmem:[%s12539_s2 + $0xa0] sm:$0xff]  ;;  %v63_v31 = vld [vmem:[%s12539_s2 + $0xb8] sm:$0xff]  ;;  %v9155_v32 = vpack.c.bf16 %v55_v26, %v52_v25  ;;  %v9004_v23 = vmov 1966171168  }
   0x9   :  { %12719 = vst [vmem:[#allocation9_spill] sm:$0xff] %v9130_v24  ;;  %8611 = vmatprep.subr.bf16.mxu1 %v12550_v0  ;;  %v9158_v33 = vpack.c.bf16 %v62_v29, %v59_v28  ;;  %v58_v34 = vld [vmem:[%s12539_s2 + $0x90] sm:$0xff]  ;;  %v61_v35 = vld [vmem:[%s12539_s2 + $0xa8] sm:$0xff]  ;;  %v9167_v36 = vpack.c.bf16 %v63_v31, %v60_v30  ;;  %v37_v39 = vld [vmem:[%s12540_s1] sm:$0x3f]  ;;  %v494_v25 = vunpack.c.l.s4 %v9004_v23  ;;  %v9255_v28 = vsub.s32 4, %v371_v43 }
   0xa   :  { %8596 = vmatpush1.bf16.msra.mxu0 %v9124_v22  ;;  %12721 = vst [vmem:[#allocation11_spill] sm:$0xff] %v9155_v32  ;;  %v38_v37 = vld [vmem:[%s12540_s1 + $0x8] sm:$0x3f]  ;;  %v9174_v38 = vpack.c.bf16 %v61_v35, %v58_v34  ;;  %v68_v40 = vld [vmem:[%s12541_s0] sm:$0xff]  ;;  %v39_v41 = vld [vmem:[%s12540_s1 + $0x10] sm:$0x3f] }
   0xb   :  { %8598 = vmatprep.subr.bf16.mxu0 %v9130_v24  ;;  %12722 = vst [vmem:[#allocation12_spill] sm:$0xff] %v9158_v33  ;;  %12723 = vst [vmem:[#allocation13_spill] sm:$0xff] %v9167_v36  ;;  %v64_v46 = vld [vmem:[%s12542_s3] sm:$0x7]  ;;  %v495_v29 = vunpack.c.0.s8 %v494_v25  ;;  %v9258_v31 = vsub.s32 5, %v371_v43  ;;  %vm8183_vm13 = vcmask 7168  }
   0xc   :  { %8613 = vmatpush3.bf16.msra.mxu1 %v9139_v27  ;;  %12724 = vst [vmem:[#allocation14_spill] sm:$0xff] %v9174_v38  ;;  %12725 = vst [vmem:[#allocation15_spill] sm:$0xff] %v9225_v47  ;;  %v9228_v50 = vrot.slane %v64_v46, %v9220_v44  ;;  %v9233_v54 = vrot.slane %v64_v46, %v9225_v47  ;;  %v9237_v59 = vrot.slane %v64_v46, %v9230_v52 }
   0xd   :  { %8614 = vmatprep.subr.bf16.mxu1 %v12550_v0  ;;  %12727 = vst [vmem:[#allocation17_spill] sm:$0xff] %v9230_v52  ;;  %12730 = vst [vmem:[#allocation20_spill] sm:$0xff] %v9252_v21  ;;  %v9260_v34 = vsub.s32 %v495_v29, %v371_v43 }
   0xe   :  { %8600 = vmatpush1.bf16.msra.mxu0 %v9155_v32  ;;  %12726 = vst [vmem:[#allocation16_spill] sm:$0xff] %v9228_v50  ;;  %12728 = vst [vmem:[#allocation18_spill] sm:$0xff] %v9233_v54 }
   0xf   :  { %8602 = vmatprep.subr.bf16.mxu0 %v9158_v33  ;;  %12729 = vst [vmem:[#allocation19_spill] sm:$0xff] %v9237_v59  ;;  %12731 = vst [vmem:[#allocation21_spill] sm:$0xff] %v9255_v28 }
  0x10   :  { %8616 = vmatpush3.bf16.msra.mxu1 %v9167_v36  ;;  %12732 = vst [vmem:[#allocation22_spill] sm:$0xff] %v9258_v31  ;;  %12733 = vst [vmem:[#allocation23_spill] sm:$0xff] %v9260_v34 }
  0x11   :  { %8189 = vmatprep.subr.msk.mxu1 %vm218_vm1, %v38_v37 }
  0x12   :  { %8604 = vmatpush1.bf16.msra.mxu0 %v9174_v38 }
  0x13   :  { %8395 = vmatmul.mubr.f32.vlgmr.msra.gmra.mrb[0].mxu1 %v12552_v4  ;;  %8618 = vmatprep.subr.bf16.mxu0 %v9085_v9 }
  0x14   :  { %8190 = vmatpush1.msk.msra.mxu1 %vm218_vm1, %v37_v39  ;;  %292 = vmatprep.mubr.f32.mxu1 %v12552_v4 }
  0x15   :  { %138 = vmatmul.mubr.f32.vlgmr.msra.gmra.mrb[0].mxu0 %v12552_v4  ;;  %8397 = vmatprep.subr.mxu1 %v12552_v4 }
  0x16   :  { %8620 = vmatpush1.bf16.msra.mxu0 %v9087_v10  ;;  %1171 = vmatprep.mubr.f32.mxu0 %v12552_v4 }
  0x17   :  { %8191 = vmatmul.mubr.msk.f32.vlgmr.msra.gmra.mrb[2].mxu1 %vm214_vm2, %v68_v40  ;;  %8622 = vmatprep.subr.bf16.mxu0 %v9112_v18 }
  0x18   :  { %8398 = vmatpush3.msk.msra.mxu1 %vm218_vm1, %v39_v41  ;;  %8399 = vmatprep.mubr.msk.f32.mxu1 %vm9002_vm0, %v12552_v4  ;;  %v9268_v41 = vsub.s32 7, %v371_v43 }
  0x19   :  { %8633 = vmatprep.subr.bf16.mxu1 %v12550_v0 }
  0x1a   :  { %8624 = vmatpush1.bf16.msra.mxu0 %v9124_v22  ;;  %12735 = vst [vmem:[#allocation25_spill] sm:$0xff] %v9268_v41 }
  0x1b   :  { %8400 = vmatmul.mubr.msk.f32.vlgmr.msra.gmra.mrb[4].mxu1 %vm214_vm2, %v68_v40  ;;  %8626 = vmatprep.subr.bf16.mxu0 %v9130_v24 }
  0x1c   :  { %8635 = vmatpush3.bf16.msra.mxu1 %v9073_v5  ;;  %8418 = vmatprep.mubr.msk.f32.mxu1 %vm9002_vm0, %v12552_v4 }
  0x1d   :  { %8636 = vmatprep.subr.bf16.mxu1 %v12550_v0 }
  0x1e   :  { %8628 = vmatpush1.bf16.msra.mxu0 %v9155_v32 }
  0x1f   :  { %8630 = vmatprep.subr.bf16.mxu0 %v9158_v33 }
  0x20   :  { %8638 = vmatpush3.bf16.msra.mxu1 %v9099_v14 }
  0x21   :  { %8639 = vmatprep.subr.bf16.mxu1 %v12550_v0 }
  0x22   :  { %8632 = vmatpush1.bf16.msra.mxu0 %v9174_v38 }
  0x23   :  { %8646 = vmatprep.subr.bf16.mxu0 %v9085_v9 }
  0x24   :  { %8641 = vmatpush3.bf16.msra.mxu1 %v9139_v27 }
  0x25   :  { %8642 = vmatprep.subr.bf16.mxu1 %v12550_v0 }
  0x28   :  { %8644 = vmatpush3.bf16.msra.mxu1 %v9167_v36 }
  0x29   :  { %8198 = vmatprep.subr.msk.mxu1 %vm218_vm1, %v38_v37  ;;  %v9263_v37 = vsub.s32 6, %v371_v43 }
  0x2b   :  { %12734 = vst [vmem:[#allocation24_spill] sm:$0xff] %v9263_v37 }
  0xe6   :  { %v210_v45 = vpop.f32.mrb[0].mxu1 }
  0xe7   :  { %v8396_v48 = vpop.f32.mrb[1].mxu1 }
  0xe8   :  { %v139_v49 = vpop.f32.mrb[0].mxu0 }
  0xe9   :  { %v141_v51 = vpop.f32.mrb[1].mxu0 }
  0xea   :  { %v294_v53 = vpop.f32.mrb[2].mxu1 }
  0xeb   :  { %v295_v55 = vadd.f32 %v294_v53, %v139_v49  ;;  %v296_v56 = vpop.f32.mrb[3].mxu1  ;;  %v9276_v49 = vld [vmem:[%s12543_s8 + $0x8] sm:$0x3] }
  0xec   :  { %v297_v57 = vadd.f32 %v296_v56, %v141_v51  ;;  %v9281_v51 = vld [vmem:[%s12543_s8] sm:$0xff]  ;;  %v9289_v56 = vld [vmem:[%s12544_s9 + $0x8] sm:$0x3] }
  0xed   :  { %v385_v58 = vadd.f32 %v9228_v50, %v295_v55 }
  0xee   :  { %v9240_v60 = vadd.f32 %v9233_v54, %v297_v57  ;;  %v365_v61 = vpop.f32.mrb[4].mxu1  ;;  %v9294_v57 = vld [vmem:[%s12544_s9] sm:$0xff] }
  0xef   :  { %v389_v62 = vmul.f32 0.16666667, %v385_v58  ;;  %v366_v63 = vadd.f32 %v365_v61, %v210_v45  ;;  %v8401_v1 = vpop.f32.mrb[5].mxu1 }
  0xf0   :  { %8846 = vtanh.f32 %v9240_v60 }
  0xf1   :  { %v390_v2 = vadd.f32 0.5, %v389_v62  ;;  %v387_v3 = vadd.f32 %v9237_v59, %v366_v63 }
  0xf3   :  { %v398_v6 = vmul.f32 0.16666667, %v387_v3  ;;  %v391_v7 = vmax.f32 %v390_v2, 0.0 }
  0xf5   :  { %v399_v8 = vadd.f32 0.5, %v398_v6  ;;  %v9244_v12 = vmin.f32 %v391_v7, 1.0 }
  0xf7   :  { %v400_v11 = vmax.f32 %v399_v8, 0.0 }
  0xf9   :  { %v401_v13 = vmin.f32 %v400_v11, 1.0 }
  0xfa   :  { %v8847_v15 = vpop.eup %8846 }
  0xfb   :  { %v9247_v16 = vmul.f32 %v8847_v15, %v9244_v12  ;;  %v428_v17 = vrot.slane %v401_v13, %v9230_v52  ;;  %v417_v19 = vrot.slane %v401_v13, %v9225_v47  ;;  %v406_v20 = vrot.slane %v401_v13, %v9220_v44 }
  0xfc   :  { %v439_v26 = vrot.slane %v401_v13, %v9252_v21  ;;  %v450_v30 = vrot.slane %v401_v13, %v9255_v28  ;;  %v461_v35 = vrot.slane %v401_v13, %v9258_v31  ;;  %v472_v40 = vrot.slane %v401_v13, %v9263_v37 }
  0xfd   :  { %430 = vbcast.lane.b32.xlu1 %v428_v17, 256  ;;  %419 = vbcast.lane.b32.xlu0 %v417_v19, 256  ;;  %v609_v39 = vrot.slane %v9247_v16, %v9260_v34  ;;  %v483_v45 = vrot.slane %v401_v13, %v9268_v41  ;;  %v602_v63 = vcombine.high %v9247_v16, %v9247_v16 }
  0xff   :  { %v625_v42 = vrot.slane %v609_v39, %v9260_v34  ;;  %v617_v48 = vcombine.high %v609_v39, %v609_v39  ;;  %v616_v11 = vrot.slane %v602_v63, %v9260_v34 }
 0x101   :  { %434 = vbcast.lane.b32.xlu1 %v428_v17, 264  ;;  %423 = vbcast.lane.b32.xlu0 %v417_v19, 264  ;;  %v670_v46 = vrot.slane %v625_v42, %v9220_v44  ;;  %v639_v55 = vrot.slane %v617_v48, %v9260_v34  ;;  %v647_v3 = vcombine.high %v625_v42, %v625_v42 }
 0x102   :  { %v632_v16 = vrot.slane %v616_v11, %v9260_v34  ;;  %v618_v39 = vcombine.high %v616_v11, %v616_v11 }
 0x103   :  { %v708_v43 = vmul.f32 %v670_v46, %v9276_v49  ;;  %v707_v53 = vmul.f32 %v670_v46, %v9281_v51  ;;  %v804_v58 = vmul.f32 %v670_v46, %v9289_v56  ;;  %v803_v61 = vmul.f32 %v670_v46, %v9294_v57 }
 0x104   :  { %v674_v62 = vrot.slane %v639_v55, %v9220_v44  ;;  %v678_v8 = vrot.slane %v647_v3, %v9220_v44 }
 0x105   :  { %412 = vbcast.lane.b32.xlu1 %v406_v20, 264  ;;  %408 = vbcast.lane.b32.xlu0 %v406_v20, 256  ;;  %v686_v20 = vrot.slane %v632_v16, %v9220_v44 }
 0x106   :  { %v710_v1 = vmul.f32 %v674_v62, %v9276_v49  ;;  %v709_v2 = vmul.f32 %v674_v62, %v9281_v51  ;;  %v806_v6 = vmul.f32 %v674_v62, %v9289_v56  ;;  %v805_v7 = vmul.f32 %v674_v62, %v9294_v57 }
 0x107   :  { %v712_v13 = vmul.f32 %v678_v8, %v9276_v49  ;;  %v711_v15 = vmul.f32 %v678_v8, %v9281_v51  ;;  %v808_v17 = vmul.f32 %v678_v8, %v9289_v56  ;;  %v807_v19 = vmul.f32 %v678_v8, %v9294_v57 }
 0x108   :  { %v716_v23 = vmul.f32 %v686_v20, %v9276_v49  ;;  %v715_v25 = vmul.f32 %v686_v20, %v9281_v51  ;;  %v812_v29 = vmul.f32 %v686_v20, %v9289_v56 }
 0x109   :  { %445 = vbcast.lane.b32.xlu1 %v439_v26, 264  ;;  %441 = vbcast.lane.b32.xlu0 %v439_v26, 256  ;;  %v649_v26 = vcombine.high %v639_v55, %v639_v55 }
 0x10d   :  { %456 = vbcast.lane.b32.xlu1 %v450_v30, 264  ;;  %452 = vbcast.lane.b32.xlu0 %v450_v30, 256  ;;  %v811_v30 = vmul.f32 %v686_v20, %v9294_v57 }
 0x111   :  { %467 = vbcast.lane.b32.xlu1 %v461_v35, 264  ;;  %463 = vbcast.lane.b32.xlu0 %v461_v35, 256  ;;  %v682_v35 = vrot.slane %v649_v26, %v9220_v44 }
 0x113   :  { %v713_v42 = vmul.f32 %v682_v35, %v9281_v51  ;;  %v810_v46 = vmul.f32 %v682_v35, %v9289_v56  ;;  %v809_v48 = vmul.f32 %v682_v35, %v9294_v57 }
 0x115   :  { %478 = vbcast.lane.b32.xlu1 %v472_v40, 264  ;;  %474 = vbcast.lane.b32.xlu0 %v472_v40, 256  ;;  %v714_v40 = vmul.f32 %v682_v35, %v9276_v49 }
 0x119   :  { %489 = vbcast.lane.b32.xlu1 %v483_v45, 264  ;;  %485 = vbcast.lane.b32.xlu0 %v483_v45, 256  ;;  %v646_v45 = vrot.slane %v618_v39, %v9260_v34 }
 0x11b   :  { %v650_v3 = vcombine.high %v646_v45, %v646_v45 }
 0x11d   :  { %741 = vrot.lane.b32.xlu1 %v708_v43, %s9005_s17  ;;  %739 = vrot.lane.b32.xlu0 %v707_v53, %s9005_s17  ;;  %v690_v43 = vrot.slane %v646_v45, %v9220_v44  ;;  %v698_v8 = vrot.slane %v650_v3, %v9220_v44 }
 0x11f   :  { %v718_v53 = vmul.f32 %v690_v43, %v9276_v49  ;;  %v717_v55 = vmul.f32 %v690_v43, %v9281_v51  ;;  %v813_v62 = vmul.f32 %v690_v43, %v9294_v57  ;;  %v722_v11 = vmul.f32 %v698_v8, %v9276_v49 }
 0x121   :  { %837 = vrot.lane.b32.xlu1 %v804_v58, %s9005_s17  ;;  %835 = vrot.lane.b32.xlu0 %v803_v61, %s9005_s17  ;;  %v648_v58 = vcombine.high %v632_v16, %v632_v16  ;;  %v814_v61 = vmul.f32 %v690_v43, %v9289_v56  ;;  %v817_v16 = vmul.f32 %v698_v8, %v9294_v57 }
 0x123   :  { %v694_v63 = vrot.slane %v648_v58, %v9220_v44 }
 0x125   :  { %745 = vrot.lane.b32.xlu1 %v710_v1, %s9005_s17  ;;  %743 = vrot.lane.b32.xlu0 %v709_v2, %s9005_s17  ;;  %v720_v1 = vmul.f32 %v694_v63, %v9276_v49  ;;  %v719_v2 = vmul.f32 %v694_v63, %v9281_v51  ;;  %v65_v49 = vld [vmem:[%s12545_s4] sm:$0xff] }
 0x129   :  { %841 = vrot.lane.b32.xlu1 %v806_v6, %s9005_s17  ;;  %839 = vrot.lane.b32.xlu0 %v805_v7, %s9005_s17  ;;  %v816_v6 = vmul.f32 %v694_v63, %v9289_v56  ;;  %v815_v7 = vmul.f32 %v694_v63, %v9294_v57 }
 0x12d   :  { %749 = vrot.lane.b32.xlu1 %v712_v13, %s9005_s17  ;;  %747 = vrot.lane.b32.xlu0 %v711_v15, %s9005_s17  ;;  %v721_v13 = vmul.f32 %v698_v8, %v9281_v51  ;;  %v818_v15 = vmul.f32 %v698_v8, %v9289_v56  ;;  %v8194_v51 = vld [vmem:[%s12546_s5] ss:$0 sm:$0xff] }
 0x131   :  { %845 = vrot.lane.b32.xlu1 %v808_v17, %s9005_s17  ;;  %843 = vrot.lane.b32.xlu0 %v807_v19, %s9005_s17  ;;  %v66_v17 = vld [vmem:[%s12545_s4 + $0x8] sm:$0x3] }
 0x135   :  { %757 = vrot.lane.b32.xlu1 %v716_v23, %s9005_s17  ;;  %755 = vrot.lane.b32.xlu0 %v715_v25, %s9005_s17 }
 0x139   :  { %853 = vrot.lane.b32.xlu1 %v812_v29, %s9005_s17  ;;  %851 = vrot.lane.b32.xlu0 %v811_v30, %s9005_s17 }
 0x13d   :  { %753 = vrot.lane.b32.xlu1 %v714_v40, %s9005_s17  ;;  %751 = vrot.lane.b32.xlu0 %v713_v42, %s9005_s17 }
 0x141   :  { %849 = vrot.lane.b32.xlu1 %v810_v46, %s9005_s17  ;;  %847 = vrot.lane.b32.xlu0 %v809_v48, %s9005_s17 }
 0x145   :  { %761 = vrot.lane.b32.xlu1 %v718_v53, %s9005_s17  ;;  %759 = vrot.lane.b32.xlu0 %v717_v55, %s9005_s17 }
 0x149   :  { %857 = vrot.lane.b32.xlu1 %v814_v61, %s9005_s17  ;;  %855 = vrot.lane.b32.xlu0 %v813_v62, %s9005_s17 }
 0x14d   :  { %765 = vrot.lane.b32.xlu1 %v720_v1, %s9005_s17  ;;  %763 = vrot.lane.b32.xlu0 %v719_v2, %s9005_s17 }
 0x151   :  { %861 = vrot.lane.b32.xlu1 %v816_v6, %s9005_s17  ;;  %859 = vrot.lane.b32.xlu0 %v815_v7, %s9005_s17  ;;  %v492_v6 = vcombine.high %v9244_v12, %v9244_v12  ;;  %v499_v7 = vrot.slane %v9244_v12, %v9260_v34 }
 0x155   :  { %769 = vrot.lane.b32.xlu1 %v722_v11, %s9005_s17  ;;  %767 = vrot.lane.b32.xlu0 %v721_v13, %s9005_s17  ;;  %v506_v13 = vrot.slane %v492_v6, %v9260_v34 }
 0x157   :  { %v522_v41 = vrot.slane %v506_v13, %v9260_v34 }
 0x159   :  { %865 = vrot.lane.b32.xlu1 %v818_v15, %s9005_s17  ;;  %863 = vrot.lane.b32.xlu0 %v817_v16, %s9005_s17  ;;  %v507_v15 = vcombine.high %v499_v7, %v499_v7  ;;  %v538_v59 = vcombine.high %v522_v41, %v522_v41  ;;  %v560_v27 = vrot.slane %v522_v41, %v9220_v44 }
 0x15b   :  { %v529_v0 = vrot.slane %v507_v15, %v9260_v34  ;;  %v568_v33 = vrot.slane %v538_v59, %v9220_v44 }
 0x15d   :  { %951 = vrot.lane.b32.xlu1 %v66_v17, %s9005_s17  ;;  %949 = vrot.lane.b32.xlu0 %v65_v49, %s9005_s17  ;;  %v515_v49 = vrot.slane %v499_v7, %v9260_v34  ;;  %v539_v6 = vcombine.high %v529_v0, %v529_v0  ;;  %v548_v7 = vrot.slane %v529_v0, %v9220_v44 }
 0x15f   :  { %v537_v12 = vcombine.high %v515_v49, %v515_v49  ;;  %v544_v15 = vrot.slane %v515_v49, %v9220_v44  ;;  %v556_v50 = vrot.slane %v539_v6, %v9220_v44 }
 0x161   :  { %1050 = vrot.lane.b32.xlu0 %v8194_v51, %s9005_s17  ;;  %v508_v51 = vcombine.high %v506_v13, %v506_v13  ;;  %v552_v21 = vrot.slane %v537_v12, %v9220_v44 }
 0x163   :  { %v536_v37 = vrot.slane %v508_v51, %v9260_v34 }
 0x165   :  { %v540_v54 = vcombine.high %v536_v37, %v536_v37  ;;  %v564_v12 = vrot.slane %v536_v37, %v9220_v44 }
 0x167   :  { %v572_v6 = vrot.slane %v540_v54, %v9220_v44 }
 0x16f   :  { %v431_v56 = vpop.permute.xlu1 %430  ;;  %v420_v57 = vpop.permute.xlu0 %419 }
 0x170   :  { %v585_v52 = vmul.f32 %v552_v21, %v431_v56  ;;  %v583_v47 = vmul.f32 %v548_v7, %v420_v57 }
 0x172   :  { %v655_v56 = vmul.f32 0.0, %v585_v52  ;;  %v653_v57 = vmul.f32 0.0, %v583_v47 }
 0x173   :  { %v435_v19 = vpop.permute.xlu1 %434  ;;  %v424_v20 = vpop.permute.xlu0 %423 }
 0x174   :  { %v586_v38 = vmul.f32 %v552_v21, %v435_v19  ;;  %v584_v0 = vmul.f32 %v548_v7, %v424_v20 }
 0x176   :  { %v656_v52 = vmul.f32 0.0, %v586_v38  ;;  %v654_v47 = vmul.f32 0.0, %v584_v0 }
 0x177   :  { %v413_v23 = vpop.permute.xlu1 %412  ;;  %v409_v25 = vpop.permute.xlu0 %408 }
 0x178   :  { %v582_v34 = vmul.f32 %v544_v15, %v413_v23  ;;  %v581_v36 = vmul.f32 %v544_v15, %v409_v25 }
 0x17a   :  { %v652_v41 = vmul.f32 0.0, %v582_v34  ;;  %v651_v37 = vmul.f32 0.0, %v581_v36 }
 0x17b   :  { %v446_v26 = vpop.permute.xlu1 %445  ;;  %v442_v29 = vpop.permute.xlu0 %441 }
 0x17c   :  { %v588_v14 = vmul.f32 %v556_v50, %v446_v26  ;;  %v587_v49 = vmul.f32 %v556_v50, %v442_v29 }
 0x17e   :  { %v658_v19 = vmul.f32 0.0, %v588_v14  ;;  %v657_v59 = vmul.f32 0.0, %v587_v49 }
 0x17f   :  { %v457_v30 = vpop.permute.xlu1 %456  ;;  %v453_v35 = vpop.permute.xlu0 %452 }
 0x180   :  { %v590_v32 = vmul.f32 %v560_v27, %v457_v30  ;;  %v589_v5 = vmul.f32 %v560_v27, %v453_v35 }
 0x182   :  { %v660_v34 = vmul.f32 0.0, %v590_v32  ;;  %v659_v36 = vmul.f32 0.0, %v589_v5 }
 0x183   :  { %v468_v39 = vpop.permute.xlu1 %467  ;;  %v464_v40 = vpop.permute.xlu0 %463 }
 0x184   :  { %v592_v24 = vmul.f32 %v564_v12, %v468_v39  ;;  %v591_v22 = vmul.f32 %v564_v12, %v464_v40 }
 0x186   :  { %v662_v29 = vmul.f32 0.0, %v592_v24  ;;  %v661_v30 = vmul.f32 0.0, %v591_v22 }
 0x187   :  { %v9382_v42 = vpop.permute.xlu1 %478  ;;  %v9384_v45 = vpop.permute.xlu0 %474 }
 0x188   :  { %v594_v21 = vmul.f32 %v568_v33, %v9382_v42  ;;  %v593_v50 = vmul.f32 %v568_v33, %v9384_v45 }
 0x18a   :  { %v664_v38 = vmul.f32 0.0, %v594_v21  ;;  %v663_v39 = vmul.f32 0.0, %v593_v50 }
 0x18b   :  { %v9386_v46 = vpop.permute.xlu1 %489  ;;  %v9388_v48 = vpop.permute.xlu0 %485 }
 0x18c   :  { %v596_v54 = vmul.f32 %v572_v6, %v9386_v46  ;;  %v595_v27 = vmul.f32 %v572_v6, %v9388_v48 }
 0x18e   :  { %v9479_v24 = vmul.f32 0.0, %v596_v54  ;;  %v9481_v32 = vmul.f32 0.0, %v595_v27 }
 0x18f   :  { %v9390_v43 = vpop.permute.xlu1 %741  ;;  %v9392_v53 = vpop.permute.xlu0 %739 }
 0x190   :  { %v9462_v14 = vadd.f32 %v9390_v43, %v652_v41  ;;  %v9465_v40 = vadd.f32 %v9392_v53, %v651_v37 }
 0x193   :  { %v9394_v55 = vpop.permute.xlu1 %837  ;;  %v9396_v58 = vpop.permute.xlu0 %835 }
 0x194   :  { %v9456_v20 = vadd.f32 %v9394_v55, %v652_v41  ;;  %v9459_v26 = vadd.f32 %v9396_v58, %v651_v37 }
 0x196   :  { %v916_v46 = vmul.f32 %v9456_v20, %v9456_v20  ;;  %v915_v48 = vmul.f32 %v9459_v26, %v9459_v26 }
 0x197   :  { %v9398_v61 = vpop.permute.xlu1 %745  ;;  %v9400_v62 = vpop.permute.xlu0 %743 }
 0x198   :  { %v9488_v43 = vadd.f32 %v9398_v61, %v654_v47  ;;  %v9491_v53 = vadd.f32 %v9400_v62, %v653_v57 }
 0x19a   :  { %v902_v49 = vmul.f32 %v9488_v43, %v9488_v43 }
 0x19b   :  { %v9402_v63 = vpop.permute.xlu1 %841  ;;  %v9404_v1 = vpop.permute.xlu0 %839 }
 0x19c   :  { %v9468_v42 = vadd.f32 %v9402_v63, %v654_v47  ;;  %v9471_v45 = vadd.f32 %v9404_v1, %v653_v57 }
 0x19f   :  { %v9406_v2 = vpop.permute.xlu1 %749  ;;  %v9408_v3 = vpop.permute.xlu0 %747 }
 0x1a0   :  { %v9494_v55 = vadd.f32 %v9406_v2, %v656_v52  ;;  %v9497_v58 = vadd.f32 %v9408_v3, %v655_v56  ;;  %v918_v2 = vmul.f32 %v9468_v42, %v9468_v42  ;;  %v917_v3 = vmul.f32 %v9471_v45, %v9471_v45 }
 0x1a2   :  { %v904_v57 = vmul.f32 %v9494_v55, %v9494_v55  ;;  %v903_v6 = vmul.f32 %v9497_v58, %v9497_v58 }
 0x1a3   :  { %v9414_v8 = vpop.permute.xlu1 %845  ;;  %v9416_v11 = vpop.permute.xlu0 %843 }
 0x1a4   :  { %v9474_v5 = vadd.f32 %v9414_v8, %v656_v52  ;;  %v9477_v22 = vadd.f32 %v9416_v11, %v655_v56  ;;  %v900_v8 = vmul.f32 %v9462_v14, %v9462_v14  ;;  %v899_v11 = vmul.f32 %v9465_v40, %v9465_v40 }
 0x1a5   :  { %v901_v56 = vmul.f32 %v9491_v53, %v9491_v53  ;;  %v934_v52 = vadd.f32 %v918_v2, %v902_v49 }
 0x1a6   :  { %v920_v7 = vmul.f32 %v9474_v5, %v9474_v5  ;;  %v919_v15 = vmul.f32 %v9477_v22, %v9477_v22  ;;  %v9517_v12 = vadd.f32 %v916_v46, %v900_v8  ;;  %v9519_v0 = vadd.f32 %v915_v48, %v899_v11 }
 0x1a7   :  { %v9419_v16 = vpop.permute.xlu1 %757  ;;  %v9421_v17 = vpop.permute.xlu0 %755  ;;  %v933_v47 = vadd.f32 %v917_v3, %v901_v56 }
 0x1a8   :  { %v936_v54 = vadd.f32 %v920_v7, %v904_v57  ;;  %v935_v27 = vadd.f32 %v919_v15, %v903_v6 }
 0x1ab   :  { %v9425_v4 = vpop.permute.xlu1 %853  ;;  %v9427_v9 = vpop.permute.xlu0 %851 }
 0x1ac   :  { %v9504_v61 = vadd.f32 %v9425_v4, %v660_v34  ;;  %v9507_v62 = vadd.f32 %v9427_v9, %v659_v36  ;;  %v9522_v4 = vadd.f32 %v9419_v16, %v660_v34  ;;  %v9525_v9 = vadd.f32 %v9421_v17, %v659_v36 }
 0x1ae   :  { %v924_v16 = vmul.f32 %v9504_v61, %v9504_v61  ;;  %v923_v17 = vmul.f32 %v9507_v62, %v9507_v62  ;;  %v908_v34 = vmul.f32 %v9522_v4, %v9522_v4  ;;  %v907_v36 = vmul.f32 %v9525_v9, %v9525_v9 }
 0x1af   :  { %v9431_v31 = vpop.permute.xlu1 %753  ;;  %v9433_v28 = vpop.permute.xlu0 %751 }
 0x1b0   :  { %v9550_v46 = vadd.f32 %v9431_v31, %v658_v19  ;;  %v9553_v48 = vadd.f32 %v9433_v28, %v657_v59  ;;  %v940_v7 = vadd.f32 %v924_v16, %v908_v34  ;;  %v939_v15 = vadd.f32 %v923_v17, %v907_v36 }
 0x1b2   :  { %v905_v56 = vmul.f32 %v9553_v48, %v9553_v48 }
 0x1b3   :  { %v9439_v13 = vpop.permute.xlu1 %849  ;;  %v9441_v51 = vpop.permute.xlu0 %847 }
 0x1b4   :  { %v9540_v21 = vadd.f32 %v9439_v13, %v658_v19  ;;  %v9543_v50 = vadd.f32 %v9441_v51, %v657_v59 }
 0x1b6   :  { %v922_v49 = vmul.f32 %v9540_v21, %v9540_v21  ;;  %v921_v31 = vmul.f32 %v9543_v50, %v9543_v50 }
 0x1b7   :  { %v9447_v23 = vpop.permute.xlu1 %761  ;;  %v9449_v25 = vpop.permute.xlu0 %759 }
 0x1b8   :  { %v9568_v28 = vadd.f32 %v9447_v23, %v662_v29  ;;  %v9571_v19 = vadd.f32 %v9449_v25, %v661_v30  ;;  %v937_v6 = vadd.f32 %v921_v31, %v905_v56 }
 0x1ba   :  { %12740 = vst [vmem:[#allocation30_spill] sm:$0xff] %v9568_v28  ;;  %12741 = vst [vmem:[#allocation31_spill] sm:$0xff] %v9571_v19  ;;  %v910_v16 = vmul.f32 %v9568_v28, %v9568_v28  ;;  %v909_v17 = vmul.f32 %v9571_v19, %v9571_v19 }
 0x1bb   :  { %v858_v35 = vpop.permute.xlu1 %857  ;;  %v856_v33 = vpop.permute.xlu0 %855 }
 0x1bc   :  { %v9555_v13 = vadd.f32 %v858_v35, %v662_v29  ;;  %v9557_v51 = vadd.f32 %v856_v33, %v661_v30  ;;  %v906_v33 = vmul.f32 %v9550_v46, %v9550_v46 }
 0x1be   :  { %12736 = vst [vmem:[#allocation26_spill] sm:$0xff] %v9555_v13  ;;  %12737 = vst [vmem:[#allocation27_spill] sm:$0xff] %v9557_v51  ;;  %v926_v25 = vmul.f32 %v9555_v13, %v9555_v13  ;;  %v925_v29 = vmul.f32 %v9557_v51, %v9557_v51 }
 0x1bf   :  { %v766_v63 = vpop.permute.xlu1 %765  ;;  %v764_v1 = vpop.permute.xlu0 %763 }
 0x1c0   :  { %v9573_v59 = vadd.f32 %v766_v63, %v664_v38  ;;  %v9575_v35 = vadd.f32 %v764_v1, %v663_v39  ;;  %v938_v1 = vadd.f32 %v922_v49, %v906_v33  ;;  %v942_v49 = vadd.f32 %v926_v25, %v910_v16 }
 0x1c1   :  { %v941_v31 = vadd.f32 %v925_v29, %v909_v17 }
 0x1c2   :  { %12742 = vst [vmem:[#allocation32_spill] sm:$0xff] %v9573_v59  ;;  %12743 = vst [vmem:[#allocation33_spill] sm:$0xff] %v9575_v35  ;;  %v912_v34 = vmul.f32 %v9573_v59, %v9573_v59  ;;  %v911_v36 = vmul.f32 %v9575_v35, %v9575_v35 }
 0x1c3   :  { %v862_v41 = vpop.permute.xlu1 %861  ;;  %v860_v37 = vpop.permute.xlu0 %859 }
 0x1c4   :  { %v9559_v8 = vadd.f32 %v862_v41, %v664_v38  ;;  %v9561_v11 = vadd.f32 %v860_v37, %v663_v39 }
 0x1c6   :  { %12738 = vst [vmem:[#allocation28_spill] sm:$0xff] %v9559_v8  ;;  %12739 = vst [vmem:[#allocation29_spill] sm:$0xff] %v9561_v11  ;;  %v928_v30 = vmul.f32 %v9559_v8, %v9559_v8  ;;  %v927_v38 = vmul.f32 %v9561_v11, %v9561_v11 }
 0x1c7   :  { %v770_v2 = vpop.permute.xlu1 %769  ;;  %v768_v3 = vpop.permute.xlu0 %767 }
 0x1c8   :  { %v9582_v57 = vadd.f32 %v770_v2, %v9479_v24  ;;  %v9585_v23 = vadd.f32 %v768_v3, %v9481_v32  ;;  %v944_v33 = vadd.f32 %v928_v30, %v912_v34  ;;  %v943_v56 = vadd.f32 %v927_v38, %v911_v36 }
 0x1ca   :  { %12744 = vst [vmem:[#allocation34_spill] sm:$0xff] %v9582_v57  ;;  %12745 = vst [vmem:[#allocation35_spill] sm:$0xff] %v9585_v23  ;;  %v914_v2 = vmul.f32 %v9582_v57, %v9582_v57 }
 0x1cb   :  { %v866_v39 = vpop.permute.xlu1 %865  ;;  %v864_v63 = vpop.permute.xlu0 %863 }
 0x1cc   :  { %v9596_v41 = vadd.f32 %v866_v39, %v9479_v24  ;;  %v9599_v37 = vadd.f32 %v864_v63, %v9481_v32  ;;  %v913_v24 = vmul.f32 %v9585_v23, %v9585_v23 }
 0x1ce   :  { %12746 = vst [vmem:[#allocation36_spill] sm:$0xff] %v9596_v41  ;;  %12747 = vst [vmem:[#allocation37_spill] sm:$0xff] %v9599_v37  ;;  %v930_v32 = vmul.f32 %v9596_v41, %v9596_v41  ;;  %v929_v3 = vmul.f32 %v9599_v37, %v9599_v37 }
 0x1cf   :  { %v9617_v39 = vpop.permute.xlu1 %951  ;;  %v9619_v63 = vpop.permute.xlu0 %949 }
 0x1d0   :  { %v946_v11 = vadd.f32 %v930_v32, %v914_v2  ;;  %v945_v8 = vadd.f32 %v929_v3, %v913_v24  ;;  %v955_v57 = vmul.f32 %v9619_v63, %v9519_v0  ;;  %v956_v23 = vmul.f32 %v9617_v39, %v9517_v12 }
 0x1d1   :  { %v957_v41 = vmul.f32 %v9619_v63, %v933_v47  ;;  %v958_v37 = vmul.f32 %v9617_v39, %v934_v52  ;;  %v959_v25 = vmul.f32 %v9619_v63, %v935_v27  ;;  %v960_v29 = vmul.f32 %v9617_v39, %v936_v54 }
 0x1d2   :  { %v961_v30 = vmul.f32 %v9619_v63, %v937_v6  ;;  %v962_v38 = vmul.f32 %v9617_v39, %v938_v1  ;;  %v963_v16 = vmul.f32 %v9619_v63, %v939_v15  ;;  %v964_v17 = vmul.f32 %v9617_v39, %v940_v7 }
 0x1d3   :  { %v965_v0 = vmul.f32 %v9619_v63, %v941_v31  ;;  %v966_v12 = vmul.f32 %v9617_v39, %v942_v49  ;;  %v967_v47 = vmul.f32 %v9619_v63, %v943_v56  ;;  %v968_v52 = vmul.f32 %v9617_v39, %v944_v33 }
 0x1d4   :  { %v969_v27 = vmul.f32 %v9619_v63, %v945_v8  ;;  %v970_v54 = vmul.f32 %v9617_v39, %v946_v11  ;;  %v972_v6 = vsel %vm971_vm3, %v955_v57, 0.0  ;;  %v974_v1 = vsel %vm973_vm4, %v956_v23, 0.0 }
 0x1d5   :  { %v975_v34 = vadd.f32 %v974_v1, %v972_v6  ;;  %v982_v15 = vsel %vm971_vm3, %v957_v41, 0.0  ;;  %v983_v7 = vsel %vm973_vm4, %v958_v37, 0.0  ;;  %v991_v36 = vsel %vm971_vm3, %v959_v25, 0.0 }
 0x1d6   :  { %v984_v2 = vadd.f32 %v983_v7, %v982_v15  ;;  %v992_v24 = vsel %vm973_vm4, %v960_v29, 0.0  ;;  %v1000_v32 = vsel %vm971_vm3, %v961_v30, 0.0  ;;  %v1001_v8 = vsel %vm973_vm4, %v962_v38, 0.0 }
 0x1d7   :  { %v976_v3 = vrot.slane %v975_v34, 4  ;;  %v993_v11 = vadd.f32 %v992_v24, %v991_v36  ;;  %v1002_v49 = vadd.f32 %v1001_v8, %v1000_v32  ;;  %v1009_v57 = vsel %vm971_vm3, %v963_v16, 0.0 }
 0x1d8   :  { %v985_v23 = vrot.slane %v984_v2, 4  ;;  %v1010_v31 = vsel %vm973_vm4, %v964_v17, 0.0  ;;  %v1018_v41 = vsel %vm971_vm3, %v965_v0, 0.0  ;;  %v1019_v37 = vsel %vm973_vm4, %v966_v12, 0.0 }
 0x1d9   :  { %v977_v33 = vadd.f32 %v976_v3, %v975_v34  ;;  %v994_v56 = vrot.slane %v993_v11, 4  ;;  %v1003_v25 = vrot.slane %v1002_v49, 4  ;;  %v1011_v29 = vadd.f32 %v1010_v31, %v1009_v57 }
 0x1da   :  { %v986_v6 = vadd.f32 %v985_v23, %v984_v2  ;;  %v1020_v30 = vadd.f32 %v1019_v37, %v1018_v41  ;;  %v1027_v38 = vsel %vm971_vm3, %v967_v47, 0.0  ;;  %v1028_v1 = vsel %vm973_vm4, %v968_v52, 0.0 }
 0x1db   :  { %v978_v15 = vrot.slane %v977_v33, 2  ;;  %v995_v7 = vadd.f32 %v994_v56, %v993_v11  ;;  %v1004_v16 = vadd.f32 %v1003_v25, %v1002_v49  ;;  %v1012_v36 = vrot.slane %v1011_v29, 4  ;;  %v9655_v49 = vpop.permute.xlu0 %1050 }
 0x1dc   :  { %v987_v24 = vrot.slane %v986_v6, 2  ;;  %v1021_v17 = vrot.slane %v1020_v30, 4  ;;  %v1029_v32 = vadd.f32 %v1028_v1, %v1027_v38  ;;  %v1036_v0 = vsel %vm971_vm3, %v969_v27, 0.0  ;;  %12748 = vst [vmem:[#allocation38_spill] sm:$0xff] %v9655_v49 }
 0x1dd   :  { %v979_v12 = vadd.f32 %v978_v15, %v977_v33  ;;  %v996_v34 = vrot.slane %v995_v7, 2  ;;  %v1005_v8 = vrot.slane %v1004_v16, 2  ;;  %v1013_v3 = vadd.f32 %v1012_v36, %v1011_v29 }
 0x1de   :  { %v988_v57 = vadd.f32 %v987_v24, %v986_v6  ;;  %v1022_v2 = vadd.f32 %v1021_v17, %v1020_v30  ;;  %v1030_v23 = vrot.slane %v1029_v32, 4  ;;  %v1037_v47 = vsel %vm973_vm4, %v970_v54, 0.0 }
 0x1df   :  { %v980_v31 = vrot.slane %v979_v12, 1  ;;  %v997_v52 = vadd.f32 %v996_v34, %v995_v7  ;;  %v1006_v41 = vadd.f32 %v1005_v8, %v1004_v16  ;;  %v1014_v11 = vrot.slane %v1013_v3, 2 }
 0x1e0   :  { %v989_v37 = vrot.slane %v988_v57, 1  ;;  %v1023_v56 = vrot.slane %v1022_v2, 2  ;;  %v1031_v25 = vadd.f32 %v1030_v23, %v1029_v32  ;;  %v1038_v38 = vadd.f32 %v1037_v47, %v1036_v0 }
 0x1e1   :  { %v981_v27 = vadd.f32 %v980_v31, %v979_v12  ;;  %v998_v33 = vrot.slane %v997_v52, 1  ;;  %v1007_v1 = vrot.slane %v1006_v41, 1  ;;  %v1015_v15 = vadd.f32 %v1014_v11, %v1013_v3 }
 0x1e2   :  { %v990_v29 = vadd.f32 %v989_v37, %v988_v57  ;;  %v1024_v6 = vadd.f32 %v1023_v56, %v1022_v2  ;;  %v1032_v30 = vrot.slane %v1031_v25, 2  ;;  %v1039_v36 = vrot.slane %v1038_v38, 4 }
 0x1e3   :  { %v999_v24 = vadd.f32 %v998_v33, %v997_v52  ;;  %v1008_v54 = vadd.f32 %v1007_v1, %v1006_v41  ;;  %v1016_v17 = vrot.slane %v1015_v15, 1  ;;  %v1053_v7 = vadd.f32 %v9655_v49, %v981_v27 }
 0x1e4   :  { %v1025_v16 = vrot.slane %v1024_v6, 1  ;;  %v1033_v34 = vadd.f32 %v1032_v30, %v1031_v25  ;;  %v1040_v8 = vadd.f32 %v1039_v36, %v1038_v38  ;;  %v1054_v35 = vadd.f32 %v9655_v49, %v990_v29 }
 0x1e5   :  { %v1017_v32 = vadd.f32 %v1016_v17, %v1015_v15  ;;  %v1055_v0 = vadd.f32 %v9655_v49, %v999_v24  ;;  %v1056_v12 = vadd.f32 %v9655_v49, %v1008_v54  ;;  %8848 = vtanh.f32 %v1053_v7 }
 0x1e6   :  { %v1026_v3 = vadd.f32 %v1025_v16, %v1024_v6  ;;  %v1034_v57 = vrot.slane %v1033_v34, 1  ;;  %v1041_v2 = vrot.slane %v1040_v8, 2  ;;  %8850 = vtanh.f32 %v1054_v35 }
 0x1e7   :  { %v1057_v23 = vadd.f32 %v9655_v49, %v1017_v32  ;;  %8852 = vtanh.f32 %v1055_v0  ;;  %v394_v35 = vmul.f32 0.16666667, %v9240_v60 }
 0x1e8   :  { %v1035_v47 = vadd.f32 %v1034_v57, %v1033_v34  ;;  %v1042_v31 = vadd.f32 %v1041_v2, %v1040_v8  ;;  %v1058_v52 = vadd.f32 %v9655_v49, %v1026_v3  ;;  %8854 = vtanh.f32 %v1056_v12 }
 0x1e9   :  { %8856 = vtanh.f32 %v1057_v23  ;;  %v395_v24 = vadd.f32 0.5, %v394_v35  ;;  %v12755_v35 = vld [vmem:[#allocation3_spill] sm:$0xff] }
 0x1ea   :  { %v1043_v41 = vrot.slane %v1042_v31, 1  ;;  %v1059_v11 = vadd.f32 %v9655_v49, %v1035_v47  ;;  %8858 = vtanh.f32 %v1058_v52  ;;  %v9679_v52 = vld [vmem:[%s12540_s1] sm:$0x3f] }
 0x1eb   :  { %v396_v32 = vmax.f32 %v395_v24, 0.0  ;;  %12749 = vst [vmem:[#allocation39_spill] sm:$0xff] %v9679_v52 }
 0x1ec   :  { %v1044_v37 = vadd.f32 %v1043_v41, %v1042_v31  ;;  %8860 = vtanh.f32 %v1059_v11  ;;  %v12750_v41 = vmov 0.0   ;;  %v8195_v11 = vld [vmem:[%s12541_s0 + $0x8] sm:$0xff] }
 0x1ed   :  { %v397_v2 = vmin.f32 %v396_v32, 1.0 }
 0x1ee   :  { %v1060_v56 = vadd.f32 %v9655_v49, %v1044_v37  ;;  %v9695_v37 = vld [vmem:[%s12540_s1 + $0x10] sm:$0x3f] }
 0x1ef   :  { %v8849_v25 = vpop.eup %8848  ;;  %12751 = vst [vmem:[#allocation40_spill] sm:$0xff] %v9695_v37 }
 0x1f0   :  { %v8851_v38 = vpop.eup %8850  ;;  %8862 = vtanh.f32 %v1060_v56  ;;  %v12752_v56 = vmov 0.0|0.0  }
 0x1f1   :  { %v8853_v27 = vpop.eup %8852  ;;  %v1077_v33 = vrot.slane %v8851_v38, 7  ;;  %v12754_v38 = vld [vmem:[#allocation9_spill] sm:$0xff] }
 0x1f2   :  { %v8855_v1 = vpop.eup %8854  ;;  %v1080_v15 = vrot.slane %v8853_v27, 6  ;;  %v12756_v27 = vld [vmem:[#allocation11_spill] sm:$0xff] }
 0x1f3   :  { %v8857_v29 = vpop.eup %8856  ;;  %v1079_v6 = vsel %vm1078_vm5, %v1077_v33, %v8849_v25  ;;  %v1083_v30 = vrot.slane %v8855_v1, 5  ;;  %v12753_v25 = vld [vmem:[#allocation8_spill] sm:$0xff]  ;;  %v12758_v1 = vld [vmem:[#allocation6_spill] sm:$0xff] }
 0x1f4   :  { %v8859_v36 = vpop.eup %8858  ;;  %v1082_v54 = vsel %vm1081_vm6, %v1080_v15, %v1079_v6  ;;  %v1086_v17 = vrot.slane %v8857_v29, 4  ;;  %v12757_v33 = vld [vmem:[#allocation12_spill] sm:$0xff]  ;;  %v12759_v15 = vld [vmem:[#allocation14_spill] sm:$0xff] }
 0x1f5   :  { %v1085_v60 = vsel %vm1084_vm7, %v1083_v30, %v1082_v54  ;;  %v1089_v7 = vrot.slane %v8859_v36, 3  ;;  %v9717_v29 = vld [vmem:[%s12540_s1 + $0x8] sm:$0x3f]  ;;  %v12761_v6 = vld [vmem:[#allocation10_spill] sm:$0xff]  ;;  %v12762_v30 = vld [vmem:[#allocation13_spill] sm:$0xff] }
 0x1f6   :  { %v8861_v16 = vpop.eup %8860  ;;  %v1088_v34 = vsel %vm1087_vm8, %v1086_v17, %v1085_v60  ;;  %12760 = vst [vmem:[#allocation41_spill] sm:$0xff] %v9717_v29 }
 0x1f7   :  { %v1091_v8 = vsel %vm1090_vm9, %v1089_v7, %v1088_v34  ;;  %v1092_v0 = vrot.slane %v8861_v16, 2 }
 0x1f9   :  { %v1094_v3 = vsel %vm1093_vm10, %v1092_v0, %v1091_v8  ;;  %v12763_v8 = vld [vmem:[#allocation16_spill] sm:$0xff]  ;;  %v12764_v0 = vld [vmem:[#allocation18_spill] sm:$0xff] }
 0x1fa   :  { %v8863_v12 = vpop.eup %8862 }
 0x1fb   :  { %v1095_v57 = vrot.slane %v8863_v12, 1 }
 0x1fd   :  { %v1097_v23 = vsel %vm1096_vm11, %v1095_v57, %v1094_v3 }
 0x1fe   :  { %v1099_v47 = vmul.f32 %v1097_v23, %v397_v2 }
 0x200   :  { %1103 = vrot.lane.b32.xlu1 %v1099_v47, %s9005_s17 }
 0x272   :  { %v1104_v31 = vpop.permute.xlu1 %1103 }
 0x273   :  { %8196 = vmatmul.mubr.msk.f32.vlgmr.msra.gmra.mrb[2].mxu0 %vm69_vm12, %v1104_v31  ;;  %8419 = vmatmul.mubr.msk.f32.vlgmr.msra.gmra.mrb[6].mxu1 %vm69_vm12, %v1104_v31  ;;  %v12766_v31 = vld [vmem:[#allocation19_spill] sm:$0xff] }
 0x274   :  { %8199 = vmatpush1.msk.msra.mxu1 %vm218_vm1, %v9679_v52  ;;  %1315 = vmatprep.mubr.f32.mxu1 %v12750_v41 }
 0x275   :  { %8421 = vmatprep.subr.mxu1 %v12750_v41  ;;  %8648 = vmatpush1.bf16.msra.mxu0 %v9087_v10 }
 0x276   :  { %8650 = vmatprep.subr.bf16.mxu0 %v9112_v18  ;;  %2170 = vmatprep.mubr.f32.mxu0 %v12750_v41 }
 0x277   :  { %8200 = vmatmul.mubr.msk.f32.vlgmr.msra.gmra.mrb[8].mxu1 %vm214_vm2, %v8195_v11 }
 0x278   :  { %8422 = vmatpush3.msk.msra.mxu1 %vm218_vm1, %v9695_v37  ;;  %8423 = vmatprep.mubr.msk.f32.mxu1 %vm9002_vm0, %v12750_v41 }
 0x279   :  { %8661 = vmatprep.subr.bf16.mxu1 %v12752_v56  ;;  %8652 = vmatpush1.bf16.msra.mxu0 %v12753_v25 }
 0x27a   :  { %8654 = vmatprep.subr.bf16.mxu0 %v12754_v38 }
 0x27b   :  { %8424 = vmatmul.mubr.msk.f32.vlgmr.msra.gmra.mrb[10].mxu1 %vm214_vm2, %v8195_v11 }
 0x27c   :  { %8663 = vmatpush3.bf16.msra.mxu1 %v12755_v35  ;;  %8442 = vmatprep.mubr.msk.f32.mxu1 %vm9002_vm0, %v12750_v41 }
 0x27d   :  { %8664 = vmatprep.subr.bf16.mxu1 %v12752_v56  ;;  %8656 = vmatpush1.bf16.msra.mxu0 %v12756_v27 }
 0x27e   :  { %8658 = vmatprep.subr.bf16.mxu0 %v12757_v33 }
 0x280   :  { %8666 = vmatpush3.bf16.msra.mxu1 %v12758_v1 }
 0x281   :  { %8667 = vmatprep.subr.bf16.mxu1 %v12752_v56  ;;  %8660 = vmatpush1.bf16.msra.mxu0 %v12759_v15 }
 0x282   :  { %8210 = vmatprep.subr.msk.mxu0 %vm218_vm1, %v9717_v29 }
 0x284   :  { %8669 = vmatpush3.bf16.msra.mxu1 %v12761_v6 }
 0x285   :  { %8670 = vmatprep.subr.bf16.mxu1 %v12752_v56 }
 0x288   :  { %8672 = vmatpush3.bf16.msra.mxu1 %v12762_v30 }
 0x289   :  { %8445 = vmatprep.subr.mxu1 %v12750_v41 }
 0x346   :  { %v1173_v36 = vpop.f32.mrb[2].mxu0  ;;  %v1244_v24 = vpop.f32.mrb[6].mxu1 }
 0x347   :  { %v1175_v54 = vpop.f32.mrb[3].mxu0  ;;  %v8420_v17 = vpop.f32.mrb[7].mxu1 }
 0x34a   :  { %v1317_v60 = vpop.f32.mrb[8].mxu1 }
 0x34b   :  { %v1318_v7 = vadd.f32 %v1317_v60, %v1173_v36  ;;  %v1319_v16 = vpop.f32.mrb[9].mxu1 }
 0x34c   :  { %v1320_v34 = vadd.f32 %v1319_v16, %v1175_v54 }
 0x34d   :  { %v1392_v32 = vadd.f32 %v1318_v7, %v12763_v8 }
 0x34e   :  { %v9727_v12 = vadd.f32 %v1320_v34, %v12764_v0  ;;  %v1388_v3 = vpop.f32.mrb[10].mxu1  ;;  %v12767_v34 = vld [vmem:[#allocation15_spill] sm:$0xff] }
 0x34f   :  { %v1395_v57 = vmul.f32 0.16666667, %v1392_v32  ;;  %v1389_v2 = vadd.f32 %v1388_v3, %v1244_v24  ;;  %v8425_v23 = vpop.f32.mrb[11].mxu1  ;;  %v12768_v24 = vld [vmem:[#allocation17_spill] sm:$0xff] }
 0x350   :  { %12765 = vst [vmem:[#allocation42_spill] sm:$0xff] %v9727_v12  ;;  %8864 = vtanh.f32 %v9727_v12  ;;  %v12771_v23 = vld [vmem:[#allocation22_spill] sm:$0xff] }
 0x351   :  { %v1396_v47 = vadd.f32 0.5, %v1395_v57  ;;  %v1394_v11 = vadd.f32 %v1389_v2, %v12766_v31  ;;  %v12770_v57 = vld [vmem:[#allocation21_spill] sm:$0xff] }
 0x353   :  { %v1404_v29 = vmul.f32 0.16666667, %v1394_v11  ;;  %v1397_v17 = vmax.f32 %v1396_v47, 0.0  ;;  %v12772_v11 = vld [vmem:[#allocation23_spill] sm:$0xff] }
 0x355   :  { %v1405_v15 = vadd.f32 0.5, %v1404_v29  ;;  %v9731_v60 = vmin.f32 %v1397_v17, 1.0  ;;  %v12769_v29 = vld [vmem:[#allocation20_spill] sm:$0xff] }
 0x356   :  { %v12773_v17 = vld [vmem:[#allocation24_spill] sm:$0xff] }
 0x357   :  { %v1406_v36 = vmax.f32 %v1405_v15, 0.0  ;;  %v1498_v30 = vcombine.high %v9731_v60, %v9731_v60 }
 0x359   :  { %v1407_v54 = vmin.f32 %v1406_v36, 1.0  ;;  %v1512_v18 = vrot.slane %v1498_v30, %v12772_v11 }
 0x35a   :  { %v8865_v7 = vpop.eup %8864 }
 0x35b   :  { %v1408_v16 = vmul.f32 %v8865_v7, %v9731_v60  ;;  %v1423_v0 = vrot.slane %v1407_v54, %v12767_v34  ;;  %v1434_v32 = vrot.slane %v1407_v54, %v12768_v24  ;;  %v1412_v3 = vrot.slane %v1407_v54, %v9220_v44 }
 0x35c   :  { %v1445_v15 = vrot.slane %v1407_v54, %v12769_v29  ;;  %v1456_v2 = vrot.slane %v1407_v54, %v12770_v57  ;;  %v1467_v47 = vrot.slane %v1407_v54, %v12771_v23  ;;  %v1478_v36 = vrot.slane %v1407_v54, %v12773_v17 }
 0x35d   :  { %1429 = vbcast.lane.b32.xlu1 %v1423_v0, 264  ;;  %1425 = vbcast.lane.b32.xlu0 %v1423_v0, 256  ;;  %v1617_v0 = vrot.slane %v1408_v16, %v12772_v11  ;;  %v1610_v57 = vcombine.high %v1408_v16, %v1408_v16  ;;  %v1514_v52 = vcombine.high %v1512_v18, %v1512_v18 }
 0x35f   :  { %v1633_v7 = vrot.slane %v1617_v0, %v12772_v11  ;;  %v1625_v29 = vcombine.high %v1617_v0, %v1617_v0  ;;  %v9761_v0 = vld [vmem:[%s12544_s9 + $0x18] sm:$0x3] }
 0x361   :  { %1440 = vbcast.lane.b32.xlu1 %v1434_v32, 264  ;;  %1436 = vbcast.lane.b32.xlu0 %v1434_v32, 256  ;;  %v12774_v32 = vld [vmem:[#allocation25_spill] sm:$0xff]  ;;  %v1655_v8 = vcombine.high %v1633_v7, %v1633_v7 }
 0x365   :  { %1418 = vbcast.lane.b32.xlu1 %v1412_v3, 264  ;;  %1414 = vbcast.lane.b32.xlu0 %v1412_v3, 256  ;;  %v1489_v3 = vrot.slane %v1407_v54, %v12774_v32  ;;  %v1647_v54 = vrot.slane %v1625_v29, %v12772_v11  ;;  %v9766_v32 = vld [vmem:[%s12544_s9 + $0x10] sm:$0xff] }
 0x367   :  { %v1682_v29 = vrot.slane %v1647_v54, %v9220_v44 }
 0x369   :  { %1451 = vbcast.lane.b32.xlu1 %v1445_v15, 264  ;;  %1447 = vbcast.lane.b32.xlu0 %v1445_v15, 256  ;;  %v1678_v15 = vrot.slane %v1633_v7, %v9220_v44 }
 0x36b   :  { %v1827_v23 = vmul.f32 %v9766_v32, %v1678_v15 }
 0x36d   :  { %1462 = vbcast.lane.b32.xlu1 %v1456_v2, 264  ;;  %1458 = vbcast.lane.b32.xlu0 %v1456_v2, 256  ;;  %v9748_v2 = vld [vmem:[%s12543_s8 + $0x18] sm:$0x3] }
 0x36e   :  { %v1716_v17 = vmul.f32 %v9748_v2, %v1678_v15  ;;  %v1718_v24 = vmul.f32 %v9748_v2, %v1682_v29 }
 0x371   :  { %1473 = vbcast.lane.b32.xlu1 %v1467_v47, 264  ;;  %1469 = vbcast.lane.b32.xlu0 %v1467_v47, 256  ;;  %v9753_v47 = vld [vmem:[%s12543_s8 + $0x10] sm:$0xff] }
 0x372   :  { %v1717_v34 = vmul.f32 %v9753_v47, %v1682_v29 }
 0x375   :  { %1484 = vbcast.lane.b32.xlu1 %v1478_v36, 264  ;;  %1480 = vbcast.lane.b32.xlu0 %v1478_v36, 256  ;;  %v1715_v36 = vmul.f32 %v9753_v47, %v1678_v15 }
 0x379   :  { %1495 = vbcast.lane.b32.xlu1 %v1489_v3, 264  ;;  %1491 = vbcast.lane.b32.xlu0 %v1489_v3, 256  ;;  %v1828_v3 = vmul.f32 %v9761_v0, %v1678_v15  ;;  %v1829_v15 = vmul.f32 %v9766_v32, %v1682_v29 }
 0x37d   :  { %1749 = vrot.lane.b32.xlu1 %v1716_v17, %s9005_s17  ;;  %1747 = vrot.lane.b32.xlu0 %v1715_v36, %s9005_s17  ;;  %v1830_v17 = vmul.f32 %v9761_v0, %v1682_v29  ;;  %v1686_v36 = vrot.slane %v1655_v8, %v9220_v44 }
 0x37f   :  { %v1720_v16 = vmul.f32 %v9748_v2, %v1686_v36  ;;  %v1831_v8 = vmul.f32 %v9766_v32, %v1686_v36 }
 0x381   :  { %1861 = vrot.lane.b32.xlu1 %v1828_v3, %s9005_s17  ;;  %1859 = vrot.lane.b32.xlu0 %v1827_v23, %s9005_s17  ;;  %v1624_v3 = vrot.slane %v1610_v57, %v12772_v11  ;;  %v1719_v23 = vmul.f32 %v9753_v47, %v1686_v36 }
 0x385   :  { %1753 = vrot.lane.b32.xlu1 %v1718_v24, %s9005_s17  ;;  %1751 = vrot.lane.b32.xlu0 %v1717_v34, %s9005_s17  ;;  %v1640_v24 = vrot.slane %v1624_v3, %v12772_v11  ;;  %v1832_v34 = vmul.f32 %v9761_v0, %v1686_v36 }
 0x387   :  { %v1694_v57 = vrot.slane %v1640_v24, %v9220_v44 }
 0x389   :  { %1865 = vrot.lane.b32.xlu1 %v1830_v17, %s9005_s17  ;;  %1863 = vrot.lane.b32.xlu0 %v1829_v15, %s9005_s17  ;;  %v1724_v7 = vmul.f32 %v9748_v2, %v1694_v57  ;;  %v1723_v29 = vmul.f32 %v9753_v47, %v1694_v57  ;;  %v1657_v17 = vcombine.high %v1647_v54, %v1647_v54 }
 0x38a   :  { %v1836_v15 = vmul.f32 %v9761_v0, %v1694_v57 }
 0x38b   :  { %v1690_v36 = vrot.slane %v1657_v17, %v9220_v44 }
 0x38d   :  { %1757 = vrot.lane.b32.xlu1 %v1720_v16, %s9005_s17  ;;  %1755 = vrot.lane.b32.xlu0 %v1719_v23, %s9005_s17  ;;  %v1835_v16 = vmul.f32 %v9766_v32, %v1694_v57  ;;  %v1626_v23 = vcombine.high %v1624_v3, %v1624_v3  ;;  %v1833_v57 = vmul.f32 %v9766_v32, %v1690_v36 }
 0x38f   :  { %v1654_v54 = vrot.slane %v1626_v23, %v12772_v11 }
 0x391   :  { %1869 = vrot.lane.b32.xlu1 %v1832_v34, %s9005_s17  ;;  %1867 = vrot.lane.b32.xlu0 %v1831_v8, %s9005_s17  ;;  %v1722_v34 = vmul.f32 %v9748_v2, %v1690_v36  ;;  %v1721_v8 = vmul.f32 %v9753_v47, %v1690_v36  ;;  %v1698_v3 = vrot.slane %v1654_v54, %v9220_v44 }
 0x393   :  { %v1725_v17 = vmul.f32 %v9753_v47, %v1698_v3  ;;  %v1837_v23 = vmul.f32 %v9766_v32, %v1698_v3 }
 0x395   :  { %1765 = vrot.lane.b32.xlu1 %v1724_v7, %s9005_s17  ;;  %1763 = vrot.lane.b32.xlu0 %v1723_v29, %s9005_s17  ;;  %v1834_v7 = vmul.f32 %v9761_v0, %v1690_v36  ;;  %v1726_v29 = vmul.f32 %v9748_v2, %v1698_v3 }
 0x399   :  { %1877 = vrot.lane.b32.xlu1 %v1836_v15, %s9005_s17  ;;  %1875 = vrot.lane.b32.xlu0 %v1835_v16, %s9005_s17  ;;  %v1656_v15 = vcombine.high %v1640_v24, %v1640_v24  ;;  %v1838_v16 = vmul.f32 %v9761_v0, %v1698_v3 }
 0x39b   :  { %v1702_v36 = vrot.slane %v1656_v15, %v9220_v44 }
 0x39d   :  { %1761 = vrot.lane.b32.xlu1 %v1722_v34, %s9005_s17  ;;  %1759 = vrot.lane.b32.xlu0 %v1721_v8, %s9005_s17  ;;  %v1728_v34 = vmul.f32 %v9748_v2, %v1702_v36  ;;  %v1727_v8 = vmul.f32 %v9753_v47, %v1702_v36  ;;  %v1840_v24 = vmul.f32 %v9761_v0, %v1702_v36 }
 0x3a1   :  { %1873 = vrot.lane.b32.xlu1 %v1834_v7, %s9005_s17  ;;  %1871 = vrot.lane.b32.xlu0 %v1833_v57, %s9005_s17  ;;  %v1658_v7 = vcombine.high %v1654_v54, %v1654_v54  ;;  %v1839_v57 = vmul.f32 %v9766_v32, %v1702_v36 }
 0x3a3   :  { %v1706_v3 = vrot.slane %v1658_v7, %v9220_v44 }
 0x3a5   :  { %1769 = vrot.lane.b32.xlu1 %v1726_v29, %s9005_s17  ;;  %1767 = vrot.lane.b32.xlu0 %v1725_v17, %s9005_s17  ;;  %v1730_v29 = vmul.f32 %v9748_v2, %v1706_v3  ;;  %v1729_v17 = vmul.f32 %v9753_v47, %v1706_v3  ;;  %v1842_v54 = vmul.f32 %v9761_v0, %v1706_v3 }
 0x3a6   :  { %v1841_v15 = vmul.f32 %v9766_v32, %v1706_v3 }
 0x3a9   :  { %1881 = vrot.lane.b32.xlu1 %v1838_v16, %s9005_s17  ;;  %1879 = vrot.lane.b32.xlu0 %v1837_v23, %s9005_s17 }
 0x3ad   :  { %1773 = vrot.lane.b32.xlu1 %v1728_v34, %s9005_s17  ;;  %1771 = vrot.lane.b32.xlu0 %v1727_v8, %s9005_s17 }
 0x3b1   :  { %1885 = vrot.lane.b32.xlu1 %v1840_v24, %s9005_s17  ;;  %1883 = vrot.lane.b32.xlu0 %v1839_v57, %s9005_s17 }
 0x3b5   :  { %1777 = vrot.lane.b32.xlu1 %v1730_v29, %s9005_s17  ;;  %1775 = vrot.lane.b32.xlu0 %v1729_v17, %s9005_s17 }
 0x3b9   :  { %1889 = vrot.lane.b32.xlu1 %v1842_v54, %s9005_s17  ;;  %1887 = vrot.lane.b32.xlu0 %v1841_v15, %s9005_s17  ;;  %v1505_v15 = vrot.slane %v9731_v60, %v12772_v11 }
 0x3bb   :  { %v1513_v27 = vcombine.high %v1505_v15, %v1505_v15  ;;  %v1521_v25 = vrot.slane %v1505_v15, %v12772_v11  ;;  %v9869_v15 = vrot.slane %v1514_v52, %v12772_v11 }
 0x3bd   :  { %v1535_v1 = vrot.slane %v1513_v27, %v12772_v11  ;;  %v1543_v56 = vcombine.high %v1521_v25, %v1521_v25  ;;  %v1550_v27 = vrot.slane %v1521_v25, %v9220_v44 }
 0x3bf   :  { %v1554_v41 = vrot.slane %v1535_v1, %v9220_v44  ;;  %v1558_v49 = vrot.slane %v1543_v56, %v9220_v44  ;;  %v1545_v60 = vcombine.high %v1535_v1, %v1535_v1 }
 0x3c1   :  { %v1562_v28 = vrot.slane %v1545_v60, %v9220_v44 }
 0x3cf   :  { %v1430_v16 = vpop.permute.xlu1 %1429  ;;  %v1426_v23 = vpop.permute.xlu0 %1425 }
 0x3d0   :  { %v1590_v30 = vmul.f32 %v1554_v41, %v1430_v16  ;;  %v1589_v59 = vmul.f32 %v1554_v41, %v1426_v23 }
 0x3d2   :  { %v1662_v41 = vmul.f32 %v1590_v30, %v9488_v43  ;;  %v1814_v25 = vmul.f32 %v1590_v30, %v9468_v42  ;;  %v1813_v1 = vmul.f32 %v1589_v59, %v9471_v45 }
 0x3d3   :  { %v1441_v36 = vpop.permute.xlu1 %1440  ;;  %v1437_v34 = vpop.permute.xlu0 %1436 }
 0x3d7   :  { %v1419_v8 = vpop.permute.xlu1 %1418  ;;  %v1415_v2 = vpop.permute.xlu0 %1414 }
 0x3d8   :  { %v1587_v51 = vmul.f32 %v1550_v27, %v1415_v2 }
 0x3da   :  { %v1659_v43 = vmul.f32 %v1587_v51, %v9465_v40  ;;  %v1811_v45 = vmul.f32 %v1587_v51, %v9459_v26 }
 0x3db   :  { %v1452_v7 = vpop.permute.xlu1 %1451  ;;  %v1448_v47 = vpop.permute.xlu0 %1447 }
 0x3df   :  { %v1463_v24 = vpop.permute.xlu1 %1462  ;;  %v1459_v57 = vpop.permute.xlu0 %1458 }
 0x3e3   :  { %v9840_v29 = vpop.permute.xlu1 %1473  ;;  %v9842_v17 = vpop.permute.xlu0 %1469 }
 0x3e7   :  { %v9844_v0 = vpop.permute.xlu1 %1484  ;;  %v9846_v32 = vpop.permute.xlu0 %1480 }
 0x3e8   :  { %12775 = vst [vmem:[#allocation43_spill] sm:$0xff] %v9844_v0  ;;  %12776 = vst [vmem:[#allocation44_spill] sm:$0xff] %v9846_v32  ;;  %v1591_v32 = vmul.f32 %v1558_v49, %v1437_v34  ;;  %v1588_v0 = vmul.f32 %v1550_v27, %v1419_v8 }
 0x3ea   :  { %v1663_v23 = vmul.f32 %v1591_v32, %v9497_v58  ;;  %v1815_v34 = vmul.f32 %v1591_v32, %v9477_v22  ;;  %v1812_v42 = vmul.f32 %v1588_v0, %v9456_v20  ;;  %v1594_v58 = vmul.f32 %v1562_v28, %v1452_v7 }
 0x3eb   :  { %v9848_v3 = vpop.permute.xlu1 %1495  ;;  %v9850_v54 = vpop.permute.xlu0 %1491 }
 0x3ec   :  { %12777 = vst [vmem:[#allocation45_spill] sm:$0xff] %v9848_v3  ;;  %12778 = vst [vmem:[#allocation46_spill] sm:$0xff] %v9850_v54  ;;  %v9866_v54 = vrot.slane %v1512_v18, %v12772_v11  ;;  %v1592_v3 = vmul.f32 %v1558_v49, %v1441_v36  ;;  %v9877_v18 = vrot.slane %v9869_v15, %v9220_v44 }
 0x3ed   :  { %v1661_v49 = vmul.f32 %v1589_v59, %v9491_v53 }
 0x3ee   :  { %v1566_v56 = vrot.slane %v9866_v54, %v9220_v44  ;;  %v1544_v52 = vcombine.high %v9866_v54, %v9866_v54  ;;  %v1664_v16 = vmul.f32 %v1592_v3, %v9494_v55  ;;  %v1816_v36 = vmul.f32 %v1592_v3, %v9474_v5 }
 0x3ef   :  { %v9854_v31 = vpop.permute.xlu1 %1749  ;;  %v9856_v33 = vpop.permute.xlu0 %1747  ;;  %v1660_v54 = vmul.f32 %v1588_v0, %v9462_v14  ;;  %v1593_v5 = vmul.f32 %v1562_v28, %v1448_v47 }
 0x3f0   :  { %v1596_v8 = vmul.f32 %v1566_v56, %v1463_v24  ;;  %v1595_v2 = vmul.f32 %v1566_v56, %v1459_v57 }
 0x3f2   :  { %v1668_v51 = vmul.f32 %v1596_v8, %v9522_v4  ;;  %v1667_v28 = vmul.f32 %v1595_v2, %v9525_v9 }
 0x3f3   :  { %v1862_v38 = vpop.permute.xlu1 %1861  ;;  %v1860_v6 = vpop.permute.xlu0 %1859 }
 0x3f4   :  { %v9901_v24 = vadd.f32 %v1862_v38, %v1812_v42  ;;  %v9903_v14 = vadd.f32 %v1860_v6, %v1811_v45 }
 0x3f6   :  { %v1940_v7 = vmul.f32 %v9901_v24, %v9901_v24 }
 0x3f7   :  { %v1754_v10 = vpop.permute.xlu1 %1753  ;;  %v1752_v35 = vpop.permute.xlu0 %1751 }
 0x3f8   :  { %v9905_v40 = vadd.f32 %v1754_v10, %v1662_v41  ;;  %v9907_v57 = vadd.f32 %v1752_v35, %v1661_v49  ;;  %v1820_v10 = vmul.f32 %v1596_v8, %v9504_v61  ;;  %v1819_v35 = vmul.f32 %v1595_v2, %v9507_v62 }
 0x3f9   :  { %v1939_v61 = vmul.f32 %v9903_v14, %v9903_v14  ;;  %v1546_v8 = vcombine.high %v9869_v15, %v9869_v15 }
 0x3fa   :  { %v1926_v62 = vmul.f32 %v9905_v40, %v9905_v40 }
 0x3fb   :  { %v1866_v37 = vpop.permute.xlu1 %1865  ;;  %v1864_v12 = vpop.permute.xlu0 %1863 }
 0x3fc   :  { %v9893_v59 = vadd.f32 %v1866_v37, %v1814_v25  ;;  %v9895_v55 = vadd.f32 %v1864_v12, %v1813_v1 }
 0x3fe   :  { %v1942_v38 = vmul.f32 %v9893_v59, %v9893_v59  ;;  %v1941_v6 = vmul.f32 %v9895_v55, %v9895_v55 }
 0x3ff   :  { %v1758_v13 = vpop.permute.xlu1 %1757  ;;  %v1756_v19 = vpop.permute.xlu0 %1755 }
 0x400   :  { %v9909_v20 = vadd.f32 %v1758_v13, %v1664_v16  ;;  %v9911_v26 = vadd.f32 %v1756_v19, %v1663_v23  ;;  %v9922_v13 = vadd.f32 %v9854_v31, %v1660_v54  ;;  %v9925_v19 = vadd.f32 %v9856_v33, %v1659_v43 }
 0x401   :  { %v1925_v31 = vmul.f32 %v9907_v57, %v9907_v57  ;;  %v1958_v56 = vadd.f32 %v1942_v38, %v1926_v62 }
 0x402   :  { %v1928_v33 = vmul.f32 %v9909_v20, %v9909_v20  ;;  %v1927_v47 = vmul.f32 %v9911_v26, %v9911_v26  ;;  %v1924_v1 = vmul.f32 %v9922_v13, %v9922_v13  ;;  %v1923_v16 = vmul.f32 %v9925_v19, %v9925_v19 }
 0x403   :  { %v1870_v60 = vpop.permute.xlu1 %1869  ;;  %v1868_v53 = vpop.permute.xlu0 %1867  ;;  %v1957_v41 = vadd.f32 %v1941_v6, %v1925_v31 }
 0x404   :  { %v9897_v3 = vadd.f32 %v1870_v60, %v1816_v36  ;;  %v9899_v22 = vadd.f32 %v1868_v53, %v1815_v34  ;;  %v1574_v34 = vrot.slane %v1544_v52, %v9220_v44  ;;  %v1956_v43 = vadd.f32 %v1940_v7, %v1924_v1  ;;  %v12779_v1 = vld [vmem:[#allocation30_spill] sm:$0xff] }
 0x405   :  { %v1955_v60 = vadd.f32 %v1939_v61, %v1923_v16  ;;  %v1974_v52 = vmul.f32 %v1958_v56, %v9617_v39  ;;  %v1973_v15 = vmul.f32 %v1957_v41, %v9619_v63  ;;  %v1817_v7 = vmul.f32 %v1593_v5, %v9543_v50 }
 0x406   :  { %v1944_v4 = vmul.f32 %v9897_v3, %v9897_v3  ;;  %v1943_v9 = vmul.f32 %v9899_v22, %v9899_v22  ;;  %v1598_v61 = vmul.f32 %v9877_v18, %v9840_v29 }
 0x407   :  { %v1766_v37 = vpop.permute.xlu1 %1765  ;;  %v1764_v12 = vpop.permute.xlu0 %1763  ;;  %v1971_v62 = vmul.f32 %v1955_v60, %v9619_v63 }
 0x408   :  { %v9943_v0 = vadd.f32 %v1766_v37, %v1668_v51  ;;  %v9945_v32 = vadd.f32 %v1764_v12, %v1667_v28  ;;  %v1960_v23 = vadd.f32 %v1944_v4, %v1928_v33  ;;  %v1959_v36 = vadd.f32 %v1943_v9, %v1927_v47 }
 0x409   :  { %v1666_v37 = vmul.f32 %v1594_v58, %v9550_v46  ;;  %v1665_v28 = vmul.f32 %v1593_v5, %v9553_v48  ;;  %v1818_v9 = vmul.f32 %v1594_v58, %v9540_v21  ;;  %v1597_v46 = vmul.f32 %v9877_v18, %v9842_v17 }
 0x40a   :  { %v1932_v53 = vmul.f32 %v9943_v0, %v9943_v0  ;;  %v1931_v42 = vmul.f32 %v9945_v32, %v9945_v32  ;;  %v1976_v12 = vmul.f32 %v1960_v23, %v9617_v39  ;;  %v1975_v38 = vmul.f32 %v1959_v36, %v9619_v63  ;;  %v12780_v36 = vld [vmem:[#allocation31_spill] sm:$0xff] }
 0x40b   :  { %v1878_v30 = vpop.permute.xlu1 %1877  ;;  %v1876_v27 = vpop.permute.xlu0 %1875  ;;  %v1972_v48 = vmul.f32 %v1956_v43, %v9617_v39  ;;  %v1997_v47 = vsel %vm973_vm4, %v1974_v52, 0.0  ;;  %v1670_v16 = vmul.f32 %v1598_v61, %v12779_v1  ;;  %v12781_v43 = vld [vmem:[#allocation26_spill] sm:$0xff] }
 0x40c   :  { %v9947_v49 = vadd.f32 %v1878_v30, %v1820_v10  ;;  %v9949_v25 = vadd.f32 %v1876_v27, %v1819_v35  ;;  %v1996_v30 = vsel %vm971_vm3, %v1973_v15, 0.0  ;;  %v2006_v50 = vsel %vm973_vm4, %v1976_v12, 0.0 }
 0x40d   :  { %v2005_v29 = vsel %vm971_vm3, %v1975_v38, 0.0  ;;  %v1822_v60 = vmul.f32 %v1598_v61, %v12781_v43  ;;  %v12785_v61 = vld [vmem:[#allocation43_spill] sm:$0xff]  ;;  %v12790_v43 = vld [vmem:[#allocation32_spill] sm:$0xff] }
 0x40e   :  { %v1948_v2 = vmul.f32 %v9947_v49, %v9947_v49  ;;  %v1947_v54 = vmul.f32 %v9949_v25, %v9949_v25 }
 0x40f   :  { %v1762_v45 = vpop.permute.xlu1 %1761  ;;  %v1760_v51 = vpop.permute.xlu0 %1759 }
 0x410   :  { %v1964_v6 = vadd.f32 %v1948_v2, %v1932_v53  ;;  %v1963_v10 = vadd.f32 %v1947_v54, %v1931_v42  ;;  %v9972_v35 = vadd.f32 %v1762_v45, %v1666_v37  ;;  %v9974_v4 = vadd.f32 %v1760_v51, %v1665_v28  ;;  %v12782_v53 = vld [vmem:[#allocation27_spill] sm:$0xff] }
 0x411   :  { %v1669_v2 = vmul.f32 %v1597_v46, %v12780_v36  ;;  %v1821_v42 = vmul.f32 %v1597_v46, %v12782_v53  ;;  %v1988_v45 = vsel %vm973_vm4, %v1972_v48, 0.0  ;;  %v1987_v51 = vsel %vm971_vm3, %v1971_v62, 0.0  ;;  %v12786_v48 = vld [vmem:[#allocation44_spill] sm:$0xff] }
 0x412   :  { %v1980_v17 = vmul.f32 %v1964_v6, %v9617_v39  ;;  %v1979_v18 = vmul.f32 %v1963_v10, %v9619_v63  ;;  %v1930_v58 = vmul.f32 %v9972_v35, %v9972_v35  ;;  %v1929_v5 = vmul.f32 %v9974_v4, %v9974_v4 }
 0x413   :  { %v1874_v31 = vpop.permute.xlu1 %1873  ;;  %v1872_v33 = vpop.permute.xlu0 %1871  ;;  %v1998_v37 = vadd.f32 %v1997_v47, %v1996_v30  ;;  %v2007_v28 = vadd.f32 %v2006_v50, %v2005_v29  ;;  %v1600_v46 = vmul.f32 %v1574_v34, %v12785_v61  ;;  %v1599_v62 = vmul.f32 %v1574_v34, %v12786_v48  ;;  %v12793_v48 = vld [vmem:[#allocation29_spill] sm:$0xff] }
 0x414   :  { %v9986_v27 = vadd.f32 %v1874_v31, %v1818_v9  ;;  %v9988_v21 = vadd.f32 %v1872_v33, %v1817_v7  ;;  %v2024_v12 = vsel %vm973_vm4, %v1980_v17, 0.0  ;;  %v2023_v38 = vsel %vm971_vm3, %v1979_v18, 0.0 }
 0x415   :  { %v1578_v31 = vrot.slane %v1546_v8, %v9220_v44  ;;  %v1989_v33 = vadd.f32 %v1988_v45, %v1987_v51 }
 0x416   :  { %v1946_v56 = vmul.f32 %v9986_v27, %v9986_v27  ;;  %v1945_v41 = vmul.f32 %v9988_v21, %v9988_v21 }
 0x417   :  { %v1770_v23 = vpop.permute.xlu1 %1769  ;;  %v1768_v54 = vpop.permute.xlu0 %1767 }
 0x418   :  { %v1962_v52 = vadd.f32 %v1946_v56, %v1930_v58  ;;  %v1961_v15 = vadd.f32 %v1945_v41, %v1929_v5  ;;  %v10012_v9 = vadd.f32 %v1770_v23, %v1670_v16  ;;  %v10014_v7 = vadd.f32 %v1768_v54, %v1669_v2  ;;  %v12789_v23 = vld [vmem:[#allocation45_spill] sm:$0xff] }
 0x419   :  { %v1999_v58 = vrot.slane %v1998_v37, 4  ;;  %v2008_v5 = vrot.slane %v2007_v28, 4  ;;  %v2025_v56 = vadd.f32 %v2024_v12, %v2023_v38  ;;  %v1602_v36 = vmul.f32 %v1578_v31, %v12789_v23  ;;  %v12792_v12 = vld [vmem:[#allocation28_spill] sm:$0xff] }
 0x41a   :  { %v1978_v6 = vmul.f32 %v1962_v52, %v9617_v39  ;;  %v1977_v10 = vmul.f32 %v1961_v15, %v9619_v63  ;;  %12783 = vst [vmem:[#allocation30_spill] sm:$0xff] %v10012_v9  ;;  %12784 = vst [vmem:[#allocation31_spill] sm:$0xff] %v10014_v7  ;;  %v1934_v34 = vmul.f32 %v10012_v9, %v10012_v9  ;;  %v1990_v2 = vrot.slane %v1989_v33, 4  ;;  %v12791_v52 = vld [vmem:[#allocation33_spill] sm:$0xff] }
 0x41b   :  { %v1882_v47 = vpop.permute.xlu1 %1881  ;;  %v1880_v30 = vpop.permute.xlu0 %1879  ;;  %v1933_v8 = vmul.f32 %v10014_v7, %v10014_v7  ;;  %v1671_v15 = vmul.f32 %v1599_v62, %v12791_v52  ;;  %v1824_v38 = vmul.f32 %v1600_v46, %v12792_v12  ;;  %v2026_v61 = vrot.slane %v2025_v56, 4 }
 0x41c   :  { %v2015_v50 = vsel %vm973_vm4, %v1978_v6, 0.0  ;;  %v2014_v29 = vsel %vm971_vm3, %v1977_v10, 0.0  ;;  %v10021_v17 = vadd.f32 %v1882_v47, %v1822_v60  ;;  %v10023_v18 = vadd.f32 %v1880_v30, %v1821_v42 }
 0x41d   :  { %v2016_v41 = vadd.f32 %v2015_v50, %v2014_v29  ;;  %v1672_v60 = vmul.f32 %v1600_v46, %v12790_v43  ;;  %v2000_v6 = vadd.f32 %v1999_v58, %v1998_v37  ;;  %v2009_v10 = vadd.f32 %v2008_v5, %v2007_v28  ;;  %v12796_v43 = vld [vmem:[#allocation46_spill] sm:$0xff] }
 0x41e   :  { %12787 = vst [vmem:[#allocation26_spill] sm:$0xff] %v10021_v17  ;;  %12788 = vst [vmem:[#allocation27_spill] sm:$0xff] %v10023_v18  ;;  %v1950_v1 = vmul.f32 %v10021_v17, %v10021_v17  ;;  %v1949_v16 = vmul.f32 %v10023_v18, %v10023_v18  ;;  %v1823_v47 = vmul.f32 %v1599_v62, %v12793_v48  ;;  %v12797_v46 = vld [vmem:[#allocation34_spill] sm:$0xff] }
 0x41f   :  { %v2017_v54 = vrot.slane %v2016_v41, 4  ;;  %v1774_v53 = vpop.permute.xlu1 %1773  ;;  %v1772_v42 = vpop.permute.xlu0 %1771  ;;  %v1674_v37 = vmul.f32 %v1602_v36, %v12797_v46 }
 0x420   :  { %v1966_v45 = vadd.f32 %v1950_v1, %v1934_v34  ;;  %v1965_v51 = vadd.f32 %v1949_v16, %v1933_v8  ;;  %v10040_v29 = vadd.f32 %v1774_v53, %v1672_v60  ;;  %v10042_v23 = vadd.f32 %v1772_v42, %v1671_v15 }
 0x421   :  { %v1601_v34 = vmul.f32 %v1578_v31, %v12796_v43  ;;  %v1991_v8 = vadd.f32 %v1990_v2, %v1989_v33  ;;  %v2018_v1 = vadd.f32 %v2017_v54, %v2016_v41  ;;  %v2001_v60 = vrot.slane %v2000_v6, 2  ;;  %v12802_v43 = vld [vmem:[#allocation37_spill] sm:$0xff] }
 0x422   :  { %v1982_v30 = vmul.f32 %v1966_v45, %v9617_v39  ;;  %v1981_v50 = vmul.f32 %v1965_v51, %v9619_v63  ;;  %12794 = vst [vmem:[#allocation43_spill] sm:$0xff] %v10040_v29  ;;  %12795 = vst [vmem:[#allocation44_spill] sm:$0xff] %v10042_v23  ;;  %v2010_v53 = vrot.slane %v2009_v10, 2  ;;  %v2027_v42 = vadd.f32 %v2026_v61, %v2025_v56 }
 0x423   :  { %v1886_v16 = vpop.permute.xlu1 %1885  ;;  %v1884_v52 = vpop.permute.xlu0 %1883  ;;  %v1936_v31 = vmul.f32 %v10040_v29, %v10040_v29  ;;  %v1935_v33 = vmul.f32 %v10042_v23, %v10042_v23  ;;  %v1992_v54 = vrot.slane %v1991_v8, 2  ;;  %v2019_v51 = vrot.slane %v2018_v1, 2 }
 0x424   :  { %v2033_v28 = vsel %vm973_vm4, %v1982_v30, 0.0  ;;  %v2032_v62 = vsel %vm971_vm3, %v1981_v50, 0.0  ;;  %v10048_v58 = vadd.f32 %v1886_v16, %v1824_v38  ;;  %v10050_v5 = vadd.f32 %v1884_v52, %v1823_v47  ;;  %v12800_v38 = vld [vmem:[#allocation35_spill] sm:$0xff]  ;;  %v12801_v30 = vld [vmem:[#allocation36_spill] sm:$0xff] }
 0x425   :  { %v2034_v45 = vadd.f32 %v2033_v28, %v2032_v62  ;;  %v1673_v48 = vmul.f32 %v1601_v34, %v12800_v38  ;;  %v1826_v50 = vmul.f32 %v1602_v36, %v12801_v30  ;;  %v1825_v16 = vmul.f32 %v1601_v34, %v12802_v43 }
 0x426   :  { %12798 = vst [vmem:[#allocation45_spill] sm:$0xff] %v10048_v58  ;;  %12799 = vst [vmem:[#allocation32_spill] sm:$0xff] %v10050_v5  ;;  %v1952_v41 = vmul.f32 %v10048_v58, %v10048_v58  ;;  %v1951_v2 = vmul.f32 %v10050_v5, %v10050_v5  ;;  %v2002_v52 = vadd.f32 %v2001_v60, %v2000_v6  ;;  %v2028_v28 = vrot.slane %v2027_v42, 2 }
 0x427   :  { %v2035_v15 = vrot.slane %v2034_v45, 4  ;;  %v1778_v12 = vpop.permute.xlu1 %1777  ;;  %v1776_v56 = vpop.permute.xlu0 %1775  ;;  %v2011_v46 = vadd.f32 %v2010_v53, %v2009_v10  ;;  %v1993_v38 = vadd.f32 %v1992_v54, %v1991_v8  ;;  %v2020_v18 = vadd.f32 %v2019_v51, %v2018_v1 }
 0x428   :  { %v1968_v61 = vadd.f32 %v1952_v41, %v1936_v31  ;;  %v1967_v47 = vadd.f32 %v1951_v2, %v1935_v33  ;;  %v10065_v23 = vadd.f32 %v1778_v12, %v1674_v37  ;;  %v10067_v29 = vadd.f32 %v1776_v56, %v1673_v48 }
 0x429   :  { %v2036_v62 = vadd.f32 %v2035_v15, %v2034_v45  ;;  %v2003_v60 = vrot.slane %v2002_v52, 1  ;;  %v2012_v53 = vrot.slane %v2011_v46, 1  ;;  %v2029_v45 = vadd.f32 %v2028_v28, %v2027_v42 }
 0x42a   :  { %v1984_v58 = vmul.f32 %v1968_v61, %v9617_v39  ;;  %v1983_v5 = vmul.f32 %v1967_v47, %v9619_v63  ;;  %12803 = vst [vmem:[#allocation33_spill] sm:$0xff] %v10065_v23  ;;  %12804 = vst [vmem:[#allocation28_spill] sm:$0xff] %v10067_v29  ;;  %v1938_v2 = vmul.f32 %v10065_v23, %v10065_v23  ;;  %v1994_v48 = vrot.slane %v1993_v38, 1 }
 0x42b   :  { %v2037_v31 = vrot.slane %v2036_v62, 2  ;;  %v1890_v33 = vpop.permute.xlu1 %1889  ;;  %v1888_v41 = vpop.permute.xlu0 %1887  ;;  %v1937_v8 = vmul.f32 %v10067_v29, %v10067_v29  ;;  %v2004_v42 = vadd.f32 %v2003_v60, %v2002_v52  ;;  %v2013_v61 = vadd.f32 %v2012_v53, %v2011_v46 }
 0x42c   :  { %v2042_v36 = vsel %vm973_vm4, %v1984_v58, 0.0  ;;  %v2041_v6 = vsel %vm971_vm3, %v1983_v5, 0.0  ;;  %v10071_v10 = vadd.f32 %v1890_v33, %v1826_v50  ;;  %v10073_v34 = vadd.f32 %v1888_v41, %v1825_v16 }
 0x42d   :  { %v2043_v37 = vadd.f32 %v2042_v36, %v2041_v6  ;;  %v2021_v5 = vrot.slane %v2020_v18, 1  ;;  %v2038_v54 = vadd.f32 %v2037_v31, %v2036_v62  ;;  %v2030_v47 = vrot.slane %v2029_v45, 1  ;;  %v12807_v31 = vld [vmem:[#allocation38_spill] sm:$0xff] }
 0x42e   :  { %12805 = vst [vmem:[#allocation29_spill] sm:$0xff] %v10071_v10  ;;  %12806 = vst [vmem:[#allocation46_spill] sm:$0xff] %v10073_v34  ;;  %v1954_v1 = vmul.f32 %v10071_v10, %v10071_v10  ;;  %v1953_v58 = vmul.f32 %v10073_v34, %v10073_v34  ;;  %v1995_v62 = vadd.f32 %v1994_v48, %v1993_v38 }
 0x42f   :  { %v2044_v51 = vrot.slane %v2043_v37, 4  ;;  %v2022_v43 = vadd.f32 %v2021_v5, %v2020_v18  ;;  %v2039_v16 = vrot.slane %v2038_v54, 1  ;;  %v2060_v36 = vadd.f32 %v2004_v42, %v12807_v31 }
 0x430   :  { %v1970_v15 = vadd.f32 %v1954_v1, %v1938_v2  ;;  %v1969_v12 = vadd.f32 %v1953_v58, %v1937_v8  ;;  %v2061_v52 = vadd.f32 %v2013_v61, %v12807_v31  ;;  %v2031_v46 = vadd.f32 %v2030_v47, %v2029_v45  ;;  %v12808_v47 = vld [vmem:[#allocation42_spill] sm:$0xff] }
 0x431   :  { %v2045_v56 = vadd.f32 %v2044_v51, %v2043_v37  ;;  %v2062_v60 = vadd.f32 %v2022_v43, %v12807_v31  ;;  %v2040_v53 = vadd.f32 %v2039_v16, %v2038_v54  ;;  %v2059_v18 = vadd.f32 %v1995_v62, %v12807_v31 }
 0x432   :  { %v1986_v30 = vmul.f32 %v1970_v15, %v9617_v39  ;;  %v1985_v50 = vmul.f32 %v1969_v12, %v9619_v63  ;;  %8866 = vtanh.f32 %v2060_v36  ;;  %v2063_v38 = vadd.f32 %v2031_v46, %v12807_v31 }
 0x433   :  { %v2046_v28 = vrot.slane %v2045_v56, 2  ;;  %8868 = vtanh.f32 %v2061_v52  ;;  %v2064_v5 = vadd.f32 %v2040_v53, %v12807_v31 }
 0x434   :  { %v2051_v33 = vsel %vm973_vm4, %v1986_v30, 0.0  ;;  %v2050_v41 = vsel %vm971_vm3, %v1985_v50, 0.0  ;;  %8870 = vtanh.f32 %v2062_v60  ;;  %v1400_v30 = vmul.f32 0.16666667, %v12808_v47  ;;  %v12814_v47 = vld [vmem:[#allocation3_spill] sm:$0xff] }
 0x435   :  { %v2047_v6 = vadd.f32 %v2046_v28, %v2045_v56  ;;  %v2052_v2 = vadd.f32 %v2051_v33, %v2050_v41  ;;  %8872 = vtanh.f32 %v2059_v18 }
 0x436   :  { %8874 = vtanh.f32 %v2063_v38  ;;  %v1401_v62 = vadd.f32 0.5, %v1400_v30  ;;  %v12815_v30 = vld [vmem:[#allocation5_spill] sm:$0xff] }
 0x437   :  { %v2048_v37 = vrot.slane %v2047_v6, 1  ;;  %v2053_v8 = vrot.slane %v2052_v2, 4  ;;  %8876 = vtanh.f32 %v2064_v5 }
 0x438   :  { %v1402_v60 = vmax.f32 %v1401_v62, 0.0  ;;  %v12822_v62 = vld [vmem:[#allocation13_spill] sm:$0xff] }
 0x439   :  { %v2049_v1 = vadd.f32 %v2048_v37, %v2047_v6  ;;  %v2054_v58 = vadd.f32 %v2053_v8, %v2052_v2 }
 0x43a   :  { %v1403_v38 = vmin.f32 %v1402_v60, 1.0 }
 0x43b   :  { %v2055_v51 = vrot.slane %v2054_v58, 2  ;;  %v2065_v15 = vadd.f32 %v2049_v1, %v12807_v31 }
 0x43c   :  { %v8867_v48 = vpop.eup %8866 }
 0x43d   :  { %v2056_v45 = vadd.f32 %v2055_v51, %v2054_v58  ;;  %8878 = vtanh.f32 %v2065_v15  ;;  %v8869_v56 = vpop.eup %8868  ;;  %v2083_v50 = vrot.slane %v8867_v48, 7  ;;  %v8207_v48 = vld [vmem:[%s12541_s0 + $0x10] sm:$0xff] }
 0x43e   :  { %v8871_v61 = vpop.eup %8870  ;;  %v2085_v16 = vrot.slane %v8869_v56, 6  ;;  %v12812_v56 = vld [vmem:[#allocation4_spill] sm:$0xff] }
 0x43f   :  { %v2057_v54 = vrot.slane %v2056_v45, 1  ;;  %v8873_v43 = vpop.eup %8872  ;;  %v2087_v33 = vrot.slane %v8871_v61, 5  ;;  %v12813_v61 = vmov 0.0|0.0  }
 0x440   :  { %v8875_v28 = vpop.eup %8874  ;;  %v2084_v6 = vsel %vm1078_vm5, %v2083_v50, %v8873_v43  ;;  %v12816_v50 = vld [vmem:[#allocation6_spill] sm:$0xff]  ;;  %v12817_v43 = vld [vmem:[#allocation7_spill] sm:$0xff] }
 0x441   :  { %v2058_v12 = vadd.f32 %v2057_v54, %v2056_v45  ;;  %v8877_v41 = vpop.eup %8876  ;;  %v2086_v2 = vsel %vm1081_vm6, %v2085_v16, %v2084_v6  ;;  %v2089_v53 = vrot.slane %v8875_v28, 4  ;;  %v12809_v54 = vld [vmem:[#allocation40_spill] sm:$0xff]  ;;  %v12819_v28 = vld [vmem:[#allocation10_spill] sm:$0xff] }
 0x442   :  { %v2088_v52 = vsel %vm1084_vm7, %v2087_v33, %v2086_v2  ;;  %v2091_v46 = vrot.slane %v8877_v41, 3  ;;  %v12818_v16 = vld [vmem:[#allocation8_spill] sm:$0xff]  ;;  %v12820_v33 = vld [vmem:[#allocation9_spill] sm:$0xff]  ;;  %v12821_v41 = vld [vmem:[#allocation11_spill] sm:$0xff] }
 0x443   :  { %v2066_v42 = vadd.f32 %v2058_v12, %v12807_v31  ;;  %v2090_v18 = vsel %vm1087_vm8, %v2089_v53, %v2088_v52  ;;  %v12810_v12 = vmov 0.0   ;;  %v12824_v6 = vld [vmem:[#allocation14_spill] sm:$0xff]  ;;  %v12825_v2 = vld [vmem:[#allocation41_spill] sm:$0xff] }
 0x444   :  { %v2092_v1 = vsel %vm1090_vm9, %v2091_v46, %v2090_v18 }
 0x445   :  { %8880 = vtanh.f32 %v2066_v42  ;;  %v12811_v42 = vld [vmem:[#allocation39_spill] sm:$0xff] }
 0x447   :  { %v8879_v36 = vpop.eup %8878 }
 0x448   :  { %v2093_v37 = vrot.slane %v8879_v36, 2  ;;  %v12823_v36 = vld [vmem:[#allocation12_spill] sm:$0xff] }
 0x44a   :  { %v2094_v5 = vsel %vm1093_vm10, %v2093_v37, %v2092_v1 }
 0x44f   :  { %v8881_v8 = vpop.eup %8880 }
 0x450   :  { %v2095_v58 = vrot.slane %v8881_v8, 1  ;;  %v12826_v8 = vld [vmem:[#allocation19_spill] sm:$0xff] }
 0x452   :  { %v2096_v51 = vsel %vm1096_vm11, %v2095_v58, %v2094_v5 }
 0x453   :  { %v2098_v15 = vmul.f32 %v2096_v51, %v1403_v38  ;;  %v12827_v38 = vld [vmem:[#allocation16_spill] sm:$0xff] }
 0x455   :  { %2102 = vrot.lane.b32.xlu0 %v2098_v15, %s9005_s17  ;;  %v12828_v15 = vld [vmem:[#allocation18_spill] sm:$0xff] }
 0x4c7   :  { %v2103_v45 = vpop.permute.xlu0 %2102 }
 0x4c8   :  { %8208 = vmatmul.mubr.msk.f32.vlgmr.msra.gmra.mrb[4].mxu0 %vm69_vm12, %v2103_v45  ;;  %8443 = vmatmul.mubr.msk.f32.vlgmr.msra.gmra.mrb[12].mxu1 %vm69_vm12, %v2103_v45 }
 0x4c9   :  { %8446 = vmatpush3.msk.msra.mxu1 %vm218_vm1, %v12809_v54  ;;  %8447 = vmatprep.mubr.msk.f32.mxu1 %vm9002_vm0, %v12810_v12 }
 0x4ca   :  { %8211 = vmatpush1.msk.msra.mxu0 %vm218_vm1, %v12811_v42  ;;  %2314 = vmatprep.mubr.f32.mxu0 %v12810_v12 }
 0x4cb   :  { %8674 = vmatprep.subr.bf16.mxu0 %v12812_v56  ;;  %8689 = vmatprep.subr.bf16.mxu1 %v12813_v61 }
 0x4cc   :  { %8448 = vmatmul.mubr.msk.f32.vlgmr.msra.gmra.mrb[14].mxu1 %vm214_vm2, %v8207_v48 }
 0x4cd   :  { %8691 = vmatpush3.bf16.msra.mxu1 %v12814_v47  ;;  %8466 = vmatprep.mubr.msk.f32.mxu1 %vm9002_vm0, %v12810_v12 }
 0x4ce   :  { %8692 = vmatprep.subr.bf16.mxu1 %v12813_v61 }
 0x4d0   :  { %8212 = vmatmul.mubr.msk.f32.vlgmr.msra.gmra.mrb[4].mxu0 %vm214_vm2, %v8207_v48 }
 0x4d1   :  { %8676 = vmatpush1.bf16.msra.mxu0 %v12815_v30  ;;  %8694 = vmatpush3.bf16.msra.mxu1 %v12816_v50 }
 0x4d2   :  { %8678 = vmatprep.subr.bf16.mxu0 %v12817_v43  ;;  %8695 = vmatprep.subr.bf16.mxu1 %v12813_v61 }
 0x4d3   :  { %3169 = vmatprep.mubr.f32.mxu0 %v12810_v12 }
 0x4d5   :  { %8680 = vmatpush1.bf16.msra.mxu0 %v12818_v16  ;;  %8697 = vmatpush3.bf16.msra.mxu1 %v12819_v28 }
 0x4d6   :  { %8682 = vmatprep.subr.bf16.mxu0 %v12820_v33  ;;  %8698 = vmatprep.subr.bf16.mxu1 %v12813_v61 }
 0x4d9   :  { %8684 = vmatpush1.bf16.msra.mxu0 %v12821_v41  ;;  %8700 = vmatpush3.bf16.msra.mxu1 %v12822_v62 }
 0x4da   :  { %8686 = vmatprep.subr.bf16.mxu0 %v12823_v36  ;;  %8469 = vmatprep.subr.mxu1 %v12810_v12 }
 0x4dd   :  { %8688 = vmatpush1.bf16.msra.mxu0 %v12824_v6 }
 0x4de   :  { %8222 = vmatprep.subr.msk.mxu0 %vm218_vm1, %v12825_v2 }
 0x59b   :  { %v2243_v52 = vpop.f32.mrb[12].mxu1 }
 0x59c   :  { %v8444_v46 = vpop.f32.mrb[13].mxu1 }
 0x59f   :  { %v2387_v60 = vpop.f32.mrb[14].mxu1 }
 0x5a0   :  { %v2388_v53 = vadd.f32 %v2387_v60, %v2243_v52  ;;  %v8449_v37 = vpop.f32.mrb[15].mxu1  ;;  %v12830_v52 = vld [vmem:[#allocation15_spill] sm:$0xff] }
 0x5a1   :  { %v12831_v37 = vld [vmem:[#allocation17_spill] sm:$0xff] }
 0x5a2   :  { %v2393_v18 = vadd.f32 %v2388_v53, %v12826_v8 }
 0x5a3   :  { %v2316_v1 = vpop.f32.mrb[4].mxu0 }
 0x5a4   :  { %v2403_v58 = vmul.f32 0.16666667, %v2393_v18  ;;  %v2391_v5 = vadd.f32 %v2316_v1, %v12827_v38  ;;  %v2318_v51 = vpop.f32.mrb[5].mxu0 }
 0x5a5   :  { %v10143_v45 = vadd.f32 %v2318_v51, %v12828_v15 }
 0x5a6   :  { %v2404_v54 = vadd.f32 0.5, %v2403_v58  ;;  %v2394_v48 = vmul.f32 0.16666667, %v2391_v5  ;;  %v12832_v5 = vld [vmem:[#allocation20_spill] sm:$0xff] }
 0x5a7   :  { %12829 = vst [vmem:[#allocation34_spill] sm:$0xff] %v10143_v45  ;;  %8882 = vtanh.f32 %v10143_v45 }
 0x5a8   :  { %v2405_v42 = vmax.f32 %v2404_v54, 0.0  ;;  %v2395_v2 = vadd.f32 0.5, %v2394_v48  ;;  %v12833_v48 = vld [vmem:[#allocation21_spill] sm:$0xff] }
 0x5aa   :  { %v2406_v46 = vmin.f32 %v2405_v42, 1.0  ;;  %v2396_v6 = vmax.f32 %v2395_v2, 0.0  ;;  %v12834_v2 = vld [vmem:[#allocation22_spill] sm:$0xff] }
 0x5ac   :  { %v2422_v60 = vrot.slane %v2406_v46, %v12830_v52  ;;  %v10147_v53 = vmin.f32 %v2396_v6, 1.0  ;;  %v2433_v18 = vrot.slane %v2406_v46, %v12831_v37  ;;  %v2411_v58 = vrot.slane %v2406_v46, %v9220_v44 }
 0x5ad   :  { %v2444_v54 = vrot.slane %v2406_v46, %v12832_v5  ;;  %v2455_v42 = vrot.slane %v2406_v46, %v12833_v48  ;;  %v12836_v5 = vld [vmem:[#allocation25_spill] sm:$0xff] }
 0x5ae   :  { %2428 = vbcast.lane.b32.xlu0 %v2422_v60, 264  ;;  %2424 = vbcast.lane.b32.xlu1 %v2422_v60, 256  ;;  %v2466_v60 = vrot.slane %v2406_v46, %v12834_v2  ;;  %v2488_v52 = vrot.slane %v2406_v46, %v12836_v5  ;;  %v10181_v5 = vld [vmem:[%s12544_s9 + $0x20] sm:$0xff]  ;;  %v2497_v41 = vcombine.high %v10147_v53, %v10147_v53 }
 0x5b0   :  { %v2511_v50 = vrot.slane %v2497_v41, %v12772_v11 }
 0x5b1   :  { %v8883_v1 = vpop.eup %8882 }
 0x5b2   :  { %v2407_v51 = vmul.f32 %v8883_v1, %v10147_v53  ;;  %2439 = vbcast.lane.b32.xlu0 %v2433_v18, 264  ;;  %2435 = vbcast.lane.b32.xlu1 %v2433_v18, 256  ;;  %v12835_v1 = vld [vmem:[#allocation24_spill] sm:$0xff]  ;;  %v2513_v12 = vcombine.high %v2511_v50, %v2511_v50  ;;  %v10281_v29 = vrot.slane %v2511_v50, %v12772_v11 }
 0x5b3   :  { %v2477_v18 = vrot.slane %v2406_v46, %v12835_v1 }
 0x5b4   :  { %v2616_v6 = vrot.slane %v2407_v51, %v12772_v11  ;;  %v2609_v48 = vcombine.high %v2407_v51, %v2407_v51 }
 0x5b6   :  { %2417 = vbcast.lane.b32.xlu0 %v2411_v58, 264  ;;  %2413 = vbcast.lane.b32.xlu1 %v2411_v58, 256  ;;  %v2632_v37 = vrot.slane %v2616_v6, %v12772_v11  ;;  %v2624_v58 = vcombine.high %v2616_v6, %v2616_v6 }
 0x5b8   :  { %v2646_v46 = vrot.slane %v2624_v58, %v12772_v11  ;;  %v2654_v8 = vcombine.high %v2632_v37, %v2632_v37 }
 0x5ba   :  { %2450 = vbcast.lane.b32.xlu0 %v2444_v54, 264  ;;  %2446 = vbcast.lane.b32.xlu1 %v2444_v54, 256  ;;  %v2677_v54 = vrot.slane %v2632_v37, %v9220_v44  ;;  %v2681_v58 = vrot.slane %v2646_v46, %v9220_v44 }
 0x5bc   :  { %v2826_v2 = vmul.f32 %v10181_v5, %v2677_v54 }
 0x5be   :  { %2461 = vbcast.lane.b32.xlu0 %v2455_v42, 264  ;;  %2457 = vbcast.lane.b32.xlu1 %v2455_v42, 256  ;;  %v10163_v42 = vld [vmem:[%s12543_s8 + $0x28] sm:$0x3] }
 0x5bf   :  { %v2715_v1 = vmul.f32 %v10163_v42, %v2677_v54  ;;  %v2717_v15 = vmul.f32 %v10163_v42, %v2681_v58 }
 0x5c2   :  { %2472 = vbcast.lane.b32.xlu0 %v2466_v60, 264  ;;  %2468 = vbcast.lane.b32.xlu1 %v2466_v60, 256  ;;  %v10168_v60 = vld [vmem:[%s12543_s8 + $0x20] sm:$0xff] }
 0x5c3   :  { %v2714_v6 = vmul.f32 %v10168_v60, %v2677_v54  ;;  %v2716_v38 = vmul.f32 %v10168_v60, %v2681_v58 }
 0x5c6   :  { %2483 = vbcast.lane.b32.xlu0 %v2477_v18, 264  ;;  %2479 = vbcast.lane.b32.xlu1 %v2477_v18, 256  ;;  %v10176_v18 = vld [vmem:[%s12544_s9 + $0x28] sm:$0x3] }
 0x5ca   :  { %2494 = vbcast.lane.b32.xlu0 %v2488_v52, 264  ;;  %2490 = vbcast.lane.b32.xlu1 %v2488_v52, 256  ;;  %v2827_v52 = vmul.f32 %v10176_v18, %v2677_v54  ;;  %v2829_v54 = vmul.f32 %v10176_v18, %v2681_v58 }
 0x5ce   :  { %2748 = vrot.lane.b32.xlu0 %v2715_v1, %s9005_s17  ;;  %2746 = vrot.lane.b32.xlu1 %v2714_v6, %s9005_s17  ;;  %v2623_v1 = vrot.slane %v2609_v48, %v12772_v11  ;;  %v2828_v6 = vmul.f32 %v10181_v5, %v2681_v58 }
 0x5d2   :  { %2860 = vrot.lane.b32.xlu0 %v2827_v52, %s9005_s17  ;;  %2858 = vrot.lane.b32.xlu1 %v2826_v2, %s9005_s17  ;;  %v2685_v52 = vrot.slane %v2654_v8, %v9220_v44 }
 0x5d4   :  { %v2719_v51 = vmul.f32 %v10163_v42, %v2685_v52  ;;  %v2718_v37 = vmul.f32 %v10168_v60, %v2685_v52  ;;  %v2830_v48 = vmul.f32 %v10181_v5, %v2685_v52 }
 0x5d6   :  { %2752 = vrot.lane.b32.xlu0 %v2717_v15, %s9005_s17  ;;  %2750 = vrot.lane.b32.xlu1 %v2716_v38, %s9005_s17  ;;  %v2639_v15 = vrot.slane %v2623_v1, %v12772_v11  ;;  %v2831_v38 = vmul.f32 %v10176_v18, %v2685_v52 }
 0x5d8   :  { %v2693_v8 = vrot.slane %v2639_v15, %v9220_v44 }
 0x5da   :  { %2864 = vrot.lane.b32.xlu0 %v2829_v54, %s9005_s17  ;;  %2862 = vrot.lane.b32.xlu1 %v2828_v6, %s9005_s17  ;;  %v2723_v2 = vmul.f32 %v10163_v42, %v2693_v8  ;;  %v2722_v58 = vmul.f32 %v10168_v60, %v2693_v8  ;;  %v2656_v54 = vcombine.high %v2646_v46, %v2646_v46 }
 0x5db   :  { %v2835_v6 = vmul.f32 %v10176_v18, %v2693_v8 }
 0x5dc   :  { %v2689_v52 = vrot.slane %v2656_v54, %v9220_v44 }
 0x5de   :  { %2756 = vrot.lane.b32.xlu0 %v2719_v51, %s9005_s17  ;;  %2754 = vrot.lane.b32.xlu1 %v2718_v37, %s9005_s17  ;;  %v2834_v51 = vmul.f32 %v10181_v5, %v2693_v8  ;;  %v2625_v37 = vcombine.high %v2623_v1, %v2623_v1  ;;  %v2832_v8 = vmul.f32 %v10181_v5, %v2689_v52 }
 0x5e0   :  { %v2653_v46 = vrot.slane %v2625_v37, %v12772_v11 }
 0x5e2   :  { %2868 = vrot.lane.b32.xlu0 %v2831_v38, %s9005_s17  ;;  %2866 = vrot.lane.b32.xlu1 %v2830_v48, %s9005_s17  ;;  %v2721_v38 = vmul.f32 %v10163_v42, %v2689_v52  ;;  %v2720_v48 = vmul.f32 %v10168_v60, %v2689_v52  ;;  %v2697_v1 = vrot.slane %v2653_v46, %v9220_v44 }
 0x5e4   :  { %v2724_v54 = vmul.f32 %v10168_v60, %v2697_v1  ;;  %v2836_v37 = vmul.f32 %v10181_v5, %v2697_v1 }
 0x5e6   :  { %2764 = vrot.lane.b32.xlu0 %v2723_v2, %s9005_s17  ;;  %2762 = vrot.lane.b32.xlu1 %v2722_v58, %s9005_s17  ;;  %v2833_v2 = vmul.f32 %v10176_v18, %v2689_v52  ;;  %v2725_v58 = vmul.f32 %v10163_v42, %v2697_v1 }
 0x5ea   :  { %2876 = vrot.lane.b32.xlu0 %v2835_v6, %s9005_s17  ;;  %2874 = vrot.lane.b32.xlu1 %v2834_v51, %s9005_s17  ;;  %v2655_v6 = vcombine.high %v2639_v15, %v2639_v15  ;;  %v2837_v51 = vmul.f32 %v10176_v18, %v2697_v1 }
 0x5ec   :  { %v2701_v52 = vrot.slane %v2655_v6, %v9220_v44 }
 0x5ee   :  { %2760 = vrot.lane.b32.xlu0 %v2721_v38, %s9005_s17  ;;  %2758 = vrot.lane.b32.xlu1 %v2720_v48, %s9005_s17  ;;  %v2727_v38 = vmul.f32 %v10163_v42, %v2701_v52  ;;  %v2726_v48 = vmul.f32 %v10168_v60, %v2701_v52  ;;  %v2839_v15 = vmul.f32 %v10176_v18, %v2701_v52 }
 0x5f2   :  { %2872 = vrot.lane.b32.xlu0 %v2833_v2, %s9005_s17  ;;  %2870 = vrot.lane.b32.xlu1 %v2832_v8, %s9005_s17  ;;  %v2657_v2 = vcombine.high %v2653_v46, %v2653_v46  ;;  %v2838_v8 = vmul.f32 %v10181_v5, %v2701_v52 }
 0x5f4   :  { %v2705_v1 = vrot.slane %v2657_v2, %v9220_v44 }
 0x5f6   :  { %2768 = vrot.lane.b32.xlu0 %v2725_v58, %s9005_s17  ;;  %2766 = vrot.lane.b32.xlu1 %v2724_v54, %s9005_s17  ;;  %v2729_v58 = vmul.f32 %v10163_v42, %v2705_v1  ;;  %v2728_v54 = vmul.f32 %v10168_v60, %v2705_v1  ;;  %v2841_v46 = vmul.f32 %v10176_v18, %v2705_v1 }
 0x5f7   :  { %v2840_v6 = vmul.f32 %v10181_v5, %v2705_v1 }
 0x5fa   :  { %2880 = vrot.lane.b32.xlu0 %v2837_v51, %s9005_s17  ;;  %2878 = vrot.lane.b32.xlu1 %v2836_v37, %s9005_s17 }
 0x5fe   :  { %2772 = vrot.lane.b32.xlu0 %v2727_v38, %s9005_s17  ;;  %2770 = vrot.lane.b32.xlu1 %v2726_v48, %s9005_s17 }
 0x602   :  { %2884 = vrot.lane.b32.xlu0 %v2839_v15, %s9005_s17  ;;  %2882 = vrot.lane.b32.xlu1 %v2838_v8, %s9005_s17 }
 0x606   :  { %2776 = vrot.lane.b32.xlu0 %v2729_v58, %s9005_s17  ;;  %2774 = vrot.lane.b32.xlu1 %v2728_v54, %s9005_s17 }
 0x60a   :  { %2888 = vrot.lane.b32.xlu0 %v2841_v46, %s9005_s17  ;;  %2886 = vrot.lane.b32.xlu1 %v2840_v6, %s9005_s17  ;;  %v2504_v6 = vrot.slane %v10147_v53, %v12772_v11 }
 0x60c   :  { %v2512_v33 = vcombine.high %v2504_v6, %v2504_v6  ;;  %v2520_v43 = vrot.slane %v2504_v6, %v12772_v11  ;;  %v10284_v6 = vrot.slane %v2513_v12, %v12772_v11  ;;  %v2543_v12 = vcombine.high %v10281_v29, %v10281_v29 }
 0x60e   :  { %v2534_v30 = vrot.slane %v2512_v33, %v12772_v11  ;;  %v2542_v56 = vcombine.high %v2520_v43, %v2520_v43  ;;  %v2549_v33 = vrot.slane %v2520_v43, %v9220_v44 }
 0x610   :  { %v2553_v45 = vrot.slane %v2534_v30, %v9220_v44  ;;  %v2557_v10 = vrot.slane %v2542_v56, %v9220_v44  ;;  %v2544_v53 = vcombine.high %v2534_v30, %v2534_v30  ;;  %v2565_v56 = vrot.slane %v10281_v29, %v9220_v44 }
 0x611   :  { %v10292_v30 = vrot.slane %v10284_v6, %v9220_v44 }
 0x612   :  { %v2561_v9 = vrot.slane %v2544_v53, %v9220_v44 }
 0x620   :  { %v2429_v51 = vpop.permute.xlu0 %2428  ;;  %v2425_v37 = vpop.permute.xlu1 %2424 }
 0x621   :  { %v2589_v41 = vmul.f32 %v2553_v45, %v2429_v51  ;;  %v2588_v23 = vmul.f32 %v2553_v45, %v2425_v37 }
 0x623   :  { %v2661_v50 = vmul.f32 %v2589_v41, %v9905_v40  ;;  %v2813_v43 = vmul.f32 %v2589_v41, %v9893_v59  ;;  %v2812_v45 = vmul.f32 %v2588_v23, %v9895_v55 }
 0x624   :  { %v2440_v52 = vpop.permute.xlu0 %2439  ;;  %v2436_v38 = vpop.permute.xlu1 %2435 }
 0x628   :  { %v2418_v48 = vpop.permute.xlu0 %2417  ;;  %v2414_v42 = vpop.permute.xlu1 %2413 }
 0x62c   :  { %v2451_v2 = vpop.permute.xlu0 %2450  ;;  %v2447_v60 = vpop.permute.xlu1 %2446 }
 0x630   :  { %v2462_v15 = vpop.permute.xlu0 %2461  ;;  %v2458_v8 = vpop.permute.xlu1 %2457 }
 0x634   :  { %v10255_v58 = vpop.permute.xlu0 %2472  ;;  %v10257_v54 = vpop.permute.xlu1 %2468 }
 0x638   :  { %v10259_v18 = vpop.permute.xlu0 %2483  ;;  %v10261_v5 = vpop.permute.xlu1 %2479 }
 0x639   :  { %12837 = vst [vmem:[#allocation35_spill] sm:$0xff] %v10259_v18  ;;  %12838 = vst [vmem:[#allocation36_spill] sm:$0xff] %v10261_v5  ;;  %v2587_v5 = vmul.f32 %v2549_v33, %v2418_v48  ;;  %v2586_v18 = vmul.f32 %v2549_v33, %v2414_v42  ;;  %v2595_v48 = vmul.f32 %v2565_v56, %v2462_v15 }
 0x63a   :  { %v2594_v42 = vmul.f32 %v2565_v56, %v2458_v8 }
 0x63b   :  { %v2659_v29 = vmul.f32 %v2587_v5, %v9922_v13  ;;  %v2658_v40 = vmul.f32 %v2586_v18, %v9925_v19  ;;  %v2811_v59 = vmul.f32 %v2587_v5, %v9901_v24  ;;  %v2810_v55 = vmul.f32 %v2586_v18, %v9903_v14 }
 0x63c   :  { %v10263_v1 = vpop.permute.xlu0 %2494  ;;  %v10265_v46 = vpop.permute.xlu1 %2490 }
 0x63d   :  { %12839 = vst [vmem:[#allocation37_spill] sm:$0xff] %v10263_v1  ;;  %12840 = vst [vmem:[#allocation42_spill] sm:$0xff] %v10265_v46  ;;  %v2591_v46 = vmul.f32 %v2557_v10, %v2440_v52  ;;  %v2590_v1 = vmul.f32 %v2557_v10, %v2436_v38  ;;  %v2660_v10 = vmul.f32 %v2588_v23, %v9907_v57 }
 0x63f   :  { %v2663_v51 = vmul.f32 %v2591_v46, %v9909_v20  ;;  %v2662_v37 = vmul.f32 %v2590_v1, %v9911_v26  ;;  %v2815_v52 = vmul.f32 %v2591_v46, %v9897_v3  ;;  %v2814_v38 = vmul.f32 %v2590_v1, %v9899_v22 }
 0x640   :  { %v10269_v36 = vpop.permute.xlu0 %2748  ;;  %v10271_v62 = vpop.permute.xlu1 %2746  ;;  %v2593_v26 = vmul.f32 %v2561_v9, %v2451_v2  ;;  %v2592_v3 = vmul.f32 %v2561_v9, %v2447_v60  ;;  %v2666_v9 = vmul.f32 %v2594_v42, %v9945_v32 }
 0x644   :  { %v2861_v28 = vpop.permute.xlu0 %2860  ;;  %v2859_v16 = vpop.permute.xlu1 %2858 }
 0x645   :  { %v10316_v15 = vadd.f32 %v2861_v28, %v2811_v59  ;;  %v10318_v13 = vadd.f32 %v2859_v16, %v2810_v55 }
 0x647   :  { %v2939_v60 = vmul.f32 %v10316_v15, %v10316_v15 }
 0x648   :  { %v2753_v47 = vpop.permute.xlu0 %2752  ;;  %v2751_v61 = vpop.permute.xlu1 %2750 }
 0x649   :  { %v10320_v19 = vadd.f32 %v2753_v47, %v2661_v50  ;;  %v10322_v8 = vadd.f32 %v2751_v61, %v2660_v10  ;;  %v2819_v47 = vmul.f32 %v2595_v48, %v9947_v49  ;;  %v2818_v61 = vmul.f32 %v2594_v42, %v9949_v25 }
 0x64a   :  { %v2938_v49 = vmul.f32 %v10318_v13, %v10318_v13 }
 0x64b   :  { %v2925_v25 = vmul.f32 %v10320_v19, %v10320_v19 }
 0x64c   :  { %v2865_v31 = vpop.permute.xlu0 %2864  ;;  %v2863_v34 = vpop.permute.xlu1 %2862 }
 0x64d   :  { %v10308_v23 = vadd.f32 %v2865_v31, %v2813_v43  ;;  %v10310_v20 = vadd.f32 %v2863_v34, %v2812_v45  ;;  %v2667_v34 = vmul.f32 %v2595_v48, %v9943_v0  ;;  %v2545_v48 = vcombine.high %v10284_v6, %v10284_v6 }
 0x64f   :  { %v2941_v28 = vmul.f32 %v10308_v23, %v10308_v23  ;;  %v2940_v16 = vmul.f32 %v10310_v20, %v10310_v20 }
 0x650   :  { %v2757_v17 = vpop.permute.xlu0 %2756  ;;  %v2755_v7 = vpop.permute.xlu1 %2754 }
 0x651   :  { %v10324_v24 = vadd.f32 %v2757_v17, %v2663_v51  ;;  %v10326_v14 = vadd.f32 %v2755_v7, %v2662_v37  ;;  %v10337_v17 = vadd.f32 %v10269_v36, %v2659_v29  ;;  %v10340_v7 = vadd.f32 %v10271_v62, %v2658_v40 }
 0x652   :  { %v2924_v36 = vmul.f32 %v10322_v8, %v10322_v8  ;;  %v2957_v56 = vadd.f32 %v2941_v28, %v2925_v25 }
 0x653   :  { %v2927_v62 = vmul.f32 %v10324_v24, %v10324_v24  ;;  %v2926_v18 = vmul.f32 %v10326_v14, %v10326_v14  ;;  %v2923_v45 = vmul.f32 %v10337_v17, %v10337_v17  ;;  %v2922_v51 = vmul.f32 %v10340_v7, %v10340_v7 }
 0x654   :  { %v2869_v53 = vpop.permute.xlu0 %2868  ;;  %v2867_v57 = vpop.permute.xlu1 %2866  ;;  %v2956_v50 = vadd.f32 %v2940_v16, %v2924_v36 }
 0x655   :  { %v10312_v46 = vadd.f32 %v2869_v53, %v2815_v52  ;;  %v10314_v22 = vadd.f32 %v2867_v57, %v2814_v38  ;;  %v2573_v38 = vrot.slane %v2543_v12, %v9220_v44  ;;  %v2955_v40 = vadd.f32 %v2939_v60, %v2923_v45  ;;  %v12841_v45 = vld [vmem:[#allocation30_spill] sm:$0xff] }
 0x656   :  { %v2954_v53 = vadd.f32 %v2938_v49, %v2922_v51  ;;  %v2973_v12 = vmul.f32 %v2957_v56, %v9617_v39  ;;  %v2972_v6 = vmul.f32 %v2956_v50, %v9619_v63  ;;  %v2816_v60 = vmul.f32 %v2592_v3, %v9988_v21 }
 0x657   :  { %v2943_v0 = vmul.f32 %v10312_v46, %v10312_v46  ;;  %v2942_v32 = vmul.f32 %v10314_v22, %v10314_v22  ;;  %v2597_v49 = vmul.f32 %v10292_v30, %v10255_v58 }
 0x658   :  { %v2765_v31 = vpop.permute.xlu0 %2764  ;;  %v2763_v2 = vpop.permute.xlu1 %2762  ;;  %v2970_v25 = vmul.f32 %v2954_v53, %v9619_v63 }
 0x659   :  { %v10358_v5 = vadd.f32 %v2765_v31, %v2667_v34  ;;  %v10360_v1 = vadd.f32 %v2763_v2, %v2666_v9  ;;  %v2959_v37 = vadd.f32 %v2943_v0, %v2927_v62  ;;  %v2958_v52 = vadd.f32 %v2942_v32, %v2926_v18 }
 0x65a   :  { %v2665_v31 = vmul.f32 %v2593_v26, %v9972_v35  ;;  %v2664_v9 = vmul.f32 %v2592_v3, %v9974_v4  ;;  %v2817_v32 = vmul.f32 %v2593_v26, %v9986_v27  ;;  %v2596_v35 = vmul.f32 %v10292_v30, %v10257_v54 }
 0x65b   :  { %v2931_v57 = vmul.f32 %v10358_v5, %v10358_v5  ;;  %v2930_v59 = vmul.f32 %v10360_v1, %v10360_v1  ;;  %v2975_v2 = vmul.f32 %v2959_v37, %v9617_v39  ;;  %v2974_v28 = vmul.f32 %v2958_v52, %v9619_v63  ;;  %v12842_v52 = vld [vmem:[#allocation31_spill] sm:$0xff] }
 0x65c   :  { %v2877_v41 = vpop.permute.xlu0 %2876  ;;  %v2875_v33 = vpop.permute.xlu1 %2874  ;;  %v2971_v4 = vmul.f32 %v2955_v40, %v9617_v39  ;;  %v2996_v18 = vsel %vm973_vm4, %v2973_v12, 0.0  ;;  %v2669_v51 = vmul.f32 %v2597_v49, %v12841_v45  ;;  %v12843_v40 = vld [vmem:[#allocation26_spill] sm:$0xff] }
 0x65d   :  { %v10362_v10 = vadd.f32 %v2877_v41, %v2819_v47  ;;  %v10364_v43 = vadd.f32 %v2875_v33, %v2818_v61  ;;  %v2995_v41 = vsel %vm971_vm3, %v2972_v6, 0.0  ;;  %v3005_v21 = vsel %vm973_vm4, %v2975_v2, 0.0 }
 0x65e   :  { %v3004_v58 = vsel %vm971_vm3, %v2974_v28, 0.0  ;;  %v2821_v53 = vmul.f32 %v2597_v49, %v12843_v40  ;;  %v12847_v49 = vld [vmem:[#allocation35_spill] sm:$0xff] }
 0x65f   :  { %v2947_v42 = vmul.f32 %v10362_v10, %v10362_v10  ;;  %v2946_v29 = vmul.f32 %v10364_v43, %v10364_v43  ;;  %v12852_v40 = vld [vmem:[#allocation43_spill] sm:$0xff] }
 0x660   :  { %v2761_v55 = vpop.permute.xlu0 %2760  ;;  %v2759_v34 = vpop.permute.xlu1 %2758 }
 0x661   :  { %v2963_v16 = vadd.f32 %v2947_v42, %v2931_v57  ;;  %v2962_v47 = vadd.f32 %v2946_v29, %v2930_v59  ;;  %v10387_v61 = vadd.f32 %v2761_v55, %v2665_v31  ;;  %v10389_v0 = vadd.f32 %v2759_v34, %v2664_v9  ;;  %v12844_v57 = vld [vmem:[#allocation27_spill] sm:$0xff] }
 0x662   :  { %v2668_v42 = vmul.f32 %v2596_v35, %v12842_v52  ;;  %v2820_v59 = vmul.f32 %v2596_v35, %v12844_v57  ;;  %v2987_v55 = vsel %vm973_vm4, %v2971_v4, 0.0  ;;  %v2986_v34 = vsel %vm971_vm3, %v2970_v25, 0.0  ;;  %v12848_v4 = vld [vmem:[#allocation36_spill] sm:$0xff] }
 0x663   :  { %v2979_v54 = vmul.f32 %v2963_v16, %v9617_v39  ;;  %v2978_v30 = vmul.f32 %v2962_v47, %v9619_v63  ;;  %v2929_v26 = vmul.f32 %v10387_v61, %v10387_v61  ;;  %v2928_v3 = vmul.f32 %v10389_v0, %v10389_v0 }
 0x664   :  { %v2873_v36 = vpop.permute.xlu0 %2872  ;;  %v2871_v62 = vpop.permute.xlu1 %2870  ;;  %v2997_v31 = vadd.f32 %v2996_v18, %v2995_v41  ;;  %v3006_v9 = vadd.f32 %v3005_v21, %v3004_v58  ;;  %v2599_v35 = vmul.f32 %v2573_v38, %v12847_v49  ;;  %v2598_v25 = vmul.f32 %v2573_v38, %v12848_v4  ;;  %v12855_v4 = vld [vmem:[#allocation32_spill] sm:$0xff] }
 0x665   :  { %v10401_v33 = vadd.f32 %v2873_v36, %v2817_v32  ;;  %v10403_v27 = vadd.f32 %v2871_v62, %v2816_v60  ;;  %v3023_v2 = vsel %vm973_vm4, %v2979_v54, 0.0  ;;  %v3022_v28 = vsel %vm971_vm3, %v2978_v30, 0.0 }
 0x666   :  { %v2577_v36 = vrot.slane %v2545_v48, %v9220_v44  ;;  %v2988_v62 = vadd.f32 %v2987_v55, %v2986_v34 }
 0x667   :  { %v2945_v56 = vmul.f32 %v10401_v33, %v10401_v33  ;;  %v2944_v50 = vmul.f32 %v10403_v27, %v10403_v27 }
 0x668   :  { %v2769_v37 = vpop.permute.xlu0 %2768  ;;  %v2767_v29 = vpop.permute.xlu1 %2766 }
 0x669   :  { %v2961_v12 = vadd.f32 %v2945_v56, %v2929_v26  ;;  %v2960_v6 = vadd.f32 %v2944_v50, %v2928_v3  ;;  %v10427_v32 = vadd.f32 %v2769_v37, %v2669_v51  ;;  %v10429_v60 = vadd.f32 %v2767_v29, %v2668_v42  ;;  %v12851_v37 = vld [vmem:[#allocation37_spill] sm:$0xff] }
 0x66a   :  { %v2998_v26 = vrot.slane %v2997_v31, 4  ;;  %v3007_v3 = vrot.slane %v3006_v9, 4  ;;  %v3024_v56 = vadd.f32 %v3023_v2, %v3022_v28  ;;  %v2601_v52 = vmul.f32 %v2577_v36, %v12851_v37  ;;  %v12854_v2 = vld [vmem:[#allocation45_spill] sm:$0xff] }
 0x66b   :  { %v2977_v16 = vmul.f32 %v2961_v12, %v9617_v39  ;;  %v2976_v47 = vmul.f32 %v2960_v6, %v9619_v63  ;;  %12845 = vst [vmem:[#allocation40_spill] sm:$0xff] %v10427_v32  ;;  %12846 = vst [vmem:[#allocation39_spill] sm:$0xff] %v10429_v60  ;;  %v2933_v38 = vmul.f32 %v10427_v32, %v10427_v32  ;;  %v2989_v42 = vrot.slane %v2988_v62, 4  ;;  %v12853_v12 = vld [vmem:[#allocation44_spill] sm:$0xff] }
 0x66c   :  { %v2881_v18 = vpop.permute.xlu0 %2880  ;;  %v2879_v41 = vpop.permute.xlu1 %2878  ;;  %v2932_v48 = vmul.f32 %v10429_v60, %v10429_v60  ;;  %v2670_v6 = vmul.f32 %v2598_v25, %v12853_v12  ;;  %v2823_v28 = vmul.f32 %v2599_v35, %v12854_v2  ;;  %v3025_v49 = vrot.slane %v3024_v56, 4 }
 0x66d   :  { %v3014_v21 = vsel %vm973_vm4, %v2977_v16, 0.0  ;;  %v3013_v58 = vsel %vm971_vm3, %v2976_v47, 0.0  ;;  %v10436_v54 = vadd.f32 %v2881_v18, %v2821_v53  ;;  %v10438_v30 = vadd.f32 %v2879_v41, %v2820_v59 }
 0x66e   :  { %v3015_v50 = vadd.f32 %v3014_v21, %v3013_v58  ;;  %v2671_v53 = vmul.f32 %v2599_v35, %v12852_v40  ;;  %v2999_v16 = vadd.f32 %v2998_v26, %v2997_v31  ;;  %v3008_v47 = vadd.f32 %v3007_v3, %v3006_v9  ;;  %v12858_v40 = vld [vmem:[#allocation42_spill] sm:$0xff]  ;;  %v12859_v35 = vld [vmem:[#allocation33_spill] sm:$0xff] }
 0x66f   :  { %12849 = vst [vmem:[#allocation41_spill] sm:$0xff] %v10436_v54  ;;  %12850 = vst [vmem:[#allocation30_spill] sm:$0xff] %v10438_v30  ;;  %v2949_v45 = vmul.f32 %v10436_v54, %v10436_v54  ;;  %v2948_v51 = vmul.f32 %v10438_v30, %v10438_v30  ;;  %v2822_v18 = vmul.f32 %v2598_v25, %v12855_v4 }
 0x670   :  { %v3016_v29 = vrot.slane %v3015_v50, 4  ;;  %v2773_v57 = vpop.permute.xlu0 %2772  ;;  %v2771_v59 = vpop.permute.xlu1 %2770  ;;  %v2673_v31 = vmul.f32 %v2601_v52, %v12859_v35 }
 0x671   :  { %v2965_v55 = vadd.f32 %v2949_v45, %v2933_v38  ;;  %v2964_v34 = vadd.f32 %v2948_v51, %v2932_v48  ;;  %v10455_v58 = vadd.f32 %v2773_v57, %v2671_v53  ;;  %v10457_v37 = vadd.f32 %v2771_v59, %v2670_v6 }
 0x672   :  { %v2600_v38 = vmul.f32 %v2577_v36, %v12858_v40  ;;  %v2990_v48 = vadd.f32 %v2989_v42, %v2988_v62  ;;  %v3017_v45 = vadd.f32 %v3016_v29, %v3015_v50  ;;  %v3000_v53 = vrot.slane %v2999_v16, 2  ;;  %v12864_v40 = vld [vmem:[#allocation46_spill] sm:$0xff] }
 0x673   :  { %v2981_v41 = vmul.f32 %v2965_v55, %v9617_v39  ;;  %v2980_v21 = vmul.f32 %v2964_v34, %v9619_v63  ;;  %12856 = vst [vmem:[#allocation31_spill] sm:$0xff] %v10455_v58  ;;  %12857 = vst [vmem:[#allocation26_spill] sm:$0xff] %v10457_v37  ;;  %v3009_v57 = vrot.slane %v3008_v47, 2  ;;  %v3026_v59 = vadd.f32 %v3025_v49, %v3024_v56 }
 0x674   :  { %v2885_v51 = vpop.permute.xlu0 %2884  ;;  %v2883_v12 = vpop.permute.xlu1 %2882  ;;  %v2935_v36 = vmul.f32 %v10455_v58, %v10455_v58  ;;  %v2934_v62 = vmul.f32 %v10457_v37, %v10457_v37  ;;  %v2991_v29 = vrot.slane %v2990_v48, 2  ;;  %v3018_v34 = vrot.slane %v3017_v45, 2 }
 0x675   :  { %v3032_v9 = vsel %vm973_vm4, %v2981_v41, 0.0  ;;  %v3031_v25 = vsel %vm971_vm3, %v2980_v21, 0.0  ;;  %v10463_v26 = vadd.f32 %v2885_v51, %v2823_v28  ;;  %v10465_v3 = vadd.f32 %v2883_v12, %v2822_v18  ;;  %v12862_v28 = vld [vmem:[#allocation28_spill] sm:$0xff]  ;;  %v12863_v41 = vld [vmem:[#allocation29_spill] sm:$0xff] }
 0x676   :  { %v3033_v55 = vadd.f32 %v3032_v9, %v3031_v25  ;;  %v2672_v4 = vmul.f32 %v2600_v38, %v12862_v28  ;;  %v2825_v21 = vmul.f32 %v2601_v52, %v12863_v41  ;;  %v2824_v51 = vmul.f32 %v2600_v38, %v12864_v40 }
 0x677   :  { %12860 = vst [vmem:[#allocation27_spill] sm:$0xff] %v10463_v26  ;;  %12861 = vst [vmem:[#allocation35_spill] sm:$0xff] %v10465_v3  ;;  %v2951_v50 = vmul.f32 %v10463_v26, %v10463_v26  ;;  %v2950_v42 = vmul.f32 %v10465_v3, %v10465_v3  ;;  %v3001_v12 = vadd.f32 %v3000_v53, %v2999_v16  ;;  %v3027_v9 = vrot.slane %v3026_v59, 2 }
 0x678   :  { %v3034_v6 = vrot.slane %v3033_v55, 4  ;;  %v2777_v2 = vpop.permute.xlu0 %2776  ;;  %v2775_v56 = vpop.permute.xlu1 %2774  ;;  %v3010_v35 = vadd.f32 %v3009_v57, %v3008_v47  ;;  %v2992_v28 = vadd.f32 %v2991_v29, %v2990_v48  ;;  %v3019_v30 = vadd.f32 %v3018_v34, %v3017_v45 }
 0x679   :  { %v2967_v49 = vadd.f32 %v2951_v50, %v2935_v36  ;;  %v2966_v18 = vadd.f32 %v2950_v42, %v2934_v62  ;;  %v10480_v37 = vadd.f32 %v2777_v2, %v2673_v31  ;;  %v10482_v58 = vadd.f32 %v2775_v56, %v2672_v4 }
 0x67a   :  { %v3035_v25 = vadd.f32 %v3034_v6, %v3033_v55  ;;  %v3002_v53 = vrot.slane %v3001_v12, 1  ;;  %v3011_v57 = vrot.slane %v3010_v35, 1  ;;  %v3028_v55 = vadd.f32 %v3027_v9, %v3026_v59 }
 0x67b   :  { %v2983_v26 = vmul.f32 %v2967_v49, %v9617_v39  ;;  %v2982_v3 = vmul.f32 %v2966_v18, %v9619_v63  ;;  %12865 = vst [vmem:[#allocation36_spill] sm:$0xff] %v10480_v37  ;;  %12866 = vst [vmem:[#allocation37_spill] sm:$0xff] %v10482_v58  ;;  %v2937_v42 = vmul.f32 %v10480_v37, %v10480_v37  ;;  %v2993_v4 = vrot.slane %v2992_v28, 1 }
 0x67c   :  { %v3036_v36 = vrot.slane %v3035_v25, 2  ;;  %v2889_v62 = vpop.permute.xlu0 %2888  ;;  %v2887_v50 = vpop.permute.xlu1 %2886  ;;  %v2936_v48 = vmul.f32 %v10482_v58, %v10482_v58  ;;  %v3003_v59 = vadd.f32 %v3002_v53, %v3001_v12  ;;  %v3012_v49 = vadd.f32 %v3011_v57, %v3010_v35 }
 0x67d   :  { %v3041_v52 = vsel %vm973_vm4, %v2983_v26, 0.0  ;;  %v3040_v16 = vsel %vm971_vm3, %v2982_v3, 0.0  ;;  %v10486_v47 = vadd.f32 %v2889_v62, %v2825_v21  ;;  %v10488_v38 = vadd.f32 %v2887_v50, %v2824_v51 }
 0x67e   :  { %v3042_v31 = vadd.f32 %v3041_v52, %v3040_v16  ;;  %v3020_v3 = vrot.slane %v3019_v30, 1  ;;  %v3037_v29 = vadd.f32 %v3036_v36, %v3035_v25  ;;  %v3029_v18 = vrot.slane %v3028_v55, 1  ;;  %v12869_v36 = vld [vmem:[#allocation38_spill] sm:$0xff] }
 0x67f   :  { %12867 = vst [vmem:[#allocation43_spill] sm:$0xff] %v10486_v47  ;;  %12868 = vst [vmem:[#allocation44_spill] sm:$0xff] %v10488_v38  ;;  %v2953_v45 = vmul.f32 %v10486_v47, %v10486_v47  ;;  %v2952_v26 = vmul.f32 %v10488_v38, %v10488_v38  ;;  %v2994_v25 = vadd.f32 %v2993_v4, %v2992_v28 }
 0x680   :  { %v3043_v34 = vrot.slane %v3042_v31, 4  ;;  %v3021_v40 = vadd.f32 %v3020_v3, %v3019_v30  ;;  %v3038_v51 = vrot.slane %v3037_v29, 1  ;;  %v3059_v52 = vadd.f32 %v3003_v59, %v12869_v36 }
 0x681   :  { %v2969_v6 = vadd.f32 %v2953_v45, %v2937_v42  ;;  %v2968_v2 = vadd.f32 %v2952_v26, %v2936_v48  ;;  %v3060_v12 = vadd.f32 %v3012_v49, %v12869_v36  ;;  %v3030_v35 = vadd.f32 %v3029_v18, %v3028_v55  ;;  %v12870_v18 = vld [vmem:[#allocation34_spill] sm:$0xff] }
 0x682   :  { %v3044_v56 = vadd.f32 %v3043_v34, %v3042_v31  ;;  %v3061_v53 = vadd.f32 %v3021_v40, %v12869_v36  ;;  %v3039_v57 = vadd.f32 %v3038_v51, %v3037_v29  ;;  %v3058_v30 = vadd.f32 %v2994_v25, %v12869_v36 }
 0x683   :  { %v2985_v41 = vmul.f32 %v2969_v6, %v9617_v39  ;;  %v2984_v21 = vmul.f32 %v2968_v2, %v9619_v63  ;;  %8884 = vtanh.f32 %v3059_v52  ;;  %v3062_v28 = vadd.f32 %v3030_v35, %v12869_v36 }
 0x684   :  { %v3045_v9 = vrot.slane %v3044_v56, 2  ;;  %8886 = vtanh.f32 %v3060_v12  ;;  %v3063_v3 = vadd.f32 %v3039_v57, %v12869_v36 }
 0x685   :  { %v3050_v62 = vsel %vm973_vm4, %v2985_v41, 0.0  ;;  %v3049_v50 = vsel %vm971_vm3, %v2984_v21, 0.0  ;;  %8888 = vtanh.f32 %v3061_v53  ;;  %v2399_v41 = vmul.f32 0.16666667, %v12870_v18  ;;  %v12876_v18 = vld [vmem:[#allocation3_spill] sm:$0xff] }
 0x686   :  { %v3046_v16 = vadd.f32 %v3045_v9, %v3044_v56  ;;  %v3051_v42 = vadd.f32 %v3050_v62, %v3049_v50  ;;  %8890 = vtanh.f32 %v3058_v30 }
 0x687   :  { %8892 = vtanh.f32 %v3062_v28  ;;  %v2400_v25 = vadd.f32 0.5, %v2399_v41  ;;  %v12877_v41 = vld [vmem:[#allocation5_spill] sm:$0xff] }
 0x688   :  { %v3047_v31 = vrot.slane %v3046_v16, 1  ;;  %v3052_v48 = vrot.slane %v3051_v42, 4  ;;  %8894 = vtanh.f32 %v3063_v3 }
 0x689   :  { %v2401_v53 = vmax.f32 %v2400_v25, 0.0  ;;  %v12884_v25 = vld [vmem:[#allocation13_spill] sm:$0xff] }
 0x68a   :  { %v3048_v45 = vadd.f32 %v3047_v31, %v3046_v16  ;;  %v3053_v26 = vadd.f32 %v3052_v48, %v3051_v42 }
 0x68b   :  { %v2402_v28 = vmin.f32 %v2401_v53, 1.0 }
 0x68c   :  { %v3054_v34 = vrot.slane %v3053_v26, 2  ;;  %v3064_v6 = vadd.f32 %v3048_v45, %v12869_v36 }
 0x68d   :  { %v8885_v4 = vpop.eup %8884 }
 0x68e   :  { %v3055_v55 = vadd.f32 %v3054_v34, %v3053_v26  ;;  %8896 = vtanh.f32 %v3064_v6  ;;  %v8887_v56 = vpop.eup %8886  ;;  %v3082_v21 = vrot.slane %v8885_v4, 7  ;;  %v8219_v4 = vld [vmem:[%s12541_s0 + $0x18] sm:$0xff] }
 0x68f   :  { %v8889_v49 = vpop.eup %8888  ;;  %v3084_v51 = vrot.slane %v8887_v56, 6  ;;  %v12874_v56 = vld [vmem:[#allocation4_spill] sm:$0xff] }
 0x690   :  { %v3056_v29 = vrot.slane %v3055_v55, 1  ;;  %v8891_v40 = vpop.eup %8890  ;;  %v3086_v62 = vrot.slane %v8889_v49, 5  ;;  %v12875_v49 = vmov 0.0|0.0  }
 0x691   :  { %v8893_v9 = vpop.eup %8892  ;;  %v3083_v16 = vsel %vm1078_vm5, %v3082_v21, %v8891_v40  ;;  %v12878_v21 = vld [vmem:[#allocation6_spill] sm:$0xff]  ;;  %v12879_v40 = vld [vmem:[#allocation7_spill] sm:$0xff] }
 0x692   :  { %v3057_v2 = vadd.f32 %v3056_v29, %v3055_v55  ;;  %v8895_v50 = vpop.eup %8894  ;;  %v3085_v42 = vsel %vm1081_vm6, %v3084_v51, %v3083_v16  ;;  %v3088_v57 = vrot.slane %v8893_v9, 4  ;;  %v10524_v29 = vld [vmem:[%s12540_s1 + $0x10] sm:$0x3f]  ;;  %v12881_v9 = vld [vmem:[#allocation10_spill] sm:$0xff] }
 0x693   :  { %v3087_v12 = vsel %vm1084_vm7, %v3086_v62, %v3085_v42  ;;  %v3090_v35 = vrot.slane %v8895_v50, 3  ;;  %12871 = vst [vmem:[#allocation45_spill] sm:$0xff] %v10524_v29  ;;  %v12880_v51 = vld [vmem:[#allocation8_spill] sm:$0xff]  ;;  %v12882_v62 = vld [vmem:[#allocation9_spill] sm:$0xff]  ;;  %v12883_v50 = vld [vmem:[#allocation11_spill] sm:$0xff] }
 0x694   :  { %v3065_v59 = vadd.f32 %v3057_v2, %v12869_v36  ;;  %v3089_v30 = vsel %vm1087_vm8, %v3088_v57, %v3087_v12  ;;  %v12872_v2 = vmov 0.0   ;;  %v12886_v16 = vld [vmem:[#allocation14_spill] sm:$0xff]  ;;  %v10566_v42 = vld [vmem:[%s12540_s1 + $0x8] sm:$0x3f] }
 0x695   :  { %v3091_v45 = vsel %vm1090_vm9, %v3090_v35, %v3089_v30  ;;  %12887 = vst [vmem:[#allocation42_spill] sm:$0xff] %v10566_v42 }
 0x696   :  { %8898 = vtanh.f32 %v3065_v59  ;;  %v10536_v59 = vld [vmem:[%s12540_s1] sm:$0x3f] }
 0x697   :  { %12873 = vst [vmem:[#allocation32_spill] sm:$0xff] %v10536_v59 }
 0x698   :  { %v8897_v52 = vpop.eup %8896 }
 0x699   :  { %v3092_v31 = vrot.slane %v8897_v52, 2  ;;  %v12885_v52 = vld [vmem:[#allocation12_spill] sm:$0xff] }
 0x69b   :  { %v3093_v3 = vsel %vm1093_vm10, %v3092_v31, %v3091_v45 }
 0x6a0   :  { %v8899_v48 = vpop.eup %8898 }
 0x6a1   :  { %v3094_v26 = vrot.slane %v8899_v48, 1  ;;  %v12888_v48 = vld [vmem:[#allocation19_spill] sm:$0xff] }
 0x6a3   :  { %v3095_v34 = vsel %vm1096_vm11, %v3094_v26, %v3093_v3 }
 0x6a4   :  { %v3097_v6 = vmul.f32 %v3095_v34, %v2402_v28  ;;  %v12889_v28 = vld [vmem:[#allocation16_spill] sm:$0xff] }
 0x6a6   :  { %3101 = vrot.lane.b32.xlu1 %v3097_v6, %s9005_s17  ;;  %v12890_v6 = vld [vmem:[#allocation18_spill] sm:$0xff] }
 0x718   :  { %v3102_v55 = vpop.permute.xlu1 %3101 }
 0x719   :  { %8220 = vmatmul.mubr.msk.f32.vlgmr.msra.gmra.mrb[6].mxu0 %vm69_vm12, %v3102_v55  ;;  %8467 = vmatmul.mubr.msk.f32.vlgmr.msra.gmra.mrb[16].mxu1 %vm69_vm12, %v3102_v55 }
 0x71a   :  { %8470 = vmatpush3.msk.msra.mxu1 %vm218_vm1, %v10524_v29  ;;  %8471 = vmatprep.mubr.msk.f32.mxu1 %vm9002_vm0, %v12872_v2 }
 0x71b   :  { %8223 = vmatpush1.msk.msra.mxu0 %vm218_vm1, %v10536_v59  ;;  %3313 = vmatprep.mubr.f32.mxu0 %v12872_v2 }
 0x71c   :  { %8702 = vmatprep.subr.bf16.mxu0 %v12874_v56  ;;  %8717 = vmatprep.subr.bf16.mxu1 %v12875_v49 }
 0x71d   :  { %8472 = vmatmul.mubr.msk.f32.vlgmr.msra.gmra.mrb[18].mxu1 %vm214_vm2, %v8219_v4 }
 0x71e   :  { %8719 = vmatpush3.bf16.msra.mxu1 %v12876_v18  ;;  %8490 = vmatprep.mubr.msk.f32.mxu1 %vm9002_vm0, %v12872_v2 }
 0x71f   :  { %8720 = vmatprep.subr.bf16.mxu1 %v12875_v49 }
 0x721   :  { %8224 = vmatmul.mubr.msk.f32.vlgmr.msra.gmra.mrb[6].mxu0 %vm214_vm2, %v8219_v4 }
 0x722   :  { %8704 = vmatpush1.bf16.msra.mxu0 %v12877_v41  ;;  %8722 = vmatpush3.bf16.msra.mxu1 %v12878_v21 }
 0x723   :  { %8706 = vmatprep.subr.bf16.mxu0 %v12879_v40  ;;  %8723 = vmatprep.subr.bf16.mxu1 %v12875_v49 }
 0x724   :  { %4168 = vmatprep.mubr.f32.mxu0 %v12872_v2 }
 0x726   :  { %8708 = vmatpush1.bf16.msra.mxu0 %v12880_v51  ;;  %8725 = vmatpush3.bf16.msra.mxu1 %v12881_v9 }
 0x727   :  { %8710 = vmatprep.subr.bf16.mxu0 %v12882_v62  ;;  %8726 = vmatprep.subr.bf16.mxu1 %v12875_v49 }
 0x72a   :  { %8712 = vmatpush1.bf16.msra.mxu0 %v12883_v50  ;;  %8728 = vmatpush3.bf16.msra.mxu1 %v12884_v25 }
 0x72b   :  { %8714 = vmatprep.subr.bf16.mxu0 %v12885_v52  ;;  %8493 = vmatprep.subr.mxu1 %v12872_v2 }
 0x72e   :  { %8716 = vmatpush1.bf16.msra.mxu0 %v12886_v16 }
 0x72f   :  { %8234 = vmatprep.subr.msk.mxu0 %vm218_vm1, %v10566_v42 }
 0x7ec   :  { %v3242_v12 = vpop.f32.mrb[16].mxu1 }
 0x7ed   :  { %v8468_v35 = vpop.f32.mrb[17].mxu1 }
 0x7f0   :  { %v3386_v53 = vpop.f32.mrb[18].mxu1 }
 0x7f1   :  { %v3387_v57 = vadd.f32 %v3386_v53, %v3242_v12  ;;  %v8473_v31 = vpop.f32.mrb[19].mxu1  ;;  %v12892_v12 = vld [vmem:[#allocation15_spill] sm:$0xff] }
 0x7f2   :  { %v12893_v31 = vld [vmem:[#allocation17_spill] sm:$0xff] }
 0x7f3   :  { %v3392_v30 = vadd.f32 %v3387_v57, %v12888_v48 }
 0x7f4   :  { %v3315_v45 = vpop.f32.mrb[6].mxu0 }
 0x7f5   :  { %v3402_v26 = vmul.f32 0.16666667, %v3392_v30  ;;  %v3390_v3 = vadd.f32 %v3315_v45, %v12889_v28  ;;  %v3317_v34 = vpop.f32.mrb[7].mxu0 }
 0x7f6   :  { %v10573_v55 = vadd.f32 %v3317_v34, %v12890_v6 }
 0x7f7   :  { %v3403_v4 = vadd.f32 0.5, %v3402_v26  ;;  %v3393_v16 = vmul.f32 0.16666667, %v3390_v3 }
 0x7f8   :  { %12891 = vst [vmem:[#allocation33_spill] sm:$0xff] %v10573_v55  ;;  %8900 = vtanh.f32 %v10573_v55 }
 0x7f9   :  { %v3404_v42 = vmax.f32 %v3403_v4, 0.0  ;;  %v3394_v52 = vadd.f32 0.5, %v3393_v16  ;;  %v12894_v16 = vld [vmem:[#allocation20_spill] sm:$0xff]  ;;  %v12896_v4 = vld [vmem:[#allocation22_spill] sm:$0xff] }
 0x7fb   :  { %v3405_v35 = vmin.f32 %v3404_v42, 1.0  ;;  %v3395_v25 = vmax.f32 %v3394_v52, 0.0  ;;  %v12895_v52 = vld [vmem:[#allocation21_spill] sm:$0xff] }
 0x7fd   :  { %v3421_v53 = vrot.slane %v3405_v35, %v12892_v12  ;;  %v10577_v57 = vmin.f32 %v3395_v25, 1.0  ;;  %v3432_v30 = vrot.slane %v3405_v35, %v12893_v31  ;;  %v3410_v26 = vrot.slane %v3405_v35, %v9220_v44 }
 0x7fe   :  { %v3443_v42 = vrot.slane %v3405_v35, %v12894_v16  ;;  %v3454_v3 = vrot.slane %v3405_v35, %v12895_v52  ;;  %v12898_v16 = vld [vmem:[#allocation25_spill] sm:$0xff] }
 0x7ff   :  { %3427 = vbcast.lane.b32.xlu1 %v3421_v53, 264  ;;  %3423 = vbcast.lane.b32.xlu0 %v3421_v53, 256  ;;  %v3465_v53 = vrot.slane %v3405_v35, %v12896_v4  ;;  %v3487_v12 = vrot.slane %v3405_v35, %v12898_v16  ;;  %v10611_v16 = vld [vmem:[%s12544_s9 + $0x30] sm:$0xff]  ;;  %v3496_v9 = vcombine.high %v10577_v57, %v10577_v57 }
 0x801   :  { %v3510_v18 = vrot.slane %v3496_v9, %v12772_v11 }
 0x802   :  { %v8901_v45 = vpop.eup %8900 }
 0x803   :  { %v3406_v34 = vmul.f32 %v8901_v45, %v10577_v57  ;;  %3438 = vbcast.lane.b32.xlu1 %v3432_v30, 264  ;;  %3434 = vbcast.lane.b32.xlu0 %v3432_v30, 256  ;;  %v12897_v45 = vld [vmem:[#allocation24_spill] sm:$0xff]  ;;  %v3512_v29 = vcombine.high %v3510_v18, %v3510_v18  ;;  %v10711_v58 = vrot.slane %v3510_v18, %v12772_v11 }
 0x804   :  { %v3476_v30 = vrot.slane %v3405_v35, %v12897_v45 }
 0x805   :  { %v3615_v25 = vrot.slane %v3406_v34, %v12772_v11  ;;  %v3608_v52 = vcombine.high %v3406_v34, %v3406_v34 }
 0x807   :  { %3416 = vbcast.lane.b32.xlu1 %v3410_v26, 264  ;;  %3412 = vbcast.lane.b32.xlu0 %v3410_v26, 256  ;;  %v3631_v31 = vrot.slane %v3615_v25, %v12772_v11  ;;  %v3623_v26 = vcombine.high %v3615_v25, %v3615_v25 }
 0x809   :  { %v3645_v35 = vrot.slane %v3623_v26, %v12772_v11  ;;  %v3653_v48 = vcombine.high %v3631_v31, %v3631_v31 }
 0x80b   :  { %3449 = vbcast.lane.b32.xlu1 %v3443_v42, 264  ;;  %3445 = vbcast.lane.b32.xlu0 %v3443_v42, 256  ;;  %v3676_v42 = vrot.slane %v3631_v31, %v9220_v44  ;;  %v3680_v26 = vrot.slane %v3645_v35, %v9220_v44 }
 0x80d   :  { %v3825_v4 = vmul.f32 %v10611_v16, %v3676_v42 }
 0x80f   :  { %3460 = vbcast.lane.b32.xlu1 %v3454_v3, 264  ;;  %3456 = vbcast.lane.b32.xlu0 %v3454_v3, 256  ;;  %v10593_v3 = vld [vmem:[%s12543_s8 + $0x38] sm:$0x3] }
 0x810   :  { %v3714_v45 = vmul.f32 %v10593_v3, %v3676_v42  ;;  %v3716_v6 = vmul.f32 %v10593_v3, %v3680_v26 }
 0x813   :  { %3471 = vbcast.lane.b32.xlu1 %v3465_v53, 264  ;;  %3467 = vbcast.lane.b32.xlu0 %v3465_v53, 256  ;;  %v10598_v53 = vld [vmem:[%s12543_s8 + $0x30] sm:$0xff] }
 0x814   :  { %v3713_v25 = vmul.f32 %v10598_v53, %v3676_v42  ;;  %v3715_v28 = vmul.f32 %v10598_v53, %v3680_v26 }
 0x817   :  { %3482 = vbcast.lane.b32.xlu1 %v3476_v30, 264  ;;  %3478 = vbcast.lane.b32.xlu0 %v3476_v30, 256  ;;  %v10606_v30 = vld [vmem:[%s12544_s9 + $0x38] sm:$0x3] }
 0x81b   :  { %3493 = vbcast.lane.b32.xlu1 %v3487_v12, 264  ;;  %3489 = vbcast.lane.b32.xlu0 %v3487_v12, 256  ;;  %v3826_v12 = vmul.f32 %v10606_v30, %v3676_v42  ;;  %v3828_v42 = vmul.f32 %v10606_v30, %v3680_v26 }
 0x81f   :  { %3747 = vrot.lane.b32.xlu1 %v3714_v45, %s9005_s17  ;;  %3745 = vrot.lane.b32.xlu0 %v3713_v25, %s9005_s17  ;;  %v3622_v45 = vrot.slane %v3608_v52, %v12772_v11  ;;  %v3827_v25 = vmul.f32 %v10611_v16, %v3680_v26 }
 0x823   :  { %3859 = vrot.lane.b32.xlu1 %v3826_v12, %s9005_s17  ;;  %3857 = vrot.lane.b32.xlu0 %v3825_v4, %s9005_s17  ;;  %v3684_v12 = vrot.slane %v3653_v48, %v9220_v44 }
 0x825   :  { %v3718_v34 = vmul.f32 %v10593_v3, %v3684_v12  ;;  %v3717_v31 = vmul.f32 %v10598_v53, %v3684_v12  ;;  %v3829_v52 = vmul.f32 %v10611_v16, %v3684_v12 }
 0x827   :  { %3751 = vrot.lane.b32.xlu1 %v3716_v6, %s9005_s17  ;;  %3749 = vrot.lane.b32.xlu0 %v3715_v28, %s9005_s17  ;;  %v3638_v6 = vrot.slane %v3622_v45, %v12772_v11  ;;  %v3830_v28 = vmul.f32 %v10606_v30, %v3684_v12 }
 0x829   :  { %v3692_v48 = vrot.slane %v3638_v6, %v9220_v44 }
 0x82b   :  { %3863 = vrot.lane.b32.xlu1 %v3828_v42, %s9005_s17  ;;  %3861 = vrot.lane.b32.xlu0 %v3827_v25, %s9005_s17  ;;  %v3722_v4 = vmul.f32 %v10593_v3, %v3692_v48  ;;  %v3721_v26 = vmul.f32 %v10598_v53, %v3692_v48  ;;  %v3655_v42 = vcombine.high %v3645_v35, %v3645_v35 }
 0x82c   :  { %v3834_v25 = vmul.f32 %v10606_v30, %v3692_v48 }
 0x82d   :  { %v3688_v12 = vrot.slane %v3655_v42, %v9220_v44 }
 0x82f   :  { %3755 = vrot.lane.b32.xlu1 %v3718_v34, %s9005_s17  ;;  %3753 = vrot.lane.b32.xlu0 %v3717_v31, %s9005_s17  ;;  %v3833_v34 = vmul.f32 %v10611_v16, %v3692_v48  ;;  %v3624_v31 = vcombine.high %v3622_v45, %v3622_v45  ;;  %v3831_v48 = vmul.f32 %v10611_v16, %v3688_v12 }
 0x831   :  { %v3652_v35 = vrot.slane %v3624_v31, %v12772_v11 }
 0x833   :  { %3867 = vrot.lane.b32.xlu1 %v3830_v28, %s9005_s17  ;;  %3865 = vrot.lane.b32.xlu0 %v3829_v52, %s9005_s17  ;;  %v3720_v28 = vmul.f32 %v10593_v3, %v3688_v12  ;;  %v3719_v52 = vmul.f32 %v10598_v53, %v3688_v12  ;;  %v3696_v45 = vrot.slane %v3652_v35, %v9220_v44 }
 0x835   :  { %v3723_v42 = vmul.f32 %v10598_v53, %v3696_v45  ;;  %v3835_v31 = vmul.f32 %v10611_v16, %v3696_v45 }
 0x837   :  { %3763 = vrot.lane.b32.xlu1 %v3722_v4, %s9005_s17  ;;  %3761 = vrot.lane.b32.xlu0 %v3721_v26, %s9005_s17  ;;  %v3832_v4 = vmul.f32 %v10606_v30, %v3688_v12  ;;  %v3724_v26 = vmul.f32 %v10593_v3, %v3696_v45 }
 0x83b   :  { %3875 = vrot.lane.b32.xlu1 %v3834_v25, %s9005_s17  ;;  %3873 = vrot.lane.b32.xlu0 %v3833_v34, %s9005_s17  ;;  %v3654_v25 = vcombine.high %v3638_v6, %v3638_v6  ;;  %v3836_v34 = vmul.f32 %v10606_v30, %v3696_v45 }
 0x83d   :  { %v3700_v12 = vrot.slane %v3654_v25, %v9220_v44 }
 0x83f   :  { %3759 = vrot.lane.b32.xlu1 %v3720_v28, %s9005_s17  ;;  %3757 = vrot.lane.b32.xlu0 %v3719_v52, %s9005_s17  ;;  %v3726_v28 = vmul.f32 %v10593_v3, %v3700_v12  ;;  %v3725_v52 = vmul.f32 %v10598_v53, %v3700_v12  ;;  %v3838_v6 = vmul.f32 %v10606_v30, %v3700_v12 }
 0x843   :  { %3871 = vrot.lane.b32.xlu1 %v3832_v4, %s9005_s17  ;;  %3869 = vrot.lane.b32.xlu0 %v3831_v48, %s9005_s17  ;;  %v3656_v4 = vcombine.high %v3652_v35, %v3652_v35  ;;  %v3837_v48 = vmul.f32 %v10611_v16, %v3700_v12 }
 0x845   :  { %v3704_v45 = vrot.slane %v3656_v4, %v9220_v44 }
 0x847   :  { %3767 = vrot.lane.b32.xlu1 %v3724_v26, %s9005_s17  ;;  %3765 = vrot.lane.b32.xlu0 %v3723_v42, %s9005_s17  ;;  %v3728_v26 = vmul.f32 %v10593_v3, %v3704_v45  ;;  %v3727_v42 = vmul.f32 %v10598_v53, %v3704_v45  ;;  %v3840_v35 = vmul.f32 %v10606_v30, %v3704_v45 }
 0x848   :  { %v3839_v25 = vmul.f32 %v10611_v16, %v3704_v45 }
 0x84b   :  { %3879 = vrot.lane.b32.xlu1 %v3836_v34, %s9005_s17  ;;  %3877 = vrot.lane.b32.xlu0 %v3835_v31, %s9005_s17 }
 0x84f   :  { %3771 = vrot.lane.b32.xlu1 %v3726_v28, %s9005_s17  ;;  %3769 = vrot.lane.b32.xlu0 %v3725_v52, %s9005_s17 }
 0x853   :  { %3883 = vrot.lane.b32.xlu1 %v3838_v6, %s9005_s17  ;;  %3881 = vrot.lane.b32.xlu0 %v3837_v48, %s9005_s17 }
 0x857   :  { %3775 = vrot.lane.b32.xlu1 %v3728_v26, %s9005_s17  ;;  %3773 = vrot.lane.b32.xlu0 %v3727_v42, %s9005_s17 }
 0x85b   :  { %3887 = vrot.lane.b32.xlu1 %v3840_v35, %s9005_s17  ;;  %3885 = vrot.lane.b32.xlu0 %v3839_v25, %s9005_s17  ;;  %v3503_v25 = vrot.slane %v10577_v57, %v12772_v11 }
 0x85d   :  { %v3511_v51 = vcombine.high %v3503_v25, %v3503_v25  ;;  %v3519_v41 = vrot.slane %v3503_v25, %v12772_v11  ;;  %v10714_v25 = vrot.slane %v3512_v29, %v12772_v11  ;;  %v3542_v29 = vcombine.high %v10711_v58, %v10711_v58 }
 0x85f   :  { %v3533_v49 = vrot.slane %v3511_v51, %v12772_v11  ;;  %v3541_v2 = vcombine.high %v3519_v41, %v3519_v41  ;;  %v3548_v51 = vrot.slane %v3519_v41, %v9220_v44 }
 0x861   :  { %v3552_v55 = vrot.slane %v3533_v49, %v9220_v44  ;;  %v3556_v47 = vrot.slane %v3541_v2, %v9220_v44  ;;  %v3543_v57 = vcombine.high %v3533_v49, %v3533_v49  ;;  %v3564_v2 = vrot.slane %v10711_v58, %v9220_v44 }
 0x862   :  { %v10722_v49 = vrot.slane %v10714_v25, %v9220_v44 }
 0x863   :  { %v3560_v32 = vrot.slane %v3543_v57, %v9220_v44 }
 0x871   :  { %v3428_v34 = vpop.permute.xlu1 %3427  ;;  %v3424_v31 = vpop.permute.xlu0 %3423 }
 0x872   :  { %v3588_v9 = vmul.f32 %v3552_v55, %v3428_v34  ;;  %v3587_v37 = vmul.f32 %v3552_v55, %v3424_v31 }
 0x874   :  { %v3660_v18 = vmul.f32 %v3588_v9, %v10320_v19  ;;  %v3812_v41 = vmul.f32 %v3588_v9, %v10308_v23  ;;  %v3811_v55 = vmul.f32 %v3587_v37, %v10310_v20 }
 0x875   :  { %v3439_v12 = vpop.permute.xlu1 %3438  ;;  %v3435_v28 = vpop.permute.xlu0 %3434 }
 0x879   :  { %v3417_v52 = vpop.permute.xlu1 %3416  ;;  %v3413_v3 = vpop.permute.xlu0 %3412 }
 0x87d   :  { %v3450_v4 = vpop.permute.xlu1 %3449  ;;  %v3446_v53 = vpop.permute.xlu0 %3445 }
 0x881   :  { %v3461_v6 = vpop.permute.xlu1 %3460  ;;  %v3457_v48 = vpop.permute.xlu0 %3456 }
 0x885   :  { %v10685_v26 = vpop.permute.xlu1 %3471  ;;  %v10687_v42 = vpop.permute.xlu0 %3467 }
 0x889   :  { %v10689_v30 = vpop.permute.xlu1 %3482  ;;  %v10691_v16 = vpop.permute.xlu0 %3478 }
 0x88a   :  { %12899 = vst [vmem:[#allocation28_spill] sm:$0xff] %v10689_v30  ;;  %12900 = vst [vmem:[#allocation29_spill] sm:$0xff] %v10691_v16  ;;  %v3586_v16 = vmul.f32 %v3548_v51, %v3417_v52  ;;  %v3585_v30 = vmul.f32 %v3548_v51, %v3413_v3  ;;  %v3594_v52 = vmul.f32 %v3564_v2, %v3461_v6 }
 0x88b   :  { %v3593_v3 = vmul.f32 %v3564_v2, %v3457_v48 }
 0x88c   :  { %v3658_v58 = vmul.f32 %v3586_v16, %v10337_v17  ;;  %v3657_v19 = vmul.f32 %v3585_v30, %v10340_v7  ;;  %v3810_v23 = vmul.f32 %v3586_v16, %v10316_v15  ;;  %v3809_v20 = vmul.f32 %v3585_v30, %v10318_v13 }
 0x88d   :  { %v10693_v45 = vpop.permute.xlu1 %3493  ;;  %v10695_v35 = vpop.permute.xlu0 %3489 }
 0x88e   :  { %12901 = vst [vmem:[#allocation46_spill] sm:$0xff] %v10693_v45  ;;  %12902 = vst [vmem:[#allocation34_spill] sm:$0xff] %v10695_v35  ;;  %v3590_v35 = vmul.f32 %v3556_v47, %v3439_v12  ;;  %v3589_v45 = vmul.f32 %v3556_v47, %v3435_v28  ;;  %v3659_v47 = vmul.f32 %v3587_v37, %v10322_v8 }
 0x890   :  { %v3662_v34 = vmul.f32 %v3590_v35, %v10324_v24  ;;  %v3661_v31 = vmul.f32 %v3589_v45, %v10326_v14  ;;  %v3814_v12 = vmul.f32 %v3590_v35, %v10312_v46  ;;  %v3813_v28 = vmul.f32 %v3589_v45, %v10314_v22 }
 0x891   :  { %v10699_v50 = vpop.permute.xlu1 %3747  ;;  %v10701_v62 = vpop.permute.xlu0 %3745  ;;  %v3592_v14 = vmul.f32 %v3560_v32, %v3450_v4  ;;  %v3591_v46 = vmul.f32 %v3560_v32, %v3446_v53  ;;  %v3665_v32 = vmul.f32 %v3593_v3, %v10360_v1 }
 0x895   :  { %v3860_v40 = vpop.permute.xlu1 %3859  ;;  %v3858_v21 = vpop.permute.xlu0 %3857 }
 0x896   :  { %v10746_v6 = vadd.f32 %v3860_v40, %v3810_v23  ;;  %v10748_v17 = vadd.f32 %v3858_v21, %v3809_v20 }
 0x898   :  { %v3938_v53 = vmul.f32 %v10746_v6, %v10746_v6 }
 0x899   :  { %v3752_v56 = vpop.permute.xlu1 %3751  ;;  %v3750_v59 = vpop.permute.xlu0 %3749 }
 0x89a   :  { %v10750_v7 = vadd.f32 %v3752_v56, %v3660_v18  ;;  %v10752_v48 = vadd.f32 %v3750_v59, %v3659_v47  ;;  %v3818_v56 = vmul.f32 %v3594_v52, %v10362_v10  ;;  %v3817_v59 = vmul.f32 %v3593_v3, %v10364_v43 }
 0x89b   :  { %v3937_v10 = vmul.f32 %v10748_v17, %v10748_v17 }
 0x89c   :  { %v3924_v43 = vmul.f32 %v10750_v7, %v10750_v7 }
 0x89d   :  { %v3864_v36 = vpop.permute.xlu1 %3863  ;;  %v3862_v38 = vpop.permute.xlu0 %3861 }
 0x89e   :  { %v10738_v37 = vadd.f32 %v3864_v36, %v3812_v41  ;;  %v10740_v24 = vadd.f32 %v3862_v38, %v3811_v55  ;;  %v3666_v38 = vmul.f32 %v3594_v52, %v10358_v5  ;;  %v3544_v52 = vcombine.high %v10714_v25, %v10714_v25 }
 0x8a0   :  { %v3940_v40 = vmul.f32 %v10738_v37, %v10738_v37  ;;  %v3939_v21 = vmul.f32 %v10740_v24, %v10740_v24 }
 0x8a1   :  { %v3756_v54 = vpop.permute.xlu1 %3755  ;;  %v3754_v60 = vpop.permute.xlu0 %3753 }
 0x8a2   :  { %v10754_v15 = vadd.f32 %v3756_v54, %v3662_v34  ;;  %v10756_v13 = vadd.f32 %v3754_v60, %v3661_v31  ;;  %v10767_v54 = vadd.f32 %v10699_v50, %v3658_v58  ;;  %v10770_v60 = vadd.f32 %v10701_v62, %v3657_v19 }
 0x8a3   :  { %v3923_v50 = vmul.f32 %v10752_v48, %v10752_v48  ;;  %v3956_v2 = vadd.f32 %v3940_v40, %v3924_v43 }
 0x8a4   :  { %v3926_v62 = vmul.f32 %v10754_v15, %v10754_v15  ;;  %v3925_v30 = vmul.f32 %v10756_v13, %v10756_v13  ;;  %v3922_v55 = vmul.f32 %v10767_v54, %v10767_v54  ;;  %v3921_v34 = vmul.f32 %v10770_v60, %v10770_v60 }
 0x8a5   :  { %v3868_v57 = vpop.permute.xlu1 %3867  ;;  %v3866_v8 = vpop.permute.xlu0 %3865  ;;  %v3955_v18 = vadd.f32 %v3939_v21, %v3923_v50 }
 0x8a6   :  { %v10742_v35 = vadd.f32 %v3868_v57, %v3814_v12  ;;  %v10744_v22 = vadd.f32 %v3866_v8, %v3813_v28  ;;  %v3572_v28 = vrot.slane %v3542_v29, %v9220_v44  ;;  %v3954_v19 = vadd.f32 %v3938_v53, %v3922_v55  ;;  %v12903_v55 = vld [vmem:[#allocation40_spill] sm:$0xff] }
 0x8a7   :  { %v3953_v57 = vadd.f32 %v3937_v10, %v3921_v34  ;;  %v3972_v29 = vmul.f32 %v3956_v2, %v9617_v39  ;;  %v3971_v25 = vmul.f32 %v3955_v18, %v9619_v63  ;;  %v3815_v53 = vmul.f32 %v3591_v46, %v10403_v27 }
 0x8a8   :  { %v3942_v5 = vmul.f32 %v10742_v35, %v10742_v35  ;;  %v3941_v1 = vmul.f32 %v10744_v22, %v10744_v22  ;;  %v3596_v10 = vmul.f32 %v10722_v49, %v10685_v26 }
 0x8a9   :  { %v3764_v36 = vpop.permute.xlu1 %3763  ;;  %v3762_v4 = vpop.permute.xlu0 %3761  ;;  %v3969_v43 = vmul.f32 %v3953_v57, %v9619_v63 }
 0x8aa   :  { %v10788_v16 = vadd.f32 %v3764_v36, %v3666_v38  ;;  %v10790_v45 = vadd.f32 %v3762_v4, %v3665_v32  ;;  %v3958_v31 = vadd.f32 %v3942_v5, %v3926_v62  ;;  %v3957_v12 = vadd.f32 %v3941_v1, %v3925_v30 }
 0x8ab   :  { %v3664_v36 = vmul.f32 %v3592_v14, %v10387_v61  ;;  %v3663_v32 = vmul.f32 %v3591_v46, %v10389_v0  ;;  %v3816_v1 = vmul.f32 %v3592_v14, %v10401_v33  ;;  %v3595_v61 = vmul.f32 %v10722_v49, %v10687_v42 }
 0x8ac   :  { %v3930_v8 = vmul.f32 %v10788_v16, %v10788_v16  ;;  %v3929_v23 = vmul.f32 %v10790_v45, %v10790_v45  ;;  %v3974_v4 = vmul.f32 %v3958_v31, %v9617_v39  ;;  %v3973_v40 = vmul.f32 %v3957_v12, %v9619_v63  ;;  %v12904_v12 = vld [vmem:[#allocation39_spill] sm:$0xff] }
 0x8ad   :  { %v3876_v9 = vpop.permute.xlu1 %3875  ;;  %v3874_v51 = vpop.permute.xlu0 %3873  ;;  %v3970_v0 = vmul.f32 %v3954_v19, %v9617_v39  ;;  %v3995_v30 = vsel %vm973_vm4, %v3972_v29, 0.0  ;;  %v3668_v34 = vmul.f32 %v3596_v10, %v12903_v55  ;;  %v12905_v19 = vld [vmem:[#allocation41_spill] sm:$0xff] }
 0x8ae   :  { %v10792_v47 = vadd.f32 %v3876_v9, %v3818_v56  ;;  %v10794_v41 = vadd.f32 %v3874_v51, %v3817_v59  ;;  %v3994_v9 = vsel %vm971_vm3, %v3971_v25, 0.0  ;;  %v4004_v27 = vsel %vm973_vm4, %v3974_v4, 0.0 }
 0x8af   :  { %v4003_v26 = vsel %vm971_vm3, %v3973_v40, 0.0  ;;  %v3820_v57 = vmul.f32 %v3596_v10, %v12905_v19  ;;  %v12909_v10 = vld [vmem:[#allocation28_spill] sm:$0xff]  ;;  %v12914_v19 = vld [vmem:[#allocation31_spill] sm:$0xff] }
 0x8b0   :  { %v3946_v3 = vmul.f32 %v10792_v47, %v10792_v47  ;;  %v3945_v58 = vmul.f32 %v10794_v41, %v10794_v41 }
 0x8b1   :  { %v3760_v20 = vpop.permute.xlu1 %3759  ;;  %v3758_v38 = vpop.permute.xlu0 %3757 }
 0x8b2   :  { %v3962_v21 = vadd.f32 %v3946_v3, %v3930_v8  ;;  %v3961_v56 = vadd.f32 %v3945_v58, %v3929_v23  ;;  %v10817_v59 = vadd.f32 %v3760_v20, %v3664_v36  ;;  %v10819_v5 = vadd.f32 %v3758_v38, %v3663_v32  ;;  %v12906_v8 = vld [vmem:[#allocation30_spill] sm:$0xff] }
 0x8b3   :  { %v3667_v3 = vmul.f32 %v3595_v61, %v12904_v12  ;;  %v3819_v23 = vmul.f32 %v3595_v61, %v12906_v8  ;;  %v3986_v20 = vsel %vm973_vm4, %v3970_v0, 0.0  ;;  %v3985_v38 = vsel %vm971_vm3, %v3969_v43, 0.0  ;;  %v12910_v0 = vld [vmem:[#allocation29_spill] sm:$0xff] }
 0x8b4   :  { %v3978_v42 = vmul.f32 %v3962_v21, %v9617_v39  ;;  %v3977_v49 = vmul.f32 %v3961_v56, %v9619_v63  ;;  %v3928_v14 = vmul.f32 %v10817_v59, %v10817_v59  ;;  %v3927_v46 = vmul.f32 %v10819_v5, %v10819_v5 }
 0x8b5   :  { %v3872_v50 = vpop.permute.xlu1 %3871  ;;  %v3870_v62 = vpop.permute.xlu0 %3869  ;;  %v3996_v36 = vadd.f32 %v3995_v30, %v3994_v9  ;;  %v4005_v32 = vadd.f32 %v4004_v27, %v4003_v26  ;;  %v3598_v61 = vmul.f32 %v3572_v28, %v12909_v10  ;;  %v3597_v43 = vmul.f32 %v3572_v28, %v12910_v0  ;;  %v12917_v0 = vld [vmem:[#allocation35_spill] sm:$0xff] }
 0x8b6   :  { %v10831_v51 = vadd.f32 %v3872_v50, %v3816_v1  ;;  %v10833_v33 = vadd.f32 %v3870_v62, %v3815_v53  ;;  %v4022_v4 = vsel %vm973_vm4, %v3978_v42, 0.0  ;;  %v4021_v40 = vsel %vm971_vm3, %v3977_v49, 0.0 }
 0x8b7   :  { %v3576_v50 = vrot.slane %v3544_v52, %v9220_v44  ;;  %v3987_v62 = vadd.f32 %v3986_v20, %v3985_v38 }
 0x8b8   :  { %v3944_v2 = vmul.f32 %v10831_v51, %v10831_v51  ;;  %v3943_v18 = vmul.f32 %v10833_v33, %v10833_v33 }
 0x8b9   :  { %v3768_v31 = vpop.permute.xlu1 %3767  ;;  %v3766_v58 = vpop.permute.xlu0 %3765 }
 0x8ba   :  { %v3960_v29 = vadd.f32 %v3944_v2, %v3928_v14  ;;  %v3959_v25 = vadd.f32 %v3943_v18, %v3927_v46  ;;  %v10857_v1 = vadd.f32 %v3768_v31, %v3668_v34  ;;  %v10859_v53 = vadd.f32 %v3766_v58, %v3667_v3  ;;  %v12913_v31 = vld [vmem:[#allocation46_spill] sm:$0xff] }
 0x8bb   :  { %v3997_v14 = vrot.slane %v3996_v36, 4  ;;  %v4006_v46 = vrot.slane %v4005_v32, 4  ;;  %v4023_v2 = vadd.f32 %v4022_v4, %v4021_v40  ;;  %v3600_v12 = vmul.f32 %v3576_v50, %v12913_v31  ;;  %v12916_v4 = vld [vmem:[#allocation27_spill] sm:$0xff] }
 0x8bc   :  { %v3976_v21 = vmul.f32 %v3960_v29, %v9617_v39  ;;  %v3975_v56 = vmul.f32 %v3959_v25, %v9619_v63  ;;  %12907 = vst [vmem:[#allocation40_spill] sm:$0xff] %v10857_v1  ;;  %12908 = vst [vmem:[#allocation39_spill] sm:$0xff] %v10859_v53  ;;  %v3932_v28 = vmul.f32 %v10857_v1, %v10857_v1  ;;  %v3988_v3 = vrot.slane %v3987_v62, 4  ;;  %v12915_v29 = vld [vmem:[#allocation26_spill] sm:$0xff] }
 0x8bd   :  { %v3880_v30 = vpop.permute.xlu1 %3879  ;;  %v3878_v9 = vpop.permute.xlu0 %3877  ;;  %v3931_v52 = vmul.f32 %v10859_v53, %v10859_v53  ;;  %v3669_v25 = vmul.f32 %v3597_v43, %v12915_v29  ;;  %v3822_v40 = vmul.f32 %v3598_v61, %v12916_v4  ;;  %v4024_v10 = vrot.slane %v4023_v2, 4 }
 0x8be   :  { %v4013_v27 = vsel %vm973_vm4, %v3976_v21, 0.0  ;;  %v4012_v26 = vsel %vm971_vm3, %v3975_v56, 0.0  ;;  %v10866_v42 = vadd.f32 %v3880_v30, %v3820_v57  ;;  %v10868_v49 = vadd.f32 %v3878_v9, %v3819_v23 }
 0x8bf   :  { %v4014_v18 = vadd.f32 %v4013_v27, %v4012_v26  ;;  %v3670_v57 = vmul.f32 %v3598_v61, %v12914_v19  ;;  %v3998_v21 = vadd.f32 %v3997_v14, %v3996_v36  ;;  %v4007_v56 = vadd.f32 %v4006_v46, %v4005_v32  ;;  %v12920_v19 = vld [vmem:[#allocation34_spill] sm:$0xff]  ;;  %v12921_v61 = vld [vmem:[#allocation36_spill] sm:$0xff] }
 0x8c0   :  { %12911 = vst [vmem:[#allocation41_spill] sm:$0xff] %v10866_v42  ;;  %12912 = vst [vmem:[#allocation30_spill] sm:$0xff] %v10868_v49  ;;  %v3948_v55 = vmul.f32 %v10866_v42, %v10866_v42  ;;  %v3947_v34 = vmul.f32 %v10868_v49, %v10868_v49  ;;  %v3821_v30 = vmul.f32 %v3597_v43, %v12917_v0 }
 0x8c1   :  { %v4015_v58 = vrot.slane %v4014_v18, 4  ;;  %v3772_v8 = vpop.permute.xlu1 %3771  ;;  %v3770_v23 = vpop.permute.xlu0 %3769  ;;  %v3672_v36 = vmul.f32 %v3600_v12, %v12921_v61 }
 0x8c2   :  { %v3964_v20 = vadd.f32 %v3948_v55, %v3932_v28  ;;  %v3963_v38 = vadd.f32 %v3947_v34, %v3931_v52  ;;  %v10885_v26 = vadd.f32 %v3772_v8, %v3670_v57  ;;  %v10887_v31 = vadd.f32 %v3770_v23, %v3669_v25 }
 0x8c3   :  { %v3599_v28 = vmul.f32 %v3576_v50, %v12920_v19  ;;  %v3989_v52 = vadd.f32 %v3988_v3, %v3987_v62  ;;  %v4016_v55 = vadd.f32 %v4015_v58, %v4014_v18  ;;  %v3999_v57 = vrot.slane %v3998_v21, 2  ;;  %v12926_v19 = vld [vmem:[#allocation44_spill] sm:$0xff] }
 0x8c4   :  { %v3980_v9 = vmul.f32 %v3964_v20, %v9617_v39  ;;  %v3979_v27 = vmul.f32 %v3963_v38, %v9619_v63  ;;  %12918 = vst [vmem:[#allocation28_spill] sm:$0xff] %v10885_v26  ;;  %12919 = vst [vmem:[#allocation29_spill] sm:$0xff] %v10887_v31  ;;  %v4008_v8 = vrot.slane %v4007_v56, 2  ;;  %v4025_v23 = vadd.f32 %v4024_v10, %v4023_v2 }
 0x8c5   :  { %v3884_v34 = vpop.permute.xlu1 %3883  ;;  %v3882_v29 = vpop.permute.xlu0 %3881  ;;  %v3934_v50 = vmul.f32 %v10885_v26, %v10885_v26  ;;  %v3933_v62 = vmul.f32 %v10887_v31, %v10887_v31  ;;  %v3990_v58 = vrot.slane %v3989_v52, 2  ;;  %v4017_v38 = vrot.slane %v4016_v55, 2 }
 0x8c6   :  { %v4031_v32 = vsel %vm973_vm4, %v3980_v9, 0.0  ;;  %v4030_v43 = vsel %vm971_vm3, %v3979_v27, 0.0  ;;  %v10893_v14 = vadd.f32 %v3884_v34, %v3822_v40  ;;  %v10895_v46 = vadd.f32 %v3882_v29, %v3821_v30  ;;  %v12924_v40 = vld [vmem:[#allocation37_spill] sm:$0xff]  ;;  %v12925_v9 = vld [vmem:[#allocation43_spill] sm:$0xff] }
 0x8c7   :  { %v4032_v20 = vadd.f32 %v4031_v32, %v4030_v43  ;;  %v3671_v0 = vmul.f32 %v3599_v28, %v12924_v40  ;;  %v3824_v27 = vmul.f32 %v3600_v12, %v12925_v9  ;;  %v3823_v34 = vmul.f32 %v3599_v28, %v12926_v19 }
 0x8c8   :  { %12922 = vst [vmem:[#allocation46_spill] sm:$0xff] %v10893_v14  ;;  %12923 = vst [vmem:[#allocation31_spill] sm:$0xff] %v10895_v46  ;;  %v3950_v18 = vmul.f32 %v10893_v14, %v10893_v14  ;;  %v3949_v3 = vmul.f32 %v10895_v46, %v10895_v46  ;;  %v4000_v29 = vadd.f32 %v3999_v57, %v3998_v21  ;;  %v4026_v32 = vrot.slane %v4025_v23, 2 }
 0x8c9   :  { %v4033_v25 = vrot.slane %v4032_v20, 4  ;;  %v3776_v4 = vpop.permute.xlu1 %3775  ;;  %v3774_v2 = vpop.permute.xlu0 %3773  ;;  %v4009_v61 = vadd.f32 %v4008_v8, %v4007_v56  ;;  %v3991_v40 = vadd.f32 %v3990_v58, %v3989_v52  ;;  %v4018_v49 = vadd.f32 %v4017_v38, %v4016_v55 }
 0x8ca   :  { %v3966_v10 = vadd.f32 %v3950_v18, %v3934_v50  ;;  %v3965_v30 = vadd.f32 %v3949_v3, %v3933_v62  ;;  %v10910_v31 = vadd.f32 %v3776_v4, %v3672_v36  ;;  %v10912_v26 = vadd.f32 %v3774_v2, %v3671_v0 }
 0x8cb   :  { %v4034_v43 = vadd.f32 %v4033_v25, %v4032_v20  ;;  %v4001_v57 = vrot.slane %v4000_v29, 1  ;;  %v4010_v8 = vrot.slane %v4009_v61, 1  ;;  %v4027_v20 = vadd.f32 %v4026_v32, %v4025_v23 }
 0x8cc   :  { %v3982_v14 = vmul.f32 %v3966_v10, %v9617_v39  ;;  %v3981_v46 = vmul.f32 %v3965_v30, %v9619_v63  ;;  %12927 = vst [vmem:[#allocation26_spill] sm:$0xff] %v10910_v31  ;;  %12928 = vst [vmem:[#allocation27_spill] sm:$0xff] %v10912_v26  ;;  %v3936_v3 = vmul.f32 %v10910_v31, %v10910_v31  ;;  %v3992_v0 = vrot.slane %v3991_v40, 1 }
 0x8cd   :  { %v4035_v50 = vrot.slane %v4034_v43, 2  ;;  %v3888_v62 = vpop.permute.xlu1 %3887  ;;  %v3886_v18 = vpop.permute.xlu0 %3885  ;;  %v3935_v52 = vmul.f32 %v10912_v26, %v10912_v26  ;;  %v4002_v23 = vadd.f32 %v4001_v57, %v4000_v29  ;;  %v4011_v10 = vadd.f32 %v4010_v8, %v4009_v61 }
 0x8ce   :  { %v4040_v12 = vsel %vm973_vm4, %v3982_v14, 0.0  ;;  %v4039_v21 = vsel %vm971_vm3, %v3981_v46, 0.0  ;;  %v10916_v56 = vadd.f32 %v3888_v62, %v3824_v27  ;;  %v10918_v28 = vadd.f32 %v3886_v18, %v3823_v34 }
 0x8cf   :  { %v4041_v36 = vadd.f32 %v4040_v12, %v4039_v21  ;;  %v4019_v46 = vrot.slane %v4018_v49, 1  ;;  %v4036_v58 = vadd.f32 %v4035_v50, %v4034_v43  ;;  %v4028_v30 = vrot.slane %v4027_v20, 1  ;;  %v12931_v50 = vld [vmem:[#allocation38_spill] sm:$0xff] }
 0x8d0   :  { %12929 = vst [vmem:[#allocation35_spill] sm:$0xff] %v10916_v56  ;;  %12930 = vst [vmem:[#allocation34_spill] sm:$0xff] %v10918_v28  ;;  %v3952_v55 = vmul.f32 %v10916_v56, %v10916_v56  ;;  %v3951_v14 = vmul.f32 %v10918_v28, %v10918_v28  ;;  %v3993_v43 = vadd.f32 %v3992_v0, %v3991_v40 }
 0x8d1   :  { %v4042_v38 = vrot.slane %v4041_v36, 4  ;;  %v4020_v19 = vadd.f32 %v4019_v46, %v4018_v49  ;;  %v4037_v34 = vrot.slane %v4036_v58, 1  ;;  %v4058_v12 = vadd.f32 %v4002_v23, %v12931_v50 }
 0x8d2   :  { %v3968_v25 = vadd.f32 %v3952_v55, %v3936_v3  ;;  %v3967_v4 = vadd.f32 %v3951_v14, %v3935_v52  ;;  %v4059_v29 = vadd.f32 %v4011_v10, %v12931_v50  ;;  %v4029_v61 = vadd.f32 %v4028_v30, %v4027_v20  ;;  %v12932_v30 = vld [vmem:[#allocation33_spill] sm:$0xff] }
 0x8d3   :  { %v4043_v2 = vadd.f32 %v4042_v38, %v4041_v36  ;;  %v4060_v57 = vadd.f32 %v4020_v19, %v12931_v50  ;;  %v4038_v8 = vadd.f32 %v4037_v34, %v4036_v58  ;;  %v4057_v49 = vadd.f32 %v3993_v43, %v12931_v50 }
 0x8d4   :  { %v3984_v9 = vmul.f32 %v3968_v25, %v9617_v39  ;;  %v3983_v27 = vmul.f32 %v3967_v4, %v9619_v63  ;;  %8902 = vtanh.f32 %v4058_v12  ;;  %v4061_v40 = vadd.f32 %v4029_v61, %v12931_v50 }
 0x8d5   :  { %v4044_v32 = vrot.slane %v4043_v2, 2  ;;  %8904 = vtanh.f32 %v4059_v29  ;;  %v4062_v46 = vadd.f32 %v4038_v8, %v12931_v50 }
 0x8d6   :  { %v4049_v62 = vsel %vm973_vm4, %v3984_v9, 0.0  ;;  %v4048_v18 = vsel %vm971_vm3, %v3983_v27, 0.0  ;;  %8906 = vtanh.f32 %v4060_v57  ;;  %v3398_v9 = vmul.f32 0.16666667, %v12932_v30  ;;  %v12938_v30 = vld [vmem:[#allocation3_spill] sm:$0xff] }
 0x8d7   :  { %v4045_v21 = vadd.f32 %v4044_v32, %v4043_v2  ;;  %v4050_v3 = vadd.f32 %v4049_v62, %v4048_v18  ;;  %8908 = vtanh.f32 %v4057_v49 }
 0x8d8   :  { %8910 = vtanh.f32 %v4061_v40  ;;  %v3399_v43 = vadd.f32 0.5, %v3398_v9  ;;  %v12939_v9 = vld [vmem:[#allocation5_spill] sm:$0xff] }
 0x8d9   :  { %v4046_v36 = vrot.slane %v4045_v21, 1  ;;  %v4051_v52 = vrot.slane %v4050_v3, 4  ;;  %8912 = vtanh.f32 %v4062_v46 }
 0x8da   :  { %v3400_v57 = vmax.f32 %v3399_v43, 0.0  ;;  %v12946_v43 = vld [vmem:[#allocation13_spill] sm:$0xff] }
 0x8db   :  { %v4047_v55 = vadd.f32 %v4046_v36, %v4045_v21  ;;  %v4052_v14 = vadd.f32 %v4051_v52, %v4050_v3 }
 0x8dc   :  { %v3401_v40 = vmin.f32 %v3400_v57, 1.0 }
 0x8dd   :  { %v4053_v38 = vrot.slane %v4052_v14, 2  ;;  %v4063_v25 = vadd.f32 %v4047_v55, %v12931_v50 }
 0x8de   :  { %v8903_v0 = vpop.eup %8902 }
 0x8df   :  { %v4054_v20 = vadd.f32 %v4053_v38, %v4052_v14  ;;  %8914 = vtanh.f32 %v4063_v25  ;;  %v8905_v2 = vpop.eup %8904  ;;  %v4081_v27 = vrot.slane %v8903_v0, 7  ;;  %v8231_v0 = vld [vmem:[%s12541_s0 + $0x20] sm:$0xff] }
 0x8e0   :  { %v8907_v10 = vpop.eup %8906  ;;  %v4083_v34 = vrot.slane %v8905_v2, 6  ;;  %v12936_v2 = vld [vmem:[#allocation4_spill] sm:$0xff] }
 0x8e1   :  { %v4055_v58 = vrot.slane %v4054_v20, 1  ;;  %v8909_v19 = vpop.eup %8908  ;;  %v4085_v62 = vrot.slane %v8907_v10, 5  ;;  %v12937_v10 = vmov 0.0|0.0  }
 0x8e2   :  { %v8911_v32 = vpop.eup %8910  ;;  %v4082_v21 = vsel %vm1078_vm5, %v4081_v27, %v8909_v19  ;;  %v12940_v27 = vld [vmem:[#allocation6_spill] sm:$0xff]  ;;  %v12941_v19 = vld [vmem:[#allocation7_spill] sm:$0xff] }
 0x8e3   :  { %v4056_v4 = vadd.f32 %v4055_v58, %v4054_v20  ;;  %v8913_v18 = vpop.eup %8912  ;;  %v4084_v3 = vsel %vm1081_vm6, %v4083_v34, %v4082_v21  ;;  %v4087_v8 = vrot.slane %v8911_v32, 4  ;;  %v12933_v58 = vld [vmem:[#allocation45_spill] sm:$0xff]  ;;  %v12942_v34 = vld [vmem:[#allocation8_spill] sm:$0xff]  ;;  %v12943_v32 = vld [vmem:[#allocation10_spill] sm:$0xff] }
 0x8e4   :  { %v4086_v29 = vsel %vm1084_vm7, %v4085_v62, %v4084_v3  ;;  %v4089_v61 = vrot.slane %v8913_v18, 3  ;;  %v12944_v62 = vld [vmem:[#allocation9_spill] sm:$0xff]  ;;  %v12945_v18 = vld [vmem:[#allocation11_spill] sm:$0xff]  ;;  %v12948_v21 = vld [vmem:[#allocation14_spill] sm:$0xff] }
 0x8e5   :  { %v4064_v23 = vadd.f32 %v4056_v4, %v12931_v50  ;;  %v4088_v49 = vsel %vm1087_vm8, %v4087_v8, %v4086_v29  ;;  %v12934_v4 = vmov 0.0   ;;  %v12949_v3 = vld [vmem:[#allocation42_spill] sm:$0xff] }
 0x8e6   :  { %v4090_v55 = vsel %vm1090_vm9, %v4089_v61, %v4088_v49 }
 0x8e7   :  { %8916 = vtanh.f32 %v4064_v23  ;;  %v12935_v23 = vld [vmem:[#allocation32_spill] sm:$0xff] }
 0x8e9   :  { %v8915_v12 = vpop.eup %8914 }
 0x8ea   :  { %v4091_v36 = vrot.slane %v8915_v12, 2  ;;  %v12947_v12 = vld [vmem:[#allocation12_spill] sm:$0xff] }
 0x8ec   :  { %v4092_v46 = vsel %vm1093_vm10, %v4091_v36, %v4090_v55 }
 0x8f1   :  { %v8917_v52 = vpop.eup %8916 }
 0x8f2   :  { %v4093_v14 = vrot.slane %v8917_v52, 1  ;;  %v12950_v52 = vld [vmem:[#allocation19_spill] sm:$0xff] }
 0x8f4   :  { %v4094_v38 = vsel %vm1096_vm11, %v4093_v14, %v4092_v46 }
 0x8f5   :  { %v4096_v25 = vmul.f32 %v4094_v38, %v3401_v40  ;;  %v12951_v40 = vld [vmem:[#allocation16_spill] sm:$0xff] }
 0x8f7   :  { %4100 = vrot.lane.b32.xlu0 %v4096_v25, %s9005_s17  ;;  %v12952_v25 = vld [vmem:[#allocation18_spill] sm:$0xff] }
 0x969   :  { %v4101_v20 = vpop.permute.xlu0 %4100 }
 0x96a   :  { %8232 = vmatmul.mubr.msk.f32.vlgmr.msra.gmra.mrb[8].mxu0 %vm69_vm12, %v4101_v20  ;;  %8491 = vmatmul.mubr.msk.f32.vlgmr.msra.gmra.mrb[20].mxu1 %vm69_vm12, %v4101_v20 }
 0x96b   :  { %8494 = vmatpush3.msk.msra.mxu1 %vm218_vm1, %v12933_v58  ;;  %8495 = vmatprep.mubr.msk.f32.mxu1 %vm9002_vm0, %v12934_v4 }
 0x96c   :  { %8235 = vmatpush1.msk.msra.mxu0 %vm218_vm1, %v12935_v23  ;;  %4312 = vmatprep.mubr.f32.mxu0 %v12934_v4 }
 0x96d   :  { %8730 = vmatprep.subr.bf16.mxu0 %v12936_v2  ;;  %8745 = vmatprep.subr.bf16.mxu1 %v12937_v10 }
 0x96e   :  { %8496 = vmatmul.mubr.msk.f32.vlgmr.msra.gmra.mrb[22].mxu1 %vm214_vm2, %v8231_v0 }
 0x96f   :  { %8747 = vmatpush3.bf16.msra.mxu1 %v12938_v30  ;;  %8514 = vmatprep.mubr.msk.f32.mxu1 %vm9002_vm0, %v12934_v4 }
 0x970   :  { %8748 = vmatprep.subr.bf16.mxu1 %v12937_v10 }
 0x972   :  { %8236 = vmatmul.mubr.msk.f32.vlgmr.msra.gmra.mrb[8].mxu0 %vm214_vm2, %v8231_v0 }
 0x973   :  { %8732 = vmatpush1.bf16.msra.mxu0 %v12939_v9  ;;  %8750 = vmatpush3.bf16.msra.mxu1 %v12940_v27 }
 0x974   :  { %8734 = vmatprep.subr.bf16.mxu0 %v12941_v19  ;;  %8751 = vmatprep.subr.bf16.mxu1 %v12937_v10 }
 0x975   :  { %5167 = vmatprep.mubr.f32.mxu0 %v12934_v4 }
 0x977   :  { %8736 = vmatpush1.bf16.msra.mxu0 %v12942_v34  ;;  %8753 = vmatpush3.bf16.msra.mxu1 %v12943_v32 }
 0x978   :  { %8738 = vmatprep.subr.bf16.mxu0 %v12944_v62  ;;  %8754 = vmatprep.subr.bf16.mxu1 %v12937_v10 }
 0x97b   :  { %8740 = vmatpush1.bf16.msra.mxu0 %v12945_v18  ;;  %8756 = vmatpush3.bf16.msra.mxu1 %v12946_v43 }
 0x97c   :  { %8742 = vmatprep.subr.bf16.mxu0 %v12947_v12  ;;  %8517 = vmatprep.subr.mxu1 %v12934_v4 }
 0x97f   :  { %8744 = vmatpush1.bf16.msra.mxu0 %v12948_v21 }
 0x980   :  { %8246 = vmatprep.subr.msk.mxu0 %vm218_vm1, %v12949_v3 }
 0xa3d   :  { %v4241_v29 = vpop.f32.mrb[20].mxu1 }
 0xa3e   :  { %v8492_v61 = vpop.f32.mrb[21].mxu1 }
 0xa41   :  { %v4385_v57 = vpop.f32.mrb[22].mxu1 }
 0xa42   :  { %v4386_v8 = vadd.f32 %v4385_v57, %v4241_v29  ;;  %v8497_v36 = vpop.f32.mrb[23].mxu1  ;;  %v12954_v29 = vld [vmem:[#allocation15_spill] sm:$0xff] }
 0xa43   :  { %v12955_v36 = vld [vmem:[#allocation17_spill] sm:$0xff] }
 0xa44   :  { %v4391_v49 = vadd.f32 %v4386_v8, %v12950_v52 }
 0xa45   :  { %v4314_v55 = vpop.f32.mrb[8].mxu0 }
 0xa46   :  { %v4401_v14 = vmul.f32 0.16666667, %v4391_v49  ;;  %v4389_v46 = vadd.f32 %v4314_v55, %v12951_v40  ;;  %v4316_v38 = vpop.f32.mrb[9].mxu0 }
 0xa47   :  { %v10988_v20 = vadd.f32 %v4316_v38, %v12952_v25 }
 0xa48   :  { %v4402_v58 = vadd.f32 0.5, %v4401_v14  ;;  %v4392_v0 = vmul.f32 0.16666667, %v4389_v46  ;;  %v12956_v46 = vld [vmem:[#allocation20_spill] sm:$0xff] }
 0xa49   :  { %12953 = vst [vmem:[#allocation36_spill] sm:$0xff] %v10988_v20  ;;  %8918 = vtanh.f32 %v10988_v20 }
 0xa4a   :  { %v4403_v23 = vmax.f32 %v4402_v58, 0.0  ;;  %v4393_v3 = vadd.f32 0.5, %v4392_v0  ;;  %v12957_v0 = vld [vmem:[#allocation21_spill] sm:$0xff] }
 0xa4c   :  { %v4404_v61 = vmin.f32 %v4403_v23, 1.0  ;;  %v4394_v21 = vmax.f32 %v4393_v3, 0.0  ;;  %v12958_v3 = vld [vmem:[#allocation22_spill] sm:$0xff] }
 0xa4e   :  { %v4420_v57 = vrot.slane %v4404_v61, %v12954_v29  ;;  %v10992_v8 = vmin.f32 %v4394_v21, 1.0  ;;  %v4431_v49 = vrot.slane %v4404_v61, %v12955_v36  ;;  %v4409_v14 = vrot.slane %v4404_v61, %v9220_v44 }
 0xa4f   :  { %v4442_v58 = vrot.slane %v4404_v61, %v12956_v46  ;;  %v4453_v23 = vrot.slane %v4404_v61, %v12957_v0  ;;  %v12960_v46 = vld [vmem:[#allocation25_spill] sm:$0xff] }
 0xa50   :  { %4426 = vbcast.lane.b32.xlu0 %v4420_v57, 264  ;;  %4422 = vbcast.lane.b32.xlu1 %v4420_v57, 256  ;;  %v4464_v57 = vrot.slane %v4404_v61, %v12958_v3  ;;  %v4486_v29 = vrot.slane %v4404_v61, %v12960_v46  ;;  %v11026_v46 = vld [vmem:[%s12544_s9 + $0x40] sm:$0xff]  ;;  %v4495_v18 = vcombine.high %v10992_v8, %v10992_v8 }
 0xa52   :  { %v4509_v27 = vrot.slane %v4495_v18, %v12772_v11 }
 0xa53   :  { %v8919_v55 = vpop.eup %8918 }
 0xa54   :  { %v4405_v38 = vmul.f32 %v8919_v55, %v10992_v8  ;;  %4437 = vbcast.lane.b32.xlu0 %v4431_v49, 264  ;;  %4433 = vbcast.lane.b32.xlu1 %v4431_v49, 256  ;;  %v12959_v55 = vld [vmem:[#allocation24_spill] sm:$0xff]  ;;  %v4511_v4 = vcombine.high %v4509_v27, %v4509_v27  ;;  %v11126_v26 = vrot.slane %v4509_v27, %v12772_v11 }
 0xa55   :  { %v4475_v49 = vrot.slane %v4404_v61, %v12959_v55 }
 0xa56   :  { %v4614_v21 = vrot.slane %v4405_v38, %v12772_v11  ;;  %v4607_v0 = vcombine.high %v4405_v38, %v4405_v38 }
 0xa58   :  { %4415 = vbcast.lane.b32.xlu0 %v4409_v14, 264  ;;  %4411 = vbcast.lane.b32.xlu1 %v4409_v14, 256  ;;  %v4630_v36 = vrot.slane %v4614_v21, %v12772_v11  ;;  %v4622_v14 = vcombine.high %v4614_v21, %v4614_v21 }
 0xa5a   :  { %v4644_v61 = vrot.slane %v4622_v14, %v12772_v11  ;;  %v4652_v52 = vcombine.high %v4630_v36, %v4630_v36 }
 0xa5c   :  { %4448 = vbcast.lane.b32.xlu0 %v4442_v58, 264  ;;  %4444 = vbcast.lane.b32.xlu1 %v4442_v58, 256  ;;  %v4675_v58 = vrot.slane %v4630_v36, %v9220_v44  ;;  %v4679_v14 = vrot.slane %v4644_v61, %v9220_v44 }
 0xa5e   :  { %v4824_v3 = vmul.f32 %v11026_v46, %v4675_v58 }
 0xa60   :  { %4459 = vbcast.lane.b32.xlu0 %v4453_v23, 264  ;;  %4455 = vbcast.lane.b32.xlu1 %v4453_v23, 256  ;;  %v11008_v23 = vld [vmem:[%s12543_s8 + $0x48] sm:$0x3] }
 0xa61   :  { %v4713_v55 = vmul.f32 %v11008_v23, %v4675_v58  ;;  %v4715_v25 = vmul.f32 %v11008_v23, %v4679_v14 }
 0xa64   :  { %4470 = vbcast.lane.b32.xlu0 %v4464_v57, 264  ;;  %4466 = vbcast.lane.b32.xlu1 %v4464_v57, 256  ;;  %v11013_v57 = vld [vmem:[%s12543_s8 + $0x40] sm:$0xff] }
 0xa65   :  { %v4712_v21 = vmul.f32 %v11013_v57, %v4675_v58  ;;  %v4714_v40 = vmul.f32 %v11013_v57, %v4679_v14 }
 0xa68   :  { %4481 = vbcast.lane.b32.xlu0 %v4475_v49, 264  ;;  %4477 = vbcast.lane.b32.xlu1 %v4475_v49, 256  ;;  %v11021_v49 = vld [vmem:[%s12544_s9 + $0x48] sm:$0x3] }
 0xa6c   :  { %4492 = vbcast.lane.b32.xlu0 %v4486_v29, 264  ;;  %4488 = vbcast.lane.b32.xlu1 %v4486_v29, 256  ;;  %v4825_v29 = vmul.f32 %v11021_v49, %v4675_v58  ;;  %v4827_v58 = vmul.f32 %v11021_v49, %v4679_v14 }
 0xa70   :  { %4746 = vrot.lane.b32.xlu0 %v4713_v55, %s9005_s17  ;;  %4744 = vrot.lane.b32.xlu1 %v4712_v21, %s9005_s17  ;;  %v4621_v55 = vrot.slane %v4607_v0, %v12772_v11  ;;  %v4826_v21 = vmul.f32 %v11026_v46, %v4679_v14 }
 0xa74   :  { %4858 = vrot.lane.b32.xlu0 %v4825_v29, %s9005_s17  ;;  %4856 = vrot.lane.b32.xlu1 %v4824_v3, %s9005_s17  ;;  %v4683_v29 = vrot.slane %v4652_v52, %v9220_v44 }
 0xa76   :  { %v4717_v38 = vmul.f32 %v11008_v23, %v4683_v29  ;;  %v4716_v36 = vmul.f32 %v11013_v57, %v4683_v29  ;;  %v4828_v0 = vmul.f32 %v11026_v46, %v4683_v29 }
 0xa78   :  { %4750 = vrot.lane.b32.xlu0 %v4715_v25, %s9005_s17  ;;  %4748 = vrot.lane.b32.xlu1 %v4714_v40, %s9005_s17  ;;  %v4637_v25 = vrot.slane %v4621_v55, %v12772_v11  ;;  %v4829_v40 = vmul.f32 %v11021_v49, %v4683_v29 }
 0xa7a   :  { %v4691_v52 = vrot.slane %v4637_v25, %v9220_v44 }
 0xa7c   :  { %4862 = vrot.lane.b32.xlu0 %v4827_v58, %s9005_s17  ;;  %4860 = vrot.lane.b32.xlu1 %v4826_v21, %s9005_s17  ;;  %v4721_v3 = vmul.f32 %v11008_v23, %v4691_v52  ;;  %v4720_v14 = vmul.f32 %v11013_v57, %v4691_v52  ;;  %v4654_v58 = vcombine.high %v4644_v61, %v4644_v61 }
 0xa7d   :  { %v4833_v21 = vmul.f32 %v11021_v49, %v4691_v52 }
 0xa7e   :  { %v4687_v29 = vrot.slane %v4654_v58, %v9220_v44 }
 0xa80   :  { %4754 = vrot.lane.b32.xlu0 %v4717_v38, %s9005_s17  ;;  %4752 = vrot.lane.b32.xlu1 %v4716_v36, %s9005_s17  ;;  %v4832_v38 = vmul.f32 %v11026_v46, %v4691_v52  ;;  %v4623_v36 = vcombine.high %v4621_v55, %v4621_v55  ;;  %v4830_v52 = vmul.f32 %v11026_v46, %v4687_v29 }
 0xa82   :  { %v4651_v61 = vrot.slane %v4623_v36, %v12772_v11 }
 0xa84   :  { %4866 = vrot.lane.b32.xlu0 %v4829_v40, %s9005_s17  ;;  %4864 = vrot.lane.b32.xlu1 %v4828_v0, %s9005_s17  ;;  %v4719_v40 = vmul.f32 %v11008_v23, %v4687_v29  ;;  %v4718_v0 = vmul.f32 %v11013_v57, %v4687_v29  ;;  %v4695_v55 = vrot.slane %v4651_v61, %v9220_v44 }
 0xa86   :  { %v4722_v58 = vmul.f32 %v11013_v57, %v4695_v55  ;;  %v4834_v36 = vmul.f32 %v11026_v46, %v4695_v55 }
 0xa88   :  { %4762 = vrot.lane.b32.xlu0 %v4721_v3, %s9005_s17  ;;  %4760 = vrot.lane.b32.xlu1 %v4720_v14, %s9005_s17  ;;  %v4831_v3 = vmul.f32 %v11021_v49, %v4687_v29  ;;  %v4723_v14 = vmul.f32 %v11008_v23, %v4695_v55 }
 0xa8c   :  { %4874 = vrot.lane.b32.xlu0 %v4833_v21, %s9005_s17  ;;  %4872 = vrot.lane.b32.xlu1 %v4832_v38, %s9005_s17  ;;  %v4653_v21 = vcombine.high %v4637_v25, %v4637_v25  ;;  %v4835_v38 = vmul.f32 %v11021_v49, %v4695_v55 }
 0xa8e   :  { %v4699_v29 = vrot.slane %v4653_v21, %v9220_v44 }
 0xa90   :  { %4758 = vrot.lane.b32.xlu0 %v4719_v40, %s9005_s17  ;;  %4756 = vrot.lane.b32.xlu1 %v4718_v0, %s9005_s17  ;;  %v4725_v40 = vmul.f32 %v11008_v23, %v4699_v29  ;;  %v4724_v0 = vmul.f32 %v11013_v57, %v4699_v29  ;;  %v4837_v25 = vmul.f32 %v11021_v49, %v4699_v29 }
 0xa94   :  { %4870 = vrot.lane.b32.xlu0 %v4831_v3, %s9005_s17  ;;  %4868 = vrot.lane.b32.xlu1 %v4830_v52, %s9005_s17  ;;  %v4655_v3 = vcombine.high %v4651_v61, %v4651_v61  ;;  %v4836_v52 = vmul.f32 %v11026_v46, %v4699_v29 }
 0xa96   :  { %v4703_v55 = vrot.slane %v4655_v3, %v9220_v44 }
 0xa98   :  { %4766 = vrot.lane.b32.xlu0 %v4723_v14, %s9005_s17  ;;  %4764 = vrot.lane.b32.xlu1 %v4722_v58, %s9005_s17  ;;  %v4727_v14 = vmul.f32 %v11008_v23, %v4703_v55  ;;  %v4726_v58 = vmul.f32 %v11013_v57, %v4703_v55  ;;  %v4839_v61 = vmul.f32 %v11021_v49, %v4703_v55 }
 0xa99   :  { %v4838_v21 = vmul.f32 %v11026_v46, %v4703_v55 }
 0xa9c   :  { %4878 = vrot.lane.b32.xlu0 %v4835_v38, %s9005_s17  ;;  %4876 = vrot.lane.b32.xlu1 %v4834_v36, %s9005_s17 }
 0xaa0   :  { %4770 = vrot.lane.b32.xlu0 %v4725_v40, %s9005_s17  ;;  %4768 = vrot.lane.b32.xlu1 %v4724_v0, %s9005_s17 }
 0xaa4   :  { %4882 = vrot.lane.b32.xlu0 %v4837_v25, %s9005_s17  ;;  %4880 = vrot.lane.b32.xlu1 %v4836_v52, %s9005_s17 }
 0xaa8   :  { %4774 = vrot.lane.b32.xlu0 %v4727_v14, %s9005_s17  ;;  %4772 = vrot.lane.b32.xlu1 %v4726_v58, %s9005_s17 }
 0xaac   :  { %4886 = vrot.lane.b32.xlu0 %v4839_v61, %s9005_s17  ;;  %4884 = vrot.lane.b32.xlu1 %v4838_v21, %s9005_s17  ;;  %v4502_v21 = vrot.slane %v10992_v8, %v12772_v11 }
 0xaae   :  { %v4510_v62 = vcombine.high %v4502_v21, %v4502_v21  ;;  %v4518_v19 = vrot.slane %v4502_v21, %v12772_v11  ;;  %v11129_v21 = vrot.slane %v4511_v4, %v12772_v11  ;;  %v4541_v4 = vcombine.high %v11126_v26, %v11126_v26 }
 0xab0   :  { %v4532_v9 = vrot.slane %v4510_v62, %v12772_v11  ;;  %v4540_v2 = vcombine.high %v4518_v19, %v4518_v19  ;;  %v4547_v62 = vrot.slane %v4518_v19, %v9220_v44 }
 0xab2   :  { %v4551_v20 = vrot.slane %v4532_v9, %v9220_v44  ;;  %v4555_v56 = vrot.slane %v4540_v2, %v9220_v44  ;;  %v4542_v8 = vcombine.high %v4532_v9, %v4532_v9  ;;  %v4563_v2 = vrot.slane %v11126_v26, %v9220_v44 }
 0xab3   :  { %v11137_v9 = vrot.slane %v11129_v21, %v9220_v44 }
 0xab4   :  { %v4559_v1 = vrot.slane %v4542_v8, %v9220_v44 }
 0xac2   :  { %v4427_v38 = vpop.permute.xlu0 %4426  ;;  %v4423_v36 = vpop.permute.xlu1 %4422 }
 0xac3   :  { %v4587_v18 = vmul.f32 %v4551_v20, %v4427_v38  ;;  %v4586_v31 = vmul.f32 %v4551_v20, %v4423_v36 }
 0xac5   :  { %v4659_v27 = vmul.f32 %v4587_v18, %v10750_v7  ;;  %v4811_v19 = vmul.f32 %v4587_v18, %v10738_v37  ;;  %v4810_v20 = vmul.f32 %v4586_v31, %v10740_v24 }
 0xac6   :  { %v4438_v29 = vpop.permute.xlu0 %4437  ;;  %v4434_v40 = vpop.permute.xlu1 %4433 }
 0xaca   :  { %v4416_v0 = vpop.permute.xlu0 %4415  ;;  %v4412_v23 = vpop.permute.xlu1 %4411 }
 0xace   :  { %v4449_v3 = vpop.permute.xlu0 %4448  ;;  %v4445_v57 = vpop.permute.xlu1 %4444 }
 0xad2   :  { %v4460_v25 = vpop.permute.xlu0 %4459  ;;  %v4456_v52 = vpop.permute.xlu1 %4455 }
 0xad6   :  { %v11100_v14 = vpop.permute.xlu0 %4470  ;;  %v11102_v58 = vpop.permute.xlu1 %4466 }
 0xada   :  { %v11104_v49 = vpop.permute.xlu0 %4481  ;;  %v11106_v46 = vpop.permute.xlu1 %4477 }
 0xadb   :  { %12961 = vst [vmem:[#allocation37_spill] sm:$0xff] %v11104_v49  ;;  %12962 = vst [vmem:[#allocation43_spill] sm:$0xff] %v11106_v46  ;;  %v4585_v46 = vmul.f32 %v4547_v62, %v4416_v0  ;;  %v4584_v49 = vmul.f32 %v4547_v62, %v4412_v23  ;;  %v4593_v0 = vmul.f32 %v4563_v2, %v4460_v25 }
 0xadc   :  { %v4592_v23 = vmul.f32 %v4563_v2, %v4456_v52 }
 0xadd   :  { %v4657_v26 = vmul.f32 %v4585_v46, %v10767_v54  ;;  %v4656_v7 = vmul.f32 %v4584_v49, %v10770_v60  ;;  %v4809_v37 = vmul.f32 %v4585_v46, %v10746_v6  ;;  %v4808_v24 = vmul.f32 %v4584_v49, %v10748_v17 }
 0xade   :  { %v11108_v55 = vpop.permute.xlu0 %4492  ;;  %v11110_v61 = vpop.permute.xlu1 %4488 }
 0xadf   :  { %12963 = vst [vmem:[#allocation44_spill] sm:$0xff] %v11108_v55  ;;  %12964 = vst [vmem:[#allocation33_spill] sm:$0xff] %v11110_v61  ;;  %v4589_v61 = vmul.f32 %v4555_v56, %v4438_v29  ;;  %v4588_v55 = vmul.f32 %v4555_v56, %v4434_v40  ;;  %v4658_v56 = vmul.f32 %v4586_v31, %v10752_v48 }
 0xae1   :  { %v4661_v38 = vmul.f32 %v4589_v61, %v10754_v15  ;;  %v4660_v36 = vmul.f32 %v4588_v55, %v10756_v13  ;;  %v4813_v29 = vmul.f32 %v4589_v61, %v10742_v35  ;;  %v4812_v40 = vmul.f32 %v4588_v55, %v10744_v22 }
 0xae2   :  { %v11114_v12 = vpop.permute.xlu0 %4746  ;;  %v11116_v43 = vpop.permute.xlu1 %4744  ;;  %v4591_v13 = vmul.f32 %v4559_v1, %v4449_v3  ;;  %v4590_v35 = vmul.f32 %v4559_v1, %v4445_v57  ;;  %v4664_v1 = vmul.f32 %v4592_v23, %v10790_v45 }
 0xae6   :  { %v4859_v32 = vpop.permute.xlu0 %4858  ;;  %v4857_v34 = vpop.permute.xlu1 %4856 }
 0xae7   :  { %v11161_v25 = vadd.f32 %v4859_v32, %v4809_v37  ;;  %v11163_v54 = vadd.f32 %v4857_v34, %v4808_v24 }
 0xae9   :  { %v4937_v57 = vmul.f32 %v11161_v25, %v11161_v25 }
 0xaea   :  { %v4751_v30 = vpop.permute.xlu0 %4750  ;;  %v4749_v10 = vpop.permute.xlu1 %4748 }
 0xaeb   :  { %v11165_v60 = vadd.f32 %v4751_v30, %v4659_v27  ;;  %v11167_v52 = vadd.f32 %v4749_v10, %v4658_v56  ;;  %v4817_v30 = vmul.f32 %v4593_v0, %v10792_v47  ;;  %v4816_v10 = vmul.f32 %v4592_v23, %v10794_v41 }
 0xaec   :  { %v4936_v47 = vmul.f32 %v11163_v54, %v11163_v54 }
 0xaed   :  { %v4923_v41 = vmul.f32 %v11165_v60, %v11165_v60 }
 0xaee   :  { %v4863_v50 = vpop.permute.xlu0 %4862  ;;  %v4861_v28 = vpop.permute.xlu1 %4860 }
 0xaef   :  { %v11153_v31 = vadd.f32 %v4863_v50, %v4811_v19  ;;  %v11155_v15 = vadd.f32 %v4861_v28, %v4810_v20  ;;  %v4665_v28 = vmul.f32 %v4593_v0, %v10788_v16  ;;  %v4543_v0 = vcombine.high %v11129_v21, %v11129_v21 }
 0xaf1   :  { %v4939_v32 = vmul.f32 %v11153_v31, %v11153_v31  ;;  %v4938_v34 = vmul.f32 %v11155_v15, %v11155_v15 }
 0xaf2   :  { %v4755_v42 = vpop.permute.xlu0 %4754  ;;  %v4753_v53 = vpop.permute.xlu1 %4752 }
 0xaf3   :  { %v11169_v6 = vadd.f32 %v4755_v42, %v4661_v38  ;;  %v11171_v17 = vadd.f32 %v4753_v53, %v4660_v36  ;;  %v11182_v42 = vadd.f32 %v11114_v12, %v4657_v26  ;;  %v11185_v53 = vadd.f32 %v11116_v43, %v4656_v7 }
 0xaf4   :  { %v4922_v12 = vmul.f32 %v11167_v52, %v11167_v52  ;;  %v4955_v2 = vadd.f32 %v4939_v32, %v4923_v41 }
 0xaf5   :  { %v4925_v43 = vmul.f32 %v11169_v6, %v11169_v6  ;;  %v4924_v49 = vmul.f32 %v11171_v17, %v11171_v17  ;;  %v4921_v20 = vmul.f32 %v11182_v42, %v11182_v42  ;;  %v4920_v38 = vmul.f32 %v11185_v53, %v11185_v53 }
 0xaf6   :  { %v4867_v8 = vpop.permute.xlu0 %4866  ;;  %v4865_v48 = vpop.permute.xlu1 %4864  ;;  %v4954_v27 = vadd.f32 %v4938_v34, %v4922_v12 }
 0xaf7   :  { %v11157_v61 = vadd.f32 %v4867_v8, %v4813_v29  ;;  %v11159_v22 = vadd.f32 %v4865_v48, %v4812_v40  ;;  %v4571_v40 = vrot.slane %v4541_v4, %v9220_v44  ;;  %v4953_v7 = vadd.f32 %v4937_v57, %v4921_v20  ;;  %v12965_v20 = vld [vmem:[#allocation40_spill] sm:$0xff] }
 0xaf8   :  { %v4952_v8 = vadd.f32 %v4936_v47, %v4920_v38  ;;  %v4971_v4 = vmul.f32 %v4955_v2, %v9617_v39  ;;  %v4970_v21 = vmul.f32 %v4954_v27, %v9619_v63  ;;  %v4814_v57 = vmul.f32 %v4590_v35, %v10833_v33 }
 0xaf9   :  { %v4941_v16 = vmul.f32 %v11157_v61, %v11157_v61  ;;  %v4940_v45 = vmul.f32 %v11159_v22, %v11159_v22  ;;  %v4595_v47 = vmul.f32 %v11137_v9, %v11100_v14 }
 0xafa   :  { %v4763_v50 = vpop.permute.xlu0 %4762  ;;  %v4761_v3 = vpop.permute.xlu1 %4760  ;;  %v4968_v41 = vmul.f32 %v4952_v8, %v9619_v63 }
 0xafb   :  { %v11203_v46 = vadd.f32 %v4763_v50, %v4665_v28  ;;  %v11205_v55 = vadd.f32 %v4761_v3, %v4664_v1  ;;  %v4957_v36 = vadd.f32 %v4941_v16, %v4925_v43  ;;  %v4956_v29 = vadd.f32 %v4940_v45, %v4924_v49 }
 0xafc   :  { %v4663_v50 = vmul.f32 %v4591_v13, %v10817_v59  ;;  %v4662_v1 = vmul.f32 %v4590_v35, %v10819_v5  ;;  %v4815_v45 = vmul.f32 %v4591_v13, %v10831_v51  ;;  %v4594_v59 = vmul.f32 %v11137_v9, %v11102_v58 }
 0xafd   :  { %v4929_v48 = vmul.f32 %v11203_v46, %v11203_v46  ;;  %v4928_v37 = vmul.f32 %v11205_v55, %v11205_v55  ;;  %v4973_v3 = vmul.f32 %v4957_v36, %v9617_v39  ;;  %v4972_v32 = vmul.f32 %v4956_v29, %v9619_v63  ;;  %v12966_v29 = vld [vmem:[#allocation39_spill] sm:$0xff] }
 0xafe   :  { %v4875_v18 = vpop.permute.xlu0 %4874  ;;  %v4873_v62 = vpop.permute.xlu1 %4872  ;;  %v4969_v5 = vmul.f32 %v4953_v7, %v9617_v39  ;;  %v4994_v49 = vsel %vm973_vm4, %v4971_v4, 0.0  ;;  %v4667_v38 = vmul.f32 %v4595_v47, %v12965_v20  ;;  %v12967_v7 = vld [vmem:[#allocation41_spill] sm:$0xff] }
 0xaff   :  { %v11207_v56 = vadd.f32 %v4875_v18, %v4817_v30  ;;  %v11209_v19 = vadd.f32 %v4873_v62, %v4816_v10  ;;  %v4993_v18 = vsel %vm971_vm3, %v4970_v21, 0.0  ;;  %v5003_v33 = vsel %vm973_vm4, %v4973_v3, 0.0 }
 0xb00   :  { %v5002_v14 = vsel %vm971_vm3, %v4972_v32, 0.0  ;;  %v4819_v8 = vmul.f32 %v4595_v47, %v12967_v7  ;;  %v12971_v47 = vld [vmem:[#allocation37_spill] sm:$0xff]  ;;  %v12976_v7 = vld [vmem:[#allocation28_spill] sm:$0xff] }
 0xb01   :  { %v4945_v23 = vmul.f32 %v11207_v56, %v11207_v56  ;;  %v4944_v26 = vmul.f32 %v11209_v19, %v11209_v19 }
 0xb02   :  { %v4759_v24 = vpop.permute.xlu0 %4758  ;;  %v4757_v28 = vpop.permute.xlu1 %4756 }
 0xb03   :  { %v4961_v34 = vadd.f32 %v4945_v23, %v4929_v48  ;;  %v4960_v30 = vadd.f32 %v4944_v26, %v4928_v37  ;;  %v11232_v10 = vadd.f32 %v4759_v24, %v4663_v50  ;;  %v11234_v16 = vadd.f32 %v4757_v28, %v4662_v1  ;;  %v12968_v48 = vld [vmem:[#allocation30_spill] sm:$0xff] }
 0xb04   :  { %v4666_v23 = vmul.f32 %v4594_v59, %v12966_v29  ;;  %v4818_v37 = vmul.f32 %v4594_v59, %v12968_v48  ;;  %v4985_v24 = vsel %vm973_vm4, %v4969_v5, 0.0  ;;  %v4984_v28 = vsel %vm971_vm3, %v4968_v41, 0.0  ;;  %v12972_v5 = vld [vmem:[#allocation43_spill] sm:$0xff] }
 0xb05   :  { %v4977_v58 = vmul.f32 %v4961_v34, %v9617_v39  ;;  %v4976_v9 = vmul.f32 %v4960_v30, %v9619_v63  ;;  %v4927_v13 = vmul.f32 %v11232_v10, %v11232_v10  ;;  %v4926_v35 = vmul.f32 %v11234_v16, %v11234_v16 }
 0xb06   :  { %v4871_v12 = vpop.permute.xlu0 %4870  ;;  %v4869_v43 = vpop.permute.xlu1 %4868  ;;  %v4995_v50 = vadd.f32 %v4994_v49, %v4993_v18  ;;  %v5004_v1 = vadd.f32 %v5003_v33, %v5002_v14  ;;  %v4597_v59 = vmul.f32 %v4571_v40, %v12971_v47  ;;  %v4596_v41 = vmul.f32 %v4571_v40, %v12972_v5  ;;  %v12979_v5 = vld [vmem:[#allocation31_spill] sm:$0xff] }
 0xb07   :  { %v11246_v62 = vadd.f32 %v4871_v12, %v4815_v45  ;;  %v11248_v51 = vadd.f32 %v4869_v43, %v4814_v57  ;;  %v5021_v3 = vsel %vm973_vm4, %v4977_v58, 0.0  ;;  %v5020_v32 = vsel %vm971_vm3, %v4976_v9, 0.0 }
 0xb08   :  { %v4575_v12 = vrot.slane %v4543_v0, %v9220_v44  ;;  %v4986_v43 = vadd.f32 %v4985_v24, %v4984_v28 }
 0xb09   :  { %v4943_v2 = vmul.f32 %v11246_v62, %v11246_v62  ;;  %v4942_v27 = vmul.f32 %v11248_v51, %v11248_v51 }
 0xb0a   :  { %v4767_v36 = vpop.permute.xlu0 %4766  ;;  %v4765_v26 = vpop.permute.xlu1 %4764 }
 0xb0b   :  { %v4959_v4 = vadd.f32 %v4943_v2, %v4927_v13  ;;  %v4958_v21 = vadd.f32 %v4942_v27, %v4926_v35  ;;  %v11272_v45 = vadd.f32 %v4767_v36, %v4667_v38  ;;  %v11274_v57 = vadd.f32 %v4765_v26, %v4666_v23  ;;  %v12975_v36 = vld [vmem:[#allocation44_spill] sm:$0xff] }
 0xb0c   :  { %v4996_v13 = vrot.slane %v4995_v50, 4  ;;  %v5005_v35 = vrot.slane %v5004_v1, 4  ;;  %v5022_v2 = vadd.f32 %v5021_v3, %v5020_v32  ;;  %v4599_v29 = vmul.f32 %v4575_v12, %v12975_v36  ;;  %v12978_v3 = vld [vmem:[#allocation46_spill] sm:$0xff] }
 0xb0d   :  { %v4975_v34 = vmul.f32 %v4959_v4, %v9617_v39  ;;  %v4974_v30 = vmul.f32 %v4958_v21, %v9619_v63  ;;  %12969 = vst [vmem:[#allocation45_spill] sm:$0xff] %v11272_v45  ;;  %12970 = vst [vmem:[#allocation32_spill] sm:$0xff] %v11274_v57  ;;  %v4931_v40 = vmul.f32 %v11272_v45, %v11272_v45  ;;  %v4987_v23 = vrot.slane %v4986_v43, 4  ;;  %v12977_v4 = vld [vmem:[#allocation29_spill] sm:$0xff] }
 0xb0e   :  { %v4879_v49 = vpop.permute.xlu0 %4878  ;;  %v4877_v18 = vpop.permute.xlu1 %4876  ;;  %v4930_v0 = vmul.f32 %v11274_v57, %v11274_v57  ;;  %v4668_v21 = vmul.f32 %v4596_v41, %v12977_v4  ;;  %v4821_v32 = vmul.f32 %v4597_v59, %v12978_v3  ;;  %v5023_v47 = vrot.slane %v5022_v2, 4 }
 0xb0f   :  { %v5012_v33 = vsel %vm973_vm4, %v4975_v34, 0.0  ;;  %v5011_v14 = vsel %vm971_vm3, %v4974_v30, 0.0  ;;  %v11281_v58 = vadd.f32 %v4879_v49, %v4819_v8  ;;  %v11283_v9 = vadd.f32 %v4877_v18, %v4818_v37 }
 0xb10   :  { %v5013_v27 = vadd.f32 %v5012_v33, %v5011_v14  ;;  %v4669_v8 = vmul.f32 %v4597_v59, %v12976_v7  ;;  %v4997_v34 = vadd.f32 %v4996_v13, %v4995_v50  ;;  %v5006_v30 = vadd.f32 %v5005_v35, %v5004_v1  ;;  %v12982_v7 = vld [vmem:[#allocation33_spill] sm:$0xff]  ;;  %v12983_v59 = vld [vmem:[#allocation26_spill] sm:$0xff] }
 0xb11   :  { %12973 = vst [vmem:[#allocation42_spill] sm:$0xff] %v11281_v58  ;;  %12974 = vst [vmem:[#allocation40_spill] sm:$0xff] %v11283_v9  ;;  %v4947_v20 = vmul.f32 %v11281_v58, %v11281_v58  ;;  %v4946_v38 = vmul.f32 %v11283_v9, %v11283_v9  ;;  %v4820_v49 = vmul.f32 %v4596_v41, %v12979_v5 }
 0xb12   :  { %v5014_v26 = vrot.slane %v5013_v27, 4  ;;  %v4771_v48 = vpop.permute.xlu0 %4770  ;;  %v4769_v37 = vpop.permute.xlu1 %4768  ;;  %v4671_v50 = vmul.f32 %v4599_v29, %v12983_v59 }
 0xb13   :  { %v4963_v24 = vadd.f32 %v4947_v20, %v4931_v40  ;;  %v4962_v28 = vadd.f32 %v4946_v38, %v4930_v0  ;;  %v11300_v14 = vadd.f32 %v4771_v48, %v4669_v8  ;;  %v11302_v36 = vadd.f32 %v4769_v37, %v4668_v21 }
 0xb14   :  { %v4598_v40 = vmul.f32 %v4575_v12, %v12982_v7  ;;  %v4988_v0 = vadd.f32 %v4987_v23, %v4986_v43  ;;  %v5015_v20 = vadd.f32 %v5014_v26, %v5013_v27  ;;  %v4998_v8 = vrot.slane %v4997_v34, 2  ;;  %v12988_v7 = vld [vmem:[#allocation34_spill] sm:$0xff] }
 0xb15   :  { %v4979_v18 = vmul.f32 %v4963_v24, %v9617_v39  ;;  %v4978_v33 = vmul.f32 %v4962_v28, %v9619_v63  ;;  %12980 = vst [vmem:[#allocation39_spill] sm:$0xff] %v11300_v14  ;;  %12981 = vst [vmem:[#allocation41_spill] sm:$0xff] %v11302_v36  ;;  %v5007_v48 = vrot.slane %v5006_v30, 2  ;;  %v5024_v37 = vadd.f32 %v5023_v47, %v5022_v2 }
 0xb16   :  { %v4883_v38 = vpop.permute.xlu0 %4882  ;;  %v4881_v4 = vpop.permute.xlu1 %4880  ;;  %v4933_v12 = vmul.f32 %v11300_v14, %v11300_v14  ;;  %v4932_v43 = vmul.f32 %v11302_v36, %v11302_v36  ;;  %v4989_v26 = vrot.slane %v4988_v0, 2  ;;  %v5016_v28 = vrot.slane %v5015_v20, 2 }
 0xb17   :  { %v5030_v1 = vsel %vm973_vm4, %v4979_v18, 0.0  ;;  %v5029_v41 = vsel %vm971_vm3, %v4978_v33, 0.0  ;;  %v11308_v13 = vadd.f32 %v4883_v38, %v4821_v32  ;;  %v11310_v35 = vadd.f32 %v4881_v4, %v4820_v49  ;;  %v12986_v32 = vld [vmem:[#allocation27_spill] sm:$0xff] }
 0xb18   :  { %v5031_v24 = vadd.f32 %v5030_v1, %v5029_v41  ;;  %v4670_v5 = vmul.f32 %v4598_v40, %v12986_v32  ;;  %v12987_v18 = vld [vmem:[#allocation35_spill] sm:$0xff]  ;;  %v4822_v38 = vmul.f32 %v4598_v40, %v12988_v7  ;;  %v4999_v4 = vadd.f32 %v4998_v8, %v4997_v34 }
 0xb19   :  { %12984 = vst [vmem:[#allocation30_spill] sm:$0xff] %v11308_v13  ;;  %12985 = vst [vmem:[#allocation37_spill] sm:$0xff] %v11310_v35  ;;  %v4949_v27 = vmul.f32 %v11308_v13, %v11308_v13  ;;  %v4948_v23 = vmul.f32 %v11310_v35, %v11310_v35  ;;  %v4823_v33 = vmul.f32 %v4599_v29, %v12987_v18  ;;  %v5025_v1 = vrot.slane %v5024_v37, 2 }
 0xb1a   :  { %v5032_v21 = vrot.slane %v5031_v24, 4  ;;  %v4775_v3 = vpop.permute.xlu0 %4774  ;;  %v4773_v2 = vpop.permute.xlu1 %4772  ;;  %v5008_v59 = vadd.f32 %v5007_v48, %v5006_v30  ;;  %v4990_v32 = vadd.f32 %v4989_v26, %v4988_v0  ;;  %v5017_v9 = vadd.f32 %v5016_v28, %v5015_v20 }
 0xb1b   :  { %v4965_v47 = vadd.f32 %v4949_v27, %v4933_v12  ;;  %v4964_v49 = vadd.f32 %v4948_v23, %v4932_v43  ;;  %v11325_v36 = vadd.f32 %v4775_v3, %v4671_v50  ;;  %v11327_v14 = vadd.f32 %v4773_v2, %v4670_v5 }
 0xb1c   :  { %v5033_v41 = vadd.f32 %v5032_v21, %v5031_v24  ;;  %v5000_v8 = vrot.slane %v4999_v4, 1  ;;  %v5009_v48 = vrot.slane %v5008_v59, 1  ;;  %v5026_v24 = vadd.f32 %v5025_v1, %v5024_v37 }
 0xb1d   :  { %v4981_v13 = vmul.f32 %v4965_v47, %v9617_v39  ;;  %v4980_v35 = vmul.f32 %v4964_v49, %v9619_v63  ;;  %12989 = vst [vmem:[#allocation43_spill] sm:$0xff] %v11325_v36  ;;  %12990 = vst [vmem:[#allocation44_spill] sm:$0xff] %v11327_v14  ;;  %v4935_v23 = vmul.f32 %v11325_v36, %v11325_v36  ;;  %v4991_v5 = vrot.slane %v4990_v32, 1 }
 0xb1e   :  { %v5034_v12 = vrot.slane %v5033_v41, 2  ;;  %v4887_v43 = vpop.permute.xlu0 %4886  ;;  %v4885_v27 = vpop.permute.xlu1 %4884  ;;  %v4934_v0 = vmul.f32 %v11327_v14, %v11327_v14  ;;  %v5001_v37 = vadd.f32 %v5000_v8, %v4999_v4  ;;  %v5010_v47 = vadd.f32 %v5009_v48, %v5008_v59 }
 0xb1f   :  { %v5039_v29 = vsel %vm973_vm4, %v4981_v13, 0.0  ;;  %v5038_v34 = vsel %vm971_vm3, %v4980_v35, 0.0  ;;  %v11331_v30 = vadd.f32 %v4887_v43, %v4823_v33  ;;  %v11333_v40 = vadd.f32 %v4885_v27, %v4822_v38 }
 0xb20   :  { %v5040_v50 = vadd.f32 %v5039_v29, %v5038_v34  ;;  %v5018_v35 = vrot.slane %v5017_v9, 1  ;;  %v5035_v26 = vadd.f32 %v5034_v12, %v5033_v41  ;;  %v5027_v49 = vrot.slane %v5026_v24, 1  ;;  %v12993_v12 = vld [vmem:[#allocation38_spill] sm:$0xff] }
 0xb21   :  { %12991 = vst [vmem:[#allocation28_spill] sm:$0xff] %v11331_v30  ;;  %12992 = vst [vmem:[#allocation29_spill] sm:$0xff] %v11333_v40  ;;  %v4951_v20 = vmul.f32 %v11331_v30, %v11331_v30  ;;  %v4950_v13 = vmul.f32 %v11333_v40, %v11333_v40  ;;  %v4992_v41 = vadd.f32 %v4991_v5, %v4990_v32 }
 0xb22   :  { %v5041_v28 = vrot.slane %v5040_v50, 4  ;;  %v5019_v7 = vadd.f32 %v5018_v35, %v5017_v9  ;;  %v5036_v38 = vrot.slane %v5035_v26, 1  ;;  %v5057_v29 = vadd.f32 %v5001_v37, %v12993_v12 }
 0xb23   :  { %v4967_v21 = vadd.f32 %v4951_v20, %v4935_v23  ;;  %v4966_v3 = vadd.f32 %v4950_v13, %v4934_v0  ;;  %v5058_v4 = vadd.f32 %v5010_v47, %v12993_v12  ;;  %v5028_v59 = vadd.f32 %v5027_v49, %v5026_v24  ;;  %v12994_v49 = vld [vmem:[#allocation36_spill] sm:$0xff] }
 0xb24   :  { %v5042_v2 = vadd.f32 %v5041_v28, %v5040_v50  ;;  %v5059_v8 = vadd.f32 %v5019_v7, %v12993_v12  ;;  %v5037_v48 = vadd.f32 %v5036_v38, %v5035_v26  ;;  %v5056_v9 = vadd.f32 %v4992_v41, %v12993_v12 }
 0xb25   :  { %v4983_v18 = vmul.f32 %v4967_v21, %v9617_v39  ;;  %v4982_v33 = vmul.f32 %v4966_v3, %v9619_v63  ;;  %8920 = vtanh.f32 %v5057_v29  ;;  %v5060_v32 = vadd.f32 %v5028_v59, %v12993_v12 }
 0xb26   :  { %v5043_v1 = vrot.slane %v5042_v2, 2  ;;  %8922 = vtanh.f32 %v5058_v4  ;;  %v5061_v35 = vadd.f32 %v5037_v48, %v12993_v12 }
 0xb27   :  { %v5048_v43 = vsel %vm973_vm4, %v4983_v18, 0.0  ;;  %v5047_v27 = vsel %vm971_vm3, %v4982_v33, 0.0  ;;  %8924 = vtanh.f32 %v5059_v8  ;;  %v4397_v18 = vmul.f32 0.16666667, %v12994_v49  ;;  %v13000_v49 = vld [vmem:[#allocation3_spill] sm:$0xff] }
 0xb28   :  { %v5044_v34 = vadd.f32 %v5043_v1, %v5042_v2  ;;  %v5049_v23 = vadd.f32 %v5048_v43, %v5047_v27  ;;  %8926 = vtanh.f32 %v5056_v9 }
 0xb29   :  { %8928 = vtanh.f32 %v5060_v32  ;;  %v4398_v41 = vadd.f32 0.5, %v4397_v18  ;;  %v13001_v18 = vld [vmem:[#allocation5_spill] sm:$0xff] }
 0xb2a   :  { %v5045_v50 = vrot.slane %v5044_v34, 1  ;;  %v5050_v0 = vrot.slane %v5049_v23, 4  ;;  %8930 = vtanh.f32 %v5061_v35 }
 0xb2b   :  { %v4399_v8 = vmax.f32 %v4398_v41, 0.0  ;;  %v13008_v41 = vld [vmem:[#allocation13_spill] sm:$0xff] }
 0xb2c   :  { %v5046_v20 = vadd.f32 %v5045_v50, %v5044_v34  ;;  %v5051_v13 = vadd.f32 %v5050_v0, %v5049_v23 }
 0xb2d   :  { %v4400_v32 = vmin.f32 %v4399_v8, 1.0 }
 0xb2e   :  { %v5052_v28 = vrot.slane %v5051_v13, 2  ;;  %v5062_v21 = vadd.f32 %v5046_v20, %v12993_v12 }
 0xb2f   :  { %v8921_v5 = vpop.eup %8920 }
 0xb30   :  { %v5053_v24 = vadd.f32 %v5052_v28, %v5051_v13  ;;  %8932 = vtanh.f32 %v5062_v21  ;;  %v8923_v2 = vpop.eup %8922  ;;  %v5080_v33 = vrot.slane %v8921_v5, 7  ;;  %v8243_v5 = vld [vmem:[%s12541_s0 + $0x28] sm:$0xff] }
 0xb31   :  { %v8925_v47 = vpop.eup %8924  ;;  %v5082_v38 = vrot.slane %v8923_v2, 6  ;;  %v12998_v2 = vld [vmem:[#allocation4_spill] sm:$0xff] }
 0xb32   :  { %v5054_v26 = vrot.slane %v5053_v24, 1  ;;  %v8927_v7 = vpop.eup %8926  ;;  %v5084_v43 = vrot.slane %v8925_v47, 5  ;;  %v12999_v47 = vmov 0.0|0.0  }
 0xb33   :  { %v8929_v1 = vpop.eup %8928  ;;  %v5081_v34 = vsel %vm1078_vm5, %v5080_v33, %v8927_v7  ;;  %v13002_v33 = vld [vmem:[#allocation6_spill] sm:$0xff]  ;;  %v13003_v7 = vld [vmem:[#allocation7_spill] sm:$0xff] }
 0xb34   :  { %v5055_v3 = vadd.f32 %v5054_v26, %v5053_v24  ;;  %v8931_v27 = vpop.eup %8930  ;;  %v5083_v23 = vsel %vm1081_vm6, %v5082_v38, %v5081_v34  ;;  %v5086_v48 = vrot.slane %v8929_v1, 4  ;;  %v11369_v26 = vld [vmem:[%s12540_s1 + $0x10] sm:$0x3f]  ;;  %v13005_v1 = vld [vmem:[#allocation10_spill] sm:$0xff] }
 0xb35   :  { %v5085_v4 = vsel %vm1084_vm7, %v5084_v43, %v5083_v23  ;;  %v5088_v59 = vrot.slane %v8931_v27, 3  ;;  %12995 = vst [vmem:[#allocation46_spill] sm:$0xff] %v11369_v26  ;;  %v13004_v38 = vld [vmem:[#allocation8_spill] sm:$0xff]  ;;  %v13006_v43 = vld [vmem:[#allocation9_spill] sm:$0xff]  ;;  %v13007_v27 = vld [vmem:[#allocation11_spill] sm:$0xff] }
 0xb36   :  { %v5063_v37 = vadd.f32 %v5055_v3, %v12993_v12  ;;  %v5087_v9 = vsel %vm1087_vm8, %v5086_v48, %v5085_v4  ;;  %v12996_v3 = vmov 0.0   ;;  %v13010_v34 = vld [vmem:[#allocation14_spill] sm:$0xff]  ;;  %v11411_v23 = vld [vmem:[%s12540_s1 + $0x8] sm:$0x3f] }
 0xb37   :  { %v5089_v20 = vsel %vm1090_vm9, %v5088_v59, %v5087_v9  ;;  %13011 = vst [vmem:[#allocation33_spill] sm:$0xff] %v11411_v23 }
 0xb38   :  { %8934 = vtanh.f32 %v5063_v37  ;;  %v11381_v37 = vld [vmem:[%s12540_s1] sm:$0x3f] }
 0xb39   :  { %12997 = vst [vmem:[#allocation31_spill] sm:$0xff] %v11381_v37 }
 0xb3a   :  { %v8933_v29 = vpop.eup %8932 }
 0xb3b   :  { %v5090_v50 = vrot.slane %v8933_v29, 2  ;;  %v13009_v29 = vld [vmem:[#allocation12_spill] sm:$0xff] }
 0xb3d   :  { %v5091_v35 = vsel %vm1093_vm10, %v5090_v50, %v5089_v20 }
 0xb42   :  { %v8935_v0 = vpop.eup %8934 }
 0xb43   :  { %v5092_v13 = vrot.slane %v8935_v0, 1  ;;  %v13012_v0 = vld [vmem:[#allocation19_spill] sm:$0xff] }
 0xb45   :  { %v5093_v28 = vsel %vm1096_vm11, %v5092_v13, %v5091_v35 }
 0xb46   :  { %v5095_v21 = vmul.f32 %v5093_v28, %v4400_v32  ;;  %v13013_v32 = vld [vmem:[#allocation16_spill] sm:$0xff] }
 0xb48   :  { %5099 = vrot.lane.b32.xlu1 %v5095_v21, %s9005_s17  ;;  %v13014_v21 = vld [vmem:[#allocation18_spill] sm:$0xff] }
 0xbba   :  { %v5100_v24 = vpop.permute.xlu1 %5099 }
 0xbbb   :  { %8244 = vmatmul.mubr.msk.f32.vlgmr.msra.gmra.mrb[10].mxu0 %vm69_vm12, %v5100_v24  ;;  %8515 = vmatmul.mubr.msk.f32.vlgmr.msra.gmra.mrb[24].mxu1 %vm69_vm12, %v5100_v24 }
 0xbbc   :  { %8518 = vmatpush3.msk.msra.mxu1 %vm218_vm1, %v11369_v26  ;;  %8519 = vmatprep.mubr.msk.f32.mxu1 %vm9002_vm0, %v12996_v3 }
 0xbbd   :  { %8247 = vmatpush1.msk.msra.mxu0 %vm218_vm1, %v11381_v37  ;;  %5311 = vmatprep.mubr.f32.mxu0 %v12996_v3 }
 0xbbe   :  { %8758 = vmatprep.subr.bf16.mxu0 %v12998_v2  ;;  %8773 = vmatprep.subr.bf16.mxu1 %v12999_v47 }
 0xbbf   :  { %8520 = vmatmul.mubr.msk.f32.vlgmr.msra.gmra.mrb[26].mxu1 %vm214_vm2, %v8243_v5 }
 0xbc0   :  { %8775 = vmatpush3.bf16.msra.mxu1 %v13000_v49  ;;  %8538 = vmatprep.mubr.msk.f32.mxu1 %vm9002_vm0, %v12996_v3 }
 0xbc1   :  { %8776 = vmatprep.subr.bf16.mxu1 %v12999_v47 }
 0xbc3   :  { %8248 = vmatmul.mubr.msk.f32.vlgmr.msra.gmra.mrb[10].mxu0 %vm214_vm2, %v8243_v5 }
 0xbc4   :  { %8760 = vmatpush1.bf16.msra.mxu0 %v13001_v18  ;;  %8778 = vmatpush3.bf16.msra.mxu1 %v13002_v33 }
 0xbc5   :  { %8762 = vmatprep.subr.bf16.mxu0 %v13003_v7  ;;  %8779 = vmatprep.subr.bf16.mxu1 %v12999_v47 }
 0xbc6   :  { %6166 = vmatprep.mubr.f32.mxu0 %v12996_v3 }
 0xbc8   :  { %8764 = vmatpush1.bf16.msra.mxu0 %v13004_v38  ;;  %8781 = vmatpush3.bf16.msra.mxu1 %v13005_v1 }
 0xbc9   :  { %8766 = vmatprep.subr.bf16.mxu0 %v13006_v43  ;;  %8782 = vmatprep.subr.bf16.mxu1 %v12999_v47 }
 0xbcc   :  { %8768 = vmatpush1.bf16.msra.mxu0 %v13007_v27  ;;  %8784 = vmatpush3.bf16.msra.mxu1 %v13008_v41 }
 0xbcd   :  { %8770 = vmatprep.subr.bf16.mxu0 %v13009_v29  ;;  %8541 = vmatprep.subr.mxu1 %v12996_v3 }
 0xbd0   :  { %8772 = vmatpush1.bf16.msra.mxu0 %v13010_v34 }
 0xbd1   :  { %8258 = vmatprep.subr.msk.mxu0 %vm218_vm1, %v11411_v23 }
 0xc8e   :  { %v5240_v4 = vpop.f32.mrb[24].mxu1 }
 0xc8f   :  { %v8516_v59 = vpop.f32.mrb[25].mxu1 }
 0xc92   :  { %v5384_v8 = vpop.f32.mrb[26].mxu1 }
 0xc93   :  { %v5385_v48 = vadd.f32 %v5384_v8, %v5240_v4  ;;  %v8521_v50 = vpop.f32.mrb[27].mxu1  ;;  %v13016_v4 = vld [vmem:[#allocation15_spill] sm:$0xff] }
 0xc94   :  { %v13017_v50 = vld [vmem:[#allocation17_spill] sm:$0xff] }
 0xc95   :  { %v5390_v9 = vadd.f32 %v5385_v48, %v13012_v0 }
 0xc96   :  { %v5313_v20 = vpop.f32.mrb[10].mxu0 }
 0xc97   :  { %v5400_v13 = vmul.f32 0.16666667, %v5390_v9  ;;  %v5388_v35 = vadd.f32 %v5313_v20, %v13013_v32  ;;  %v5315_v28 = vpop.f32.mrb[11].mxu0 }
 0xc98   :  { %v11418_v24 = vadd.f32 %v5315_v28, %v13014_v21 }
 0xc99   :  { %v5401_v5 = vadd.f32 0.5, %v5400_v13  ;;  %v5391_v34 = vmul.f32 0.16666667, %v5388_v35 }
 0xc9a   :  { %13015 = vst [vmem:[#allocation26_spill] sm:$0xff] %v11418_v24  ;;  %8936 = vtanh.f32 %v11418_v24 }
 0xc9b   :  { %v5402_v23 = vmax.f32 %v5401_v5, 0.0  ;;  %v5392_v29 = vadd.f32 0.5, %v5391_v34  ;;  %v13018_v34 = vld [vmem:[#allocation20_spill] sm:$0xff]  ;;  %v13020_v5 = vld [vmem:[#allocation22_spill] sm:$0xff] }
 0xc9d   :  { %v5403_v59 = vmin.f32 %v5402_v23, 1.0  ;;  %v5393_v41 = vmax.f32 %v5392_v29, 0.0  ;;  %v13019_v29 = vld [vmem:[#allocation21_spill] sm:$0xff] }
 0xc9f   :  { %v5419_v8 = vrot.slane %v5403_v59, %v13016_v4  ;;  %v11422_v48 = vmin.f32 %v5393_v41, 1.0  ;;  %v5430_v9 = vrot.slane %v5403_v59, %v13017_v50  ;;  %v5408_v13 = vrot.slane %v5403_v59, %v9220_v44 }
 0xca0   :  { %v5441_v23 = vrot.slane %v5403_v59, %v13018_v34  ;;  %v5452_v35 = vrot.slane %v5403_v59, %v13019_v29  ;;  %v13022_v34 = vld [vmem:[#allocation25_spill] sm:$0xff] }
 0xca1   :  { %5425 = vbcast.lane.b32.xlu1 %v5419_v8, 264  ;;  %5421 = vbcast.lane.b32.xlu0 %v5419_v8, 256  ;;  %v5463_v8 = vrot.slane %v5403_v59, %v13020_v5  ;;  %v5485_v4 = vrot.slane %v5403_v59, %v13022_v34  ;;  %v11456_v34 = vld [vmem:[%s12544_s9 + $0x50] sm:$0xff]  ;;  %v5494_v1 = vcombine.high %v11422_v48, %v11422_v48 }
 0xca3   :  { %v5508_v49 = vrot.slane %v5494_v1, %v12772_v11 }
 0xca4   :  { %v8937_v20 = vpop.eup %8936 }
 0xca5   :  { %v5404_v28 = vmul.f32 %v8937_v20, %v11422_v48  ;;  %5436 = vbcast.lane.b32.xlu1 %v5430_v9, 264  ;;  %5432 = vbcast.lane.b32.xlu0 %v5430_v9, 256  ;;  %v13021_v20 = vld [vmem:[#allocation24_spill] sm:$0xff]  ;;  %v5510_v26 = vcombine.high %v5508_v49, %v5508_v49  ;;  %v11556_v14 = vrot.slane %v5508_v49, %v12772_v11 }
 0xca6   :  { %v5474_v9 = vrot.slane %v5403_v59, %v13021_v20 }
 0xca7   :  { %v5613_v41 = vrot.slane %v5404_v28, %v12772_v11  ;;  %v5606_v29 = vcombine.high %v5404_v28, %v5404_v28 }
 0xca9   :  { %5414 = vbcast.lane.b32.xlu1 %v5408_v13, 264  ;;  %5410 = vbcast.lane.b32.xlu0 %v5408_v13, 256  ;;  %v5629_v50 = vrot.slane %v5613_v41, %v12772_v11  ;;  %v5621_v13 = vcombine.high %v5613_v41, %v5613_v41 }
 0xcab   :  { %v5643_v59 = vrot.slane %v5621_v13, %v12772_v11  ;;  %v5651_v0 = vcombine.high %v5629_v50, %v5629_v50 }
 0xcad   :  { %5447 = vbcast.lane.b32.xlu1 %v5441_v23, 264  ;;  %5443 = vbcast.lane.b32.xlu0 %v5441_v23, 256  ;;  %v5674_v23 = vrot.slane %v5629_v50, %v9220_v44  ;;  %v5678_v13 = vrot.slane %v5643_v59, %v9220_v44 }
 0xcaf   :  { %v5823_v5 = vmul.f32 %v11456_v34, %v5674_v23 }
 0xcb1   :  { %5458 = vbcast.lane.b32.xlu1 %v5452_v35, 264  ;;  %5454 = vbcast.lane.b32.xlu0 %v5452_v35, 256  ;;  %v11438_v35 = vld [vmem:[%s12543_s8 + $0x58] sm:$0x3] }
 0xcb2   :  { %v5712_v20 = vmul.f32 %v11438_v35, %v5674_v23  ;;  %v5714_v21 = vmul.f32 %v11438_v35, %v5678_v13 }
 0xcb5   :  { %5469 = vbcast.lane.b32.xlu1 %v5463_v8, 264  ;;  %5465 = vbcast.lane.b32.xlu0 %v5463_v8, 256  ;;  %v11443_v8 = vld [vmem:[%s12543_s8 + $0x50] sm:$0xff] }
 0xcb6   :  { %v5711_v41 = vmul.f32 %v11443_v8, %v5674_v23  ;;  %v5713_v32 = vmul.f32 %v11443_v8, %v5678_v13 }
 0xcb9   :  { %5480 = vbcast.lane.b32.xlu1 %v5474_v9, 264  ;;  %5476 = vbcast.lane.b32.xlu0 %v5474_v9, 256  ;;  %v11451_v9 = vld [vmem:[%s12544_s9 + $0x58] sm:$0x3] }
 0xcbd   :  { %5491 = vbcast.lane.b32.xlu1 %v5485_v4, 264  ;;  %5487 = vbcast.lane.b32.xlu0 %v5485_v4, 256  ;;  %v5824_v4 = vmul.f32 %v11451_v9, %v5674_v23  ;;  %v5826_v23 = vmul.f32 %v11451_v9, %v5678_v13 }
 0xcc1   :  { %5745 = vrot.lane.b32.xlu1 %v5712_v20, %s9005_s17  ;;  %5743 = vrot.lane.b32.xlu0 %v5711_v41, %s9005_s17  ;;  %v5620_v20 = vrot.slane %v5606_v29, %v12772_v11  ;;  %v5825_v41 = vmul.f32 %v11456_v34, %v5678_v13 }
 0xcc5   :  { %5857 = vrot.lane.b32.xlu1 %v5824_v4, %s9005_s17  ;;  %5855 = vrot.lane.b32.xlu0 %v5823_v5, %s9005_s17  ;;  %v5682_v4 = vrot.slane %v5651_v0, %v9220_v44 }
 0xcc7   :  { %v5716_v28 = vmul.f32 %v11438_v35, %v5682_v4  ;;  %v5715_v50 = vmul.f32 %v11443_v8, %v5682_v4  ;;  %v5827_v29 = vmul.f32 %v11456_v34, %v5682_v4 }
 0xcc9   :  { %5749 = vrot.lane.b32.xlu1 %v5714_v21, %s9005_s17  ;;  %5747 = vrot.lane.b32.xlu0 %v5713_v32, %s9005_s17  ;;  %v5636_v21 = vrot.slane %v5620_v20, %v12772_v11  ;;  %v5828_v32 = vmul.f32 %v11451_v9, %v5682_v4 }
 0xccb   :  { %v5690_v0 = vrot.slane %v5636_v21, %v9220_v44 }
 0xccd   :  { %5861 = vrot.lane.b32.xlu1 %v5826_v23, %s9005_s17  ;;  %5859 = vrot.lane.b32.xlu0 %v5825_v41, %s9005_s17  ;;  %v5720_v5 = vmul.f32 %v11438_v35, %v5690_v0  ;;  %v5719_v13 = vmul.f32 %v11443_v8, %v5690_v0  ;;  %v5653_v23 = vcombine.high %v5643_v59, %v5643_v59 }
 0xcce   :  { %v5832_v41 = vmul.f32 %v11451_v9, %v5690_v0 }
 0xccf   :  { %v5686_v4 = vrot.slane %v5653_v23, %v9220_v44 }
 0xcd1   :  { %5753 = vrot.lane.b32.xlu1 %v5716_v28, %s9005_s17  ;;  %5751 = vrot.lane.b32.xlu0 %v5715_v50, %s9005_s17  ;;  %v5831_v28 = vmul.f32 %v11456_v34, %v5690_v0  ;;  %v5622_v50 = vcombine.high %v5620_v20, %v5620_v20  ;;  %v5829_v0 = vmul.f32 %v11456_v34, %v5686_v4 }
 0xcd3   :  { %v5650_v59 = vrot.slane %v5622_v50, %v12772_v11 }
 0xcd5   :  { %5865 = vrot.lane.b32.xlu1 %v5828_v32, %s9005_s17  ;;  %5863 = vrot.lane.b32.xlu0 %v5827_v29, %s9005_s17  ;;  %v5718_v32 = vmul.f32 %v11438_v35, %v5686_v4  ;;  %v5717_v29 = vmul.f32 %v11443_v8, %v5686_v4  ;;  %v5694_v20 = vrot.slane %v5650_v59, %v9220_v44 }
 0xcd7   :  { %v5721_v23 = vmul.f32 %v11443_v8, %v5694_v20  ;;  %v5833_v50 = vmul.f32 %v11456_v34, %v5694_v20 }
 0xcd9   :  { %5761 = vrot.lane.b32.xlu1 %v5720_v5, %s9005_s17  ;;  %5759 = vrot.lane.b32.xlu0 %v5719_v13, %s9005_s17  ;;  %v5830_v5 = vmul.f32 %v11451_v9, %v5686_v4  ;;  %v5722_v13 = vmul.f32 %v11438_v35, %v5694_v20 }
 0xcdd   :  { %5873 = vrot.lane.b32.xlu1 %v5832_v41, %s9005_s17  ;;  %5871 = vrot.lane.b32.xlu0 %v5831_v28, %s9005_s17  ;;  %v5652_v41 = vcombine.high %v5636_v21, %v5636_v21  ;;  %v5834_v28 = vmul.f32 %v11451_v9, %v5694_v20 }
 0xcdf   :  { %v5698_v4 = vrot.slane %v5652_v41, %v9220_v44 }
 0xce1   :  { %5757 = vrot.lane.b32.xlu1 %v5718_v32, %s9005_s17  ;;  %5755 = vrot.lane.b32.xlu0 %v5717_v29, %s9005_s17  ;;  %v5724_v32 = vmul.f32 %v11438_v35, %v5698_v4  ;;  %v5723_v29 = vmul.f32 %v11443_v8, %v5698_v4  ;;  %v5836_v21 = vmul.f32 %v11451_v9, %v5698_v4 }
 0xce5   :  { %5869 = vrot.lane.b32.xlu1 %v5830_v5, %s9005_s17  ;;  %5867 = vrot.lane.b32.xlu0 %v5829_v0, %s9005_s17  ;;  %v5654_v5 = vcombine.high %v5650_v59, %v5650_v59  ;;  %v5835_v0 = vmul.f32 %v11456_v34, %v5698_v4 }
 0xce7   :  { %v5702_v20 = vrot.slane %v5654_v5, %v9220_v44 }
 0xce9   :  { %5765 = vrot.lane.b32.xlu1 %v5722_v13, %s9005_s17  ;;  %5763 = vrot.lane.b32.xlu0 %v5721_v23, %s9005_s17  ;;  %v5726_v13 = vmul.f32 %v11438_v35, %v5702_v20  ;;  %v5725_v23 = vmul.f32 %v11443_v8, %v5702_v20  ;;  %v5838_v59 = vmul.f32 %v11451_v9, %v5702_v20 }
 0xcea   :  { %v5837_v41 = vmul.f32 %v11456_v34, %v5702_v20 }
 0xced   :  { %5877 = vrot.lane.b32.xlu1 %v5834_v28, %s9005_s17  ;;  %5875 = vrot.lane.b32.xlu0 %v5833_v50, %s9005_s17 }
 0xcf1   :  { %5769 = vrot.lane.b32.xlu1 %v5724_v32, %s9005_s17  ;;  %5767 = vrot.lane.b32.xlu0 %v5723_v29, %s9005_s17 }
 0xcf5   :  { %5881 = vrot.lane.b32.xlu1 %v5836_v21, %s9005_s17  ;;  %5879 = vrot.lane.b32.xlu0 %v5835_v0, %s9005_s17 }
 0xcf9   :  { %5773 = vrot.lane.b32.xlu1 %v5726_v13, %s9005_s17  ;;  %5771 = vrot.lane.b32.xlu0 %v5725_v23, %s9005_s17 }
 0xcfd   :  { %5885 = vrot.lane.b32.xlu1 %v5838_v59, %s9005_s17  ;;  %5883 = vrot.lane.b32.xlu0 %v5837_v41, %s9005_s17  ;;  %v5501_v41 = vrot.slane %v11422_v48, %v12772_v11 }
 0xcff   :  { %v5509_v38 = vcombine.high %v5501_v41, %v5501_v41  ;;  %v5517_v18 = vrot.slane %v5501_v41, %v12772_v11  ;;  %v11559_v41 = vrot.slane %v5510_v26, %v12772_v11  ;;  %v5540_v26 = vcombine.high %v11556_v14, %v11556_v14 }
 0xd01   :  { %v5531_v47 = vrot.slane %v5509_v38, %v12772_v11  ;;  %v5539_v3 = vcombine.high %v5517_v18, %v5517_v18  ;;  %v5546_v38 = vrot.slane %v5517_v18, %v9220_v44 }
 0xd03   :  { %v5550_v24 = vrot.slane %v5531_v47, %v9220_v44  ;;  %v5554_v30 = vrot.slane %v5539_v3, %v9220_v44  ;;  %v5541_v48 = vcombine.high %v5531_v47, %v5531_v47  ;;  %v5562_v3 = vrot.slane %v11556_v14, %v9220_v44 }
 0xd04   :  { %v11567_v47 = vrot.slane %v11559_v41, %v9220_v44 }
 0xd05   :  { %v5558_v45 = vrot.slane %v5541_v48, %v9220_v44 }
 0xd13   :  { %v5426_v28 = vpop.permute.xlu1 %5425  ;;  %v5422_v50 = vpop.permute.xlu0 %5421 }
 0xd14   :  { %v5586_v1 = vmul.f32 %v5550_v24, %v5426_v28  ;;  %v5585_v36 = vmul.f32 %v5550_v24, %v5422_v50 }
 0xd16   :  { %v5658_v49 = vmul.f32 %v5586_v1, %v11165_v60  ;;  %v5810_v18 = vmul.f32 %v5586_v1, %v11153_v31  ;;  %v5809_v24 = vmul.f32 %v5585_v36, %v11155_v15 }
 0xd17   :  { %v5437_v4 = vpop.permute.xlu1 %5436  ;;  %v5433_v32 = vpop.permute.xlu0 %5432 }
 0xd1b   :  { %v5415_v29 = vpop.permute.xlu1 %5414  ;;  %v5411_v35 = vpop.permute.xlu0 %5410 }
 0xd1f   :  { %v5448_v5 = vpop.permute.xlu1 %5447  ;;  %v5444_v8 = vpop.permute.xlu0 %5443 }
 0xd23   :  { %v5459_v21 = vpop.permute.xlu1 %5458  ;;  %v5455_v0 = vpop.permute.xlu0 %5454 }
 0xd27   :  { %v11530_v13 = vpop.permute.xlu1 %5469  ;;  %v11532_v23 = vpop.permute.xlu0 %5465 }
 0xd2b   :  { %v11534_v9 = vpop.permute.xlu1 %5480  ;;  %v11536_v34 = vpop.permute.xlu0 %5476 }
 0xd2c   :  { %13023 = vst [vmem:[#allocation27_spill] sm:$0xff] %v11534_v9  ;;  %13024 = vst [vmem:[#allocation35_spill] sm:$0xff] %v11536_v34  ;;  %v5584_v34 = vmul.f32 %v5546_v38, %v5415_v29  ;;  %v5583_v9 = vmul.f32 %v5546_v38, %v5411_v35  ;;  %v5592_v29 = vmul.f32 %v5562_v3, %v5459_v21 }
 0xd2d   :  { %v5591_v35 = vmul.f32 %v5562_v3, %v5455_v0 }
 0xd2e   :  { %v5656_v14 = vmul.f32 %v5584_v34, %v11182_v42  ;;  %v5655_v60 = vmul.f32 %v5583_v9, %v11185_v53  ;;  %v5808_v31 = vmul.f32 %v5584_v34, %v11161_v25  ;;  %v5807_v15 = vmul.f32 %v5583_v9, %v11163_v54 }
 0xd2f   :  { %v11538_v20 = vpop.permute.xlu1 %5491  ;;  %v11540_v59 = vpop.permute.xlu0 %5487 }
 0xd30   :  { %13025 = vst [vmem:[#allocation34_spill] sm:$0xff] %v11538_v20  ;;  %13026 = vst [vmem:[#allocation36_spill] sm:$0xff] %v11540_v59  ;;  %v5588_v59 = vmul.f32 %v5554_v30, %v5437_v4  ;;  %v5587_v20 = vmul.f32 %v5554_v30, %v5433_v32  ;;  %v5657_v30 = vmul.f32 %v5585_v36, %v11167_v52 }
 0xd32   :  { %v5660_v28 = vmul.f32 %v5588_v59, %v11169_v6  ;;  %v5659_v50 = vmul.f32 %v5587_v20, %v11171_v17  ;;  %v5812_v4 = vmul.f32 %v5588_v59, %v11157_v61  ;;  %v5811_v32 = vmul.f32 %v5587_v20, %v11159_v22 }
 0xd33   :  { %v11544_v27 = vpop.permute.xlu1 %5745  ;;  %v11546_v43 = vpop.permute.xlu0 %5743  ;;  %v5590_v17 = vmul.f32 %v5558_v45, %v5448_v5  ;;  %v5589_v61 = vmul.f32 %v5558_v45, %v5444_v8  ;;  %v5663_v45 = vmul.f32 %v5591_v35, %v11205_v55 }
 0xd37   :  { %v5858_v7 = vpop.permute.xlu1 %5857  ;;  %v5856_v33 = vpop.permute.xlu0 %5855 }
 0xd38   :  { %v11591_v21 = vadd.f32 %v5858_v7, %v5808_v31  ;;  %v11593_v42 = vadd.f32 %v5856_v33, %v5807_v15 }
 0xd3a   :  { %v5936_v8 = vmul.f32 %v11591_v21, %v11591_v21 }
 0xd3b   :  { %v5750_v2 = vpop.permute.xlu1 %5749  ;;  %v5748_v37 = vpop.permute.xlu0 %5747 }
 0xd3c   :  { %v11595_v53 = vadd.f32 %v5750_v2, %v5658_v49  ;;  %v11597_v0 = vadd.f32 %v5748_v37, %v5657_v30  ;;  %v5816_v2 = vmul.f32 %v5592_v29, %v11207_v56  ;;  %v5815_v37 = vmul.f32 %v5591_v35, %v11209_v19 }
 0xd3d   :  { %v5935_v56 = vmul.f32 %v11593_v42, %v11593_v42 }
 0xd3e   :  { %v5922_v19 = vmul.f32 %v11595_v53, %v11595_v53 }
 0xd3f   :  { %v5862_v12 = vpop.permute.xlu1 %5861  ;;  %v5860_v40 = vpop.permute.xlu0 %5859 }
 0xd40   :  { %v11583_v36 = vadd.f32 %v5862_v12, %v5810_v18  ;;  %v11585_v6 = vadd.f32 %v5860_v40, %v5809_v24  ;;  %v5664_v40 = vmul.f32 %v5592_v29, %v11203_v46  ;;  %v5542_v29 = vcombine.high %v11559_v41, %v11559_v41 }
 0xd42   :  { %v5938_v7 = vmul.f32 %v11583_v36, %v11583_v36  ;;  %v5937_v33 = vmul.f32 %v11585_v6, %v11585_v6 }
 0xd43   :  { %v5754_v58 = vpop.permute.xlu1 %5753  ;;  %v5752_v57 = vpop.permute.xlu0 %5751 }
 0xd44   :  { %v11599_v25 = vadd.f32 %v5754_v58, %v5660_v28  ;;  %v11601_v54 = vadd.f32 %v5752_v57, %v5659_v50  ;;  %v11612_v58 = vadd.f32 %v11544_v27, %v5656_v14  ;;  %v11615_v57 = vadd.f32 %v11546_v43, %v5655_v60 }
 0xd45   :  { %v5921_v27 = vmul.f32 %v11597_v0, %v11597_v0  ;;  %v5954_v3 = vadd.f32 %v5938_v7, %v5922_v19 }
 0xd46   :  { %v5924_v43 = vmul.f32 %v11599_v25, %v11599_v25  ;;  %v5923_v9 = vmul.f32 %v11601_v54, %v11601_v54  ;;  %v5920_v24 = vmul.f32 %v11612_v58, %v11612_v58  ;;  %v5919_v28 = vmul.f32 %v11615_v57, %v11615_v57 }
 0xd47   :  { %v5866_v48 = vpop.permute.xlu1 %5865  ;;  %v5864_v52 = vpop.permute.xlu0 %5863  ;;  %v5953_v49 = vadd.f32 %v5937_v33, %v5921_v27 }
 0xd48   :  { %v11587_v59 = vadd.f32 %v5866_v48, %v5812_v4  ;;  %v11589_v22 = vadd.f32 %v5864_v52, %v5811_v32  ;;  %v5570_v32 = vrot.slane %v5540_v26, %v9220_v44  ;;  %v5952_v60 = vadd.f32 %v5936_v8, %v5920_v24  ;;  %v13027_v24 = vld [vmem:[#allocation45_spill] sm:$0xff] }
 0xd49   :  { %v5951_v48 = vadd.f32 %v5935_v56, %v5919_v28  ;;  %v5970_v26 = vmul.f32 %v5954_v3, %v9617_v39  ;;  %v5969_v41 = vmul.f32 %v5953_v49, %v9619_v63  ;;  %v5813_v8 = vmul.f32 %v5589_v61, %v11248_v51 }
 0xd4a   :  { %v5940_v46 = vmul.f32 %v11587_v59, %v11587_v59  ;;  %v5939_v55 = vmul.f32 %v11589_v22, %v11589_v22  ;;  %v5594_v56 = vmul.f32 %v11567_v47, %v11530_v13 }
 0xd4b   :  { %v5762_v12 = vpop.permute.xlu1 %5761  ;;  %v5760_v5 = vpop.permute.xlu0 %5759  ;;  %v5967_v19 = vmul.f32 %v5951_v48, %v9619_v63 }
 0xd4c   :  { %v11633_v34 = vadd.f32 %v5762_v12, %v5664_v40  ;;  %v11635_v20 = vadd.f32 %v5760_v5, %v5663_v45  ;;  %v5956_v50 = vadd.f32 %v5940_v46, %v5924_v43  ;;  %v5955_v4 = vadd.f32 %v5939_v55, %v5923_v9 }
 0xd4d   :  { %v5662_v12 = vmul.f32 %v5590_v17, %v11232_v10  ;;  %v5661_v45 = vmul.f32 %v5589_v61, %v11234_v16  ;;  %v5814_v55 = vmul.f32 %v5590_v17, %v11246_v62  ;;  %v5593_v10 = vmul.f32 %v11567_v47, %v11532_v23 }
 0xd4e   :  { %v5928_v52 = vmul.f32 %v11633_v34, %v11633_v34  ;;  %v5927_v31 = vmul.f32 %v11635_v20, %v11635_v20  ;;  %v5972_v5 = vmul.f32 %v5956_v50, %v9617_v39  ;;  %v5971_v7 = vmul.f32 %v5955_v4, %v9619_v63  ;;  %v13028_v4 = vld [vmem:[#allocation32_spill] sm:$0xff] }
 0xd4f   :  { %v5874_v1 = vpop.permute.xlu1 %5873  ;;  %v5872_v38 = vpop.permute.xlu0 %5871  ;;  %v5968_v16 = vmul.f32 %v5952_v60, %v9617_v39  ;;  %v5993_v9 = vsel %vm973_vm4, %v5970_v26, 0.0  ;;  %v5666_v28 = vmul.f32 %v5594_v56, %v13027_v24  ;;  %v13029_v60 = vld [vmem:[#allocation42_spill] sm:$0xff] }
 0xd50   :  { %v11637_v30 = vadd.f32 %v5874_v1, %v5816_v2  ;;  %v11639_v18 = vadd.f32 %v5872_v38, %v5815_v37  ;;  %v5992_v1 = vsel %vm971_vm3, %v5969_v41, 0.0  ;;  %v6002_v51 = vsel %vm973_vm4, %v5972_v5, 0.0 }
 0xd51   :  { %v6001_v13 = vsel %vm971_vm3, %v5971_v7, 0.0  ;;  %v5818_v48 = vmul.f32 %v5594_v56, %v13029_v60  ;;  %v13031_v56 = vld [vmem:[#allocation27_spill] sm:$0xff] }
 0xd52   :  { %v5944_v35 = vmul.f32 %v11637_v30, %v11637_v30  ;;  %v5943_v14 = vmul.f32 %v11639_v18, %v11639_v18  ;;  %v13035_v60 = vld [vmem:[#allocation39_spill] sm:$0xff] }
 0xd53   :  { %v5758_v15 = vpop.permute.xlu1 %5757  ;;  %v5756_v40 = vpop.permute.xlu0 %5755 }
 0xd54   :  { %v5960_v33 = vadd.f32 %v5944_v35, %v5928_v52  ;;  %v5959_v2 = vadd.f32 %v5943_v14, %v5927_v31  ;;  %v11662_v37 = vadd.f32 %v5758_v15, %v5662_v12  ;;  %v11664_v46 = vadd.f32 %v5756_v40, %v5661_v45  ;;  %v13030_v52 = vld [vmem:[#allocation40_spill] sm:$0xff] }
 0xd55   :  { %v5665_v35 = vmul.f32 %v5593_v10, %v13028_v4  ;;  %v5817_v31 = vmul.f32 %v5593_v10, %v13030_v52  ;;  %v5984_v15 = vsel %vm973_vm4, %v5968_v16, 0.0  ;;  %v5983_v40 = vsel %vm971_vm3, %v5967_v19, 0.0  ;;  %v13032_v16 = vld [vmem:[#allocation35_spill] sm:$0xff] }
 0xd56   :  { %v5976_v23 = vmul.f32 %v5960_v33, %v9617_v39  ;;  %v5975_v47 = vmul.f32 %v5959_v2, %v9619_v63  ;;  %v5926_v17 = vmul.f32 %v11662_v37, %v11662_v37  ;;  %v5925_v61 = vmul.f32 %v11664_v46, %v11664_v46 }
 0xd57   :  { %v5870_v27 = vpop.permute.xlu1 %5869  ;;  %v5868_v43 = vpop.permute.xlu0 %5867  ;;  %v5994_v12 = vadd.f32 %v5993_v9, %v5992_v1  ;;  %v6003_v45 = vadd.f32 %v6002_v51, %v6001_v13  ;;  %v5596_v10 = vmul.f32 %v5570_v32, %v13031_v56  ;;  %v5595_v19 = vmul.f32 %v5570_v32, %v13032_v16  ;;  %v13038_v16 = vld [vmem:[#allocation37_spill] sm:$0xff] }
 0xd58   :  { %v11676_v38 = vadd.f32 %v5870_v27, %v5814_v55  ;;  %v11678_v62 = vadd.f32 %v5868_v43, %v5813_v8  ;;  %v6020_v5 = vsel %vm973_vm4, %v5976_v23, 0.0  ;;  %v6019_v7 = vsel %vm971_vm3, %v5975_v47, 0.0 }
 0xd59   :  { %v5574_v27 = vrot.slane %v5542_v29, %v9220_v44  ;;  %v5985_v43 = vadd.f32 %v5984_v15, %v5983_v40 }
 0xd5a   :  { %v5942_v3 = vmul.f32 %v11676_v38, %v11676_v38  ;;  %v5941_v49 = vmul.f32 %v11678_v62, %v11678_v62 }
 0xd5b   :  { %v5766_v50 = vpop.permute.xlu1 %5765  ;;  %v5764_v14 = vpop.permute.xlu0 %5763 }
 0xd5c   :  { %v5958_v26 = vadd.f32 %v5942_v3, %v5926_v17  ;;  %v5957_v41 = vadd.f32 %v5941_v49, %v5925_v61  ;;  %v11702_v55 = vadd.f32 %v5766_v50, %v5666_v28  ;;  %v11704_v8 = vadd.f32 %v5764_v14, %v5665_v35  ;;  %v13034_v50 = vld [vmem:[#allocation34_spill] sm:$0xff] }
 0xd5d   :  { %v5995_v17 = vrot.slane %v5994_v12, 4  ;;  %v6004_v61 = vrot.slane %v6003_v45, 4  ;;  %v6021_v3 = vadd.f32 %v6020_v5, %v6019_v7  ;;  %v5598_v4 = vmul.f32 %v5574_v27, %v13034_v50  ;;  %v13037_v5 = vld [vmem:[#allocation30_spill] sm:$0xff] }
 0xd5e   :  { %v5974_v33 = vmul.f32 %v5958_v26, %v9617_v39  ;;  %v5973_v2 = vmul.f32 %v5957_v41, %v9619_v63  ;;  %v5930_v32 = vmul.f32 %v11702_v55, %v11702_v55  ;;  %v5929_v29 = vmul.f32 %v11704_v8, %v11704_v8  ;;  %v13036_v26 = vld [vmem:[#allocation41_spill] sm:$0xff] }
 0xd5f   :  { %v5878_v9 = vpop.permute.xlu1 %5877  ;;  %v5876_v1 = vpop.permute.xlu0 %5875  ;;  %v5986_v35 = vrot.slane %v5985_v43, 4  ;;  %v5667_v41 = vmul.f32 %v5595_v19, %v13036_v26  ;;  %v5820_v7 = vmul.f32 %v5596_v10, %v13037_v5  ;;  %v6022_v56 = vrot.slane %v6021_v3, 4 }
 0xd60   :  { %v6011_v51 = vsel %vm973_vm4, %v5974_v33, 0.0  ;;  %v6010_v13 = vsel %vm971_vm3, %v5973_v2, 0.0  ;;  %v11711_v23 = vadd.f32 %v5878_v9, %v5818_v48  ;;  %v11713_v47 = vadd.f32 %v5876_v1, %v5817_v31 }
 0xd61   :  { %v6012_v49 = vadd.f32 %v6011_v51, %v6010_v13  ;;  %v5668_v48 = vmul.f32 %v5596_v10, %v13035_v60  ;;  %v5996_v33 = vadd.f32 %v5995_v17, %v5994_v12  ;;  %v6005_v2 = vadd.f32 %v6004_v61, %v6003_v45  ;;  %v13041_v60 = vld [vmem:[#allocation36_spill] sm:$0xff]  ;;  %v13042_v10 = vld [vmem:[#allocation43_spill] sm:$0xff] }
 0xd62   :  { %13033 = vst [vmem:[#allocation45_spill] sm:$0xff] %v11713_v47  ;;  %v5946_v24 = vmul.f32 %v11711_v23, %v11711_v23  ;;  %v5945_v28 = vmul.f32 %v11713_v47, %v11713_v47  ;;  %v5819_v9 = vmul.f32 %v5595_v19, %v13038_v16  ;;  %v5670_v12 = vmul.f32 %v5598_v4, %v13042_v10 }
 0xd63   :  { %v6013_v14 = vrot.slane %v6012_v49, 4  ;;  %v5770_v52 = vpop.permute.xlu1 %5769  ;;  %v5768_v31 = vpop.permute.xlu0 %5767 }
 0xd64   :  { %v5962_v15 = vadd.f32 %v5946_v24, %v5930_v32  ;;  %v5961_v40 = vadd.f32 %v5945_v28, %v5929_v29  ;;  %v11730_v13 = vadd.f32 %v5770_v52, %v5668_v48  ;;  %v11732_v50 = vadd.f32 %v5768_v31, %v5667_v41 }
 0xd65   :  { %v5597_v32 = vmul.f32 %v5574_v27, %v13041_v60  ;;  %v5987_v29 = vadd.f32 %v5986_v35, %v5985_v43  ;;  %v6014_v24 = vadd.f32 %v6013_v14, %v6012_v49  ;;  %v5997_v48 = vrot.slane %v5996_v33, 2  ;;  %v13047_v60 = vld [vmem:[#allocation29_spill] sm:$0xff] }
 0xd66   :  { %v5978_v1 = vmul.f32 %v5962_v15, %v9617_v39  ;;  %v5977_v51 = vmul.f32 %v5961_v40, %v9619_v63  ;;  %13039 = vst [vmem:[#allocation32_spill] sm:$0xff] %v11730_v13  ;;  %13040 = vst [vmem:[#allocation42_spill] sm:$0xff] %v11732_v50  ;;  %v6006_v52 = vrot.slane %v6005_v2, 2  ;;  %v6023_v31 = vadd.f32 %v6022_v56, %v6021_v3 }
 0xd67   :  { %v5882_v28 = vpop.permute.xlu1 %5881  ;;  %v5880_v26 = vpop.permute.xlu0 %5879  ;;  %v5932_v27 = vmul.f32 %v11730_v13, %v11730_v13  ;;  %v5931_v43 = vmul.f32 %v11732_v50, %v11732_v50  ;;  %v5988_v14 = vrot.slane %v5987_v29, 2  ;;  %v6015_v40 = vrot.slane %v6014_v24, 2 }
 0xd68   :  { %v6029_v45 = vsel %vm973_vm4, %v5978_v1, 0.0  ;;  %v6028_v19 = vsel %vm971_vm3, %v5977_v51, 0.0  ;;  %v11738_v17 = vadd.f32 %v5882_v28, %v5820_v7  ;;  %v11740_v61 = vadd.f32 %v5880_v26, %v5819_v9  ;;  %v13045_v7 = vld [vmem:[#allocation44_spill] sm:$0xff] }
 0xd69   :  { %v6030_v15 = vadd.f32 %v6029_v45, %v6028_v19  ;;  %v5669_v16 = vmul.f32 %v5597_v32, %v13045_v7  ;;  %v13046_v1 = vld [vmem:[#allocation28_spill] sm:$0xff]  ;;  %v5821_v28 = vmul.f32 %v5597_v32, %v13047_v60  ;;  %v5998_v26 = vadd.f32 %v5997_v48, %v5996_v33 }
 0xd6a   :  { %13043 = vst [vmem:[#allocation40_spill] sm:$0xff] %v11738_v17  ;;  %13044 = vst [vmem:[#allocation27_spill] sm:$0xff] %v11740_v61  ;;  %v5948_v49 = vmul.f32 %v11738_v17, %v11738_v17  ;;  %v5947_v35 = vmul.f32 %v11740_v61, %v11740_v61  ;;  %v5822_v51 = vmul.f32 %v5598_v4, %v13046_v1  ;;  %v6024_v45 = vrot.slane %v6023_v31, 2 }
 0xd6b   :  { %v6031_v41 = vrot.slane %v6030_v15, 4  ;;  %v5774_v5 = vpop.permute.xlu1 %5773  ;;  %v5772_v3 = vpop.permute.xlu0 %5771  ;;  %v6007_v10 = vadd.f32 %v6006_v52, %v6005_v2  ;;  %v5989_v7 = vadd.f32 %v5988_v14, %v5987_v29  ;;  %v6016_v47 = vadd.f32 %v6015_v40, %v6014_v24 }
 0xd6c   :  { %v5964_v56 = vadd.f32 %v5948_v49, %v5932_v27  ;;  %v5963_v9 = vadd.f32 %v5947_v35, %v5931_v43  ;;  %v11755_v50 = vadd.f32 %v5774_v5, %v5670_v12  ;;  %v11757_v13 = vadd.f32 %v5772_v3, %v5669_v16 }
 0xd6d   :  { %v6032_v19 = vadd.f32 %v6031_v41, %v6030_v15  ;;  %v5999_v48 = vrot.slane %v5998_v26, 1  ;;  %v6008_v52 = vrot.slane %v6007_v10, 1  ;;  %v6025_v15 = vadd.f32 %v6024_v45, %v6023_v31 }
 0xd6e   :  { %v5980_v17 = vmul.f32 %v5964_v56, %v9617_v39  ;;  %v5979_v61 = vmul.f32 %v5963_v9, %v9619_v63  ;;  %13048 = vst [vmem:[#allocation35_spill] sm:$0xff] %v11755_v50  ;;  %13049 = vst [vmem:[#allocation34_spill] sm:$0xff] %v11757_v13  ;;  %v5934_v35 = vmul.f32 %v11755_v50, %v11755_v50  ;;  %v5990_v16 = vrot.slane %v5989_v7, 1 }
 0xd6f   :  { %v6033_v27 = vrot.slane %v6032_v19, 2  ;;  %v5886_v43 = vpop.permute.xlu1 %5885  ;;  %v5884_v49 = vpop.permute.xlu0 %5883  ;;  %v5933_v29 = vmul.f32 %v11757_v13, %v11757_v13  ;;  %v6000_v31 = vadd.f32 %v5999_v48, %v5998_v26  ;;  %v6009_v56 = vadd.f32 %v6008_v52, %v6007_v10 }
 0xd70   :  { %v6038_v4 = vsel %vm973_vm4, %v5980_v17, 0.0  ;;  %v6037_v33 = vsel %vm971_vm3, %v5979_v61, 0.0  ;;  %v11761_v2 = vadd.f32 %v5886_v43, %v5822_v51  ;;  %v11763_v32 = vadd.f32 %v5884_v49, %v5821_v28 }
 0xd71   :  { %v6039_v12 = vadd.f32 %v6038_v4, %v6037_v33  ;;  %v6017_v61 = vrot.slane %v6016_v47, 1  ;;  %v6034_v14 = vadd.f32 %v6033_v27, %v6032_v19  ;;  %v6026_v9 = vrot.slane %v6025_v15, 1  ;;  %v13052_v27 = vld [vmem:[#allocation38_spill] sm:$0xff] }
 0xd72   :  { %13050 = vst [vmem:[#allocation39_spill] sm:$0xff] %v11761_v2  ;;  %13051 = vst [vmem:[#allocation41_spill] sm:$0xff] %v11763_v32  ;;  %v5950_v24 = vmul.f32 %v11761_v2, %v11761_v2  ;;  %v5949_v17 = vmul.f32 %v11763_v32, %v11763_v32  ;;  %v5991_v19 = vadd.f32 %v5990_v16, %v5989_v7 }
 0xd73   :  { %v6040_v40 = vrot.slane %v6039_v12, 4  ;;  %v6018_v60 = vadd.f32 %v6017_v61, %v6016_v47  ;;  %v6035_v28 = vrot.slane %v6034_v14, 1  ;;  %v6056_v4 = vadd.f32 %v6000_v31, %v13052_v27 }
 0xd74   :  { %v5966_v41 = vadd.f32 %v5950_v24, %v5934_v35  ;;  %v5965_v5 = vadd.f32 %v5949_v17, %v5933_v29  ;;  %v6057_v26 = vadd.f32 %v6009_v56, %v13052_v27  ;;  %v6027_v10 = vadd.f32 %v6026_v9, %v6025_v15  ;;  %v13053_v9 = vld [vmem:[#allocation26_spill] sm:$0xff] }
 0xd75   :  { %v6041_v3 = vadd.f32 %v6040_v40, %v6039_v12  ;;  %v6058_v48 = vadd.f32 %v6018_v60, %v13052_v27  ;;  %v6036_v52 = vadd.f32 %v6035_v28, %v6034_v14  ;;  %v6055_v47 = vadd.f32 %v5991_v19, %v13052_v27 }
 0xd76   :  { %v5982_v1 = vmul.f32 %v5966_v41, %v9617_v39  ;;  %v5981_v51 = vmul.f32 %v5965_v5, %v9619_v63  ;;  %8938 = vtanh.f32 %v6056_v4  ;;  %v6059_v7 = vadd.f32 %v6027_v10, %v13052_v27 }
 0xd77   :  { %v6042_v45 = vrot.slane %v6041_v3, 2  ;;  %8940 = vtanh.f32 %v6057_v26  ;;  %v6060_v61 = vadd.f32 %v6036_v52, %v13052_v27 }
 0xd78   :  { %v6047_v43 = vsel %vm973_vm4, %v5982_v1, 0.0  ;;  %v6046_v49 = vsel %vm971_vm3, %v5981_v51, 0.0  ;;  %8942 = vtanh.f32 %v6058_v48  ;;  %v5396_v1 = vmul.f32 0.16666667, %v13053_v9  ;;  %v13059_v9 = vld [vmem:[#allocation3_spill] sm:$0xff] }
 0xd79   :  { %v6043_v33 = vadd.f32 %v6042_v45, %v6041_v3  ;;  %v6048_v35 = vadd.f32 %v6047_v43, %v6046_v49  ;;  %8944 = vtanh.f32 %v6055_v47 }
 0xd7a   :  { %8946 = vtanh.f32 %v6059_v7  ;;  %v5397_v19 = vadd.f32 0.5, %v5396_v1  ;;  %v13060_v1 = vld [vmem:[#allocation5_spill] sm:$0xff] }
 0xd7b   :  { %v6044_v12 = vrot.slane %v6043_v33, 1  ;;  %v6049_v29 = vrot.slane %v6048_v35, 4  ;;  %8948 = vtanh.f32 %v6060_v61 }
 0xd7c   :  { %v5398_v48 = vmax.f32 %v5397_v19, 0.0  ;;  %v13067_v19 = vld [vmem:[#allocation13_spill] sm:$0xff] }
 0xd7d   :  { %v6045_v24 = vadd.f32 %v6044_v12, %v6043_v33  ;;  %v6050_v17 = vadd.f32 %v6049_v29, %v6048_v35 }
 0xd7e   :  { %v5399_v7 = vmin.f32 %v5398_v48, 1.0 }
 0xd7f   :  { %v6051_v40 = vrot.slane %v6050_v17, 2  ;;  %v6061_v41 = vadd.f32 %v6045_v24, %v13052_v27 }
 0xd80   :  { %v8939_v16 = vpop.eup %8938 }
 0xd81   :  { %v6052_v15 = vadd.f32 %v6051_v40, %v6050_v17  ;;  %8950 = vtanh.f32 %v6061_v41  ;;  %v8941_v3 = vpop.eup %8940  ;;  %v6079_v51 = vrot.slane %v8939_v16, 7  ;;  %v8255_v16 = vld [vmem:[%s12541_s0 + $0x30] sm:$0xff] }
 0xd82   :  { %v8943_v56 = vpop.eup %8942  ;;  %v6081_v28 = vrot.slane %v8941_v3, 6  ;;  %v13057_v3 = vld [vmem:[#allocation4_spill] sm:$0xff] }
 0xd83   :  { %v6053_v14 = vrot.slane %v6052_v15, 1  ;;  %v8945_v60 = vpop.eup %8944  ;;  %v6083_v43 = vrot.slane %v8943_v56, 5  ;;  %v13058_v56 = vmov 0.0|0.0  }
 0xd84   :  { %v8947_v45 = vpop.eup %8946  ;;  %v6080_v33 = vsel %vm1078_vm5, %v6079_v51, %v8945_v60  ;;  %v13061_v51 = vld [vmem:[#allocation6_spill] sm:$0xff]  ;;  %v13062_v60 = vld [vmem:[#allocation7_spill] sm:$0xff] }
 0xd85   :  { %v6054_v5 = vadd.f32 %v6053_v14, %v6052_v15  ;;  %v8949_v49 = vpop.eup %8948  ;;  %v6082_v35 = vsel %vm1081_vm6, %v6081_v28, %v6080_v33  ;;  %v6085_v52 = vrot.slane %v8947_v45, 4  ;;  %v13054_v14 = vld [vmem:[#allocation46_spill] sm:$0xff]  ;;  %v13063_v28 = vld [vmem:[#allocation8_spill] sm:$0xff] }
 0xd86   :  { %v6084_v26 = vsel %vm1084_vm7, %v6083_v43, %v6082_v35  ;;  %v6087_v10 = vrot.slane %v8949_v49, 3  ;;  %v13064_v45 = vld [vmem:[#allocation10_spill] sm:$0xff]  ;;  %v13065_v43 = vld [vmem:[#allocation9_spill] sm:$0xff]  ;;  %v13066_v49 = vld [vmem:[#allocation11_spill] sm:$0xff] }
 0xd87   :  { %v6062_v31 = vadd.f32 %v6054_v5, %v13052_v27  ;;  %v6086_v47 = vsel %vm1087_vm8, %v6085_v52, %v6084_v26  ;;  %v13055_v5 = vmov 0.0   ;;  %v13069_v33 = vld [vmem:[#allocation14_spill] sm:$0xff]  ;;  %v13070_v35 = vld [vmem:[#allocation33_spill] sm:$0xff] }
 0xd88   :  { %v6088_v24 = vsel %vm1090_vm9, %v6087_v10, %v6086_v47 }
 0xd89   :  { %8952 = vtanh.f32 %v6062_v31  ;;  %v13056_v31 = vld [vmem:[#allocation31_spill] sm:$0xff] }
 0xd8b   :  { %v8951_v4 = vpop.eup %8950 }
 0xd8c   :  { %v6089_v12 = vrot.slane %v8951_v4, 2  ;;  %v13068_v4 = vld [vmem:[#allocation12_spill] sm:$0xff] }
 0xd8e   :  { %v6090_v61 = vsel %vm1093_vm10, %v6089_v12, %v6088_v24 }
 0xd93   :  { %v8953_v29 = vpop.eup %8952 }
 0xd94   :  { %v6091_v17 = vrot.slane %v8953_v29, 1  ;;  %v13071_v29 = vld [vmem:[#allocation19_spill] sm:$0xff] }
 0xd96   :  { %v6092_v40 = vsel %vm1096_vm11, %v6091_v17, %v6090_v61 }
 0xd97   :  { %v6094_v41 = vmul.f32 %v6092_v40, %v5399_v7  ;;  %v13072_v7 = vld [vmem:[#allocation16_spill] sm:$0xff] }
 0xd99   :  { %6098 = vrot.lane.b32.xlu0 %v6094_v41, %s9005_s17  ;;  %v13073_v41 = vld [vmem:[#allocation18_spill] sm:$0xff] }
 0xe0b   :  { %v6099_v15 = vpop.permute.xlu0 %6098 }
 0xe0c   :  { %8256 = vmatmul.mubr.msk.f32.vlgmr.msra.gmra.mrb[12].mxu0 %vm69_vm12, %v6099_v15  ;;  %8539 = vmatmul.mubr.msk.f32.vlgmr.msra.gmra.mrb[28].mxu1 %vm69_vm12, %v6099_v15 }
 0xe0d   :  { %8542 = vmatpush3.msk.msra.mxu1 %vm218_vm1, %v13054_v14  ;;  %8543 = vmatprep.mubr.msk.f32.mxu1 %vm9002_vm0, %v13055_v5 }
 0xe0e   :  { %8259 = vmatpush1.msk.msra.mxu0 %vm218_vm1, %v13056_v31  ;;  %6310 = vmatprep.mubr.f32.mxu0 %v13055_v5 }
 0xe0f   :  { %8786 = vmatprep.subr.bf16.mxu0 %v13057_v3  ;;  %8801 = vmatprep.subr.bf16.mxu1 %v13058_v56 }
 0xe10   :  { %8544 = vmatmul.mubr.msk.f32.vlgmr.msra.gmra.mrb[30].mxu1 %vm214_vm2, %v8255_v16 }
 0xe11   :  { %8803 = vmatpush3.bf16.msra.mxu1 %v13059_v9  ;;  %8562 = vmatprep.mubr.msk.f32.mxu1 %vm9002_vm0, %v13055_v5 }
 0xe12   :  { %8804 = vmatprep.subr.bf16.mxu1 %v13058_v56 }
 0xe14   :  { %8260 = vmatmul.mubr.msk.f32.vlgmr.msra.gmra.mrb[12].mxu0 %vm214_vm2, %v8255_v16 }
 0xe15   :  { %8788 = vmatpush1.bf16.msra.mxu0 %v13060_v1  ;;  %8806 = vmatpush3.bf16.msra.mxu1 %v13061_v51  ;;  %v13075_v51 = vld [vmem:[#allocation15_spill] sm:$0xff] }
 0xe16   :  { %8790 = vmatprep.subr.bf16.mxu0 %v13062_v60  ;;  %8807 = vmatprep.subr.bf16.mxu1 %v13058_v56 }
 0xe17   :  { %7165 = vmatprep.mubr.f32.mxu0 %v13055_v5 }
 0xe19   :  { %8792 = vmatpush1.bf16.msra.mxu0 %v13063_v28  ;;  %8809 = vmatpush3.bf16.msra.mxu1 %v13064_v45  ;;  %v13076_v45 = vld [vmem:[#allocation17_spill] sm:$0xff] }
 0xe1a   :  { %8794 = vmatprep.subr.bf16.mxu0 %v13065_v43  ;;  %8810 = vmatprep.subr.bf16.mxu1 %v13058_v56 }
 0xe1d   :  { %8796 = vmatpush1.bf16.msra.mxu0 %v13066_v49  ;;  %8812 = vmatpush3.bf16.msra.mxu1 %v13067_v19 }
 0xe1e   :  { %8798 = vmatprep.subr.bf16.mxu0 %v13068_v4  ;;  %8565 = vmatprep.subr.mxu1 %v13055_v5 }
 0xe21   :  { %8800 = vmatpush1.bf16.msra.mxu0 %v13069_v33  ;;  %v13077_v33 = vld [vmem:[#allocation20_spill] sm:$0xff] }
 0xe22   :  { %8270 = vmatprep.subr.msk.mxu0 %vm218_vm1, %v13070_v35 }
 0xedf   :  { %v6239_v26 = vpop.f32.mrb[28].mxu1 }
 0xee0   :  { %v8540_v10 = vpop.f32.mrb[29].mxu1 }
 0xee3   :  { %v6383_v48 = vpop.f32.mrb[30].mxu1 }
 0xee4   :  { %v6384_v52 = vadd.f32 %v6383_v48, %v6239_v26  ;;  %v8545_v12 = vpop.f32.mrb[31].mxu1  ;;  %v13078_v26 = vld [vmem:[#allocation21_spill] sm:$0xff] }
 0xee6   :  { %v6389_v47 = vadd.f32 %v6384_v52, %v13071_v29  ;;  %v13079_v52 = vld [vmem:[#allocation22_spill] sm:$0xff] }
 0xee7   :  { %v6312_v24 = vpop.f32.mrb[12].mxu0 }
 0xee8   :  { %v6399_v17 = vmul.f32 0.16666667, %v6389_v47  ;;  %v6387_v61 = vadd.f32 %v6312_v24, %v13072_v7  ;;  %v6314_v40 = vpop.f32.mrb[13].mxu0  ;;  %v13080_v47 = vld [vmem:[#allocation24_spill] sm:$0xff] }
 0xee9   :  { %v11833_v15 = vadd.f32 %v6314_v40, %v13073_v41  ;;  %v13081_v40 = vld [vmem:[#allocation25_spill] sm:$0xff] }
 0xeea   :  { %v6400_v14 = vadd.f32 0.5, %v6399_v17  ;;  %v6390_v16 = vmul.f32 0.16666667, %v6387_v61 }
 0xeeb   :  { %13074 = vst [vmem:[#allocation30_spill] sm:$0xff] %v11833_v15  ;;  %8954 = vtanh.f32 %v11833_v15 }
 0xeec   :  { %v6401_v31 = vmax.f32 %v6400_v14, 0.0  ;;  %v6391_v3 = vadd.f32 0.5, %v6390_v16 }
 0xeee   :  { %v6402_v9 = vmin.f32 %v6401_v31, 1.0  ;;  %v6392_v1 = vmax.f32 %v6391_v3, 0.0  ;;  %v11853_v31 = vld [vmem:[%s12543_s8 + $0x68] sm:$0x3]  ;;  %v11858_v3 = vld [vmem:[%s12543_s8 + $0x60] sm:$0xff] }
 0xef0   :  { %v6418_v60 = vrot.slane %v6402_v9, %v13075_v51  ;;  %v11837_v28 = vmin.f32 %v6392_v1, 1.0  ;;  %v6429_v43 = vrot.slane %v6402_v9, %v13076_v45  ;;  %v6407_v4 = vrot.slane %v6402_v9, %v9220_v44 }
 0xef1   :  { %v6440_v35 = vrot.slane %v6402_v9, %v13077_v33  ;;  %v6451_v10 = vrot.slane %v6402_v9, %v13078_v26  ;;  %v6462_v12 = vrot.slane %v6402_v9, %v13079_v52  ;;  %v6473_v24 = vrot.slane %v6402_v9, %v13080_v47 }
 0xef2   :  { %6424 = vbcast.lane.b32.xlu0 %v6418_v60, 264  ;;  %6420 = vbcast.lane.b32.xlu1 %v6418_v60, 256  ;;  %v6484_v14 = vrot.slane %v6402_v9, %v13081_v40 }
 0xef5   :  { %v8955_v49 = vpop.eup %8954 }
 0xef6   :  { %v6403_v19 = vmul.f32 %v8955_v49, %v11837_v28  ;;  %6435 = vbcast.lane.b32.xlu0 %v6429_v43, 264  ;;  %6431 = vbcast.lane.b32.xlu1 %v6429_v43, 256  ;;  %v11866_v43 = vld [vmem:[%s12544_s9 + $0x68] sm:$0x3]  ;;  %v11871_v49 = vld [vmem:[%s12544_s9 + $0x60] sm:$0xff] }
 0xef8   :  { %v6612_v48 = vrot.slane %v6403_v19, %v12772_v11 }
 0xefa   :  { %6413 = vbcast.lane.b32.xlu0 %v6407_v4, 264  ;;  %6409 = vbcast.lane.b32.xlu1 %v6407_v4, 256  ;;  %v6628_v17 = vrot.slane %v6612_v48, %v12772_v11  ;;  %v6620_v61 = vcombine.high %v6612_v48, %v6612_v48  ;;  %v6605_v48 = vcombine.high %v6403_v19, %v6403_v19 }
 0xefc   :  { %v6673_v16 = vrot.slane %v6628_v17, %v9220_v44  ;;  %v6642_v9 = vrot.slane %v6620_v61, %v12772_v11  ;;  %v6650_v61 = vcombine.high %v6628_v17, %v6628_v17 }
 0xefe   :  { %6446 = vbcast.lane.b32.xlu0 %v6440_v35, 264  ;;  %6442 = vbcast.lane.b32.xlu1 %v6440_v35, 256  ;;  %v6711_v1 = vmul.f32 %v11853_v31, %v6673_v16  ;;  %v6710_v60 = vmul.f32 %v11858_v3, %v6673_v16  ;;  %v6823_v4 = vmul.f32 %v11866_v43, %v6673_v16 }
 0xeff   :  { %v6822_v35 = vmul.f32 %v11871_v49, %v6673_v16 }
 0xf02   :  { %6457 = vbcast.lane.b32.xlu0 %v6451_v10, 264  ;;  %6453 = vbcast.lane.b32.xlu1 %v6451_v10, 256  ;;  %v6677_v10 = vrot.slane %v6642_v9, %v9220_v44 }
 0xf04   :  { %v6825_v16 = vmul.f32 %v11866_v43, %v6677_v10 }
 0xf06   :  { %6468 = vbcast.lane.b32.xlu0 %v6462_v12, 264  ;;  %6464 = vbcast.lane.b32.xlu1 %v6462_v12, 256  ;;  %v6713_v12 = vmul.f32 %v11853_v31, %v6677_v10 }
 0xf0a   :  { %6479 = vbcast.lane.b32.xlu0 %v6473_v24, 264  ;;  %6475 = vbcast.lane.b32.xlu1 %v6473_v24, 256  ;;  %v6712_v24 = vmul.f32 %v11858_v3, %v6677_v10 }
 0xf0e   :  { %6490 = vbcast.lane.b32.xlu0 %v6484_v14, 264  ;;  %6486 = vbcast.lane.b32.xlu1 %v6484_v14, 256  ;;  %v6619_v14 = vrot.slane %v6605_v48, %v12772_v11 }
 0xf12   :  { %6744 = vrot.lane.b32.xlu0 %v6711_v1, %s9005_s17  ;;  %6742 = vrot.lane.b32.xlu1 %v6710_v60, %s9005_s17  ;;  %v6824_v1 = vmul.f32 %v11871_v49, %v6677_v10  ;;  %v6681_v60 = vrot.slane %v6650_v61, %v9220_v44  ;;  %v6652_v61 = vcombine.high %v6642_v9, %v6642_v9 }
 0xf14   :  { %v6715_v19 = vmul.f32 %v11853_v31, %v6681_v60  ;;  %v6714_v17 = vmul.f32 %v11858_v3, %v6681_v60  ;;  %v6826_v10 = vmul.f32 %v11871_v49, %v6681_v60 }
 0xf16   :  { %6856 = vrot.lane.b32.xlu0 %v6823_v4, %s9005_s17  ;;  %6854 = vrot.lane.b32.xlu1 %v6822_v35, %s9005_s17  ;;  %v6635_v4 = vrot.slane %v6619_v14, %v12772_v11  ;;  %v6827_v35 = vmul.f32 %v11866_v43, %v6681_v60  ;;  %v6685_v60 = vrot.slane %v6652_v61, %v9220_v44 }
 0xf18   :  { %v6689_v48 = vrot.slane %v6635_v4, %v9220_v44  ;;  %v6651_v61 = vcombine.high %v6635_v4, %v6635_v4 }
 0xf1a   :  { %6748 = vrot.lane.b32.xlu0 %v6713_v12, %s9005_s17  ;;  %6746 = vrot.lane.b32.xlu1 %v6712_v24, %s9005_s17  ;;  %v6719_v12 = vmul.f32 %v11853_v31, %v6689_v48  ;;  %v6718_v24 = vmul.f32 %v11858_v3, %v6689_v48 }
 0xf1e   :  { %6860 = vrot.lane.b32.xlu0 %v6825_v16, %s9005_s17  ;;  %6858 = vrot.lane.b32.xlu1 %v6824_v1, %s9005_s17  ;;  %v6831_v16 = vmul.f32 %v11866_v43, %v6689_v48  ;;  %v6830_v1 = vmul.f32 %v11871_v49, %v6689_v48  ;;  %v6828_v48 = vmul.f32 %v11871_v49, %v6685_v60 }
 0xf22   :  { %6752 = vrot.lane.b32.xlu0 %v6715_v19, %s9005_s17  ;;  %6750 = vrot.lane.b32.xlu1 %v6714_v17, %s9005_s17  ;;  %v6621_v19 = vcombine.high %v6619_v14, %v6619_v14  ;;  %v6717_v17 = vmul.f32 %v11853_v31, %v6685_v60 }
 0xf24   :  { %v6649_v9 = vrot.slane %v6621_v19, %v12772_v11 }
 0xf26   :  { %6864 = vrot.lane.b32.xlu0 %v6827_v35, %s9005_s17  ;;  %6862 = vrot.lane.b32.xlu1 %v6826_v10, %s9005_s17  ;;  %v6716_v35 = vmul.f32 %v11858_v3, %v6685_v60  ;;  %v6829_v10 = vmul.f32 %v11866_v43, %v6685_v60  ;;  %v6693_v14 = vrot.slane %v6649_v9, %v9220_v44 }
 0xf27   :  { %v6697_v60 = vrot.slane %v6651_v61, %v9220_v44  ;;  %v6500_v61 = vrot.slane %v11837_v28, %v12772_v11 }
 0xf29   :  { %v6723_v19 = vmul.f32 %v11853_v31, %v6697_v60  ;;  %v6835_v4 = vmul.f32 %v11866_v43, %v6697_v60 }
 0xf2a   :  { %6760 = vrot.lane.b32.xlu0 %v6719_v12, %s9005_s17  ;;  %6758 = vrot.lane.b32.xlu1 %v6718_v24, %s9005_s17  ;;  %v6721_v12 = vmul.f32 %v11853_v31, %v6693_v14  ;;  %v6720_v24 = vmul.f32 %v11858_v3, %v6693_v14 }
 0xf2e   :  { %6872 = vrot.lane.b32.xlu0 %v6831_v16, %s9005_s17  ;;  %6870 = vrot.lane.b32.xlu1 %v6830_v1, %s9005_s17  ;;  %v6833_v16 = vmul.f32 %v11866_v43, %v6693_v14  ;;  %v6832_v1 = vmul.f32 %v11871_v49, %v6693_v14 }
 0xf32   :  { %6756 = vrot.lane.b32.xlu0 %v6717_v17, %s9005_s17  ;;  %6754 = vrot.lane.b32.xlu1 %v6716_v35, %s9005_s17  ;;  %v6722_v17 = vmul.f32 %v11858_v3, %v6697_v60  ;;  %v6653_v35 = vcombine.high %v6649_v9, %v6649_v9 }
 0xf36   :  { %6868 = vrot.lane.b32.xlu0 %v6829_v10, %s9005_s17  ;;  %6866 = vrot.lane.b32.xlu1 %v6828_v48, %s9005_s17  ;;  %v6834_v10 = vmul.f32 %v11871_v49, %v6697_v60  ;;  %v6701_v48 = vrot.slane %v6653_v35, %v9220_v44 }
 0xf38   :  { %v6725_v14 = vmul.f32 %v11853_v31, %v6701_v48  ;;  %v6837_v9 = vmul.f32 %v11866_v43, %v6701_v48 }
 0xf3a   :  { %6764 = vrot.lane.b32.xlu0 %v6721_v12, %s9005_s17  ;;  %6762 = vrot.lane.b32.xlu1 %v6720_v24, %s9005_s17  ;;  %v6724_v12 = vmul.f32 %v11858_v3, %v6701_v48  ;;  %v6836_v24 = vmul.f32 %v11871_v49, %v6701_v48  ;;  %v6516_v3 = vrot.slane %v6500_v61, %v12772_v11 }
 0xf3b   :  { %v6493_v49 = vcombine.high %v11837_v28, %v11837_v28 }
 0xf3c   :  { %v6538_v60 = vcombine.high %v6516_v3, %v6516_v3 }
 0xf3e   :  { %6876 = vrot.lane.b32.xlu0 %v6833_v16, %s9005_s17  ;;  %6874 = vrot.lane.b32.xlu1 %v6832_v1, %s9005_s17  ;;  %v6508_v16 = vcombine.high %v6500_v61, %v6500_v61  ;;  %v6507_v61 = vrot.slane %v6493_v49, %v12772_v11 }
 0xf40   :  { %v6530_v31 = vrot.slane %v6508_v16, %v12772_v11  ;;  %v6509_v28 = vcombine.high %v6507_v61, %v6507_v61 }
 0xf42   :  { %6768 = vrot.lane.b32.xlu0 %v6723_v19, %s9005_s17  ;;  %6766 = vrot.lane.b32.xlu1 %v6722_v17, %s9005_s17  ;;  %v6549_v1 = vrot.slane %v6530_v31, %v9220_v44 }
 0xf46   :  { %6880 = vrot.lane.b32.xlu0 %v6835_v4, %s9005_s17  ;;  %6878 = vrot.lane.b32.xlu1 %v6834_v10, %s9005_s17  ;;  %v6553_v4 = vrot.slane %v6538_v60, %v9220_v44 }
 0xf4a   :  { %6772 = vrot.lane.b32.xlu0 %v6725_v14, %s9005_s17  ;;  %6770 = vrot.lane.b32.xlu1 %v6724_v12, %s9005_s17 }
 0xf4e   :  { %6884 = vrot.lane.b32.xlu0 %v6837_v9, %s9005_s17  ;;  %6882 = vrot.lane.b32.xlu1 %v6836_v24, %s9005_s17  ;;  %v6545_v9 = vrot.slane %v6516_v3, %v9220_v44  ;;  %v6540_v24 = vcombine.high %v6530_v31, %v6530_v31  ;;  %v11966_v3 = vrot.slane %v6509_v28, %v12772_v11 }
 0xf64   :  { %v6425_v19 = vpop.permute.xlu0 %6424  ;;  %v6421_v17 = vpop.permute.xlu1 %6420 }
 0xf65   :  { %v6585_v43 = vmul.f32 %v6549_v1, %v6425_v19  ;;  %v6584_v35 = vmul.f32 %v6549_v1, %v6421_v17  ;;  %v6557_v1 = vrot.slane %v6540_v24, %v9220_v44  ;;  %v11957_v19 = vrot.slane %v6507_v61, %v12772_v11 }
 0xf67   :  { %v6561_v31 = vrot.slane %v11957_v19, %v9220_v44  ;;  %v6809_v56 = vmul.f32 %v6585_v43, %v11583_v36  ;;  %v6808_v5 = vmul.f32 %v6584_v35, %v11585_v6 }
 0xf68   :  { %v6436_v10 = vpop.permute.xlu0 %6435  ;;  %v6432_v48 = vpop.permute.xlu1 %6431 }
 0xf69   :  { %v6587_v14 = vmul.f32 %v6553_v4, %v6436_v10  ;;  %v6586_v12 = vmul.f32 %v6553_v4, %v6432_v48 }
 0xf6b   :  { %v6659_v15 = vmul.f32 %v6587_v14, %v11599_v25  ;;  %v6658_v27 = vmul.f32 %v6586_v12, %v11601_v54  ;;  %v6811_v32 = vmul.f32 %v6587_v14, %v11587_v59  ;;  %v6810_v13 = vmul.f32 %v6586_v12, %v11589_v22 }
 0xf6c   :  { %v6414_v16 = vpop.permute.xlu0 %6413  ;;  %v6410_v40 = vpop.permute.xlu1 %6409 }
 0xf6d   :  { %v6583_v47 = vmul.f32 %v6545_v9, %v6414_v16  ;;  %v6582_v52 = vmul.f32 %v6545_v9, %v6410_v40  ;;  %v6565_v9 = vrot.slane %v11966_v3, %v9220_v44 }
 0xf6f   :  { %v6655_v36 = vmul.f32 %v6583_v47, %v11612_v58  ;;  %v6654_v6 = vmul.f32 %v6582_v52, %v11615_v57 }
 0xf70   :  { %v6447_v60 = vpop.permute.xlu0 %6446  ;;  %v6443_v17 = vpop.permute.xlu1 %6442 }
 0xf71   :  { %v11959_v26 = vmul.f32 %v6557_v1, %v6447_v60  ;;  %v11961_v4 = vmul.f32 %v6557_v1, %v6443_v17 }
 0xf74   :  { %v6458_v49 = vpop.permute.xlu0 %6457  ;;  %v6454_v40 = vpop.permute.xlu1 %6453 }
 0xf75   :  { %v6591_v10 = vmul.f32 %v6561_v31, %v6458_v49  ;;  %v6590_v48 = vmul.f32 %v6561_v31, %v6454_v40 }
 0xf77   :  { %v6663_v58 = vmul.f32 %v6591_v10, %v11633_v34  ;;  %v6662_v57 = vmul.f32 %v6590_v48, %v11635_v20 }
 0xf78   :  { %v6469_v24 = vpop.permute.xlu0 %6468  ;;  %v6465_v61 = vpop.permute.xlu1 %6464 }
 0xf79   :  { %v11970_v16 = vmul.f32 %v6565_v9, %v6469_v24  ;;  %v11972_v60 = vmul.f32 %v6565_v9, %v6465_v61  ;;  %v6657_v9 = vmul.f32 %v6585_v43, %v11595_v53  ;;  %v6656_v61 = vmul.f32 %v6584_v35, %v11597_v0 }
 0xf7a   :  { %v6806_v53 = vmul.f32 %v6582_v52, %v11593_v42 }
 0xf7c   :  { %v11974_v1 = vpop.permute.xlu0 %6479  ;;  %v11976_v17 = vpop.permute.xlu1 %6475 }
 0xf80   :  { %v11978_v33 = vpop.permute.xlu0 %6490  ;;  %v11980_v28 = vpop.permute.xlu1 %6486 }
 0xf81   :  { %13082 = vst [vmem:[#allocation37_spill] sm:$0xff] %v11978_v33  ;;  %13083 = vst [vmem:[#allocation36_spill] sm:$0xff] %v11980_v28  ;;  %v6807_v28 = vmul.f32 %v6583_v47, %v11591_v21 }
 0xf84   :  { %v6745_v11 = vpop.permute.xlu0 %6744  ;;  %v6743_v49 = vpop.permute.xlu1 %6742 }
 0xf88   :  { %v6857_v31 = vpop.permute.xlu0 %6856  ;;  %v6855_v40 = vpop.permute.xlu1 %6854 }
 0xf89   :  { %v12002_v59 = vadd.f32 %v6857_v31, %v6807_v28  ;;  %v12004_v22 = vadd.f32 %v6855_v40, %v6806_v53 }
 0xf8c   :  { %v6749_v45 = vpop.permute.xlu0 %6748  ;;  %v6747_v51 = vpop.permute.xlu1 %6746 }
 0xf8d   :  { %v12006_v43 = vadd.f32 %v6749_v45, %v6657_v9  ;;  %v12008_v21 = vadd.f32 %v6747_v51, %v6656_v61 }
 0xf90   :  { %v6861_v41 = vpop.permute.xlu0 %6860  ;;  %v6859_v7 = vpop.permute.xlu1 %6858 }
 0xf91   :  { %v11992_v33 = vadd.f32 %v6861_v41, %v6809_v56  ;;  %v11994_v0 = vadd.f32 %v6859_v7, %v6808_v5  ;;  %v6814_v7 = vmul.f32 %v6590_v48, %v11639_v18  ;;  %v12022_v41 = vadd.f32 %v6745_v11, %v6655_v36 }
 0xf92   :  { %v6920_v11 = vmul.f32 %v12008_v21, %v12008_v21 }
 0xf93   :  { %v6919_v28 = vmul.f32 %v12022_v41, %v12022_v41 }
 0xf94   :  { %v6753_v24 = vpop.permute.xlu0 %6752  ;;  %v6751_v29 = vpop.permute.xlu1 %6750 }
 0xf95   :  { %v12010_v42 = vadd.f32 %v6753_v24, %v6659_v15  ;;  %v12012_v5 = vadd.f32 %v6751_v29, %v6658_v27  ;;  %v12024_v27 = vadd.f32 %v6743_v49, %v6654_v6  ;;  %v6935_v29 = vmul.f32 %v12002_v59, %v12002_v59 }
 0xf96   :  { %v6934_v15 = vmul.f32 %v12004_v22, %v12004_v22  ;;  %v6539_v24 = vcombine.high %v11957_v19, %v11957_v19 }
 0xf97   :  { %v6923_v18 = vmul.f32 %v12010_v42, %v12010_v42  ;;  %v6922_v51 = vmul.f32 %v12012_v5, %v12012_v5  ;;  %v6918_v49 = vmul.f32 %v12024_v27, %v12024_v27  ;;  %v6951_v53 = vadd.f32 %v6935_v29, %v6919_v28 }
 0xf98   :  { %v6865_v2 = vpop.permute.xlu0 %6864  ;;  %v6863_v50 = vpop.permute.xlu1 %6862 }
 0xf99   :  { %v11998_v25 = vadd.f32 %v6865_v2, %v6811_v32  ;;  %v12000_v54 = vadd.f32 %v6863_v50, %v6810_v13  ;;  %v6937_v13 = vmul.f32 %v11992_v33, %v11992_v33  ;;  %v6936_v50 = vmul.f32 %v11994_v0, %v11994_v0 }
 0xf9a   :  { %v6815_v32 = vmul.f32 %v6591_v10, %v11637_v30  ;;  %v6921_v30 = vmul.f32 %v12006_v43, %v12006_v43  ;;  %v6950_v36 = vadd.f32 %v6934_v15, %v6918_v49 }
 0xf9b   :  { %v6939_v34 = vmul.f32 %v11998_v25, %v11998_v25  ;;  %v6938_v20 = vmul.f32 %v12000_v54, %v12000_v54  ;;  %v6952_v12 = vadd.f32 %v6936_v50, %v6920_v11  ;;  %v6660_v50 = vmul.f32 %v11961_v4, %v11664_v46 }
 0xf9c   :  { %v6761_v56 = vpop.permute.xlu0 %6760  ;;  %v6759_v2 = vpop.permute.xlu1 %6758  ;;  %v6953_v14 = vadd.f32 %v6937_v13, %v6921_v30  ;;  %v6661_v13 = vmul.f32 %v11959_v26, %v11662_v37  ;;  %v6813_v30 = vmul.f32 %v11959_v26, %v11676_v38  ;;  %v6812_v11 = vmul.f32 %v11961_v4, %v11678_v62 }
 0xf9d   :  { %v12042_v45 = vadd.f32 %v6761_v56, %v6663_v58  ;;  %v12044_v52 = vadd.f32 %v6759_v2, %v6662_v57  ;;  %v6955_v31 = vadd.f32 %v6939_v34, %v6923_v18  ;;  %v6954_v40 = vadd.f32 %v6938_v20, %v6922_v51 }
 0xf9e   :  { %v6969_v2 = vmul.f32 %v6953_v14, %v9617_v39  ;;  %v6968_v19 = vmul.f32 %v6952_v12, %v9619_v63  ;;  %v6569_v37 = vrot.slane %v6539_v24, %v9220_v44  ;;  %v6541_v46 = vcombine.high %v11966_v3, %v11966_v3 }
 0xf9f   :  { %v6927_v6 = vmul.f32 %v12042_v45, %v12042_v45  ;;  %v6926_v58 = vmul.f32 %v12044_v52, %v12044_v52  ;;  %v6967_v18 = vmul.f32 %v6951_v53, %v9617_v39  ;;  %v6966_v51 = vmul.f32 %v6950_v36, %v9619_v63 }
 0xfa0   :  { %v6873_v47 = vpop.permute.xlu0 %6872  ;;  %v6871_v35 = vpop.permute.xlu1 %6870  ;;  %v6992_v14 = vsel %vm973_vm4, %v6969_v2, 0.0  ;;  %v6991_v12 = vsel %vm971_vm3, %v6968_v19, 0.0  ;;  %v6664_v53 = vmul.f32 %v11972_v60, %v11704_v8 }
 0xfa1   :  { %v12046_v10 = vadd.f32 %v6873_v47, %v6815_v32  ;;  %v12048_v48 = vadd.f32 %v6871_v35, %v6814_v7  ;;  %v6971_v32 = vmul.f32 %v6955_v31, %v9617_v39  ;;  %v6970_v7 = vmul.f32 %v6954_v40, %v9619_v63 }
 0xfa2   :  { %v6982_v2 = vsel %vm971_vm3, %v6966_v51, 0.0 }
 0xfa3   :  { %v6943_v9 = vmul.f32 %v12046_v10, %v12046_v10  ;;  %v6942_v61 = vmul.f32 %v12048_v48, %v12048_v48  ;;  %v7001_v62 = vsel %vm973_vm4, %v6971_v32, 0.0  ;;  %v7000_v26 = vsel %vm971_vm3, %v6970_v7, 0.0 }
 0xfa4   :  { %v6757_v56 = vpop.permute.xlu0 %6756  ;;  %v6755_v57 = vpop.permute.xlu1 %6754  ;;  %v7002_v32 = vadd.f32 %v7001_v62, %v7000_v26 }
 0xfa5   :  { %v6959_v34 = vadd.f32 %v6943_v9, %v6927_v6  ;;  %v6958_v20 = vadd.f32 %v6942_v61, %v6926_v58  ;;  %v12072_v29 = vadd.f32 %v6757_v56, %v6661_v13  ;;  %v12074_v15 = vadd.f32 %v6755_v57, %v6660_v50  ;;  %v13084_v58 = vld [vmem:[#allocation45_spill] sm:$0xff] }
 0xfa6   :  { %v6665_v9 = vmul.f32 %v11970_v16, %v11702_v55  ;;  %v6817_v6 = vmul.f32 %v11970_v16, %v11711_v23  ;;  %v6816_v56 = vmul.f32 %v11972_v60, %v13084_v58  ;;  %v6983_v57 = vsel %vm973_vm4, %v6967_v18, 0.0 }
 0xfa7   :  { %v6975_v4 = vmul.f32 %v6959_v34, %v9617_v39  ;;  %v6974_v3 = vmul.f32 %v6958_v20, %v9619_v63  ;;  %v6925_v49 = vmul.f32 %v12072_v29, %v12072_v29  ;;  %v6924_v31 = vmul.f32 %v12074_v15, %v12074_v15 }
 0xfa8   :  { %v6869_v47 = vpop.permute.xlu0 %6868  ;;  %v6867_v35 = vpop.permute.xlu1 %6866  ;;  %v6993_v50 = vadd.f32 %v6992_v14, %v6991_v12  ;;  %v6595_v60 = vmul.f32 %v6569_v37, %v11974_v1  ;;  %v6594_v20 = vmul.f32 %v6569_v37, %v11976_v17  ;;  %v7003_v26 = vrot.slane %v7002_v32, 4 }
 0xfa9   :  { %v12087_v28 = vadd.f32 %v6869_v47, %v6813_v30  ;;  %v12089_v38 = vadd.f32 %v6867_v35, %v6812_v11  ;;  %v7019_v55 = vsel %vm973_vm4, %v6975_v4, 0.0  ;;  %v7018_v7 = vsel %vm971_vm3, %v6974_v3, 0.0 }
 0xfaa   :  { %v6573_v30 = vrot.slane %v6541_v46, %v9220_v44  ;;  %v6984_v11 = vadd.f32 %v6983_v57, %v6982_v2  ;;  %v6994_v62 = vrot.slane %v6993_v50, 4  ;;  %v7020_v4 = vadd.f32 %v7019_v55, %v7018_v7  ;;  %v13088_v2 = vld [vmem:[#allocation40_spill] sm:$0xff] }
 0xfab   :  { %v6941_v40 = vmul.f32 %v12087_v28, %v12087_v28  ;;  %v6940_v24 = vmul.f32 %v12089_v38, %v12089_v38  ;;  %v7004_v55 = vadd.f32 %v7003_v26, %v7002_v32 }
 0xfac   :  { %v6765_v61 = vpop.permute.xlu0 %6764  ;;  %v6763_v36 = vpop.permute.xlu1 %6762  ;;  %v7021_v7 = vrot.slane %v7020_v4, 4 }
 0xfad   :  { %v6957_v19 = vadd.f32 %v6941_v40, %v6925_v49  ;;  %v6956_v13 = vadd.f32 %v6940_v24, %v6924_v31  ;;  %v12117_v23 = vadd.f32 %v6765_v61, %v6665_v9  ;;  %v12119_v16 = vadd.f32 %v6763_v36, %v6664_v53  ;;  %v13085_v49 = vld [vmem:[#allocation37_spill] sm:$0xff]  ;;  %v13086_v9 = vld [vmem:[#allocation32_spill] sm:$0xff] }
 0xfae   :  { %v6597_v31 = vmul.f32 %v6573_v30, %v13085_v49  ;;  %v6985_v40 = vrot.slane %v6984_v11, 4  ;;  %v6667_v61 = vmul.f32 %v6595_v60, %v13086_v9  ;;  %v13092_v49 = vld [vmem:[#allocation36_spill] sm:$0xff] }
 0xfaf   :  { %v6973_v8 = vmul.f32 %v6957_v19, %v9617_v39  ;;  %v6972_v34 = vmul.f32 %v6956_v13, %v9619_v63  ;;  %v6929_v1 = vmul.f32 %v12117_v23, %v12117_v23  ;;  %v6928_v17 = vmul.f32 %v12119_v16, %v12119_v16 }
 0xfb0   :  { %v6877_v18 = vpop.permute.xlu0 %6876  ;;  %v6875_v51 = vpop.permute.xlu1 %6874  ;;  %v6819_v19 = vmul.f32 %v6595_v60, %v13088_v2  ;;  %v6995_v13 = vadd.f32 %v6994_v62, %v6993_v50  ;;  %v13093_v60 = vld [vmem:[#allocation35_spill] sm:$0xff]  ;;  %v13096_v2 = vld [vmem:[#allocation34_spill] sm:$0xff] }
 0xfb1   :  { %v7010_v47 = vsel %vm973_vm4, %v6973_v8, 0.0  ;;  %v7009_v35 = vsel %vm971_vm3, %v6972_v34, 0.0  ;;  %v12126_v14 = vadd.f32 %v6877_v18, %v6817_v6  ;;  %v12128_v12 = vadd.f32 %v6875_v51, %v6816_v56  ;;  %v13087_v56 = vld [vmem:[#allocation42_spill] sm:$0xff]  ;;  %v13089_v8 = vld [vmem:[#allocation27_spill] sm:$0xff] }
 0xfb2   :  { %v7011_v3 = vadd.f32 %v7010_v47, %v7009_v35  ;;  %v6666_v57 = vmul.f32 %v6594_v20, %v13087_v56  ;;  %v6818_v34 = vmul.f32 %v6594_v20, %v13089_v8  ;;  %v6669_v50 = vmul.f32 %v6597_v31, %v13093_v60 }
 0xfb3   :  { %v6945_v37 = vmul.f32 %v12126_v14, %v12126_v14  ;;  %v6944_v46 = vmul.f32 %v12128_v12, %v12128_v12 }
 0xfb4   :  { %v7012_v24 = vrot.slane %v7011_v3, 4  ;;  %v6769_v53 = vpop.permute.xlu0 %6768  ;;  %v6767_v36 = vpop.permute.xlu1 %6766 }
 0xfb5   :  { %v6961_v6 = vadd.f32 %v6945_v37, %v6929_v1  ;;  %v6960_v58 = vadd.f32 %v6944_v46, %v6928_v17  ;;  %v12145_v47 = vadd.f32 %v6769_v53, %v6667_v61  ;;  %v12147_v35 = vadd.f32 %v6767_v36, %v6666_v57 }
 0xfb6   :  { %v6596_v1 = vmul.f32 %v6573_v30, %v13092_v49  ;;  %v6986_v17 = vadd.f32 %v6985_v40, %v6984_v11  ;;  %v7013_v37 = vadd.f32 %v7012_v24, %v7011_v3  ;;  %v6996_v61 = vrot.slane %v6995_v13, 2 }
 0xfb7   :  { %v6977_v18 = vmul.f32 %v6961_v6, %v9617_v39  ;;  %v6976_v51 = vmul.f32 %v6960_v58, %v9619_v63  ;;  %13090 = vst [vmem:[#allocation43_spill] sm:$0xff] %v12145_v47  ;;  %13091 = vst [vmem:[#allocation44_spill] sm:$0xff] %v12147_v35  ;;  %v7005_v53 = vrot.slane %v7004_v55, 2  ;;  %v7022_v36 = vadd.f32 %v7021_v7, %v7020_v4 }
 0xfb8   :  { %v6881_v46 = vpop.permute.xlu0 %6880  ;;  %v6879_v9 = vpop.permute.xlu1 %6878  ;;  %v6931_v30 = vmul.f32 %v12145_v47, %v12145_v47  ;;  %v6930_v11 = vmul.f32 %v12147_v35, %v12147_v35  ;;  %v6987_v24 = vrot.slane %v6986_v17, 2  ;;  %v7014_v58 = vrot.slane %v7013_v37, 2 }
 0xfb9   :  { %v7028_v32 = vsel %vm973_vm4, %v6977_v18, 0.0  ;;  %v7027_v20 = vsel %vm971_vm3, %v6976_v51, 0.0  ;;  %v12153_v62 = vadd.f32 %v6881_v46, %v6819_v19  ;;  %v12155_v26 = vadd.f32 %v6879_v9, %v6818_v34  ;;  %v13097_v34 = vld [vmem:[#allocation39_spill] sm:$0xff]  ;;  %v13098_v51 = vld [vmem:[#allocation41_spill] sm:$0xff] }
 0xfba   :  { %v7029_v6 = vadd.f32 %v7028_v32, %v7027_v20  ;;  %v6668_v19 = vmul.f32 %v6596_v1, %v13096_v2  ;;  %v6821_v18 = vmul.f32 %v6597_v31, %v13097_v34  ;;  %v6820_v49 = vmul.f32 %v6596_v1, %v13098_v51 }
 0xfbb   :  { %13094 = vst [vmem:[#allocation28_spill] sm:$0xff] %v12153_v62  ;;  %13095 = vst [vmem:[#allocation29_spill] sm:$0xff] %v12155_v26  ;;  %v6947_v3 = vmul.f32 %v12153_v62, %v12153_v62  ;;  %v6946_v40 = vmul.f32 %v12155_v26, %v12155_v26  ;;  %v6997_v46 = vadd.f32 %v6996_v61, %v6995_v13  ;;  %v7023_v60 = vrot.slane %v7022_v36, 2 }
 0xfbc   :  { %v7030_v56 = vrot.slane %v7029_v6, 4  ;;  %v6773_v57 = vpop.permute.xlu0 %6772  ;;  %v6771_v4 = vpop.permute.xlu1 %6770  ;;  %v7006_v9 = vadd.f32 %v7005_v53, %v7004_v55  ;;  %v6988_v2 = vadd.f32 %v6987_v24, %v6986_v17  ;;  %v7015_v47 = vadd.f32 %v7014_v58, %v7013_v37 }
 0xfbd   :  { %v6963_v7 = vadd.f32 %v6947_v3, %v6931_v30  ;;  %v6962_v8 = vadd.f32 %v6946_v40, %v6930_v11  ;;  %v12170_v62 = vadd.f32 %v6773_v57, %v6669_v50  ;;  %v12172_v35 = vadd.f32 %v6771_v4, %v6668_v19 }
 0xfbe   :  { %v7031_v32 = vadd.f32 %v7030_v56, %v7029_v6  ;;  %v6998_v61 = vrot.slane %v6997_v46, 1  ;;  %v7007_v53 = vrot.slane %v7006_v9, 1  ;;  %v7024_v6 = vadd.f32 %v7023_v60, %v7022_v36 }
 0xfbf   :  { %v6979_v20 = vmul.f32 %v6963_v7, %v9617_v39  ;;  %v6978_v26 = vmul.f32 %v6962_v8, %v9619_v63  ;;  %13099 = vst [vmem:[#allocation26_spill] sm:$0xff] %v12170_v62  ;;  %13100 = vst [vmem:[#allocation46_spill] sm:$0xff] %v12172_v35  ;;  %v6933_v40 = vmul.f32 %v12170_v62, %v12170_v62  ;;  %v7016_v24 = vrot.slane %v7015_v47, 1 }
 0xfc0   :  { %v7032_v30 = vrot.slane %v7031_v32, 2  ;;  %v6885_v11 = vpop.permute.xlu0 %6884  ;;  %v6883_v3 = vpop.permute.xlu1 %6882  ;;  %v6932_v17 = vmul.f32 %v12172_v35, %v12172_v35  ;;  %v6989_v4 = vrot.slane %v6988_v2, 1  ;;  %v6999_v36 = vadd.f32 %v6998_v61, %v6997_v46 }
 0xfc1   :  { %v7037_v31 = vsel %vm973_vm4, %v6979_v20, 0.0  ;;  %v7036_v13 = vsel %vm971_vm3, %v6978_v26, 0.0  ;;  %v12176_v55 = vadd.f32 %v6885_v11, %v6821_v18  ;;  %v12178_v1 = vadd.f32 %v6883_v3, %v6820_v49 }
 0xfc2   :  { %v7038_v50 = vadd.f32 %v7037_v31, %v7036_v13  ;;  %v7033_v58 = vadd.f32 %v7032_v30, %v7031_v32  ;;  %v7008_v8 = vadd.f32 %v7007_v53, %v7006_v9  ;;  %v7025_v34 = vrot.slane %v7024_v6, 1  ;;  %v13103_v30 = vld [vmem:[#allocation38_spill] sm:$0xff] }
 0xfc3   :  { %13101 = vst [vmem:[#allocation31_spill] sm:$0xff] %v12176_v55  ;;  %13102 = vst [vmem:[#allocation4_spill] sm:$0xff] %v12178_v1  ;;  %v6949_v37 = vmul.f32 %v12176_v55, %v12176_v55  ;;  %v6948_v26 = vmul.f32 %v12178_v1, %v12178_v1  ;;  %v7017_v49 = vadd.f32 %v7016_v24, %v7015_v47 }
 0xfc4   :  { %v7039_v56 = vrot.slane %v7038_v50, 4  ;;  %v7034_v60 = vrot.slane %v7033_v58, 1  ;;  %v6990_v32 = vadd.f32 %v6989_v4, %v6988_v2  ;;  %v7055_v31 = vadd.f32 %v6999_v36, %v13103_v30 }
 0xfc5   :  { %v6965_v57 = vadd.f32 %v6949_v37, %v6933_v40  ;;  %v6964_v19 = vadd.f32 %v6948_v26, %v6932_v17  ;;  %v7056_v46 = vadd.f32 %v7008_v8, %v13103_v30  ;;  %v7026_v9 = vadd.f32 %v7025_v34, %v7024_v6  ;;  %v13104_v34 = vld [vmem:[#allocation30_spill] sm:$0xff] }
 0xfc6   :  { %v7040_v7 = vadd.f32 %v7039_v56, %v7038_v50  ;;  %v7057_v61 = vadd.f32 %v7017_v49, %v13103_v30  ;;  %v7035_v53 = vadd.f32 %v7034_v60, %v7033_v58  ;;  %v7054_v47 = vadd.f32 %v6990_v32, %v13103_v30 }
 0xfc7   :  { %v6981_v18 = vmul.f32 %v6965_v57, %v9617_v39  ;;  %v6980_v51 = vmul.f32 %v6964_v19, %v9619_v63  ;;  %8956 = vtanh.f32 %v7055_v31  ;;  %v7058_v2 = vadd.f32 %v7026_v9, %v13103_v30 }
 0xfc8   :  { %v7041_v20 = vrot.slane %v7040_v7, 2  ;;  %8958 = vtanh.f32 %v7056_v46  ;;  %v7059_v24 = vadd.f32 %v7035_v53, %v13103_v30 }
 0xfc9   :  { %v7046_v11 = vsel %vm973_vm4, %v6981_v18, 0.0  ;;  %v7045_v3 = vsel %vm971_vm3, %v6980_v51, 0.0  ;;  %8960 = vtanh.f32 %v7057_v61  ;;  %v6395_v18 = vmul.f32 0.16666667, %v13104_v34 }
 0xfca   :  { %v7042_v13 = vadd.f32 %v7041_v20, %v7040_v7  ;;  %v7047_v40 = vadd.f32 %v7046_v11, %v7045_v3  ;;  %8962 = vtanh.f32 %v7054_v47 }
 0xfcb   :  { %8964 = vtanh.f32 %v7058_v2  ;;  %v6396_v32 = vadd.f32 0.5, %v6395_v18 }
 0xfcc   :  { %v7043_v50 = vrot.slane %v7042_v13, 1  ;;  %v7048_v17 = vrot.slane %v7047_v40, 4  ;;  %8966 = vtanh.f32 %v7059_v24 }
 0xfcd   :  { %v6397_v61 = vmax.f32 %v6396_v32, 0.0  ;;  %v13108_v32 = vld [vmem:[#allocation16_spill] sm:$0xff] }
 0xfce   :  { %v7044_v37 = vadd.f32 %v7043_v50, %v7042_v13  ;;  %v7049_v26 = vadd.f32 %v7048_v17, %v7047_v40 }
 0xfcf   :  { %v6398_v2 = vmin.f32 %v6397_v61, 1.0 }
 0xfd0   :  { %v7050_v56 = vrot.slane %v7049_v26, 2  ;;  %v7060_v57 = vadd.f32 %v7044_v37, %v13103_v30 }
 0xfd1   :  { %v8957_v4 = vpop.eup %8956 }
 0xfd2   :  { %v7051_v6 = vadd.f32 %v7050_v56, %v7049_v26  ;;  %8968 = vtanh.f32 %v7060_v57  ;;  %v8959_v7 = vpop.eup %8958  ;;  %v7078_v51 = vrot.slane %v8957_v4, 7  ;;  %v8267_v4 = vld [vmem:[%s12541_s0 + $0x38] sm:$0xff] }
 0xfd3   :  { %v8961_v8 = vpop.eup %8960  ;;  %v7080_v60 = vrot.slane %v8959_v7, 6  ;;  %v13106_v7 = vmov 0.0|0.0  }
 0xfd4   :  { %v7052_v58 = vrot.slane %v7051_v6, 1  ;;  %v8963_v49 = vpop.eup %8962  ;;  %v7082_v11 = vrot.slane %v8961_v8, 5 }
 0xfd5   :  { %v8965_v20 = vpop.eup %8964  ;;  %v7079_v13 = vsel %vm1078_vm5, %v7078_v51, %v8963_v49 }
 0xfd6   :  { %v7053_v19 = vadd.f32 %v7052_v58, %v7051_v6  ;;  %v8967_v3 = vpop.eup %8966  ;;  %v7081_v40 = vsel %vm1081_vm6, %v7080_v60, %v7079_v13  ;;  %v7084_v53 = vrot.slane %v8965_v20, 4  ;;  %v8999_v58 = vld [vmem:[%s12540_s1 + $0x10] sm:$0x3f]  ;;  %v13107_v60 = vld [vmem:[#allocation19_spill] sm:$0xff] }
 0xfd7   :  { %v7083_v46 = vsel %vm1084_vm7, %v7082_v11, %v7081_v40  ;;  %v7086_v9 = vrot.slane %v8967_v3, 3  ;;  %v13109_v40 = vld [vmem:[#allocation18_spill] sm:$0xff] }
 0xfd8   :  { %v7061_v36 = vadd.f32 %v7053_v19, %v13103_v30  ;;  %v7085_v47 = vsel %vm1087_vm8, %v7084_v53, %v7083_v46  ;;  %v13105_v19 = vmov 0.0  }
 0xfd9   :  { %v7087_v37 = vsel %vm1090_vm9, %v7086_v9, %v7085_v47 }
 0xfda   :  { %8970 = vtanh.f32 %v7061_v36  ;;  %v9000_v36 = vld [vmem:[%s12540_s1] sm:$0x3f] }
 0xfdc   :  { %v8969_v31 = vpop.eup %8968 }
 0xfdd   :  { %v7088_v50 = vrot.slane %v8969_v31, 2 }
 0xfdf   :  { %v7089_v24 = vsel %vm1093_vm10, %v7088_v50, %v7087_v37  ;;  %v13111_v37 = vld [vmem:[#allocation15_spill] sm:$0xff] }
 0xfe4   :  { %v8971_v17 = vpop.eup %8970 }
 0xfe5   :  { %v7090_v26 = vrot.slane %v8971_v17, 1 }
 0xfe7   :  { %v7091_v56 = vsel %vm1096_vm11, %v7090_v26, %v7089_v24  ;;  %v13112_v24 = vld [vmem:[#allocation17_spill] sm:$0xff] }
 0xfe8   :  { %v7093_v57 = vmul.f32 %v7091_v56, %v6398_v2 }
 0xfea   :  { %7097 = vrot.lane.b32.xlu1 %v7093_v57, %s9005_s17 }
0x105c   :  { %v7098_v6 = vpop.permute.xlu1 %7097 }
0x105d   :  { %8268 = vmatmul.mubr.msk.f32.vlgmr.msra.gmra.mrb[14].mxu0 %vm69_vm12, %v7098_v6  ;;  %8563 = vmatmul.mubr.msk.f32.vlgmr.msra.gmra.mrb[32].mxu1 %vm69_vm12, %v7098_v6 }
0x105e   :  { %8566 = vmatpush3.msk.msra.mxu1 %vm218_vm1, %v8999_v58  ;;  %8567 = vmatprep.mubr.msk.f32.mxu1 %vm9002_vm0, %v13105_v19 }
0x105f   :  { %8271 = vmatpush1.msk.msra.mxu0 %vm218_vm1, %v9000_v36  ;;  %7309 = vmatprep.mubr.f32.mxu0 %v13105_v19  ;;  %v13114_v36 = vld [vmem:[#allocation21_spill] sm:$0xff] }
0x1060   :  { %8813 = vmatprep.subr.bf16.mxu0 %v13106_v7 }
0x1061   :  { %8568 = vmatmul.mubr.msk.f32.vlgmr.msra.gmra.mrb[34].mxu1 %vm214_vm2, %v8267_v4 }
0x1065   :  { %8272 = vmatmul.mubr.msk.f32.vlgmr.msra.gmra.mrb[14].mxu0 %vm214_vm2, %v8267_v4 }
0x1066   :  { %8586 = vmatprep.mubr.msk.f32.mxu0 %vm9002_vm0, %v13105_v19  ;;  %v13113_v19 = vld [vmem:[#allocation20_spill] sm:$0xff] }
0x1130   :  { %v7238_v8 = vpop.f32.mrb[32].mxu1 }
0x1131   :  { %v8564_v34 = vpop.f32.mrb[33].mxu1 }
0x1132   :  { %v13115_v34 = vld [vmem:[#allocation23_spill] sm:$0xff] }
0x1134   :  { %v7382_v18 = vpop.f32.mrb[34].mxu1 }
0x1135   :  { %v7383_v51 = vadd.f32 %v7382_v18, %v7238_v8  ;;  %v8569_v49 = vpop.f32.mrb[35].mxu1 }
0x1137   :  { %v7388_v20 = vadd.f32 %v7383_v51, %v13107_v60  ;;  %v13116_v51 = vld [vmem:[#allocation22_spill] sm:$0xff]  ;;  %v13117_v60 = vld [vmem:[#allocation24_spill] sm:$0xff] }
0x1138   :  { %v7311_v11 = vpop.f32.mrb[14].mxu0 }
0x1139   :  { %v7398_v3 = vmul.f32 0.16666667, %v7388_v20  ;;  %v7386_v31 = vadd.f32 %v7311_v11, %v13108_v32  ;;  %v7313_v13 = vpop.f32.mrb[15].mxu0  ;;  %v13118_v32 = vld [vmem:[#allocation25_spill] sm:$0xff] }
0x113a   :  { %v12233_v46 = vadd.f32 %v7313_v13, %v13109_v40  ;;  %v12253_v40 = vld [vmem:[%s12543_s8 + $0x78] sm:$0x3] }
0x113b   :  { %v7399_v9 = vadd.f32 0.5, %v7398_v3  ;;  %v7389_v61 = vmul.f32 0.16666667, %v7386_v31 }
0x113c   :  { %13110 = vst [vmem:[#allocation3_spill] sm:$0xff] %v12233_v46  ;;  %8972 = vtanh.f32 %v12233_v46 }
0x113d   :  { %v7400_v53 = vmax.f32 %v7399_v9, 0.0  ;;  %v7390_v50 = vadd.f32 0.5, %v7389_v61  ;;  %v12258_v9 = vld [vmem:[%s12543_s8 + $0x70] sm:$0xff] }
0x113f   :  { %v7401_v17 = vmin.f32 %v7400_v53, 1.0  ;;  %v7391_v47 = vmax.f32 %v7390_v50, 0.0 }
0x1141   :  { %v7417_v26 = vrot.slane %v7401_v17, %v13111_v37  ;;  %v12237_v2 = vmin.f32 %v7391_v47, 1.0  ;;  %v7428_v56 = vrot.slane %v7401_v17, %v13112_v24  ;;  %v7406_v58 = vrot.slane %v7401_v17, %v9220_v44  ;;  %v12271_v47 = vld [vmem:[%s12544_s9 + $0x70] sm:$0xff] }
0x1142   :  { %v7439_v4 = vrot.slane %v7401_v17, %v13113_v19  ;;  %v7450_v8 = vrot.slane %v7401_v17, %v13114_v36  ;;  %v7461_v49 = vrot.slane %v7401_v17, %v13116_v51  ;;  %v7472_v20 = vrot.slane %v7401_v17, %v13117_v60 }
0x1143   :  { %7423 = vbcast.lane.b32.xlu1 %v7417_v26, 264  ;;  %7419 = vbcast.lane.b32.xlu0 %v7417_v26, 256  ;;  %v7483_v31 = vrot.slane %v7401_v17, %v13118_v32  ;;  %v12266_v17 = vld [vmem:[%s12544_s9 + $0x78] sm:$0x3] }
0x1146   :  { %v8973_v57 = vpop.eup %8972 }
0x1147   :  { %v7402_v6 = vmul.f32 %v8973_v57, %v12237_v2  ;;  %7434 = vbcast.lane.b32.xlu1 %v7428_v56, 264  ;;  %7430 = vbcast.lane.b32.xlu0 %v7428_v56, 256 }
0x1149   :  { %v7611_v18 = vrot.slane %v7402_v6, %v13115_v34  ;;  %v7604_v56 = vcombine.high %v7402_v6, %v7402_v6 }
0x114b   :  { %7412 = vbcast.lane.b32.xlu1 %v7406_v58, 264  ;;  %7408 = vbcast.lane.b32.xlu0 %v7406_v58, 256  ;;  %v7627_v11 = vrot.slane %v7611_v18, %v13115_v34  ;;  %v7619_v3 = vcombine.high %v7611_v18, %v7611_v18 }
0x114d   :  { %v7672_v13 = vrot.slane %v7627_v11, %v9220_v44  ;;  %v7641_v50 = vrot.slane %v7619_v3, %v13115_v34  ;;  %v7649_v19 = vcombine.high %v7627_v11, %v7627_v11 }
0x114f   :  { %7445 = vbcast.lane.b32.xlu1 %v7439_v4, 264  ;;  %7441 = vbcast.lane.b32.xlu0 %v7439_v4, 256  ;;  %v7710_v61 = vmul.f32 %v12253_v40, %v7672_v13  ;;  %v7709_v53 = vmul.f32 %v12258_v9, %v7672_v13  ;;  %v7822_v37 = vmul.f32 %v12266_v17, %v7672_v13 }
0x1150   :  { %v7821_v26 = vmul.f32 %v12271_v47, %v7672_v13  ;;  %v7676_v24 = vrot.slane %v7641_v50, %v9220_v44  ;;  %v7618_v4 = vrot.slane %v7604_v56, %v13115_v34  ;;  %v7680_v18 = vrot.slane %v7649_v19, %v9220_v44 }
0x1152   :  { %v7712_v57 = vmul.f32 %v12253_v40, %v7676_v24  ;;  %v7711_v58 = vmul.f32 %v12258_v9, %v7676_v24  ;;  %v7824_v36 = vmul.f32 %v12266_v17, %v7676_v24  ;;  %v7714_v6 = vmul.f32 %v12253_v40, %v7680_v18 }
0x1153   :  { %7456 = vbcast.lane.b32.xlu1 %v7450_v8, 264  ;;  %7452 = vbcast.lane.b32.xlu0 %v7450_v8, 256  ;;  %v7823_v8 = vmul.f32 %v12271_v47, %v7676_v24  ;;  %v7713_v51 = vmul.f32 %v12258_v9, %v7680_v18  ;;  %v7826_v60 = vmul.f32 %v12266_v17, %v7680_v18 }
0x1157   :  { %7467 = vbcast.lane.b32.xlu1 %v7461_v49, 264  ;;  %7463 = vbcast.lane.b32.xlu0 %v7461_v49, 256  ;;  %v7634_v49 = vrot.slane %v7618_v4, %v13115_v34 }
0x1159   :  { %v7688_v11 = vrot.slane %v7634_v49, %v9220_v44 }
0x115b   :  { %7478 = vbcast.lane.b32.xlu1 %v7472_v20, 264  ;;  %7474 = vbcast.lane.b32.xlu0 %v7472_v20, 256  ;;  %v7825_v20 = vmul.f32 %v12271_v47, %v7680_v18  ;;  %v7718_v3 = vmul.f32 %v12253_v40, %v7688_v11  ;;  %v7717_v32 = vmul.f32 %v12258_v9, %v7688_v11 }
0x115c   :  { %v7830_v13 = vmul.f32 %v12266_v17, %v7688_v11 }
0x115f   :  { %7489 = vbcast.lane.b32.xlu1 %v7483_v31, 264  ;;  %7485 = vbcast.lane.b32.xlu0 %v7483_v31, 256  ;;  %v7651_v31 = vcombine.high %v7641_v50, %v7641_v50 }
0x1163   :  { %7743 = vrot.lane.b32.xlu1 %v7710_v61, %s9005_s17  ;;  %7741 = vrot.lane.b32.xlu0 %v7709_v53, %s9005_s17  ;;  %v7829_v61 = vmul.f32 %v12271_v47, %v7688_v11  ;;  %v7684_v53 = vrot.slane %v7651_v31, %v9220_v44 }
0x1165   :  { %v7715_v24 = vmul.f32 %v12258_v9, %v7684_v53  ;;  %v7828_v56 = vmul.f32 %v12266_v17, %v7684_v53 }
0x1167   :  { %7855 = vrot.lane.b32.xlu1 %v7822_v37, %s9005_s17  ;;  %7853 = vrot.lane.b32.xlu0 %v7821_v26, %s9005_s17  ;;  %v7620_v37 = vcombine.high %v7618_v4, %v7618_v4  ;;  %v7716_v26 = vmul.f32 %v12253_v40, %v7684_v53 }
0x1169   :  { %v7648_v50 = vrot.slane %v7620_v37, %v13115_v34 }
0x116b   :  { %7747 = vrot.lane.b32.xlu1 %v7712_v57, %s9005_s17  ;;  %7745 = vrot.lane.b32.xlu0 %v7711_v58, %s9005_s17  ;;  %v7827_v57 = vmul.f32 %v12271_v47, %v7684_v53  ;;  %v7692_v58 = vrot.slane %v7648_v50, %v9220_v44  ;;  %v7499_v53 = vrot.slane %v12237_v2, %v13115_v34 }
0x116d   :  { %v7720_v19 = vmul.f32 %v12253_v40, %v7692_v58  ;;  %v7719_v4 = vmul.f32 %v12258_v9, %v7692_v58  ;;  %v7831_v18 = vmul.f32 %v12271_v47, %v7692_v58  ;;  %v7507_v37 = vcombine.high %v7499_v53, %v7499_v53 }
0x116f   :  { %7859 = vrot.lane.b32.xlu1 %v7824_v36, %s9005_s17  ;;  %7857 = vrot.lane.b32.xlu0 %v7823_v8, %s9005_s17  ;;  %v7650_v36 = vcombine.high %v7634_v49, %v7634_v49  ;;  %v7832_v8 = vmul.f32 %v12266_v17, %v7692_v58 }
0x1173   :  { %7751 = vrot.lane.b32.xlu1 %v7714_v6, %s9005_s17  ;;  %7749 = vrot.lane.b32.xlu0 %v7713_v51, %s9005_s17  ;;  %v7696_v6 = vrot.slane %v7650_v36, %v9220_v44 }
0x1175   :  { %v7722_v51 = vmul.f32 %v12253_v40, %v7696_v6  ;;  %v7834_v49 = vmul.f32 %v12266_v17, %v7696_v6  ;;  %v7833_v11 = vmul.f32 %v12271_v47, %v7696_v6 }
0x1177   :  { %7863 = vrot.lane.b32.xlu1 %v7826_v60, %s9005_s17  ;;  %7861 = vrot.lane.b32.xlu0 %v7825_v20, %s9005_s17  ;;  %v7721_v60 = vmul.f32 %v12258_v9, %v7696_v6  ;;  %v7652_v20 = vcombine.high %v7648_v50, %v7648_v50 }
0x117b   :  { %7759 = vrot.lane.b32.xlu1 %v7718_v3, %s9005_s17  ;;  %7757 = vrot.lane.b32.xlu0 %v7717_v32, %s9005_s17  ;;  %v7700_v3 = vrot.slane %v7652_v20, %v9220_v44  ;;  %v8095_v20 = vld [vmem:[%s12547_s6 + $0x10] sm:$0xff] }
0x117d   :  { %v7724_v32 = vmul.f32 %v12253_v40, %v7700_v3  ;;  %v7723_v31 = vmul.f32 %v12258_v9, %v7700_v3  ;;  %v7529_v40 = vrot.slane %v7507_v37, %v13115_v34  ;;  %v7515_v9 = vrot.slane %v7499_v53, %v13115_v34 }
0x117f   :  { %7871 = vrot.lane.b32.xlu1 %v7830_v13, %s9005_s17  ;;  %7869 = vrot.lane.b32.xlu0 %v7829_v61, %s9005_s17  ;;  %v7836_v13 = vmul.f32 %v12266_v17, %v7700_v3  ;;  %v7835_v61 = vmul.f32 %v12271_v47, %v7700_v3  ;;  %v7539_v6 = vcombine.high %v7529_v40, %v7529_v40 }
0x1181   :  { %v7556_v53 = vrot.slane %v7539_v6, %v9220_v44  ;;  %v8100_v6 = vld [vmem:[%s12547_s6 + $0x38] sm:$0xff] }
0x1183   :  { %7755 = vrot.lane.b32.xlu1 %v7716_v26, %s9005_s17  ;;  %7753 = vrot.lane.b32.xlu0 %v7715_v24, %s9005_s17  ;;  %v7548_v26 = vrot.slane %v7529_v40, %v9220_v44  ;;  %v7537_v24 = vcombine.high %v7515_v9, %v7515_v9 }
0x1185   :  { %v7552_v58 = vrot.slane %v7537_v24, %v9220_v44 }
0x1187   :  { %7867 = vrot.lane.b32.xlu1 %v7828_v56, %s9005_s17  ;;  %7865 = vrot.lane.b32.xlu0 %v7827_v57, %s9005_s17  ;;  %v7492_v57 = vcombine.high %v12237_v2, %v12237_v2  ;;  %v8094_v2 = vld [vmem:[%s12547_s6 + $0x8] sm:$0xff] }
0x118b   :  { %7763 = vrot.lane.b32.xlu1 %v7720_v19, %s9005_s17  ;;  %7761 = vrot.lane.b32.xlu0 %v7719_v4, %s9005_s17 }
0x118f   :  { %7875 = vrot.lane.b32.xlu1 %v7832_v8, %s9005_s17  ;;  %7873 = vrot.lane.b32.xlu0 %v7831_v18, %s9005_s17  ;;  %v7544_v18 = vrot.slane %v7515_v9, %v9220_v44  ;;  %v8097_v9 = vld [vmem:[%s12547_s6 + $0x20] sm:$0xff] }
0x1193   :  { %7767 = vrot.lane.b32.xlu1 %v7722_v51, %s9005_s17  ;;  %7765 = vrot.lane.b32.xlu0 %v7721_v60, %s9005_s17  ;;  %v7506_v51 = vrot.slane %v7492_v57, %v13115_v34  ;;  %v8093_v60 = vld [vmem:[%s12547_s6] sm:$0xff] }
0x1194   :  { %v8814_v3 = vpack.c.bf16 %v8094_v2, %v8093_v60 }
0x1195   :  { %v12377_v37 = vrot.slane %v7506_v51, %v13115_v34  ;;  %v7508_v40 = vcombine.high %v7506_v51, %v7506_v51 }
0x1196   :  { %8815 = vmatpush3.bf16.msra.mxu0 %v8814_v3 }
0x1197   :  { %7879 = vrot.lane.b32.xlu1 %v7834_v49, %s9005_s17  ;;  %7877 = vrot.lane.b32.xlu0 %v7833_v11, %s9005_s17 }
0x1198   :  { %8816 = vmatprep.subr.bf16.mxu0 %v13106_v7 }
0x119b   :  { %7771 = vrot.lane.b32.xlu1 %v7724_v32, %s9005_s17  ;;  %7769 = vrot.lane.b32.xlu0 %v7723_v31, %s9005_s17  ;;  %v8096_v32 = vld [vmem:[%s12547_s6 + $0x18] sm:$0xff] }
0x119f   :  { %7883 = vrot.lane.b32.xlu1 %v7836_v13, %s9005_s17  ;;  %7881 = vrot.lane.b32.xlu0 %v7835_v61, %s9005_s17  ;;  %v8817_v61 = vpack.c.bf16 %v8096_v32, %v8095_v20 }
0x11a1   :  { %8818 = vmatpush3.bf16.msra.mxu0 %v8817_v61 }
0x11a2   :  { %8819 = vmatprep.subr.bf16.mxu0 %v13106_v7 }
0x11b5   :  { %v7424_v50 = vpop.permute.xlu1 %7423  ;;  %v7420_v56 = vpop.permute.xlu0 %7419 }
0x11b6   :  { %v12350_v17 = vmul.f32 %v7548_v26, %v7424_v50  ;;  %v12352_v47 = vmul.f32 %v7548_v26, %v7420_v56  ;;  %v8098_v26 = vld [vmem:[%s12547_s6 + $0x28] sm:$0xff] }
0x11b9   :  { %v7435_v19 = vpop.permute.xlu1 %7434  ;;  %v7431_v4 = vpop.permute.xlu0 %7430 }
0x11ba   :  { %v12357_v36 = vmul.f32 %v7552_v58, %v7435_v19  ;;  %v12359_v8 = vmul.f32 %v7552_v58, %v7431_v4  ;;  %v8820_v58 = vpack.c.bf16 %v8098_v26, %v8097_v9  ;;  %v7560_v19 = vrot.slane %v12377_v37, %v9220_v44 }
0x11bb   :  { %v12393_v4 = vrot.slane %v7508_v40, %v13115_v34 }
0x11bc   :  { %8821 = vmatpush3.bf16.msra.mxu0 %v8820_v58 }
0x11bd   :  { %v7413_v49 = vpop.permute.xlu1 %7412  ;;  %v7409_v11 = vpop.permute.xlu0 %7408  ;;  %v7564_v34 = vrot.slane %v12393_v4, %v9220_v44  ;;  %8822 = vmatprep.subr.bf16.mxu0 %v13106_v7 }
0x11be   :  { %v7582_v31 = vmul.f32 %v7544_v18, %v7413_v49  ;;  %v7581_v13 = vmul.f32 %v7544_v18, %v7409_v11  ;;  %v8099_v18 = vld [vmem:[%s12547_s6 + $0x30] sm:$0xff] }
0x11bf   :  { %v8823_v49 = vpack.c.bf16 %v8100_v6, %v8099_v18 }
0x11c0   :  { %v7654_v58 = vmul.f32 %v7582_v31, %v12022_v41  ;;  %v7653_v7 = vmul.f32 %v7581_v13, %v12024_v27  ;;  %v7806_v6 = vmul.f32 %v7582_v31, %v12002_v59  ;;  %v7656_v27 = vmul.f32 %v12350_v17, %v12006_v43 }
0x11c1   :  { %v7446_v24 = vpop.permute.xlu1 %7445  ;;  %v7442_v50 = vpop.permute.xlu0 %7441  ;;  %8824 = vmatpush3.bf16.msra.mxu0 %v8823_v49  ;;  %v7655_v59 = vmul.f32 %v12352_v47, %v12008_v21  ;;  %v7807_v31 = vmul.f32 %v12352_v47, %v11994_v0 }
0x11c2   :  { %v12386_v56 = vmul.f32 %v7556_v53, %v7446_v24  ;;  %v12388_v57 = vmul.f32 %v7556_v53, %v7442_v50 }
0x11c5   :  { %v7457_v51 = vpop.permute.xlu1 %7456  ;;  %v7453_v60 = vpop.permute.xlu0 %7452 }
0x11c6   :  { %v12402_v2 = vmul.f32 %v7560_v19, %v7457_v51  ;;  %v12404_v20 = vmul.f32 %v7560_v19, %v7453_v60  ;;  %v7805_v51 = vmul.f32 %v7581_v13, %v12004_v22  ;;  %v7808_v22 = vmul.f32 %v12350_v17, %v11992_v33 }
0x11c9   :  { %v7468_v11 = vpop.permute.xlu1 %7467  ;;  %v7464_v3 = vpop.permute.xlu0 %7463 }
0x11ca   :  { %v12409_v32 = vmul.f32 %v7564_v34, %v7468_v11  ;;  %v12411_v61 = vmul.f32 %v7564_v34, %v7464_v3 }
0x11cd   :  { %v12413_v53 = vpop.permute.xlu1 %7478  ;;  %v12415_v40 = vpop.permute.xlu0 %7474 }
0x11d1   :  { %v12417_v9 = vpop.permute.xlu1 %7489  ;;  %v12419_v26 = vpop.permute.xlu0 %7485 }
0x11d2   :  { %13119 = vst [vmem:[#allocation5_spill] sm:$0xff] %v12419_v26 }
0x11d5   :  { %v7744_v24 = vpop.permute.xlu1 %7743  ;;  %v7742_v50 = vpop.permute.xlu0 %7741 }
0x11d6   :  { %v7790_v19 = vadd.f32 %v7744_v24, %v7654_v58  ;;  %v7789_v18 = vadd.f32 %v7742_v50, %v7653_v7 }
0x11d8   :  { %v7918_v3 = vmul.f32 %v7790_v19, %v7790_v19  ;;  %v7917_v46 = vmul.f32 %v7789_v18, %v7789_v18 }
0x11d9   :  { %v7856_v60 = vpop.permute.xlu1 %7855  ;;  %v7854_v49 = vpop.permute.xlu0 %7853 }
0x11da   :  { %v7902_v34 = vadd.f32 %v7856_v60, %v7806_v6  ;;  %v7901_v11 = vadd.f32 %v7854_v49, %v7805_v51 }
0x11dc   :  { %v7934_v1 = vmul.f32 %v7902_v34, %v7902_v34  ;;  %v7933_v55 = vmul.f32 %v7901_v11, %v7901_v11  ;;  %v7810_v34 = vmul.f32 %v12357_v36, %v11998_v25  ;;  %v7809_v11 = vmul.f32 %v12359_v8, %v12000_v54 }
0x11dd   :  { %v7748_v35 = vpop.permute.xlu1 %7747  ;;  %v7746_v62 = vpop.permute.xlu0 %7745 }
0x11de   :  { %v7950_v26 = vadd.f32 %v7934_v1, %v7918_v3  ;;  %v7949_v41 = vadd.f32 %v7933_v55, %v7917_v46  ;;  %v7792_v50 = vadd.f32 %v7748_v35, %v7656_v27  ;;  %v7791_v58 = vadd.f32 %v7746_v62, %v7655_v59 }
0x11df   :  { %v7658_v35 = vmul.f32 %v12357_v36, %v12010_v42  ;;  %v7657_v62 = vmul.f32 %v12359_v8, %v12012_v5 }
0x11e0   :  { %v7966_v13 = vmul.f32 %v7950_v26, %v9617_v39  ;;  %v7965_v24 = vmul.f32 %v7949_v41, %v9619_v63  ;;  %v7920_v18 = vmul.f32 %v7792_v50, %v7792_v50  ;;  %v7919_v33 = vmul.f32 %v7791_v58, %v7791_v58 }
0x11e1   :  { %v7860_v1 = vpop.permute.xlu1 %7859  ;;  %v7858_v55 = vpop.permute.xlu0 %7857 }
0x11e2   :  { %v7982_v46 = vsel %vm973_vm4, %v7966_v13, 0.0  ;;  %v7981_v43 = vsel %vm971_vm3, %v7965_v24, 0.0  ;;  %v7904_v7 = vadd.f32 %v7860_v1, %v7808_v22  ;;  %v7903_v21 = vadd.f32 %v7858_v55, %v7807_v31 }
0x11e3   :  { %v7983_v19 = vadd.f32 %v7982_v46, %v7981_v43 }
0x11e4   :  { %v7936_v17 = vmul.f32 %v7904_v7, %v7904_v7  ;;  %v7935_v6 = vmul.f32 %v7903_v21, %v7903_v21 }
0x11e5   :  { %v7984_v0 = vrot.slane %v7983_v19, 4  ;;  %v7752_v47 = vpop.permute.xlu1 %7751  ;;  %v7750_v26 = vpop.permute.xlu0 %7749 }
0x11e6   :  { %v7952_v51 = vadd.f32 %v7936_v17, %v7920_v18  ;;  %v7951_v60 = vadd.f32 %v7935_v6, %v7919_v33  ;;  %v7794_v27 = vadd.f32 %v7752_v47, %v7658_v35  ;;  %v7793_v59 = vadd.f32 %v7750_v26, %v7657_v62 }
0x11e7   :  { %v7985_v49 = vadd.f32 %v7984_v0, %v7983_v19  ;;  %v7662_v19 = vmul.f32 %v12402_v2, %v12042_v45  ;;  %v7661_v18 = vmul.f32 %v12404_v20, %v12044_v52  ;;  %v7814_v17 = vmul.f32 %v12402_v2, %v12046_v10 }
0x11e8   :  { %v7968_v3 = vmul.f32 %v7952_v51, %v9617_v39  ;;  %v7967_v41 = vmul.f32 %v7951_v60, %v9619_v63  ;;  %v7922_v25 = vmul.f32 %v7794_v27, %v7794_v27  ;;  %v7921_v36 = vmul.f32 %v7793_v59, %v7793_v59 }
0x11e9   :  { %v7986_v22 = vrot.slane %v7985_v49, 2  ;;  %v7864_v31 = vpop.permute.xlu1 %7863  ;;  %v7862_v13 = vpop.permute.xlu0 %7861  ;;  %v7813_v6 = vmul.f32 %v12404_v20, %v12048_v48  ;;  %v7538_v27 = vcombine.high %v12377_v37, %v12377_v37  ;;  %v7811_v37 = vmul.f32 %v12388_v57, %v12089_v38 }
0x11ea   :  { %v7991_v42 = vsel %vm973_vm4, %v7968_v3, 0.0  ;;  %v7990_v5 = vsel %vm971_vm3, %v7967_v41, 0.0  ;;  %v7906_v24 = vadd.f32 %v7864_v31, %v7810_v34  ;;  %v7905_v50 = vadd.f32 %v7862_v13, %v7809_v11 }
0x11eb   :  { %v7992_v58 = vadd.f32 %v7991_v42, %v7990_v5  ;;  %v7987_v8 = vadd.f32 %v7986_v22, %v7985_v49  ;;  %v7568_v38 = vrot.slane %v7538_v27, %v9220_v44 }
0x11ec   :  { %v7938_v1 = vmul.f32 %v7906_v24, %v7906_v24  ;;  %v7937_v54 = vmul.f32 %v7905_v50, %v7905_v50  ;;  %v7660_v50 = vmul.f32 %v12386_v56, %v12072_v29 }
0x11ed   :  { %v7993_v55 = vrot.slane %v7992_v58, 4  ;;  %v7760_v46 = vpop.permute.xlu1 %7759  ;;  %v7758_v43 = vpop.permute.xlu0 %7757  ;;  %v7988_v60 = vrot.slane %v7987_v8, 1  ;;  %v7594_v27 = vmul.f32 %v7568_v38, %v12413_v53 }
0x11ee   :  { %v7954_v7 = vadd.f32 %v7938_v1, %v7922_v25  ;;  %v7953_v21 = vadd.f32 %v7937_v54, %v7921_v36  ;;  %v7798_v26 = vadd.f32 %v7760_v46, %v7662_v19  ;;  %v7797_v51 = vadd.f32 %v7758_v43, %v7661_v18 }
0x11ef   :  { %v7994_v33 = vadd.f32 %v7993_v55, %v7992_v58  ;;  %v7989_v59 = vadd.f32 %v7988_v60, %v7987_v8  ;;  %v7659_v58 = vmul.f32 %v12388_v57, %v12074_v15  ;;  %v7812_v1 = vmul.f32 %v12386_v56, %v12087_v28 }
0x11f0   :  { %v7970_v0 = vmul.f32 %v7954_v7, %v9617_v39  ;;  %v7969_v47 = vmul.f32 %v7953_v21, %v9619_v63  ;;  %v7926_v3 = vmul.f32 %v7798_v26, %v7798_v26  ;;  %v7925_v48 = vmul.f32 %v7797_v51, %v7797_v51 }
0x11f1   :  { %v7995_v35 = vrot.slane %v7994_v33, 2  ;;  %v7872_v62 = vpop.permute.xlu1 %7871  ;;  %v7870_v45 = vpop.permute.xlu0 %7869  ;;  %v8053_v43 = vadd.f32 %v7989_v59, %v13103_v30  ;;  %v7540_v26 = vcombine.high %v12393_v4, %v12393_v4  ;;  %v7815_v4 = vmul.f32 %v12411_v61, %v12128_v12 }
0x11f2   :  { %v8000_v49 = vsel %vm973_vm4, %v7970_v0, 0.0  ;;  %v7999_v52 = vsel %vm971_vm3, %v7969_v47, 0.0  ;;  %v7910_v34 = vadd.f32 %v7872_v62, %v7814_v17  ;;  %v7909_v11 = vadd.f32 %v7870_v45, %v7813_v6 }
0x11f3   :  { %v7996_v10 = vadd.f32 %v7995_v35, %v7994_v33  ;;  %v8001_v2 = vadd.f32 %v8000_v49, %v7999_v52  ;;  %v7664_v52 = vmul.f32 %v12409_v32, %v12117_v23  ;;  %v7593_v23 = vmul.f32 %v7568_v38, %v12415_v40 }
0x11f4   :  { %v7942_v20 = vmul.f32 %v7910_v34, %v7910_v34  ;;  %v7941_v41 = vmul.f32 %v7909_v11, %v7909_v11  ;;  %v7663_v34 = vmul.f32 %v12411_v61, %v12119_v16 }
0x11f5   :  { %v7997_v22 = vrot.slane %v7996_v10, 1  ;;  %v8002_v31 = vrot.slane %v8001_v2, 4  ;;  %v7756_v13 = vpop.permute.xlu1 %7755  ;;  %v7754_v42 = vpop.permute.xlu0 %7753 }
0x11f6   :  { %v7958_v5 = vadd.f32 %v7942_v20, %v7926_v3  ;;  %v7957_v24 = vadd.f32 %v7941_v41, %v7925_v48  ;;  %v7796_v55 = vadd.f32 %v7756_v13, %v7660_v50  ;;  %v7795_v46 = vadd.f32 %v7754_v42, %v7659_v58 }
0x11f7   :  { %v7998_v25 = vadd.f32 %v7997_v22, %v7996_v10  ;;  %v8003_v36 = vadd.f32 %v8002_v31, %v8001_v2  ;;  %v7816_v2 = vmul.f32 %v12409_v32, %v12126_v14  ;;  %v7572_v13 = vrot.slane %v7540_v26, %v9220_v44  ;;  %v13122_v44 = vld [vmem:[#allocation28_spill] sm:$0xff] }
0x11f8   :  { %v7974_v54 = vmul.f32 %v7958_v5, %v9617_v39  ;;  %v7973_v8 = vmul.f32 %v7957_v24, %v9619_v63  ;;  %v7924_v17 = vmul.f32 %v7796_v55, %v7796_v55  ;;  %v7923_v6 = vmul.f32 %v7795_v46, %v7795_v46 }
0x11f9   :  { %v8054_v29 = vadd.f32 %v7998_v25, %v13103_v30  ;;  %v8004_v7 = vrot.slane %v8003_v36, 2  ;;  %v7868_v15 = vpop.permute.xlu1 %7867  ;;  %v7866_v21 = vpop.permute.xlu0 %7865 }
0x11fa   :  { %v8018_v19 = vsel %vm973_vm4, %v7974_v54, 0.0  ;;  %v8017_v28 = vsel %vm971_vm3, %v7973_v8, 0.0  ;;  %v7908_v56 = vadd.f32 %v7868_v15, %v7812_v1  ;;  %v7907_v18 = vadd.f32 %v7866_v21, %v7811_v37  ;;  %v13120_v1 = vld [vmem:[#allocation43_spill] sm:$0xff]  ;;  %v13121_v8 = vld [vmem:[#allocation44_spill] sm:$0xff] }
0x11fb   :  { %8974 = vtanh.f32 %v8054_v29  ;;  %v8005_v57 = vadd.f32 %v8004_v7, %v8003_v36  ;;  %v8019_v33 = vadd.f32 %v8018_v19, %v8017_v28  ;;  %v7666_v37 = vmul.f32 %v7594_v27, %v13120_v1 }
0x11fc   :  { %v7940_v0 = vmul.f32 %v7908_v56, %v7908_v56  ;;  %v7939_v47 = vmul.f32 %v7907_v18, %v7907_v18  ;;  %8976 = vtanh.f32 %v8053_v43  ;;  %v7665_v55 = vmul.f32 %v7593_v23, %v13121_v8  ;;  %v13123_v18 = vld [vmem:[#allocation29_spill] sm:$0xff] }
0x11fd   :  { %v8006_v51 = vrot.slane %v8005_v57, 1  ;;  %v8020_v60 = vrot.slane %v8019_v33, 4  ;;  %v7764_v35 = vpop.permute.xlu1 %7763  ;;  %v7762_v62 = vpop.permute.xlu0 %7761  ;;  %v7818_v15 = vmul.f32 %v7594_v27, %v13122_v44  ;;  %v7596_v19 = vmul.f32 %v7572_v13, %v12417_v9 }
0x11fe   :  { %v7956_v45 = vadd.f32 %v7940_v0, %v7924_v17  ;;  %v7955_v49 = vadd.f32 %v7939_v47, %v7923_v6  ;;  %v7800_v20 = vadd.f32 %v7764_v35, %v7664_v52  ;;  %v7799_v41 = vadd.f32 %v7762_v62, %v7663_v34  ;;  %v13124_v0 = vld [vmem:[#allocation5_spill] sm:$0xff] }
0x11ff   :  { %v8007_v11 = vadd.f32 %v8006_v51, %v8005_v57  ;;  %v8021_v10 = vadd.f32 %v8020_v60, %v8019_v33  ;;  %v7817_v38 = vmul.f32 %v7593_v23, %v13123_v18  ;;  %v7595_v47 = vmul.f32 %v7572_v13, %v13124_v0 }
0x1200   :  { %v7972_v3 = vmul.f32 %v7956_v45, %v9617_v39  ;;  %v7971_v48 = vmul.f32 %v7955_v49, %v9619_v63  ;;  %v7928_v24 = vmul.f32 %v7800_v20, %v7800_v20  ;;  %v7927_v53 = vmul.f32 %v7799_v41, %v7799_v41 }
0x1201   :  { %v8055_v16 = vadd.f32 %v8007_v11, %v13103_v30  ;;  %v8022_v59 = vrot.slane %v8021_v10, 2  ;;  %v7876_v22 = vpop.permute.xlu1 %7875  ;;  %v7874_v31 = vpop.permute.xlu0 %7873  ;;  %v13125_v11 = vld [vmem:[#allocation26_spill] sm:$0xff] }
0x1202   :  { %v8009_v14 = vsel %vm973_vm4, %v7972_v3, 0.0  ;;  %v8008_v32 = vsel %vm971_vm3, %v7971_v48, 0.0  ;;  %v7912_v12 = vadd.f32 %v7876_v22, %v7816_v2  ;;  %v7911_v61 = vadd.f32 %v7874_v31, %v7815_v4 }
0x1203   :  { %8978 = vtanh.f32 %v8055_v16  ;;  %v8023_v42 = vadd.f32 %v8022_v59, %v8021_v10  ;;  %v8010_v5 = vadd.f32 %v8009_v14, %v8008_v32  ;;  %v7668_v10 = vmul.f32 %v7596_v19, %v13125_v11  ;;  %v13126_v59 = vld [vmem:[#allocation46_spill] sm:$0xff] }
0x1204   :  { %v7944_v50 = vmul.f32 %v7912_v12, %v7912_v12  ;;  %v7943_v40 = vmul.f32 %v7911_v61, %v7911_v61  ;;  %v7667_v22 = vmul.f32 %v7595_v47, %v13126_v59  ;;  %v13127_v61 = vld [vmem:[#allocation31_spill] sm:$0xff] }
0x1205   :  { %v8975_v58 = vpop.eup %8974  ;;  %v8024_v25 = vrot.slane %v8023_v42, 1  ;;  %v8011_v36 = vrot.slane %v8010_v5, 4  ;;  %v7768_v54 = vpop.permute.xlu1 %7767  ;;  %v7820_v13 = vmul.f32 %v7596_v19, %v13127_v61  ;;  %v15_v61 = vstv %s12548_s7 }
0x1206   :  { %v7766_v46 = vpop.permute.xlu0 %7765  ;;  %v8077_v43 = vrot.slane %v8975_v58, 7  ;;  %v7960_v29 = vadd.f32 %v7944_v50, %v7928_v24  ;;  %v7959_v7 = vadd.f32 %v7943_v40, %v7927_v53  ;;  %v8977_v21 = vpop.eup %8976  ;;  %v7802_v56 = vadd.f32 %v7768_v54, %v7666_v37  ;;  %v13128_v53 = vld [vmem:[#allocation4_spill] sm:$0xff]  ;;  %16 = vst [vmem:[#allocation2] sm:$0x1] %v15_v61 }
0x1207   :  { %v8012_v28 = vadd.f32 %v8011_v36, %v8010_v5  ;;  %v7801_v17 = vadd.f32 %v7766_v46, %v7665_v55  ;;  %v8025_v26 = vadd.f32 %v8024_v25, %v8023_v42  ;;  %v7819_v50 = vmul.f32 %v7595_v47, %v13128_v53 }
0x1208   :  { %v7976_v57 = vmul.f32 %v7960_v29, %v9617_v39  ;;  %v7975_v33 = vmul.f32 %v7959_v7, %v9619_v63  ;;  %v8078_v6 = vsel %vm1078_vm5, %v8077_v43, %v8977_v21  ;;  %v7930_v2 = vmul.f32 %v7802_v56, %v7802_v56 }
0x1209   :  { %v8013_v51 = vrot.slane %v8012_v28, 2  ;;  %v7880_v60 = vpop.permute.xlu1 %7879  ;;  %v7929_v4 = vmul.f32 %v7801_v17, %v7801_v17  ;;  %v8057_v41 = vadd.f32 %v8025_v26, %v13103_v30 }
0x120a   :  { %v7878_v35 = vpop.permute.xlu0 %7877  ;;  %v8027_v62 = vsel %vm973_vm4, %v7976_v57, 0.0  ;;  %v8026_v9 = vsel %vm971_vm3, %v7975_v33, 0.0  ;;  %v7914_v45 = vadd.f32 %v7880_v60, %v7818_v15 }
0x120b   :  { %v7913_v49 = vadd.f32 %v7878_v35, %v7817_v38  ;;  %v8014_v52 = vadd.f32 %v8013_v51, %v8012_v28  ;;  %v8028_v34 = vadd.f32 %v8027_v62, %v8026_v9  ;;  %8980 = vtanh.f32 %v8057_v41 }
0x120c   :  { %v7946_v3 = vmul.f32 %v7914_v45, %v7914_v45 }
0x120d   :  { %v7945_v48 = vmul.f32 %v7913_v49, %v7913_v49  ;;  %v8979_v20 = vpop.eup %8978  ;;  %v8015_v27 = vrot.slane %v8014_v52, 1  ;;  %v8029_v23 = vrot.slane %v8028_v34, 4  ;;  %v7772_v16 = vpop.permute.xlu1 %7771 }
0x120e   :  { %v7770_v31 = vpop.permute.xlu0 %7769  ;;  %v8079_v14 = vrot.slane %v8979_v20, 6  ;;  %v7962_v32 = vadd.f32 %v7946_v3, %v7930_v2  ;;  %v7804_v24 = vadd.f32 %v7772_v16, %v7668_v10 }
0x120f   :  { %v7961_v12 = vadd.f32 %v7945_v48, %v7929_v4  ;;  %v8016_v42 = vadd.f32 %v8015_v27, %v8014_v52  ;;  %v8030_v5 = vadd.f32 %v8029_v23, %v8028_v34  ;;  %v7803_v25 = vadd.f32 %v7770_v31, %v7667_v22  ;;  %v13129_v22 = vld [vmem:[#allocation3_spill] sm:$0xff] }
0x1210   :  { %v7978_v40 = vmul.f32 %v7962_v32, %v9617_v39  ;;  %v8080_v36 = vsel %vm1081_vm6, %v8079_v14, %v8078_v6  ;;  %v7932_v15 = vmul.f32 %v7804_v24, %v7804_v24  ;;  %v7394_v31 = vmul.f32 0.16666667, %v13129_v22 }
0x1211   :  { %v7977_v58 = vmul.f32 %v7961_v12, %v9619_v63  ;;  %v8056_v1 = vadd.f32 %v8016_v42, %v13103_v30  ;;  %v8031_v37 = vrot.slane %v8030_v5, 2  ;;  %v7884_v54 = vpop.permute.xlu1 %7883  ;;  %v7931_v21 = vmul.f32 %v7803_v25, %v7803_v25 }
0x1212   :  { %v7882_v8 = vpop.permute.xlu0 %7881  ;;  %v8036_v55 = vsel %vm973_vm4, %v7978_v40, 0.0  ;;  %v7916_v43 = vadd.f32 %v7884_v54, %v7820_v13  ;;  %v7395_v12 = vadd.f32 0.5, %v7394_v31 }
0x1213   :  { %v8035_v46 = vsel %vm971_vm3, %v7977_v58, 0.0  ;;  %v7915_v29 = vadd.f32 %v7882_v8, %v7819_v50  ;;  %8982 = vtanh.f32 %v8056_v1  ;;  %v8032_v7 = vadd.f32 %v8031_v37, %v8030_v5  ;;  %v8279_v58 = vld [vmem:[#allocation2] ss:$0 sm:$0xff] }
0x1214   :  { %v8037_v44 = vadd.f32 %v8036_v55, %v8035_v46  ;;  %v7948_v19 = vmul.f32 %v7916_v43, %v7916_v43  ;;  %v7396_v42 = vmax.f32 %v7395_v12, 0.0 }
0x1215   :  { %v7947_v28 = vmul.f32 %v7915_v29, %v7915_v29  ;;  %v8033_v56 = vrot.slane %v8032_v7, 1  ;;  %v8981_v35 = vpop.eup %8980 }
0x1216   :  { %v8038_v18 = vrot.slane %v8037_v44, 4  ;;  %v7964_v38 = vadd.f32 %v7948_v19, %v7932_v15  ;;  %v8083_v11 = vrot.slane %v8981_v35, 4  ;;  %v7397_v53 = vmin.f32 %v7396_v42, 1.0 }
0x1217   :  { %v7963_v57 = vadd.f32 %v7947_v28, %v7931_v21  ;;  %v8034_v33 = vadd.f32 %v8033_v56, %v8032_v7 }
0x1218   :  { %v8039_v17 = vadd.f32 %v8038_v18, %v8037_v44  ;;  %v7980_v6 = vmul.f32 %v7964_v38, %v9617_v39 }
0x1219   :  { %v7979_v0 = vmul.f32 %v7963_v57, %v9619_v63  ;;  %v8058_v47 = vadd.f32 %v8034_v33, %v13103_v30 }
0x121a   :  { %v8040_v26 = vrot.slane %v8039_v17, 2  ;;  %v8045_v51 = vsel %vm973_vm4, %v7980_v6, 0.0 }
0x121b   :  { %v8044_v60 = vsel %vm971_vm3, %v7979_v0, 0.0  ;;  %8984 = vtanh.f32 %v8058_v47 }
0x121c   :  { %v8041_v62 = vadd.f32 %v8040_v26, %v8039_v17  ;;  %v8046_v9 = vadd.f32 %v8045_v51, %v8044_v60 }
0x121d   :  { %v8983_v45 = vpop.eup %8982 }
0x121e   :  { %v8042_v49 = vrot.slane %v8041_v62, 1  ;;  %v8047_v52 = vrot.slane %v8046_v9, 4  ;;  %v8081_v34 = vrot.slane %v8983_v45, 5 }
0x1220   :  { %v8043_v10 = vadd.f32 %v8042_v49, %v8041_v62  ;;  %v8048_v39 = vadd.f32 %v8047_v52, %v8046_v9  ;;  %v8082_v63 = vsel %vm1084_vm7, %v8081_v34, %v8080_v36 }
0x1221   :  { %v8084_v3 = vsel %vm1087_vm8, %v8083_v11, %v8082_v63 }
0x1222   :  { %v8059_v2 = vadd.f32 %v8043_v10, %v13103_v30  ;;  %v8049_v4 = vrot.slane %v8048_v39, 2 }
0x1224   :  { %8986 = vtanh.f32 %v8059_v2  ;;  %v8050_v48 = vadd.f32 %v8049_v4, %v8048_v39 }
0x1225   :  { %v8985_v20 = vpop.eup %8984 }
0x1226   :  { %v8051_v41 = vrot.slane %v8050_v48, 1  ;;  %v8085_v27 = vrot.slane %v8985_v20, 3 }
0x1228   :  { %v8052_v23 = vadd.f32 %v8051_v41, %v8050_v48  ;;  %v8086_v16 = vsel %vm1090_vm9, %v8085_v27, %v8084_v3 }
0x122a   :  { %v8060_v59 = vadd.f32 %v8052_v23, %v13103_v30 }
0x122c   :  { %8988 = vtanh.f32 %v8060_v59 }
0x122e   :  { %v8987_v14 = vpop.eup %8986 }
0x122f   :  { %v8087_v32 = vrot.slane %v8987_v14, 2 }
0x1231   :  { %v8088_v13 = vsel %vm1093_vm10, %v8087_v32, %v8086_v16 }
0x1236   :  { %v8989_v5 = vpop.eup %8988 }
0x1237   :  { %v8089_v24 = vrot.slane %v8989_v5, 1 }
0x1239   :  { %v8090_v50 = vsel %vm1096_vm11, %v8089_v24, %v8088_v13 }
0x123a   :  { %v8092_v30 = vmul.f32 %v8090_v50, %v7397_v53 }
0x123c   :  { %8109 = vrot.lane.b32.xlu0 %v8092_v30, %s9005_s17 }
0x12ae   :  { %v8110_v40 = vpop.permute.xlu0 %8109 }
0x12af   :  { %8587 = vmatmul.mubr.msk.f32.vlgmr.msra.gmra.mrb[16].mxu0 %vm69_vm12, %v8110_v40 }
0x1382   :  { %v8179_v25 = vpop.f32.mrb[16].mxu0 }
0x1383   :  { %v8180_v36 = vadd.f32 %v8279_v58, %v8179_v25  ;;  %v8588_v1 = vpop.f32.mrb[17].mxu0 }
0x1385   :  { %8184 = vst.msk [vmem:[%s12549_s10] sm:$0xff] %vm8183_vm13, %v8180_v36 }

</bundles_post_ra>
